<compile_context>
chip_gen: v5e
topology: v5e:2x2
jax: 0.10.0
libtpu: 0.0.40
codegen_flags: <defaults>
</compile_context>

<pallas_src>
import functools
import numpy as np

import jax
import jax.numpy as jnp
from jax.experimental import pallas as pl
from jax.experimental.pallas import tpu as pltpu

# ---------------- small config (scaled-down from the original module) ----------------
NUM_MODES = 6
T, S = 8, 5
D_TRAJ = T * S                       # 40   (orig 50*5 = 250)
D_FEAT = 64                          # orig 512
BEV_CIN, BEV_CCONV = 32, 16          # orig 256 -> 128
BEV_H, BEV_W = 8, 16                 # orig 48 x 176
D_BEV = 32                           # orig 128
MAP_P, MAP_C = 8, 16                 # orig 49 x 256
D_MAP = 32                           # orig 128
D_GATE = D_FEAT + D_BEV + D_MAP      # 128  (orig 768)
BN_EPS = 1e-5


# ---------------------------------- kernel helpers ----------------------------------
def _mish(x):
    # x * tanh(softplus(x)), numerically stable softplus; tanh/exp run on the EUP slot
    sp = jnp.maximum(x, 0.0) + jnp.log1p(jnp.exp(-jnp.abs(x)))
    return x * jnp.tanh(sp)


def _act(x, activator):
    if activator == "mish":
        return _mish(x)
    return jnp.maximum(x, 0.0)


# ------------------------------ 3-layer MLP kernel ------------------------------
def _mlp3_kernel(x_ref, w1_ref, b1_ref, w2_ref, b2_ref, w3_ref, b3_ref, o_ref, *, activator):
    h = _act(jnp.dot(x_ref[...], w1_ref[...], preferred_element_type=jnp.float32) + b1_ref[...],
             activator)
    h = _act(jnp.dot(h, w2_ref[...], preferred_element_type=jnp.float32) + b2_ref[...],
             activator)
    o_ref[...] = jnp.dot(h, w3_ref[...], preferred_element_type=jnp.float32) + b3_ref[...]


def mlp3(x, params, activator):
    w1, b1, w2, b2, w3, b3 = params
    n = x.shape[0]
    dout = w3.shape[1]
    return pl.pallas_call(
        functools.partial(_mlp3_kernel, activator=activator),
        out_shape=jax.ShapeDtypeStruct((n, dout), jnp.float32),
    )(x, w1, b1, w2, b2, w3, b3)


# ------------------- fused context kernel: bev conv + linear, map MLP -------------------
def _context_kernel(patches_t_ref, cwt_ref, cb_ref, lin_w_ref, lin_b_ref,
                    map_ref, mw1_ref, mb1_ref, mw2_ref, mb2_ref, mw3_ref, mb3_ref,
                    bev_out_ref, map_out_ref):
    # 3x3 conv + ReLU as ONE matmul on the pre-built (9*Cin, H*W) im2col slab.
    # Output kept channel-major (Cout, H*W) so the flatten+Linear can be realised as a short
    # unrolled sum of per-channel matmuls (avoids an in-kernel minor-dim reshape / relayout).
    conv = jnp.maximum(
        jnp.dot(cwt_ref[...], patches_t_ref[...], preferred_element_type=jnp.float32)
        + cb_ref[...], 0.0)                                        # (Cout, H*W)
    acc = lin_b_ref[...]                                           # (1, D_BEV)
    for c in range(conv.shape[0]):                                 # Cout = 16, static unroll
        acc = acc + jnp.dot(conv[c:c + 1, :], lin_w_ref[c],
                            preferred_element_type=jnp.float32)
    bev_out_ref[...] = acc

    # ego map encoder (3-layer mish MLP) fused into the same launch
    h = _mish(jnp.dot(map_ref[...], mw1_ref[...], preferred_element_type=jnp.float32)
              + mb1_ref[...])
    h = _mish(jnp.dot(h, mw2_ref[...], preferred_element_type=jnp.float32) + mb2_ref[...])
    map_out_ref[...] = jnp.dot(h, mw3_ref[...], preferred_element_type=jnp.float32) + mb3_ref[...]


def context_encode(bev_nchw, ego_map, ego_mask, params):
    """bev_features (1, Cin, H, W) -> (1, D_BEV); ego map rows -> (n_ego, D_MAP)."""
    p = params["bev"]
    x = jnp.transpose(bev_nchw[0], (1, 2, 0))                      # (H, W, Cin) channels-last
    H, W, cin = x.shape
    xpad = jnp.pad(x, ((1, 1), (1, 1), (0, 0)))                    # padding=1
    # wrapper-side im2col (XLA glue), transposed so the kernel conv output is channel-major
    pats = [xpad[dh:dh + H, dw:dw + W, :] for dh in range(3) for dw in range(3)]
    patches = jnp.concatenate(pats, axis=-1).reshape(H * W, 9 * cin)   # (H*W, 9*Cin), (dh,dw,cin)
    patches_t = patches.T                                          # (9*Cin, H*W)

    cout = p["conv_w"].shape[-1]
    cw_t = p["conv_w"].reshape(9 * cin, cout).T                    # (Cout, 9*Cin)
    cb = p["conv_b"].reshape(cout, 1)
    d_bev = p["lin_w"].shape[-1]
    # (H*W*Cconv, D_BEV) with (h,w,c) flatten order -> (Cout, H*W, D_BEV) for per-channel use
    lin_w3 = p["lin_w"].reshape(H * W, cout, d_bev).transpose(1, 0, 2)

    masked_map = (ego_map * ego_mask[..., None].astype(ego_map.dtype)
                  ).reshape(ego_map.shape[0], -1)                  # (n_ego, MAP_P*MAP_C)
    mw1, mb1, mw2, mb2, mw3, mb3 = params["map_enc"]

    bev_emb, map_emb = pl.pallas_call(
        _context_kernel,
        out_shape=(jax.ShapeDtypeStruct((1, d_bev), jnp.float32),
                   jax.ShapeDtypeStruct((ego_map.shape[0], mw3.shape[1]), jnp.float32)),
    )(patches_t, cw_t, cb, lin_w3, p["lin_b"],
      masked_map, mw1, mb1, mw2, mb2, mw3, mb3)
    return bev_emb, map_emb


# ----- fused MOE kernel: masked BN + 6-mode gating + softmax-weighted aggregation + score +
# ----- trajectory decoding, one grid step per ego object --------------------------------
def _moe_score_traj_kernel(nvalid_ref,                       # scalar-prefetch SMEM (n_ego,)
                           emb_ref, gamma_ref, beta_ref,
                           w1_ref, b1_ref, w2_ref, b2_ref, w3_ref, b3_ref,
                           sw1_ref, sb1_ref, sw2_ref, sb2_ref, sw3_ref, sb3_ref,
                           tw1_ref, tb1_ref, tw2_ref, tb2_ref, tw3_ref, tb3_ref,
                           trajs_ref, scores_ref):
    i = pl.program_id(0)
    num_modes, d_gate = w2_ref.shape[0], w2_ref.shape[1]

    agt = emb_ref[0]                                         # (Nmax, Df) raw agent embeddings
    n_max = agt.shape[0]
    nv = nvalid_ref[i]                                       # valid (CAV, mode) row count

    row = jax.lax.broadcasted_iota(jnp.int32, (n_max, 1), 0)
    valid = row < nv                                         # (Nmax, 1)
    inv_cnt = 1.0 / nv.astype(jnp.float32)

    # training-mode BatchNorm1d over valid rows only (padded rows excluded from the stats)
    agt_v = jnp.where(valid, agt, 0.0)
    mu = jnp.sum(agt_v, axis=0, keepdims=True) * inv_cnt
    diff = jnp.where(valid, agt - mu, 0.0)
    var = jnp.sum(diff * diff, axis=0, keepdims=True) * inv_cnt            # biased variance
    agt_bn = (agt - mu) * jax.lax.rsqrt(var + BN_EPS) * gamma_ref[...] + beta_ref[...]

    # gating layer 1 for all 6 modes at once; bev/map train-mode BN of repeated rows == beta,
    # already folded into b1 (so the bev/map partial matmuls are gone).
    h1 = _mish(jnp.dot(agt_bn, w1_ref[...], preferred_element_type=jnp.float32) + b1_ref[...])

    b2 = b2_ref[...]
    w3 = w3_ref[...]
    b3 = b3_ref[...]
    combined_rows = []
    for m in range(num_modes):                               # short static unroll over modes
        h2 = _mish(jnp.dot(h1[:, m * d_gate:(m + 1) * d_gate], w2_ref[m],
                           preferred_element_type=jnp.float32) + b2[m:m + 1, :])
        # width-1 gate head as a VPU reduction (avoids a 1-lane MXU matmul)
        g = jnp.sum(h2 * w3[m:m + 1, :], axis=-1, keepdims=True) + b3[:, m:m + 1]   # (Nmax, 1)
        # masked softmax over the prediction axis (dim 0)
        g = jnp.where(valid, g, jnp.float32(-1e30))
        e = jnp.where(valid, jnp.exp(g - jnp.max(g, axis=0, keepdims=True)), 0.0)
        wgt = e * pl.reciprocal(jnp.sum(e, axis=0, keepdims=True), approx=True)
        # softmax-weighted sum of the RAW agent embeddings
        combined_rows.append(jnp.sum(wgt * agt, axis=0, keepdims=True))             # (1, Df)
    combined = jnp.concatenate(combined_rows, axis=0)                               # (M, Df)

    # score estimator on the mode-major flatten of `combined` (layer 1 as per-mode partials)
    acc = sb1_ref[...]
    for m in range(num_modes):
        acc = acc + jnp.dot(combined[m:m + 1, :], sw1_ref[m],
                            preferred_element_type=jnp.float32)
    sh = _mish(acc)
    sh = _mish(jnp.dot(sh, sw2_ref[...], preferred_element_type=jnp.float32) + sb2_ref[...])
    scores = jnp.dot(sh, sw3_ref[...], preferred_element_type=jnp.float32) + sb3_ref[...]
    scores_ref[...] = scores[None]                                                  # (1, 1, M)

    # trajectory decoder on the per-mode aggregated embeddings
    th = _mish(jnp.dot(combined, tw1_ref[...], preferred_element_type=jnp.float32) + tb1_ref[...])
    th = _mish(jnp.dot(th, tw2_ref[...], preferred_element_type=jnp.float32) + tb2_ref[...])
    tr = jnp.dot(th, tw3_ref[...], preferred_element_type=jnp.float32) + tb3_ref[...]
    trajs_ref[...] = tr[None]                                                       # (1, M, T*S)


def moe_score_traj(emb_pad, nvalid, params):
    """emb_pad (n_ego, Kmax*M, D_FEAT), nvalid (n_ego,) int32 -> trajs (n_ego, M, T*S),
    scores (n_ego, M)."""
    n_ego, n_max, df = emb_pad.shape
    m, dg = NUM_MODES, D_GATE
    mdf = m * df

    # pack gate parameters; fold the degenerate bev/map BN (== beta exactly in training mode,
    # because the rows are identical repeats) into the layer-1 bias.
    gw1, gb1 = params["gw1"], params["gb1"]
    w1_agt = gw1[:, :D_FEAT, :]                                       # (M, Df, Dg)
    b1_eff = (gb1[:, 0, :]
              + jnp.einsum("d,mdg->mg", params["bev_beta"][0], gw1[:, D_FEAT:D_FEAT + D_BEV, :])
              + jnp.einsum("d,mdg->mg", params["map_beta"][0], gw1[:, D_FEAT + D_BEV:, :]))
    w1_all = jnp.transpose(w1_agt, (1, 0, 2)).reshape(df, m * dg)      # (Df, M*Dg)
    b1_all = b1_eff.reshape(1, m * dg)
    w2 = params["gw2"]                                                 # (M, Dg, Dg)
    b2 = params["gb2"].reshape(m, dg)
    w3 = params["gw3"].reshape(m, dg)
    b3 = params["gb3"].reshape(1, m)

    sw1, sb1, sw2, sb2, sw3, sb3 = params["score"]
    sw1 = sw1.reshape(m, df, mdf)                                      # mode-major flatten rows
    tw1, tb1, tw2, tb2, tw3, tb3 = params["traj_dec"]
    ts = tw3.shape[1]

    grid_spec = pltpu.PrefetchScalarGridSpec(
        num_scalar_prefetch=1,
        grid=(n_ego,),
        in_specs=[
            pl.BlockSpec((1, n_max, df), lambda i, *_: (i, 0, 0)),     # per-object agent block
            pl.BlockSpec((1, df), lambda i, *_: (0, 0)),               # agt_gamma
            pl.BlockSpec((1, df), lambda i, *_: (0, 0)),               # agt_beta
            pl.BlockSpec((df, m * dg), lambda i, *_: (0, 0)),          # gate W1 (agent part)
            pl.BlockSpec((1, m * dg), lambda i, *_: (0, 0)),           # gate b1 (beta folded)
            pl.BlockSpec((m, dg, dg), lambda i, *_: (0, 0, 0)),        # gate W2 per mode
            pl.BlockSpec((m, dg), lambda i, *_: (0, 0)),               # gate b2
            pl.BlockSpec((m, dg), lambda i, *_: (0, 0)),               # gate w3 rows
            pl.BlockSpec((1, m), lambda i, *_: (0, 0)),                # gate b3
            pl.BlockSpec((m, df, mdf), lambda i, *_: (0, 0, 0)),       # score W1 per mode
            pl.BlockSpec((1, mdf), lambda i, *_: (0, 0)),
            pl.BlockSpec((mdf, mdf), lambda i, *_: (0, 0)),
            pl.BlockSpec((1, mdf), lambda i, *_: (0, 0)),
            pl.BlockSpec((mdf, m), lambda i, *_: (0, 0)),
            pl.BlockSpec((1, m), lambda i, *_: (0, 0)),
            pl.BlockSpec((df, df), lambda i, *_: (0, 0)),              # traj decoder
            pl.BlockSpec((1, df), lambda i, *_: (0, 0)),
            pl.BlockSpec((df, df), lambda i, *_: (0, 0)),
            pl.BlockSpec((1, df), lambda i, *_: (0, 0)),
            pl.BlockSpec((df, ts), lambda i, *_: (0, 0)),
            pl.BlockSpec((1, ts), lambda i, *_: (0, 0)),
        ],
        out_specs=[
            pl.BlockSpec((1, m, ts), lambda i, *_: (i, 0, 0)),
            pl.BlockSpec((1, 1, m), lambda i, *_: (i, 0, 0)),
        ],
    )
    trajs, scores = pl.pallas_call(
        _moe_score_traj_kernel,
        grid_spec=grid_spec,
        out_shape=(jax.ShapeDtypeStruct((n_ego, m, ts), jnp.float32),
                   jax.ShapeDtypeStruct((n_ego, 1, m), jnp.float32)),
        compiler_params=pltpu.CompilerParams(dimension_semantics=("parallel",)),
    )(nvalid, emb_pad, params["agt_gamma"], params["agt_beta"],
      w1_all, b1_all, w2, b2, w3, b3,
      sw1, sb1, sw2, sb2, sw3, sb3,
      tw1, tb1, tw2, tb2, tw3, tb3)
    return trajs, scores[:, 0, :]


# ---------------------------------- parameters ----------------------------------
def _dense(key, din, dout, scale=0.05):
    kw, kb = jax.random.split(key)
    return (scale * jax.random.normal(kw, (din, dout), jnp.float32),
            scale * jax.random.normal(kb, (1, dout), jnp.float32))


def _mlp3_params(key, din, dout):
    k1, k2, k3 = jax.random.split(key, 3)
    w1, b1 = _dense(k1, din, din)
    w2, b2 = _dense(k2, din, din)
    w3, b3 = _dense(k3, din, dout)
    return (w1, b1, w2, b2, w3, b3)


def init_params(key):
    ks = jax.random.split(key, 8)
    p = {}
    p["feat_enc"] = _mlp3_params(ks[0], D_TRAJ, D_FEAT)
    p["map_enc"] = _mlp3_params(ks[1], MAP_P * MAP_C, D_MAP)
    p["traj_dec"] = _mlp3_params(ks[2], D_FEAT, D_TRAJ)
    p["score"] = _mlp3_params(ks[3], NUM_MODES * D_FEAT, NUM_MODES)

    kc, kcb, kl, klb = jax.random.split(ks[4], 4)
    p["bev"] = dict(
        conv_w=0.05 * jax.random.normal(kc, (3, 3, BEV_CIN, BEV_CCONV), jnp.float32),
        conv_b=0.05 * jax.random.normal(kcb, (1, BEV_CCONV), jnp.float32),
        lin_w=0.02 * jax.random.normal(kl, (BEV_H * BEV_W * BEV_CCONV, D_BEV), jnp.float32),
        lin_b=0.02 * jax.random.normal(klb, (1, D_BEV), jnp.float32),
    )

    kbn = jax.random.split(ks[5], 6)
    p["agt_gamma"] = 1.0 + 0.1 * jax.random.normal(kbn[0], (1, D_FEAT), jnp.float32)
    p["agt_beta"] = 0.1 * jax.random.normal(kbn[1], (1, D_FEAT), jnp.float32)
    p["bev_gamma"] = 1.0 + 0.1 * jax.random.normal(kbn[2], (1, D_BEV), jnp.float32)
    p["bev_beta"] = 0.1 * jax.random.normal(kbn[3], (1, D_BEV), jnp.float32)
    p["map_gamma"] = 1.0 + 0.1 * jax.random.normal(kbn[4], (1, D_MAP), jnp.float32)
    p["map_beta"] = 0.1 * jax.random.normal(kbn[5], (1, D_MAP), jnp.float32)

    gw1, gb1, gw2, gb2, gw3, gb3 = [], [], [], [], [], []
    for m in range(NUM_MODES):
        w1, b1, w2, b2, w3, b3 = _mlp3_params(jax.random.fold_in(ks[6], m), D_GATE, 1)
        gw1.append(w1); gb1.append(b1); gw2.append(w2)
        gb2.append(b2); gw3.append(w3); gb3.append(b3)
    p["gw1"], p["gb1"] = jnp.stack(gw1), jnp.stack(gb1)
    p["gw2"], p["gb2"] = jnp.stack(gw2), jnp.stack(gb2)
    p["gw3"], p["gb3"] = jnp.stack(gw3), jnp.stack(gb3)
    return p


# ---------------------------------- forward pass ----------------------------------
def _build_gather_indices(center_ids, num_modes):
    """Host-side glue: torch's dict-based grouping of predictions by center-object id,
    expressed as a padded gather-index table + per-object valid row counts."""
    counts = [len(np.asarray(ids)) * num_modes for ids in center_ids]
    offsets = np.concatenate([[0], np.cumsum(counts)[:-1]]).astype(np.int64)
    ego_ids = np.asarray(center_ids[0]).tolist()
    per_obj = []
    for oid in ego_ids:
        rows = []
        for c, ids in enumerate(center_ids):
            ids_l = np.asarray(ids).tolist()
            if oid in ids_l:
                j = ids_l.index(oid)
                rows.extend(int(offsets[c]) + j * num_modes + mm for mm in range(num_modes))
        per_obj.append(rows)
    kmax = max(len(r) for r in per_obj)
    idx = np.zeros((len(ego_ids), kmax), np.int32)
    nvalid = np.zeros((len(ego_ids),), np.int32)
    for i, rows in enumerate(per_obj):
        idx[i, :len(rows)] = np.asarray(rows, np.int32)
        nvalid[i] = len(rows)
    return jnp.asarray(idx), jnp.asarray(nvalid)


@jax.jit
def _forward_core(params, traj_list, bev_nchw, ego_map, ego_mask, idx_pad, nvalid):
    m = NUM_MODES
    # 1) trajectory feature encoder over ALL CAVs' rows in ONE launch
    flat = jnp.concatenate([f.reshape(f.shape[0] * m, -1) for f in traj_list], axis=0)
    emb_all = mlp3(flat, params["feat_enc"], "mish")                 # (sum_i n_i*M, D_FEAT)

    # 2) fused side-encoders (bev conv+flatten+linear, ego map MLP). Their outputs feed the
    #    gating only through a training-mode BN of identical repeated rows, which collapses
    #    exactly to beta and is folded into the gate bias inside moe_score_traj.
    bev_emb, map_emb = context_encode(bev_nchw, ego_map, ego_mask, params)

    # 3) gather padded per-object agent embeddings (XLA gather glue)
    emb_pad = jnp.take(emb_all, idx_pad, axis=0)                     # (n_ego, Kmax*M, D_FEAT)

    # 4) fused MOE gating + aggregation + score estimator + trajectory decoder
    trajs, scores = moe_score_traj(emb_pad, nvalid, params)
    return trajs, scores, bev_emb, map_emb


def motion_aggregator_moev5_forward(params, features_to_aggregate, pred_scores, bev_features,
                                    batch_sample_count, center_objects_id_to_aggregate,
                                    map_polylines_feature, map_valid_mask, map_polylines_center):
    del pred_scores, batch_sample_count, map_polylines_center        # unused by the torch forward
    n_ego, m, t_, s_ = features_to_aggregate[0].shape
    assert m == NUM_MODES

    # host-side grouping of predictions by center-object id (pure python/numpy glue)
    idx_pad, nvalid = _build_gather_indices(center_objects_id_to_aggregate, m)

    trajs, scores, _bev_emb, _map_emb = _forward_core(
        params, list(features_to_aggregate), bev_features,
        map_polylines_feature[0], map_valid_mask[0], idx_pad, nvalid)
    return trajs.reshape(n_ego, m, t_, s_), scores


# --------------------------------------- main ---------------------------------------
if __name__ == "__main__":
    root = jax.random.PRNGKey(0)
    kparam, kdata = jax.random.split(root)
    params = init_params(kparam)

    kd = jax.random.split(kdata, 8)
    # CAV 0 (ego) observes objects [10, 11, 12]; CAV 1 observes [11, 13].
    feats0 = jax.random.normal(kd[0], (3, NUM_MODES, T, S), jnp.float32)
    feats1 = jax.random.normal(kd[1], (2, NUM_MODES, T, S), jnp.float32)
    features_to_aggregate = [feats0, feats1]
    pred_scores = [jax.random.normal(kd[2], (3, NUM_MODES), jnp.float32),
                   jax.random.normal(kd[2], (2, NUM_MODES), jnp.float32)]
    bev_features = jax.random.normal(kd[3], (1, BEV_CIN, BEV_H, BEV_W), jnp.float32)   # NCHW
    center_objects_id_to_aggregate = [np.array([10, 11, 12]), np.array([11, 13])]
    map_polylines_feature = [jax.random.normal(kd[4], (3, MAP_P, MAP_C), jnp.float32),
                             jax.random.normal(kd[5], (2, MAP_P, MAP_C), jnp.float32)]
    map_valid_mask = [(jax.random.uniform(kd[6], (3, MAP_P)) < 0.8).astype(jnp.float32),
                      (jax.random.uniform(kd[7], (2, MAP_P)) < 0.8).astype(jnp.float32)]
    map_polylines_center = [jnp.zeros((3, MAP_P, 3), jnp.float32),
                            jnp.zeros((2, MAP_P, 3), jnp.float32)]

    trajs, scores = motion_aggregator_moev5_forward(
        params, features_to_aggregate, pred_scores, bev_features,
        batch_sample_count=3,
        center_objects_id_to_aggregate=center_objects_id_to_aggregate,
        map_polylines_feature=map_polylines_feature,
        map_valid_mask=map_valid_mask,
        map_polylines_center=map_polylines_center)
    trajs, scores = jax.block_until_ready((trajs, scores))

    assert trajs.shape == (3, NUM_MODES, T, S)
    assert scores.shape == (3, NUM_MODES)
    assert bool(jnp.all(jnp.isfinite(trajs))) and bool(jnp.all(jnp.isfinite(scores)))
    print("KERNEL_OK")
</pallas_src>

<mosaic_0001>
module attributes {stable_mosaic.version = 11 : i64} {
  func.func @_context_kernel(%arg0: memref<288x128xf32, #tpu.memory_space<vmem>>, %arg1: memref<16x288xf32, #tpu.memory_space<vmem>>, %arg2: memref<16x1xf32, #tpu.memory_space<vmem>>, %arg3: memref<16x128x32xf32, #tpu.memory_space<vmem>>, %arg4: memref<1x32xf32, #tpu.memory_space<vmem>>, %arg5: memref<3x128xf32, #tpu.memory_space<vmem>>, %arg6: memref<128x128xf32, #tpu.memory_space<vmem>>, %arg7: memref<1x128xf32, #tpu.memory_space<vmem>>, %arg8: memref<128x128xf32, #tpu.memory_space<vmem>>, %arg9: memref<1x128xf32, #tpu.memory_space<vmem>>, %arg10: memref<128x32xf32, #tpu.memory_space<vmem>>, %arg11: memref<1x32xf32, #tpu.memory_space<vmem>>, %arg12: memref<1x32xf32, #tpu.memory_space<vmem>>, %arg13: memref<3x32xf32, #tpu.memory_space<vmem>>) attributes {dimension_semantics = [], scalar_prefetch = 0 : i64, scratch_operands = 0 : i64, tpu.core_type = #tpu.core_type<tc>} {
    %c0 = arith.constant 0 : index
    %c0_0 = arith.constant 0 : index
    %0 = vector.load %arg1[%c0, %c0_0] : memref<16x288xf32, #tpu.memory_space<vmem>>, vector<16x288xf32>
    %c0_1 = arith.constant 0 : index
    %c0_2 = arith.constant 0 : index
    %1 = vector.load %arg0[%c0_1, %c0_2] : memref<288x128xf32, #tpu.memory_space<vmem>>, vector<288x128xf32>
    %cst = arith.constant dense<0.000000e+00> : vector<16x128xf32>
    %2 = tpu.matmul %0, %1, %cst {dimension_numbers = #tpu.dot_dimension_numbers<[1], [0], [0], [1], [0, 0, 1, 1], [], []>} : vector<16x288xf32>, vector<288x128xf32>, vector<16x128xf32> -> vector<16x128xf32>
    %c0_3 = arith.constant 0 : index
    %c0_4 = arith.constant 0 : index
    %3 = vector.load %arg2[%c0_3, %c0_4] : memref<16x1xf32, #tpu.memory_space<vmem>>, vector<16x1xf32>
    %4 = vector.broadcast %3 : vector<16x1xf32> to vector<16x128xf32>
    %5 = arith.addf %2, %4 : vector<16x128xf32>
    %cst_5 = arith.constant 0.000000e+00 : f32
    %6 = vector.broadcast %cst_5 : f32 to vector<16x128xf32>
    %7 = arith.maximumf %5, %6 : vector<16x128xf32>
    %c0_6 = arith.constant 0 : index
    %c0_7 = arith.constant 0 : index
    %8 = vector.load %arg4[%c0_6, %c0_7] : memref<1x32xf32, #tpu.memory_space<vmem>>, vector<1x32xf32>
    %9 = vector.extract_strided_slice %7 {offsets = [0, 0], sizes = [1, 128], strides = [1, 1]} : vector<16x128xf32> to vector<1x128xf32>
    %c0_8 = arith.constant 0 : index
    %c0_9 = arith.constant 0 : index
    %c0_10 = arith.constant 0 : index
    %10 = vector.load %arg3[%c0_8, %c0_9, %c0_10] : memref<16x128x32xf32, #tpu.memory_space<vmem>>, vector<1x128x32xf32>
    %11 = vector.shape_cast %10 : vector<1x128x32xf32> to vector<128x32xf32>
    %cst_11 = arith.constant dense<0.000000e+00> : vector<1x32xf32>
    %12 = tpu.matmul %9, %11, %cst_11 {dimension_numbers = #tpu.dot_dimension_numbers<[1], [0], [0], [1], [0, 0, 1, 1], [], []>} : vector<1x128xf32>, vector<128x32xf32>, vector<1x32xf32> -> vector<1x32xf32>
    %13 = arith.addf %8, %12 : vector<1x32xf32>
    %14 = vector.extract_strided_slice %7 {offsets = [1, 0], sizes = [1, 128], strides = [1, 1]} : vector<16x128xf32> to vector<1x128xf32>
    %c1 = arith.constant 1 : index
    %c0_12 = arith.constant 0 : index
    %c0_13 = arith.constant 0 : index
    %15 = vector.load %arg3[%c1, %c0_12, %c0_13] : memref<16x128x32xf32, #tpu.memory_space<vmem>>, vector<1x128x32xf32>
    %16 = vector.shape_cast %15 : vector<1x128x32xf32> to vector<128x32xf32>
    %cst_14 = arith.constant dense<0.000000e+00> : vector<1x32xf32>
    %17 = tpu.matmul %14, %16, %cst_14 {dimension_numbers = #tpu.dot_dimension_numbers<[1], [0], [0], [1], [0, 0, 1, 1], [], []>} : vector<1x128xf32>, vector<128x32xf32>, vector<1x32xf32> -> vector<1x32xf32>
    %18 = arith.addf %13, %17 : vector<1x32xf32>
    %19 = vector.extract_strided_slice %7 {offsets = [2, 0], sizes = [1, 128], strides = [1, 1]} : vector<16x128xf32> to vector<1x128xf32>
    %c2 = arith.constant 2 : index
    %c0_15 = arith.constant 0 : index
    %c0_16 = arith.constant 0 : index
    %20 = vector.load %arg3[%c2, %c0_15, %c0_16] : memref<16x128x32xf32, #tpu.memory_space<vmem>>, vector<1x128x32xf32>
    %21 = vector.shape_cast %20 : vector<1x128x32xf32> to vector<128x32xf32>
    %cst_17 = arith.constant dense<0.000000e+00> : vector<1x32xf32>
    %22 = tpu.matmul %19, %21, %cst_17 {dimension_numbers = #tpu.dot_dimension_numbers<[1], [0], [0], [1], [0, 0, 1, 1], [], []>} : vector<1x128xf32>, vector<128x32xf32>, vector<1x32xf32> -> vector<1x32xf32>
    %23 = arith.addf %18, %22 : vector<1x32xf32>
    %24 = vector.extract_strided_slice %7 {offsets = [3, 0], sizes = [1, 128], strides = [1, 1]} : vector<16x128xf32> to vector<1x128xf32>
    %c3 = arith.constant 3 : index
    %c0_18 = arith.constant 0 : index
    %c0_19 = arith.constant 0 : index
    %25 = vector.load %arg3[%c3, %c0_18, %c0_19] : memref<16x128x32xf32, #tpu.memory_space<vmem>>, vector<1x128x32xf32>
    %26 = vector.shape_cast %25 : vector<1x128x32xf32> to vector<128x32xf32>
    %cst_20 = arith.constant dense<0.000000e+00> : vector<1x32xf32>
    %27 = tpu.matmul %24, %26, %cst_20 {dimension_numbers = #tpu.dot_dimension_numbers<[1], [0], [0], [1], [0, 0, 1, 1], [], []>} : vector<1x128xf32>, vector<128x32xf32>, vector<1x32xf32> -> vector<1x32xf32>
    %28 = arith.addf %23, %27 : vector<1x32xf32>
    %29 = vector.extract_strided_slice %7 {offsets = [4, 0], sizes = [1, 128], strides = [1, 1]} : vector<16x128xf32> to vector<1x128xf32>
    %c4 = arith.constant 4 : index
    %c0_21 = arith.constant 0 : index
    %c0_22 = arith.constant 0 : index
    %30 = vector.load %arg3[%c4, %c0_21, %c0_22] : memref<16x128x32xf32, #tpu.memory_space<vmem>>, vector<1x128x32xf32>
    %31 = vector.shape_cast %30 : vector<1x128x32xf32> to vector<128x32xf32>
    %cst_23 = arith.constant dense<0.000000e+00> : vector<1x32xf32>
    %32 = tpu.matmul %29, %31, %cst_23 {dimension_numbers = #tpu.dot_dimension_numbers<[1], [0], [0], [1], [0, 0, 1, 1], [], []>} : vector<1x128xf32>, vector<128x32xf32>, vector<1x32xf32> -> vector<1x32xf32>
    %33 = arith.addf %28, %32 : vector<1x32xf32>
    %34 = vector.extract_strided_slice %7 {offsets = [5, 0], sizes = [1, 128], strides = [1, 1]} : vector<16x128xf32> to vector<1x128xf32>
    %c5 = arith.constant 5 : index
    %c0_24 = arith.constant 0 : index
    %c0_25 = arith.constant 0 : index
    %35 = vector.load %arg3[%c5, %c0_24, %c0_25] : memref<16x128x32xf32, #tpu.memory_space<vmem>>, vector<1x128x32xf32>
    %36 = vector.shape_cast %35 : vector<1x128x32xf32> to vector<128x32xf32>
    %cst_26 = arith.constant dense<0.000000e+00> : vector<1x32xf32>
    %37 = tpu.matmul %34, %36, %cst_26 {dimension_numbers = #tpu.dot_dimension_numbers<[1], [0], [0], [1], [0, 0, 1, 1], [], []>} : vector<1x128xf32>, vector<128x32xf32>, vector<1x32xf32> -> vector<1x32xf32>
    %38 = arith.addf %33, %37 : vector<1x32xf32>
    %39 = vector.extract_strided_slice %7 {offsets = [6, 0], sizes = [1, 128], strides = [1, 1]} : vector<16x128xf32> to vector<1x128xf32>
    %c6 = arith.constant 6 : index
    %c0_27 = arith.constant 0 : index
    %c0_28 = arith.constant 0 : index
    %40 = vector.load %arg3[%c6, %c0_27, %c0_28] : memref<16x128x32xf32, #tpu.memory_space<vmem>>, vector<1x128x32xf32>
    %41 = vector.shape_cast %40 : vector<1x128x32xf32> to vector<128x32xf32>
    %cst_29 = arith.constant dense<0.000000e+00> : vector<1x32xf32>
    %42 = tpu.matmul %39, %41, %cst_29 {dimension_numbers = #tpu.dot_dimension_numbers<[1], [0], [0], [1], [0, 0, 1, 1], [], []>} : vector<1x128xf32>, vector<128x32xf32>, vector<1x32xf32> -> vector<1x32xf32>
    %43 = arith.addf %38, %42 : vector<1x32xf32>
    %44 = vector.extract_strided_slice %7 {offsets = [7, 0], sizes = [1, 128], strides = [1, 1]} : vector<16x128xf32> to vector<1x128xf32>
    %c7 = arith.constant 7 : index
    %c0_30 = arith.constant 0 : index
    %c0_31 = arith.constant 0 : index
    %45 = vector.load %arg3[%c7, %c0_30, %c0_31] : memref<16x128x32xf32, #tpu.memory_space<vmem>>, vector<1x128x32xf32>
    %46 = vector.shape_cast %45 : vector<1x128x32xf32> to vector<128x32xf32>
    %cst_32 = arith.constant dense<0.000000e+00> : vector<1x32xf32>
    %47 = tpu.matmul %44, %46, %cst_32 {dimension_numbers = #tpu.dot_dimension_numbers<[1], [0], [0], [1], [0, 0, 1, 1], [], []>} : vector<1x128xf32>, vector<128x32xf32>, vector<1x32xf32> -> vector<1x32xf32>
    %48 = arith.addf %43, %47 : vector<1x32xf32>
    %49 = vector.extract_strided_slice %7 {offsets = [8, 0], sizes = [1, 128], strides = [1, 1]} : vector<16x128xf32> to vector<1x128xf32>
    %c8 = arith.constant 8 : index
    %c0_33 = arith.constant 0 : index
    %c0_34 = arith.constant 0 : index
    %50 = vector.load %arg3[%c8, %c0_33, %c0_34] : memref<16x128x32xf32, #tpu.memory_space<vmem>>, vector<1x128x32xf32>
    %51 = vector.shape_cast %50 : vector<1x128x32xf32> to vector<128x32xf32>
    %cst_35 = arith.constant dense<0.000000e+00> : vector<1x32xf32>
    %52 = tpu.matmul %49, %51, %cst_35 {dimension_numbers = #tpu.dot_dimension_numbers<[1], [0], [0], [1], [0, 0, 1, 1], [], []>} : vector<1x128xf32>, vector<128x32xf32>, vector<1x32xf32> -> vector<1x32xf32>
    %53 = arith.addf %48, %52 : vector<1x32xf32>
    %54 = vector.extract_strided_slice %7 {offsets = [9, 0], sizes = [1, 128], strides = [1, 1]} : vector<16x128xf32> to vector<1x128xf32>
    %c9 = arith.constant 9 : index
    %c0_36 = arith.constant 0 : index
    %c0_37 = arith.constant 0 : index
    %55 = vector.load %arg3[%c9, %c0_36, %c0_37] : memref<16x128x32xf32, #tpu.memory_space<vmem>>, vector<1x128x32xf32>
    %56 = vector.shape_cast %55 : vector<1x128x32xf32> to vector<128x32xf32>
    %cst_38 = arith.constant dense<0.000000e+00> : vector<1x32xf32>
    %57 = tpu.matmul %54, %56, %cst_38 {dimension_numbers = #tpu.dot_dimension_numbers<[1], [0], [0], [1], [0, 0, 1, 1], [], []>} : vector<1x128xf32>, vector<128x32xf32>, vector<1x32xf32> -> vector<1x32xf32>
    %58 = arith.addf %53, %57 : vector<1x32xf32>
    %59 = vector.extract_strided_slice %7 {offsets = [10, 0], sizes = [1, 128], strides = [1, 1]} : vector<16x128xf32> to vector<1x128xf32>
    %c10 = arith.constant 10 : index
    %c0_39 = arith.constant 0 : index
    %c0_40 = arith.constant 0 : index
    %60 = vector.load %arg3[%c10, %c0_39, %c0_40] : memref<16x128x32xf32, #tpu.memory_space<vmem>>, vector<1x128x32xf32>
    %61 = vector.shape_cast %60 : vector<1x128x32xf32> to vector<128x32xf32>
    %cst_41 = arith.constant dense<0.000000e+00> : vector<1x32xf32>
    %62 = tpu.matmul %59, %61, %cst_41 {dimension_numbers = #tpu.dot_dimension_numbers<[1], [0], [0], [1], [0, 0, 1, 1], [], []>} : vector<1x128xf32>, vector<128x32xf32>, vector<1x32xf32> -> vector<1x32xf32>
    %63 = arith.addf %58, %62 : vector<1x32xf32>
    %64 = vector.extract_strided_slice %7 {offsets = [11, 0], sizes = [1, 128], strides = [1, 1]} : vector<16x128xf32> to vector<1x128xf32>
    %c11 = arith.constant 11 : index
    %c0_42 = arith.constant 0 : index
    %c0_43 = arith.constant 0 : index
    %65 = vector.load %arg3[%c11, %c0_42, %c0_43] : memref<16x128x32xf32, #tpu.memory_space<vmem>>, vector<1x128x32xf32>
    %66 = vector.shape_cast %65 : vector<1x128x32xf32> to vector<128x32xf32>
    %cst_44 = arith.constant dense<0.000000e+00> : vector<1x32xf32>
    %67 = tpu.matmul %64, %66, %cst_44 {dimension_numbers = #tpu.dot_dimension_numbers<[1], [0], [0], [1], [0, 0, 1, 1], [], []>} : vector<1x128xf32>, vector<128x32xf32>, vector<1x32xf32> -> vector<1x32xf32>
    %68 = arith.addf %63, %67 : vector<1x32xf32>
    %69 = vector.extract_strided_slice %7 {offsets = [12, 0], sizes = [1, 128], strides = [1, 1]} : vector<16x128xf32> to vector<1x128xf32>
    %c12 = arith.constant 12 : index
    %c0_45 = arith.constant 0 : index
    %c0_46 = arith.constant 0 : index
    %70 = vector.load %arg3[%c12, %c0_45, %c0_46] : memref<16x128x32xf32, #tpu.memory_space<vmem>>, vector<1x128x32xf32>
    %71 = vector.shape_cast %70 : vector<1x128x32xf32> to vector<128x32xf32>
    %cst_47 = arith.constant dense<0.000000e+00> : vector<1x32xf32>
    %72 = tpu.matmul %69, %71, %cst_47 {dimension_numbers = #tpu.dot_dimension_numbers<[1], [0], [0], [1], [0, 0, 1, 1], [], []>} : vector<1x128xf32>, vector<128x32xf32>, vector<1x32xf32> -> vector<1x32xf32>
    %73 = arith.addf %68, %72 : vector<1x32xf32>
    %74 = vector.extract_strided_slice %7 {offsets = [13, 0], sizes = [1, 128], strides = [1, 1]} : vector<16x128xf32> to vector<1x128xf32>
    %c13 = arith.constant 13 : index
    %c0_48 = arith.constant 0 : index
    %c0_49 = arith.constant 0 : index
    %75 = vector.load %arg3[%c13, %c0_48, %c0_49] : memref<16x128x32xf32, #tpu.memory_space<vmem>>, vector<1x128x32xf32>
    %76 = vector.shape_cast %75 : vector<1x128x32xf32> to vector<128x32xf32>
    %cst_50 = arith.constant dense<0.000000e+00> : vector<1x32xf32>
    %77 = tpu.matmul %74, %76, %cst_50 {dimension_numbers = #tpu.dot_dimension_numbers<[1], [0], [0], [1], [0, 0, 1, 1], [], []>} : vector<1x128xf32>, vector<128x32xf32>, vector<1x32xf32> -> vector<1x32xf32>
    %78 = arith.addf %73, %77 : vector<1x32xf32>
    %79 = vector.extract_strided_slice %7 {offsets = [14, 0], sizes = [1, 128], strides = [1, 1]} : vector<16x128xf32> to vector<1x128xf32>
    %c14 = arith.constant 14 : index
    %c0_51 = arith.constant 0 : index
    %c0_52 = arith.constant 0 : index
    %80 = vector.load %arg3[%c14, %c0_51, %c0_52] : memref<16x128x32xf32, #tpu.memory_space<vmem>>, vector<1x128x32xf32>
    %81 = vector.shape_cast %80 : vector<1x128x32xf32> to vector<128x32xf32>
    %cst_53 = arith.constant dense<0.000000e+00> : vector<1x32xf32>
    %82 = tpu.matmul %79, %81, %cst_53 {dimension_numbers = #tpu.dot_dimension_numbers<[1], [0], [0], [1], [0, 0, 1, 1], [], []>} : vector<1x128xf32>, vector<128x32xf32>, vector<1x32xf32> -> vector<1x32xf32>
    %83 = arith.addf %78, %82 : vector<1x32xf32>
    %84 = vector.extract_strided_slice %7 {offsets = [15, 0], sizes = [1, 128], strides = [1, 1]} : vector<16x128xf32> to vector<1x128xf32>
    %c15 = arith.constant 15 : index
    %c0_54 = arith.constant 0 : index
    %c0_55 = arith.constant 0 : index
    %85 = vector.load %arg3[%c15, %c0_54, %c0_55] : memref<16x128x32xf32, #tpu.memory_space<vmem>>, vector<1x128x32xf32>
    %86 = vector.shape_cast %85 : vector<1x128x32xf32> to vector<128x32xf32>
    %cst_56 = arith.constant dense<0.000000e+00> : vector<1x32xf32>
    %87 = tpu.matmul %84, %86, %cst_56 {dimension_numbers = #tpu.dot_dimension_numbers<[1], [0], [0], [1], [0, 0, 1, 1], [], []>} : vector<1x128xf32>, vector<128x32xf32>, vector<1x32xf32> -> vector<1x32xf32>
    %88 = arith.addf %83, %87 : vector<1x32xf32>
    %c0_57 = arith.constant 0 : index
    %c0_58 = arith.constant 0 : index
    %89 = vector.load %arg12[%c0_57, %c0_58] : memref<1x32xf32, #tpu.memory_space<vmem>>, vector<1x32xf32>
    tpu.vector_store %arg12[%c0_57, %c0_58], %88 {strides = array<i32>} : memref<1x32xf32, #tpu.memory_space<vmem>>, vector<1x32xf32>,
    %c0_59 = arith.constant 0 : index
    %c0_60 = arith.constant 0 : index
    %90 = vector.load %arg5[%c0_59, %c0_60] : memref<3x128xf32, #tpu.memory_space<vmem>>, vector<3x128xf32>
    %c0_61 = arith.constant 0 : index
    %c0_62 = arith.constant 0 : index
    %91 = vector.load %arg6[%c0_61, %c0_62] : memref<128x128xf32, #tpu.memory_space<vmem>>, vector<128x128xf32>
    %cst_63 = arith.constant dense<0.000000e+00> : vector<3x128xf32>
    %92 = tpu.matmul %90, %91, %cst_63 {dimension_numbers = #tpu.dot_dimension_numbers<[1], [0], [0], [1], [0, 0, 1, 1], [], []>} : vector<3x128xf32>, vector<128x128xf32>, vector<3x128xf32> -> vector<3x128xf32>
    %c0_64 = arith.constant 0 : index
    %c0_65 = arith.constant 0 : index
    %93 = vector.load %arg7[%c0_64, %c0_65] : memref<1x128xf32, #tpu.memory_space<vmem>>, vector<1x128xf32>
    %94 = vector.broadcast %93 : vector<1x128xf32> to vector<3x128xf32>
    %95 = arith.addf %92, %94 : vector<3x128xf32>
    %cst_66 = arith.constant 0.000000e+00 : f32
    %96 = vector.broadcast %cst_66 : f32 to vector<3x128xf32>
    %97 = arith.maximumf %95, %96 : vector<3x128xf32>
    %98 = math.absf %95 : vector<3x128xf32>
    %cst_67 = arith.constant 0.000000e+00 : f32
    %99 = vector.broadcast %cst_67 : f32 to vector<3x128xf32>
    %100 = arith.subf %99, %98 : vector<3x128xf32>
    %101 = math.exp %100 : vector<3x128xf32>
    %102 = math.log1p %101 : vector<3x128xf32>
    %103 = arith.addf %97, %102 : vector<3x128xf32>
    %104 = math.tanh %103 : vector<3x128xf32>
    %105 = arith.mulf %95, %104 : vector<3x128xf32>
    %c0_68 = arith.constant 0 : index
    %c0_69 = arith.constant 0 : index
    %106 = vector.load %arg8[%c0_68, %c0_69] : memref<128x128xf32, #tpu.memory_space<vmem>>, vector<128x128xf32>
    %cst_70 = arith.constant dense<0.000000e+00> : vector<3x128xf32>
    %107 = tpu.matmul %105, %106, %cst_70 {dimension_numbers = #tpu.dot_dimension_numbers<[1], [0], [0], [1], [0, 0, 1, 1], [], []>} : vector<3x128xf32>, vector<128x128xf32>, vector<3x128xf32> -> vector<3x128xf32>
    %c0_71 = arith.constant 0 : index
    %c0_72 = arith.constant 0 : index
    %108 = vector.load %arg9[%c0_71, %c0_72] : memref<1x128xf32, #tpu.memory_space<vmem>>, vector<1x128xf32>
    %109 = vector.broadcast %108 : vector<1x128xf32> to vector<3x128xf32>
    %110 = arith.addf %107, %109 : vector<3x128xf32>
    %cst_73 = arith.constant 0.000000e+00 : f32
    %111 = vector.broadcast %cst_73 : f32 to vector<3x128xf32>
    %112 = arith.maximumf %110, %111 : vector<3x128xf32>
    %113 = math.absf %110 : vector<3x128xf32>
    %cst_74 = arith.constant 0.000000e+00 : f32
    %114 = vector.broadcast %cst_74 : f32 to vector<3x128xf32>
    %115 = arith.subf %114, %113 : vector<3x128xf32>
    %116 = math.exp %115 : vector<3x128xf32>
    %117 = math.log1p %116 : vector<3x128xf32>
    %118 = arith.addf %112, %117 : vector<3x128xf32>
    %119 = math.tanh %118 : vector<3x128xf32>
    %120 = arith.mulf %110, %119 : vector<3x128xf32>
    %c0_75 = arith.constant 0 : index
    %c0_76 = arith.constant 0 : index
    %121 = vector.load %arg10[%c0_75, %c0_76] : memref<128x32xf32, #tpu.memory_space<vmem>>, vector<128x32xf32>
    %cst_77 = arith.constant dense<0.000000e+00> : vector<3x32xf32>
    %122 = tpu.matmul %120, %121, %cst_77 {dimension_numbers = #tpu.dot_dimension_numbers<[1], [0], [0], [1], [0, 0, 1, 1], [], []>} : vector<3x128xf32>, vector<128x32xf32>, vector<3x32xf32> -> vector<3x32xf32>
    %c0_78 = arith.constant 0 : index
    %c0_79 = arith.constant 0 : index
    %123 = vector.load %arg11[%c0_78, %c0_79] : memref<1x32xf32, #tpu.memory_space<vmem>>, vector<1x32xf32>
    %124 = vector.broadcast %123 : vector<1x32xf32> to vector<3x32xf32>
    %125 = arith.addf %122, %124 : vector<3x32xf32>
    %c0_80 = arith.constant 0 : index
    %c0_81 = arith.constant 0 : index
    %126 = vector.load %arg13[%c0_80, %c0_81] : memref<3x32xf32, #tpu.memory_space<vmem>>, vector<3x32xf32>
    tpu.vector_store %arg13[%c0_80, %c0_81], %125 {strides = array<i32>} : memref<3x32xf32, #tpu.memory_space<vmem>>, vector<3x32xf32>,
    return
  }
}

module attributes {stable_mosaic.version = 11 : i64} {
  func.func @_mlp3_kernel(%arg0: memref<30x40xf32, #tpu.memory_space<vmem>>, %arg1: memref<40x40xf32, #tpu.memory_space<vmem>>, %arg2: memref<1x40xf32, #tpu.memory_space<vmem>>, %arg3: memref<40x40xf32, #tpu.memory_space<vmem>>, %arg4: memref<1x40xf32, #tpu.memory_space<vmem>>, %arg5: memref<40x64xf32, #tpu.memory_space<vmem>>, %arg6: memref<1x64xf32, #tpu.memory_space<vmem>>, %arg7: memref<30x64xf32, #tpu.memory_space<vmem>>) attributes {dimension_semantics = [], scalar_prefetch = 0 : i64, scratch_operands = 0 : i64, tpu.core_type = #tpu.core_type<tc>} {
    %c0 = arith.constant 0 : index
    %c0_0 = arith.constant 0 : index
    %0 = vector.load %arg0[%c0, %c0_0] : memref<30x40xf32, #tpu.memory_space<vmem>>, vector<30x40xf32>
    %c0_1 = arith.constant 0 : index
    %c0_2 = arith.constant 0 : index
    %1 = vector.load %arg1[%c0_1, %c0_2] : memref<40x40xf32, #tpu.memory_space<vmem>>, vector<40x40xf32>
    %cst = arith.constant dense<0.000000e+00> : vector<30x40xf32>
    %2 = tpu.matmul %0, %1, %cst {dimension_numbers = #tpu.dot_dimension_numbers<[1], [0], [0], [1], [0, 0, 1, 1], [], []>} : vector<30x40xf32>, vector<40x40xf32>, vector<30x40xf32> -> vector<30x40xf32>
    %c0_3 = arith.constant 0 : index
    %c0_4 = arith.constant 0 : index
    %3 = vector.load %arg2[%c0_3, %c0_4] : memref<1x40xf32, #tpu.memory_space<vmem>>, vector<1x40xf32>
    %4 = vector.broadcast %3 : vector<1x40xf32> to vector<30x40xf32>
    %5 = arith.addf %2, %4 : vector<30x40xf32>
    %cst_5 = arith.constant 0.000000e+00 : f32
    %6 = vector.broadcast %cst_5 : f32 to vector<30x40xf32>
    %7 = arith.maximumf %5, %6 : vector<30x40xf32>
    %8 = math.absf %5 : vector<30x40xf32>
    %cst_6 = arith.constant 0.000000e+00 : f32
    %9 = vector.broadcast %cst_6 : f32 to vector<30x40xf32>
    %10 = arith.subf %9, %8 : vector<30x40xf32>
    %11 = math.exp %10 : vector<30x40xf32>
    %12 = math.log1p %11 : vector<30x40xf32>
    %13 = arith.addf %7, %12 : vector<30x40xf32>
    %14 = math.tanh %13 : vector<30x40xf32>
    %15 = arith.mulf %5, %14 : vector<30x40xf32>
    %c0_7 = arith.constant 0 : index
    %c0_8 = arith.constant 0 : index
    %16 = vector.load %arg3[%c0_7, %c0_8] : memref<40x40xf32, #tpu.memory_space<vmem>>, vector<40x40xf32>
    %cst_9 = arith.constant dense<0.000000e+00> : vector<30x40xf32>
    %17 = tpu.matmul %15, %16, %cst_9 {dimension_numbers = #tpu.dot_dimension_numbers<[1], [0], [0], [1], [0, 0, 1, 1], [], []>} : vector<30x40xf32>, vector<40x40xf32>, vector<30x40xf32> -> vector<30x40xf32>
    %c0_10 = arith.constant 0 : index
    %c0_11 = arith.constant 0 : index
    %18 = vector.load %arg4[%c0_10, %c0_11] : memref<1x40xf32, #tpu.memory_space<vmem>>, vector<1x40xf32>
    %19 = vector.broadcast %18 : vector<1x40xf32> to vector<30x40xf32>
    %20 = arith.addf %17, %19 : vector<30x40xf32>
    %cst_12 = arith.constant 0.000000e+00 : f32
    %21 = vector.broadcast %cst_12 : f32 to vector<30x40xf32>
    %22 = arith.maximumf %20, %21 : vector<30x40xf32>
    %23 = math.absf %20 : vector<30x40xf32>
    %cst_13 = arith.constant 0.000000e+00 : f32
    %24 = vector.broadcast %cst_13 : f32 to vector<30x40xf32>
    %25 = arith.subf %24, %23 : vector<30x40xf32>
    %26 = math.exp %25 : vector<30x40xf32>
    %27 = math.log1p %26 : vector<30x40xf32>
    %28 = arith.addf %22, %27 : vector<30x40xf32>
    %29 = math.tanh %28 : vector<30x40xf32>
    %30 = arith.mulf %20, %29 : vector<30x40xf32>
    %c0_14 = arith.constant 0 : index
    %c0_15 = arith.constant 0 : index
    %31 = vector.load %arg5[%c0_14, %c0_15] : memref<40x64xf32, #tpu.memory_space<vmem>>, vector<40x64xf32>
    %cst_16 = arith.constant dense<0.000000e+00> : vector<30x64xf32>
    %32 = tpu.matmul %30, %31, %cst_16 {dimension_numbers = #tpu.dot_dimension_numbers<[1], [0], [0], [1], [0, 0, 1, 1], [], []>} : vector<30x40xf32>, vector<40x64xf32>, vector<30x64xf32> -> vector<30x64xf32>
    %c0_17 = arith.constant 0 : index
    %c0_18 = arith.constant 0 : index
    %33 = vector.load %arg6[%c0_17, %c0_18] : memref<1x64xf32, #tpu.memory_space<vmem>>, vector<1x64xf32>
    %34 = vector.broadcast %33 : vector<1x64xf32> to vector<30x64xf32>
    %35 = arith.addf %32, %34 : vector<30x64xf32>
    %c0_19 = arith.constant 0 : index
    %c0_20 = arith.constant 0 : index
    %36 = vector.load %arg7[%c0_19, %c0_20] : memref<30x64xf32, #tpu.memory_space<vmem>>, vector<30x64xf32>
    tpu.vector_store %arg7[%c0_19, %c0_20], %35 {strides = array<i32>} : memref<30x64xf32, #tpu.memory_space<vmem>>, vector<30x64xf32>,
    return
  }
}

module attributes {stable_mosaic.version = 11 : i64} {
  func.func @_moe_score_traj_kernel(%arg0: i32, %arg1: memref<3xi32, #tpu.memory_space<smem>>, %arg2: memref<1x12x64xf32, #tpu.memory_space<vmem>>, %arg3: memref<1x64xf32, #tpu.memory_space<vmem>>, %arg4: memref<1x64xf32, #tpu.memory_space<vmem>>, %arg5: memref<64x768xf32, #tpu.memory_space<vmem>>, %arg6: memref<1x768xf32, #tpu.memory_space<vmem>>, %arg7: memref<6x128x128xf32, #tpu.memory_space<vmem>>, %arg8: memref<6x128xf32, #tpu.memory_space<vmem>>, %arg9: memref<6x128xf32, #tpu.memory_space<vmem>>, %arg10: memref<1x6xf32, #tpu.memory_space<vmem>>, %arg11: memref<6x64x384xf32, #tpu.memory_space<vmem>>, %arg12: memref<1x384xf32, #tpu.memory_space<vmem>>, %arg13: memref<384x384xf32, #tpu.memory_space<vmem>>, %arg14: memref<1x384xf32, #tpu.memory_space<vmem>>, %arg15: memref<384x6xf32, #tpu.memory_space<vmem>>, %arg16: memref<1x6xf32, #tpu.memory_space<vmem>>, %arg17: memref<64x64xf32, #tpu.memory_space<vmem>>, %arg18: memref<1x64xf32, #tpu.memory_space<vmem>>, %arg19: memref<64x64xf32, #tpu.memory_space<vmem>>, %arg20: memref<1x64xf32, #tpu.memory_space<vmem>>, %arg21: memref<64x40xf32, #tpu.memory_space<vmem>>, %arg22: memref<1x40xf32, #tpu.memory_space<vmem>>, %arg23: memref<1x6x40xf32, #tpu.memory_space<vmem>>, %arg24: memref<1x1x6xf32, #tpu.memory_space<vmem>>) attributes {dimension_semantics = [#tpu.dimension_semantics<parallel>], iteration_bounds = array<i64: 3>, scalar_prefetch = 1 : i64, scratch_operands = 0 : i64, tpu.core_type = #tpu.core_type<tc>, window_params = [{transform_indices = @transform_0, window_bounds = array<i64: 1, 12, 64>}, {pipeline_mode = #tpu.pipeline_mode<synchronous>, transform_indices = @transform_1, window_bounds = array<i64: 1, 64>}, {pipeline_mode = #tpu.pipeline_mode<synchronous>, transform_indices = @transform_2, window_bounds = array<i64: 1, 64>}, {pipeline_mode = #tpu.pipeline_mode<synchronous>, transform_indices = @transform_3, window_bounds = array<i64: 64, 768>}, {pipeline_mode = #tpu.pipeline_mode<synchronous>, transform_indices = @transform_4, window_bounds = array<i64: 1, 768>}, {pipeline_mode = #tpu.pipeline_mode<synchronous>, transform_indices = @transform_5, window_bounds = array<i64: 6, 128, 128>}, {pipeline_mode = #tpu.pipeline_mode<synchronous>, transform_indices = @transform_6, window_bounds = array<i64: 6, 128>}, {pipeline_mode = #tpu.pipeline_mode<synchronous>, transform_indices = @transform_7, window_bounds = array<i64: 6, 128>}, {pipeline_mode = #tpu.pipeline_mode<synchronous>, transform_indices = @transform_8, window_bounds = array<i64: 1, 6>}, {pipeline_mode = #tpu.pipeline_mode<synchronous>, transform_indices = @transform_9, window_bounds = array<i64: 6, 64, 384>}, {pipeline_mode = #tpu.pipeline_mode<synchronous>, transform_indices = @transform_10, window_bounds = array<i64: 1, 384>}, {pipeline_mode = #tpu.pipeline_mode<synchronous>, transform_indices = @transform_11, window_bounds = array<i64: 384, 384>}, {pipeline_mode = #tpu.pipeline_mode<synchronous>, transform_indices = @transform_12, window_bounds = array<i64: 1, 384>}, {pipeline_mode = #tpu.pipeline_mode<synchronous>, transform_indices = @transform_13, window_bounds = array<i64: 384, 6>}, {pipeline_mode = #tpu.pipeline_mode<synchronous>, transform_indices = @transform_14, window_bounds = array<i64: 1, 6>}, {pipeline_mode = #tpu.pipeline_mode<synchronous>, transform_indices = @transform_15, window_bounds = array<i64: 64, 64>}, {pipeline_mode = #tpu.pipeline_mode<synchronous>, transform_indices = @transform_16, window_bounds = array<i64: 1, 64>}, {pipeline_mode = #tpu.pipeline_mode<synchronous>, transform_indices = @transform_17, window_bounds = array<i64: 64, 64>}, {pipeline_mode = #tpu.pipeline_mode<synchronous>, transform_indices = @transform_18, window_bounds = array<i64: 1, 64>}, {pipeline_mode = #tpu.pipeline_mode<synchronous>, transform_indices = @transform_19, window_bounds = array<i64: 64, 40>}, {pipeline_mode = #tpu.pipeline_mode<synchronous>, transform_indices = @transform_20, window_bounds = array<i64: 1, 40>}, {transform_indices = @transform_21, window_bounds = array<i64: 1, 6, 40>}, {transform_indices = @transform_22, window_bounds = array<i64: 1, 1, 6>}]} {
    %c0 = arith.constant 0 : index
    %c0_0 = arith.constant 0 : index
    %c0_1 = arith.constant 0 : index
    %0 = vector.load %arg2[%c0, %c0_0, %c0_1] : memref<1x12x64xf32, #tpu.memory_space<vmem>>, vector<1x12x64xf32>
    %1 = vector.shape_cast %0 : vector<1x12x64xf32> to vector<12x64xf32>
    %2 = arith.index_cast %arg0 : i32 to index
    %3 = memref.load %arg1[%2] : memref<3xi32, #tpu.memory_space<smem>>
    %4 = tpu.iota {dimensions = array<i32: 0>} : vector<12x1xi32>
    %5 = vector.broadcast %3 : i32 to vector<12x1xi32>
    %6 = arith.cmpi slt, %4, %5 : vector<12x1xi32>
    %7 = arith.sitofp %3 : i32 to f32
    %cst = arith.constant 1.000000e+00 : f32
    %8 = arith.divf %cst, %7 : f32
    %cst_2 = arith.constant 0.000000e+00 : f32
    %9 = vector.shape_cast %6 : vector<12x1xi1> to vector<12x1xi1>
    %10 = vector.broadcast %9 : vector<12x1xi1> to vector<12x64xi1>
    %11 = vector.broadcast %cst_2 : f32 to vector<12x64xf32>
    %12 = arith.select %10, %1, %11 : vector<12x64xi1>, vector<12x64xf32>
    %cst_3 = arith.constant dense<0.000000e+00> : vector<64xf32>
    %13 = vector.multi_reduction <add>, %12, %cst_3 [0] : vector<12x64xf32> to vector<64xf32>
    %14 = vector.shape_cast %13 : vector<64xf32> to vector<1x64xf32>
    %15 = vector.broadcast %8 : f32 to vector<1x64xf32>
    %16 = arith.mulf %14, %15 : vector<1x64xf32>
    %17 = vector.broadcast %16 : vector<1x64xf32> to vector<12x64xf32>
    %18 = arith.subf %1, %17 : vector<12x64xf32>
    %cst_4 = arith.constant 0.000000e+00 : f32
    %19 = vector.shape_cast %6 : vector<12x1xi1> to vector<12x1xi1>
    %20 = vector.broadcast %19 : vector<12x1xi1> to vector<12x64xi1>
    %21 = vector.broadcast %cst_4 : f32 to vector<12x64xf32>
    %22 = arith.select %20, %18, %21 : vector<12x64xi1>, vector<12x64xf32>
    %23 = arith.mulf %22, %22 : vector<12x64xf32>
    %cst_5 = arith.constant dense<0.000000e+00> : vector<64xf32>
    %24 = vector.multi_reduction <add>, %23, %cst_5 [0] : vector<12x64xf32> to vector<64xf32>
    %25 = vector.shape_cast %24 : vector<64xf32> to vector<1x64xf32>
    %26 = vector.broadcast %8 : f32 to vector<1x64xf32>
    %27 = arith.mulf %25, %26 : vector<1x64xf32>
    %28 = vector.broadcast %16 : vector<1x64xf32> to vector<12x64xf32>
    %29 = arith.subf %1, %28 : vector<12x64xf32>
    %cst_6 = arith.constant 9.99999974E-6 : f32
    %30 = vector.broadcast %cst_6 : f32 to vector<1x64xf32>
    %31 = arith.addf %27, %30 : vector<1x64xf32>
    %32 = math.rsqrt %31 : vector<1x64xf32>
    %33 = vector.broadcast %32 : vector<1x64xf32> to vector<12x64xf32>
    %34 = arith.mulf %29, %33 : vector<12x64xf32>
    %c0_7 = arith.constant 0 : index
    %c0_8 = arith.constant 0 : index
    %35 = vector.load %arg3[%c0_7, %c0_8] : memref<1x64xf32, #tpu.memory_space<vmem>>, vector<1x64xf32>
    %36 = vector.broadcast %35 : vector<1x64xf32> to vector<12x64xf32>
    %37 = arith.mulf %34, %36 : vector<12x64xf32>
    %c0_9 = arith.constant 0 : index
    %c0_10 = arith.constant 0 : index
    %38 = vector.load %arg4[%c0_9, %c0_10] : memref<1x64xf32, #tpu.memory_space<vmem>>, vector<1x64xf32>
    %39 = vector.broadcast %38 : vector<1x64xf32> to vector<12x64xf32>
    %40 = arith.addf %37, %39 : vector<12x64xf32>
    %c0_11 = arith.constant 0 : index
    %c0_12 = arith.constant 0 : index
    %41 = vector.load %arg5[%c0_11, %c0_12] : memref<64x768xf32, #tpu.memory_space<vmem>>, vector<64x768xf32>
    %cst_13 = arith.constant dense<0.000000e+00> : vector<12x768xf32>
    %42 = tpu.matmul %40, %41, %cst_13 {dimension_numbers = #tpu.dot_dimension_numbers<[1], [0], [0], [1], [0, 0, 1, 1], [], []>} : vector<12x64xf32>, vector<64x768xf32>, vector<12x768xf32> -> vector<12x768xf32>
    %c0_14 = arith.constant 0 : index
    %c0_15 = arith.constant 0 : index
    %43 = vector.load %arg6[%c0_14, %c0_15] : memref<1x768xf32, #tpu.memory_space<vmem>>, vector<1x768xf32>
    %44 = vector.broadcast %43 : vector<1x768xf32> to vector<12x768xf32>
    %45 = arith.addf %42, %44 : vector<12x768xf32>
    %cst_16 = arith.constant 0.000000e+00 : f32
    %46 = vector.broadcast %cst_16 : f32 to vector<12x768xf32>
    %47 = arith.maximumf %45, %46 : vector<12x768xf32>
    %48 = math.absf %45 : vector<12x768xf32>
    %cst_17 = arith.constant 0.000000e+00 : f32
    %49 = vector.broadcast %cst_17 : f32 to vector<12x768xf32>
    %50 = arith.subf %49, %48 : vector<12x768xf32>
    %51 = math.exp %50 : vector<12x768xf32>
    %52 = math.log1p %51 : vector<12x768xf32>
    %53 = arith.addf %47, %52 : vector<12x768xf32>
    %54 = math.tanh %53 : vector<12x768xf32>
    %55 = arith.mulf %45, %54 : vector<12x768xf32>
    %c0_18 = arith.constant 0 : index
    %c0_19 = arith.constant 0 : index
    %56 = vector.load %arg8[%c0_18, %c0_19] : memref<6x128xf32, #tpu.memory_space<vmem>>, vector<6x128xf32>
    %c0_20 = arith.constant 0 : index
    %c0_21 = arith.constant 0 : index
    %57 = vector.load %arg9[%c0_20, %c0_21] : memref<6x128xf32, #tpu.memory_space<vmem>>, vector<6x128xf32>
    %c0_22 = arith.constant 0 : index
    %c0_23 = arith.constant 0 : index
    %58 = vector.load %arg10[%c0_22, %c0_23] : memref<1x6xf32, #tpu.memory_space<vmem>>, vector<1x6xf32>
    %59 = vector.extract_strided_slice %55 {offsets = [0, 0], sizes = [12, 128], strides = [1, 1]} : vector<12x768xf32> to vector<12x128xf32>
    %c0_24 = arith.constant 0 : index
    %c0_25 = arith.constant 0 : index
    %c0_26 = arith.constant 0 : index
    %60 = vector.load %arg7[%c0_24, %c0_25, %c0_26] : memref<6x128x128xf32, #tpu.memory_space<vmem>>, vector<1x128x128xf32>
    %61 = vector.shape_cast %60 : vector<1x128x128xf32> to vector<128x128xf32>
    %cst_27 = arith.constant dense<0.000000e+00> : vector<12x128xf32>
    %62 = tpu.matmul %59, %61, %cst_27 {dimension_numbers = #tpu.dot_dimension_numbers<[1], [0], [0], [1], [0, 0, 1, 1], [], []>} : vector<12x128xf32>, vector<128x128xf32>, vector<12x128xf32> -> vector<12x128xf32>
    %63 = vector.extract_strided_slice %56 {offsets = [0, 0], sizes = [1, 128], strides = [1, 1]} : vector<6x128xf32> to vector<1x128xf32>
    %64 = vector.broadcast %63 : vector<1x128xf32> to vector<12x128xf32>
    %65 = arith.addf %62, %64 : vector<12x128xf32>
    %cst_28 = arith.constant 0.000000e+00 : f32
    %66 = vector.broadcast %cst_28 : f32 to vector<12x128xf32>
    %67 = arith.maximumf %65, %66 : vector<12x128xf32>
    %68 = math.absf %65 : vector<12x128xf32>
    %cst_29 = arith.constant 0.000000e+00 : f32
    %69 = vector.broadcast %cst_29 : f32 to vector<12x128xf32>
    %70 = arith.subf %69, %68 : vector<12x128xf32>
    %71 = math.exp %70 : vector<12x128xf32>
    %72 = math.log1p %71 : vector<12x128xf32>
    %73 = arith.addf %67, %72 : vector<12x128xf32>
    %74 = math.tanh %73 : vector<12x128xf32>
    %75 = arith.mulf %65, %74 : vector<12x128xf32>
    %76 = vector.extract_strided_slice %57 {offsets = [0, 0], sizes = [1, 128], strides = [1, 1]} : vector<6x128xf32> to vector<1x128xf32>
    %77 = vector.broadcast %76 : vector<1x128xf32> to vector<12x128xf32>
    %78 = arith.mulf %75, %77 : vector<12x128xf32>
    %cst_30 = arith.constant dense<0.000000e+00> : vector<12xf32>
    %79 = vector.multi_reduction <add>, %78, %cst_30 [1] : vector<12x128xf32> to vector<12xf32>
    %80 = vector.shape_cast %79 : vector<12xf32> to vector<12x1xf32>
    %81 = vector.extract_strided_slice %58 {offsets = [0, 0], sizes = [1, 1], strides = [1, 1]} : vector<1x6xf32> to vector<1x1xf32>
    %82 = vector.broadcast %81 : vector<1x1xf32> to vector<12x1xf32>
    %83 = arith.addf %80, %82 : vector<12x1xf32>
    %cst_31 = arith.constant -1.000000e+30 : f32
    %84 = vector.broadcast %cst_31 : f32 to vector<12x1xf32>
    %85 = arith.select %6, %83, %84 : vector<12x1xi1>, vector<12x1xf32>
    %cst_32 = arith.constant dense<0xFF800000> : vector<1xf32>
    %86 = vector.multi_reduction <maximumf>, %85, %cst_32 [0] : vector<12x1xf32> to vector<1xf32>
    %87 = vector.shape_cast %86 : vector<1xf32> to vector<1x1xf32>
    %88 = vector.broadcast %87 : vector<1x1xf32> to vector<12x1xf32>
    %89 = arith.subf %85, %88 : vector<12x1xf32>
    %90 = math.exp %89 : vector<12x1xf32>
    %cst_33 = arith.constant 0.000000e+00 : f32
    %91 = vector.broadcast %cst_33 : f32 to vector<12x1xf32>
    %92 = arith.select %6, %90, %91 : vector<12x1xi1>, vector<12x1xf32>
    %cst_34 = arith.constant dense<0.000000e+00> : vector<1xf32>
    %93 = vector.multi_reduction <add>, %92, %cst_34 [0] : vector<12x1xf32> to vector<1xf32>
    %94 = vector.shape_cast %93 : vector<1xf32> to vector<1x1xf32>
    %95 = tpu.reciprocal %94 {approx = true} : vector<1x1xf32> -> vector<1x1xf32>
    %96 = vector.broadcast %95 : vector<1x1xf32> to vector<12x1xf32>
    %97 = arith.mulf %92, %96 : vector<12x1xf32>
    %98 = vector.broadcast %97 : vector<12x1xf32> to vector<12x64xf32>
    %99 = arith.mulf %98, %1 : vector<12x64xf32>
    %cst_35 = arith.constant dense<0.000000e+00> : vector<64xf32>
    %100 = vector.multi_reduction <add>, %99, %cst_35 [0] : vector<12x64xf32> to vector<64xf32>
    %101 = vector.shape_cast %100 : vector<64xf32> to vector<1x64xf32>
    %102 = vector.extract_strided_slice %55 {offsets = [0, 128], sizes = [12, 128], strides = [1, 1]} : vector<12x768xf32> to vector<12x128xf32>
    %c1 = arith.constant 1 : index
    %c0_36 = arith.constant 0 : index
    %c0_37 = arith.constant 0 : index
    %103 = vector.load %arg7[%c1, %c0_36, %c0_37] : memref<6x128x128xf32, #tpu.memory_space<vmem>>, vector<1x128x128xf32>
    %104 = vector.shape_cast %103 : vector<1x128x128xf32> to vector<128x128xf32>
    %cst_38 = arith.constant dense<0.000000e+00> : vector<12x128xf32>
    %105 = tpu.matmul %102, %104, %cst_38 {dimension_numbers = #tpu.dot_dimension_numbers<[1], [0], [0], [1], [0, 0, 1, 1], [], []>} : vector<12x128xf32>, vector<128x128xf32>, vector<12x128xf32> -> vector<12x128xf32>
    %106 = vector.extract_strided_slice %56 {offsets = [1, 0], sizes = [1, 128], strides = [1, 1]} : vector<6x128xf32> to vector<1x128xf32>
    %107 = vector.broadcast %106 : vector<1x128xf32> to vector<12x128xf32>
    %108 = arith.addf %105, %107 : vector<12x128xf32>
    %cst_39 = arith.constant 0.000000e+00 : f32
    %109 = vector.broadcast %cst_39 : f32 to vector<12x128xf32>
    %110 = arith.maximumf %108, %109 : vector<12x128xf32>
    %111 = math.absf %108 : vector<12x128xf32>
    %cst_40 = arith.constant 0.000000e+00 : f32
    %112 = vector.broadcast %cst_40 : f32 to vector<12x128xf32>
    %113 = arith.subf %112, %111 : vector<12x128xf32>
    %114 = math.exp %113 : vector<12x128xf32>
    %115 = math.log1p %114 : vector<12x128xf32>
    %116 = arith.addf %110, %115 : vector<12x128xf32>
    %117 = math.tanh %116 : vector<12x128xf32>
    %118 = arith.mulf %108, %117 : vector<12x128xf32>
    %119 = vector.extract_strided_slice %57 {offsets = [1, 0], sizes = [1, 128], strides = [1, 1]} : vector<6x128xf32> to vector<1x128xf32>
    %120 = vector.broadcast %119 : vector<1x128xf32> to vector<12x128xf32>
    %121 = arith.mulf %118, %120 : vector<12x128xf32>
    %cst_41 = arith.constant dense<0.000000e+00> : vector<12xf32>
    %122 = vector.multi_reduction <add>, %121, %cst_41 [1] : vector<12x128xf32> to vector<12xf32>
    %123 = vector.shape_cast %122 : vector<12xf32> to vector<12x1xf32>
    %124 = vector.extract_strided_slice %58 {offsets = [0, 1], sizes = [1, 1], strides = [1, 1]} : vector<1x6xf32> to vector<1x1xf32>
    %125 = vector.broadcast %124 : vector<1x1xf32> to vector<12x1xf32>
    %126 = arith.addf %123, %125 : vector<12x1xf32>
    %cst_42 = arith.constant -1.000000e+30 : f32
    %127 = vector.broadcast %cst_42 : f32 to vector<12x1xf32>
    %128 = arith.select %6, %126, %127 : vector<12x1xi1>, vector<12x1xf32>
    %cst_43 = arith.constant dense<0xFF800000> : vector<1xf32>
    %129 = vector.multi_reduction <maximumf>, %128, %cst_43 [0] : vector<12x1xf32> to vector<1xf32>
    %130 = vector.shape_cast %129 : vector<1xf32> to vector<1x1xf32>
    %131 = vector.broadcast %130 : vector<1x1xf32> to vector<12x1xf32>
    %132 = arith.subf %128, %131 : vector<12x1xf32>
    %133 = math.exp %132 : vector<12x1xf32>
    %cst_44 = arith.constant 0.000000e+00 : f32
    %134 = vector.broadcast %cst_44 : f32 to vector<12x1xf32>
    %135 = arith.select %6, %133, %134 : vector<12x1xi1>, vector<12x1xf32>
    %cst_45 = arith.constant dense<0.000000e+00> : vector<1xf32>
    %136 = vector.multi_reduction <add>, %135, %cst_45 [0] : vector<12x1xf32> to vector<1xf32>
    %137 = vector.shape_cast %136 : vector<1xf32> to vector<1x1xf32>
    %138 = tpu.reciprocal %137 {approx = true} : vector<1x1xf32> -> vector<1x1xf32>
    %139 = vector.broadcast %138 : vector<1x1xf32> to vector<12x1xf32>
    %140 = arith.mulf %135, %139 : vector<12x1xf32>
    %141 = vector.broadcast %140 : vector<12x1xf32> to vector<12x64xf32>
    %142 = arith.mulf %141, %1 : vector<12x64xf32>
    %cst_46 = arith.constant dense<0.000000e+00> : vector<64xf32>
    %143 = vector.multi_reduction <add>, %142, %cst_46 [0] : vector<12x64xf32> to vector<64xf32>
    %144 = vector.shape_cast %143 : vector<64xf32> to vector<1x64xf32>
    %145 = vector.extract_strided_slice %55 {offsets = [0, 256], sizes = [12, 128], strides = [1, 1]} : vector<12x768xf32> to vector<12x128xf32>
    %c2 = arith.constant 2 : index
    %c0_47 = arith.constant 0 : index
    %c0_48 = arith.constant 0 : index
    %146 = vector.load %arg7[%c2, %c0_47, %c0_48] : memref<6x128x128xf32, #tpu.memory_space<vmem>>, vector<1x128x128xf32>
    %147 = vector.shape_cast %146 : vector<1x128x128xf32> to vector<128x128xf32>
    %cst_49 = arith.constant dense<0.000000e+00> : vector<12x128xf32>
    %148 = tpu.matmul %145, %147, %cst_49 {dimension_numbers = #tpu.dot_dimension_numbers<[1], [0], [0], [1], [0, 0, 1, 1], [], []>} : vector<12x128xf32>, vector<128x128xf32>, vector<12x128xf32> -> vector<12x128xf32>
    %149 = vector.extract_strided_slice %56 {offsets = [2, 0], sizes = [1, 128], strides = [1, 1]} : vector<6x128xf32> to vector<1x128xf32>
    %150 = vector.broadcast %149 : vector<1x128xf32> to vector<12x128xf32>
    %151 = arith.addf %148, %150 : vector<12x128xf32>
    %cst_50 = arith.constant 0.000000e+00 : f32
    %152 = vector.broadcast %cst_50 : f32 to vector<12x128xf32>
    %153 = arith.maximumf %151, %152 : vector<12x128xf32>
    %154 = math.absf %151 : vector<12x128xf32>
    %cst_51 = arith.constant 0.000000e+00 : f32
    %155 = vector.broadcast %cst_51 : f32 to vector<12x128xf32>
    %156 = arith.subf %155, %154 : vector<12x128xf32>
    %157 = math.exp %156 : vector<12x128xf32>
    %158 = math.log1p %157 : vector<12x128xf32>
    %159 = arith.addf %153, %158 : vector<12x128xf32>
    %160 = math.tanh %159 : vector<12x128xf32>
    %161 = arith.mulf %151, %160 : vector<12x128xf32>
    %162 = vector.extract_strided_slice %57 {offsets = [2, 0], sizes = [1, 128], strides = [1, 1]} : vector<6x128xf32> to vector<1x128xf32>
    %163 = vector.broadcast %162 : vector<1x128xf32> to vector<12x128xf32>
    %164 = arith.mulf %161, %163 : vector<12x128xf32>
    %cst_52 = arith.constant dense<0.000000e+00> : vector<12xf32>
    %165 = vector.multi_reduction <add>, %164, %cst_52 [1] : vector<12x128xf32> to vector<12xf32>
    %166 = vector.shape_cast %165 : vector<12xf32> to vector<12x1xf32>
    %167 = vector.extract_strided_slice %58 {offsets = [0, 2], sizes = [1, 1], strides = [1, 1]} : vector<1x6xf32> to vector<1x1xf32>
    %168 = vector.broadcast %167 : vector<1x1xf32> to vector<12x1xf32>
    %169 = arith.addf %166, %168 : vector<12x1xf32>
    %cst_53 = arith.constant -1.000000e+30 : f32
    %170 = vector.broadcast %cst_53 : f32 to vector<12x1xf32>
    %171 = arith.select %6, %169, %170 : vector<12x1xi1>, vector<12x1xf32>
    %cst_54 = arith.constant dense<0xFF800000> : vector<1xf32>
    %172 = vector.multi_reduction <maximumf>, %171, %cst_54 [0] : vector<12x1xf32> to vector<1xf32>
    %173 = vector.shape_cast %172 : vector<1xf32> to vector<1x1xf32>
    %174 = vector.broadcast %173 : vector<1x1xf32> to vector<12x1xf32>
    %175 = arith.subf %171, %174 : vector<12x1xf32>
    %176 = math.exp %175 : vector<12x1xf32>
    %cst_55 = arith.constant 0.000000e+00 : f32
    %177 = vector.broadcast %cst_55 : f32 to vector<12x1xf32>
    %178 = arith.select %6, %176, %177 : vector<12x1xi1>, vector<12x1xf32>
    %cst_56 = arith.constant dense<0.000000e+00> : vector<1xf32>
    %179 = vector.multi_reduction <add>, %178, %cst_56 [0] : vector<12x1xf32> to vector<1xf32>
    %180 = vector.shape_cast %179 : vector<1xf32> to vector<1x1xf32>
    %181 = tpu.reciprocal %180 {approx = true} : vector<1x1xf32> -> vector<1x1xf32>
    %182 = vector.broadcast %181 : vector<1x1xf32> to vector<12x1xf32>
    %183 = arith.mulf %178, %182 : vector<12x1xf32>
    %184 = vector.broadcast %183 : vector<12x1xf32> to vector<12x64xf32>
    %185 = arith.mulf %184, %1 : vector<12x64xf32>
    %cst_57 = arith.constant dense<0.000000e+00> : vector<64xf32>
    %186 = vector.multi_reduction <add>, %185, %cst_57 [0] : vector<12x64xf32> to vector<64xf32>
    %187 = vector.shape_cast %186 : vector<64xf32> to vector<1x64xf32>
    %188 = vector.extract_strided_slice %55 {offsets = [0, 384], sizes = [12, 128], strides = [1, 1]} : vector<12x768xf32> to vector<12x128xf32>
    %c3 = arith.constant 3 : index
    %c0_58 = arith.constant 0 : index
    %c0_59 = arith.constant 0 : index
    %189 = vector.load %arg7[%c3, %c0_58, %c0_59] : memref<6x128x128xf32, #tpu.memory_space<vmem>>, vector<1x128x128xf32>
    %190 = vector.shape_cast %189 : vector<1x128x128xf32> to vector<128x128xf32>
    %cst_60 = arith.constant dense<0.000000e+00> : vector<12x128xf32>
    %191 = tpu.matmul %188, %190, %cst_60 {dimension_numbers = #tpu.dot_dimension_numbers<[1], [0], [0], [1], [0, 0, 1, 1], [], []>} : vector<12x128xf32>, vector<128x128xf32>, vector<12x128xf32> -> vector<12x128xf32>
    %192 = vector.extract_strided_slice %56 {offsets = [3, 0], sizes = [1, 128], strides = [1, 1]} : vector<6x128xf32> to vector<1x128xf32>
    %193 = vector.broadcast %192 : vector<1x128xf32> to vector<12x128xf32>
    %194 = arith.addf %191, %193 : vector<12x128xf32>
    %cst_61 = arith.constant 0.000000e+00 : f32
    %195 = vector.broadcast %cst_61 : f32 to vector<12x128xf32>
    %196 = arith.maximumf %194, %195 : vector<12x128xf32>
    %197 = math.absf %194 : vector<12x128xf32>
    %cst_62 = arith.constant 0.000000e+00 : f32
    %198 = vector.broadcast %cst_62 : f32 to vector<12x128xf32>
    %199 = arith.subf %198, %197 : vector<12x128xf32>
    %200 = math.exp %199 : vector<12x128xf32>
    %201 = math.log1p %200 : vector<12x128xf32>
    %202 = arith.addf %196, %201 : vector<12x128xf32>
    %203 = math.tanh %202 : vector<12x128xf32>
    %204 = arith.mulf %194, %203 : vector<12x128xf32>
    %205 = vector.extract_strided_slice %57 {offsets = [3, 0], sizes = [1, 128], strides = [1, 1]} : vector<6x128xf32> to vector<1x128xf32>
    %206 = vector.broadcast %205 : vector<1x128xf32> to vector<12x128xf32>
    %207 = arith.mulf %204, %206 : vector<12x128xf32>
    %cst_63 = arith.constant dense<0.000000e+00> : vector<12xf32>
    %208 = vector.multi_reduction <add>, %207, %cst_63 [1] : vector<12x128xf32> to vector<12xf32>
    %209 = vector.shape_cast %208 : vector<12xf32> to vector<12x1xf32>
    %210 = vector.extract_strided_slice %58 {offsets = [0, 3], sizes = [1, 1], strides = [1, 1]} : vector<1x6xf32> to vector<1x1xf32>
    %211 = vector.broadcast %210 : vector<1x1xf32> to vector<12x1xf32>
    %212 = arith.addf %209, %211 : vector<12x1xf32>
    %cst_64 = arith.constant -1.000000e+30 : f32
    %213 = vector.broadcast %cst_64 : f32 to vector<12x1xf32>
    %214 = arith.select %6, %212, %213 : vector<12x1xi1>, vector<12x1xf32>
    %cst_65 = arith.constant dense<0xFF800000> : vector<1xf32>
    %215 = vector.multi_reduction <maximumf>, %214, %cst_65 [0] : vector<12x1xf32> to vector<1xf32>
    %216 = vector.shape_cast %215 : vector<1xf32> to vector<1x1xf32>
    %217 = vector.broadcast %216 : vector<1x1xf32> to vector<12x1xf32>
    %218 = arith.subf %214, %217 : vector<12x1xf32>
    %219 = math.exp %218 : vector<12x1xf32>
    %cst_66 = arith.constant 0.000000e+00 : f32
    %220 = vector.broadcast %cst_66 : f32 to vector<12x1xf32>
    %221 = arith.select %6, %219, %220 : vector<12x1xi1>, vector<12x1xf32>
    %cst_67 = arith.constant dense<0.000000e+00> : vector<1xf32>
    %222 = vector.multi_reduction <add>, %221, %cst_67 [0] : vector<12x1xf32> to vector<1xf32>
    %223 = vector.shape_cast %222 : vector<1xf32> to vector<1x1xf32>
    %224 = tpu.reciprocal %223 {approx = true} : vector<1x1xf32> -> vector<1x1xf32>
    %225 = vector.broadcast %224 : vector<1x1xf32> to vector<12x1xf32>
    %226 = arith.mulf %221, %225 : vector<12x1xf32>
    %227 = vector.broadcast %226 : vector<12x1xf32> to vector<12x64xf32>
    %228 = arith.mulf %227, %1 : vector<12x64xf32>
    %cst_68 = arith.constant dense<0.000000e+00> : vector<64xf32>
    %229 = vector.multi_reduction <add>, %228, %cst_68 [0] : vector<12x64xf32> to vector<64xf32>
    %230 = vector.shape_cast %229 : vector<64xf32> to vector<1x64xf32>
    %231 = vector.extract_strided_slice %55 {offsets = [0, 512], sizes = [12, 128], strides = [1, 1]} : vector<12x768xf32> to vector<12x128xf32>
    %c4 = arith.constant 4 : index
    %c0_69 = arith.constant 0 : index
    %c0_70 = arith.constant 0 : index
    %232 = vector.load %arg7[%c4, %c0_69, %c0_70] : memref<6x128x128xf32, #tpu.memory_space<vmem>>, vector<1x128x128xf32>
    %233 = vector.shape_cast %232 : vector<1x128x128xf32> to vector<128x128xf32>
    %cst_71 = arith.constant dense<0.000000e+00> : vector<12x128xf32>
    %234 = tpu.matmul %231, %233, %cst_71 {dimension_numbers = #tpu.dot_dimension_numbers<[1], [0], [0], [1], [0, 0, 1, 1], [], []>} : vector<12x128xf32>, vector<128x128xf32>, vector<12x128xf32> -> vector<12x128xf32>
    %235 = vector.extract_strided_slice %56 {offsets = [4, 0], sizes = [1, 128], strides = [1, 1]} : vector<6x128xf32> to vector<1x128xf32>
    %236 = vector.broadcast %235 : vector<1x128xf32> to vector<12x128xf32>
    %237 = arith.addf %234, %236 : vector<12x128xf32>
    %cst_72 = arith.constant 0.000000e+00 : f32
    %238 = vector.broadcast %cst_72 : f32 to vector<12x128xf32>
    %239 = arith.maximumf %237, %238 : vector<12x128xf32>
    %240 = math.absf %237 : vector<12x128xf32>
    %cst_73 = arith.constant 0.000000e+00 : f32
    %241 = vector.broadcast %cst_73 : f32 to vector<12x128xf32>
    %242 = arith.subf %241, %240 : vector<12x128xf32>
    %243 = math.exp %242 : vector<12x128xf32>
    %244 = math.log1p %243 : vector<12x128xf32>
    %245 = arith.addf %239, %244 : vector<12x128xf32>
    %246 = math.tanh %245 : vector<12x128xf32>
    %247 = arith.mulf %237, %246 : vector<12x128xf32>
    %248 = vector.extract_strided_slice %57 {offsets = [4, 0], sizes = [1, 128], strides = [1, 1]} : vector<6x128xf32> to vector<1x128xf32>
    %249 = vector.broadcast %248 : vector<1x128xf32> to vector<12x128xf32>
    %250 = arith.mulf %247, %249 : vector<12x128xf32>
    %cst_74 = arith.constant dense<0.000000e+00> : vector<12xf32>
    %251 = vector.multi_reduction <add>, %250, %cst_74 [1] : vector<12x128xf32> to vector<12xf32>
    %252 = vector.shape_cast %251 : vector<12xf32> to vector<12x1xf32>
    %253 = vector.extract_strided_slice %58 {offsets = [0, 4], sizes = [1, 1], strides = [1, 1]} : vector<1x6xf32> to vector<1x1xf32>
    %254 = vector.broadcast %253 : vector<1x1xf32> to vector<12x1xf32>
    %255 = arith.addf %252, %254 : vector<12x1xf32>
    %cst_75 = arith.constant -1.000000e+30 : f32
    %256 = vector.broadcast %cst_75 : f32 to vector<12x1xf32>
    %257 = arith.select %6, %255, %256 : vector<12x1xi1>, vector<12x1xf32>
    %cst_76 = arith.constant dense<0xFF800000> : vector<1xf32>
    %258 = vector.multi_reduction <maximumf>, %257, %cst_76 [0] : vector<12x1xf32> to vector<1xf32>
    %259 = vector.shape_cast %258 : vector<1xf32> to vector<1x1xf32>
    %260 = vector.broadcast %259 : vector<1x1xf32> to vector<12x1xf32>
    %261 = arith.subf %257, %260 : vector<12x1xf32>
    %262 = math.exp %261 : vector<12x1xf32>
    %cst_77 = arith.constant 0.000000e+00 : f32
    %263 = vector.broadcast %cst_77 : f32 to vector<12x1xf32>
    %264 = arith.select %6, %262, %263 : vector<12x1xi1>, vector<12x1xf32>
    %cst_78 = arith.constant dense<0.000000e+00> : vector<1xf32>
    %265 = vector.multi_reduction <add>, %264, %cst_78 [0] : vector<12x1xf32> to vector<1xf32>
    %266 = vector.shape_cast %265 : vector<1xf32> to vector<1x1xf32>
    %267 = tpu.reciprocal %266 {approx = true} : vector<1x1xf32> -> vector<1x1xf32>
    %268 = vector.broadcast %267 : vector<1x1xf32> to vector<12x1xf32>
    %269 = arith.mulf %264, %268 : vector<12x1xf32>
    %270 = vector.broadcast %269 : vector<12x1xf32> to vector<12x64xf32>
    %271 = arith.mulf %270, %1 : vector<12x64xf32>
    %cst_79 = arith.constant dense<0.000000e+00> : vector<64xf32>
    %272 = vector.multi_reduction <add>, %271, %cst_79 [0] : vector<12x64xf32> to vector<64xf32>
    %273 = vector.shape_cast %272 : vector<64xf32> to vector<1x64xf32>
    %274 = vector.extract_strided_slice %55 {offsets = [0, 640], sizes = [12, 128], strides = [1, 1]} : vector<12x768xf32> to vector<12x128xf32>
    %c5 = arith.constant 5 : index
    %c0_80 = arith.constant 0 : index
    %c0_81 = arith.constant 0 : index
    %275 = vector.load %arg7[%c5, %c0_80, %c0_81] : memref<6x128x128xf32, #tpu.memory_space<vmem>>, vector<1x128x128xf32>
    %276 = vector.shape_cast %275 : vector<1x128x128xf32> to vector<128x128xf32>
    %cst_82 = arith.constant dense<0.000000e+00> : vector<12x128xf32>
    %277 = tpu.matmul %274, %276, %cst_82 {dimension_numbers = #tpu.dot_dimension_numbers<[1], [0], [0], [1], [0, 0, 1, 1], [], []>} : vector<12x128xf32>, vector<128x128xf32>, vector<12x128xf32> -> vector<12x128xf32>
    %278 = vector.extract_strided_slice %56 {offsets = [5, 0], sizes = [1, 128], strides = [1, 1]} : vector<6x128xf32> to vector<1x128xf32>
    %279 = vector.broadcast %278 : vector<1x128xf32> to vector<12x128xf32>
    %280 = arith.addf %277, %279 : vector<12x128xf32>
    %cst_83 = arith.constant 0.000000e+00 : f32
    %281 = vector.broadcast %cst_83 : f32 to vector<12x128xf32>
    %282 = arith.maximumf %280, %281 : vector<12x128xf32>
    %283 = math.absf %280 : vector<12x128xf32>
    %cst_84 = arith.constant 0.000000e+00 : f32
    %284 = vector.broadcast %cst_84 : f32 to vector<12x128xf32>
    %285 = arith.subf %284, %283 : vector<12x128xf32>
    %286 = math.exp %285 : vector<12x128xf32>
    %287 = math.log1p %286 : vector<12x128xf32>
    %288 = arith.addf %282, %287 : vector<12x128xf32>
    %289 = math.tanh %288 : vector<12x128xf32>
    %290 = arith.mulf %280, %289 : vector<12x128xf32>
    %291 = vector.extract_strided_slice %57 {offsets = [5, 0], sizes = [1, 128], strides = [1, 1]} : vector<6x128xf32> to vector<1x128xf32>
    %292 = vector.broadcast %291 : vector<1x128xf32> to vector<12x128xf32>
    %293 = arith.mulf %290, %292 : vector<12x128xf32>
    %cst_85 = arith.constant dense<0.000000e+00> : vector<12xf32>
    %294 = vector.multi_reduction <add>, %293, %cst_85 [1] : vector<12x128xf32> to vector<12xf32>
    %295 = vector.shape_cast %294 : vector<12xf32> to vector<12x1xf32>
    %296 = vector.extract_strided_slice %58 {offsets = [0, 5], sizes = [1, 1], strides = [1, 1]} : vector<1x6xf32> to vector<1x1xf32>
    %297 = vector.broadcast %296 : vector<1x1xf32> to vector<12x1xf32>
    %298 = arith.addf %295, %297 : vector<12x1xf32>
    %cst_86 = arith.constant -1.000000e+30 : f32
    %299 = vector.broadcast %cst_86 : f32 to vector<12x1xf32>
    %300 = arith.select %6, %298, %299 : vector<12x1xi1>, vector<12x1xf32>
    %cst_87 = arith.constant dense<0xFF800000> : vector<1xf32>
    %301 = vector.multi_reduction <maximumf>, %300, %cst_87 [0] : vector<12x1xf32> to vector<1xf32>
    %302 = vector.shape_cast %301 : vector<1xf32> to vector<1x1xf32>
    %303 = vector.broadcast %302 : vector<1x1xf32> to vector<12x1xf32>
    %304 = arith.subf %300, %303 : vector<12x1xf32>
    %305 = math.exp %304 : vector<12x1xf32>
    %cst_88 = arith.constant 0.000000e+00 : f32
    %306 = vector.broadcast %cst_88 : f32 to vector<12x1xf32>
    %307 = arith.select %6, %305, %306 : vector<12x1xi1>, vector<12x1xf32>
    %cst_89 = arith.constant dense<0.000000e+00> : vector<1xf32>
    %308 = vector.multi_reduction <add>, %307, %cst_89 [0] : vector<12x1xf32> to vector<1xf32>
    %309 = vector.shape_cast %308 : vector<1xf32> to vector<1x1xf32>
    %310 = tpu.reciprocal %309 {approx = true} : vector<1x1xf32> -> vector<1x1xf32>
    %311 = vector.broadcast %310 : vector<1x1xf32> to vector<12x1xf32>
    %312 = arith.mulf %307, %311 : vector<12x1xf32>
    %313 = vector.broadcast %312 : vector<12x1xf32> to vector<12x64xf32>
    %314 = arith.mulf %313, %1 : vector<12x64xf32>
    %cst_90 = arith.constant dense<0.000000e+00> : vector<64xf32>
    %315 = vector.multi_reduction <add>, %314, %cst_90 [0] : vector<12x64xf32> to vector<64xf32>
    %316 = vector.shape_cast %315 : vector<64xf32> to vector<1x64xf32>
    %317 = tpu.concatenate %101, %144, %187, %230, %273, %316 in 0 : vector<1x64xf32>, vector<1x64xf32>, vector<1x64xf32>, vector<1x64xf32>, vector<1x64xf32>, vector<1x64xf32> -> vector<6x64xf32>
    %c0_91 = arith.constant 0 : index
    %c0_92 = arith.constant 0 : index
    %318 = vector.load %arg12[%c0_91, %c0_92] : memref<1x384xf32, #tpu.memory_space<vmem>>, vector<1x384xf32>
    %319 = vector.extract_strided_slice %317 {offsets = [0, 0], sizes = [1, 64], strides = [1, 1]} : vector<6x64xf32> to vector<1x64xf32>
    %c0_93 = arith.constant 0 : index
    %c0_94 = arith.constant 0 : index
    %c0_95 = arith.constant 0 : index
    %320 = vector.load %arg11[%c0_93, %c0_94, %c0_95] : memref<6x64x384xf32, #tpu.memory_space<vmem>>, vector<1x64x384xf32>
    %321 = vector.shape_cast %320 : vector<1x64x384xf32> to vector<64x384xf32>
    %cst_96 = arith.constant dense<0.000000e+00> : vector<1x384xf32>
    %322 = tpu.matmul %319, %321, %cst_96 {dimension_numbers = #tpu.dot_dimension_numbers<[1], [0], [0], [1], [0, 0, 1, 1], [], []>} : vector<1x64xf32>, vector<64x384xf32>, vector<1x384xf32> -> vector<1x384xf32>
    %323 = arith.addf %318, %322 : vector<1x384xf32>
    %324 = vector.extract_strided_slice %317 {offsets = [1, 0], sizes = [1, 64], strides = [1, 1]} : vector<6x64xf32> to vector<1x64xf32>
    %c1_97 = arith.constant 1 : index
    %c0_98 = arith.constant 0 : index
    %c0_99 = arith.constant 0 : index
    %325 = vector.load %arg11[%c1_97, %c0_98, %c0_99] : memref<6x64x384xf32, #tpu.memory_space<vmem>>, vector<1x64x384xf32>
    %326 = vector.shape_cast %325 : vector<1x64x384xf32> to vector<64x384xf32>
    %cst_100 = arith.constant dense<0.000000e+00> : vector<1x384xf32>
    %327 = tpu.matmul %324, %326, %cst_100 {dimension_numbers = #tpu.dot_dimension_numbers<[1], [0], [0], [1], [0, 0, 1, 1], [], []>} : vector<1x64xf32>, vector<64x384xf32>, vector<1x384xf32> -> vector<1x384xf32>
    %328 = arith.addf %323, %327 : vector<1x384xf32>
    %329 = vector.extract_strided_slice %317 {offsets = [2, 0], sizes = [1, 64], strides = [1, 1]} : vector<6x64xf32> to vector<1x64xf32>
    %c2_101 = arith.constant 2 : index
    %c0_102 = arith.constant 0 : index
    %c0_103 = arith.constant 0 : index
    %330 = vector.load %arg11[%c2_101, %c0_102, %c0_103] : memref<6x64x384xf32, #tpu.memory_space<vmem>>, vector<1x64x384xf32>
    %331 = vector.shape_cast %330 : vector<1x64x384xf32> to vector<64x384xf32>
    %cst_104 = arith.constant dense<0.000000e+00> : vector<1x384xf32>
    %332 = tpu.matmul %329, %331, %cst_104 {dimension_numbers = #tpu.dot_dimension_numbers<[1], [0], [0], [1], [0, 0, 1, 1], [], []>} : vector<1x64xf32>, vector<64x384xf32>, vector<1x384xf32> -> vector<1x384xf32>
    %333 = arith.addf %328, %332 : vector<1x384xf32>
    %334 = vector.extract_strided_slice %317 {offsets = [3, 0], sizes = [1, 64], strides = [1, 1]} : vector<6x64xf32> to vector<1x64xf32>
    %c3_105 = arith.constant 3 : index
    %c0_106 = arith.constant 0 : index
    %c0_107 = arith.constant 0 : index
    %335 = vector.load %arg11[%c3_105, %c0_106, %c0_107] : memref<6x64x384xf32, #tpu.memory_space<vmem>>, vector<1x64x384xf32>
    %336 = vector.shape_cast %335 : vector<1x64x384xf32> to vector<64x384xf32>
    %cst_108 = arith.constant dense<0.000000e+00> : vector<1x384xf32>
    %337 = tpu.matmul %334, %336, %cst_108 {dimension_numbers = #tpu.dot_dimension_numbers<[1], [0], [0], [1], [0, 0, 1, 1], [], []>} : vector<1x64xf32>, vector<64x384xf32>, vector<1x384xf32> -> vector<1x384xf32>
    %338 = arith.addf %333, %337 : vector<1x384xf32>
    %339 = vector.extract_strided_slice %317 {offsets = [4, 0], sizes = [1, 64], strides = [1, 1]} : vector<6x64xf32> to vector<1x64xf32>
    %c4_109 = arith.constant 4 : index
    %c0_110 = arith.constant 0 : index
    %c0_111 = arith.constant 0 : index
    %340 = vector.load %arg11[%c4_109, %c0_110, %c0_111] : memref<6x64x384xf32, #tpu.memory_space<vmem>>, vector<1x64x384xf32>
    %341 = vector.shape_cast %340 : vector<1x64x384xf32> to vector<64x384xf32>
    %cst_112 = arith.constant dense<0.000000e+00> : vector<1x384xf32>
    %342 = tpu.matmul %339, %341, %cst_112 {dimension_numbers = #tpu.dot_dimension_numbers<[1], [0], [0], [1], [0, 0, 1, 1], [], []>} : vector<1x64xf32>, vector<64x384xf32>, vector<1x384xf32> -> vector<1x384xf32>
    %343 = arith.addf %338, %342 : vector<1x384xf32>
    %344 = vector.extract_strided_slice %317 {offsets = [5, 0], sizes = [1, 64], strides = [1, 1]} : vector<6x64xf32> to vector<1x64xf32>
    %c5_113 = arith.constant 5 : index
    %c0_114 = arith.constant 0 : index
    %c0_115 = arith.constant 0 : index
    %345 = vector.load %arg11[%c5_113, %c0_114, %c0_115] : memref<6x64x384xf32, #tpu.memory_space<vmem>>, vector<1x64x384xf32>
    %346 = vector.shape_cast %345 : vector<1x64x384xf32> to vector<64x384xf32>
    %cst_116 = arith.constant dense<0.000000e+00> : vector<1x384xf32>
    %347 = tpu.matmul %344, %346, %cst_116 {dimension_numbers = #tpu.dot_dimension_numbers<[1], [0], [0], [1], [0, 0, 1, 1], [], []>} : vector<1x64xf32>, vector<64x384xf32>, vector<1x384xf32> -> vector<1x384xf32>
    %348 = arith.addf %343, %347 : vector<1x384xf32>
    %cst_117 = arith.constant 0.000000e+00 : f32
    %349 = vector.broadcast %cst_117 : f32 to vector<1x384xf32>
    %350 = arith.maximumf %348, %349 : vector<1x384xf32>
    %351 = math.absf %348 : vector<1x384xf32>
    %cst_118 = arith.constant 0.000000e+00 : f32
    %352 = vector.broadcast %cst_118 : f32 to vector<1x384xf32>
    %353 = arith.subf %352, %351 : vector<1x384xf32>
    %354 = math.exp %353 : vector<1x384xf32>
    %355 = math.log1p %354 : vector<1x384xf32>
    %356 = arith.addf %350, %355 : vector<1x384xf32>
    %357 = math.tanh %356 : vector<1x384xf32>
    %358 = arith.mulf %348, %357 : vector<1x384xf32>
    %c0_119 = arith.constant 0 : index
    %c0_120 = arith.constant 0 : index
    %359 = vector.load %arg13[%c0_119, %c0_120] : memref<384x384xf32, #tpu.memory_space<vmem>>, vector<384x384xf32>
    %cst_121 = arith.constant dense<0.000000e+00> : vector<1x384xf32>
    %360 = tpu.matmul %358, %359, %cst_121 {dimension_numbers = #tpu.dot_dimension_numbers<[1], [0], [0], [1], [0, 0, 1, 1], [], []>} : vector<1x384xf32>, vector<384x384xf32>, vector<1x384xf32> -> vector<1x384xf32>
    %c0_122 = arith.constant 0 : index
    %c0_123 = arith.constant 0 : index
    %361 = vector.load %arg14[%c0_122, %c0_123] : memref<1x384xf32, #tpu.memory_space<vmem>>, vector<1x384xf32>
    %362 = arith.addf %360, %361 : vector<1x384xf32>
    %cst_124 = arith.constant 0.000000e+00 : f32
    %363 = vector.broadcast %cst_124 : f32 to vector<1x384xf32>
    %364 = arith.maximumf %362, %363 : vector<1x384xf32>
    %365 = math.absf %362 : vector<1x384xf32>
    %cst_125 = arith.constant 0.000000e+00 : f32
    %366 = vector.broadcast %cst_125 : f32 to vector<1x384xf32>
    %367 = arith.subf %366, %365 : vector<1x384xf32>
    %368 = math.exp %367 : vector<1x384xf32>
    %369 = math.log1p %368 : vector<1x384xf32>
    %370 = arith.addf %364, %369 : vector<1x384xf32>
    %371 = math.tanh %370 : vector<1x384xf32>
    %372 = arith.mulf %362, %371 : vector<1x384xf32>
    %c0_126 = arith.constant 0 : index
    %c0_127 = arith.constant 0 : index
    %373 = vector.load %arg15[%c0_126, %c0_127] : memref<384x6xf32, #tpu.memory_space<vmem>>, vector<384x6xf32>
    %cst_128 = arith.constant dense<0.000000e+00> : vector<1x6xf32>
    %374 = tpu.matmul %372, %373, %cst_128 {dimension_numbers = #tpu.dot_dimension_numbers<[1], [0], [0], [1], [0, 0, 1, 1], [], []>} : vector<1x384xf32>, vector<384x6xf32>, vector<1x6xf32> -> vector<1x6xf32>
    %c0_129 = arith.constant 0 : index
    %c0_130 = arith.constant 0 : index
    %375 = vector.load %arg16[%c0_129, %c0_130] : memref<1x6xf32, #tpu.memory_space<vmem>>, vector<1x6xf32>
    %376 = arith.addf %374, %375 : vector<1x6xf32>
    %377 = vector.shape_cast %376 : vector<1x6xf32> to vector<1x1x6xf32>
    %c0_131 = arith.constant 0 : index
    %c0_132 = arith.constant 0 : index
    %c0_133 = arith.constant 0 : index
    %378 = vector.load %arg24[%c0_131, %c0_132, %c0_133] : memref<1x1x6xf32, #tpu.memory_space<vmem>>, vector<1x1x6xf32>
    tpu.vector_store %arg24[%c0_131, %c0_132, %c0_133], %377 {strides = array<i32>} : memref<1x1x6xf32, #tpu.memory_space<vmem>>, vector<1x1x6xf32>,
    %c0_134 = arith.constant 0 : index
    %c0_135 = arith.constant 0 : index
    %379 = vector.load %arg17[%c0_134, %c0_135] : memref<64x64xf32, #tpu.memory_space<vmem>>, vector<64x64xf32>
    %cst_136 = arith.constant dense<0.000000e+00> : vector<6x64xf32>
    %380 = tpu.matmul %317, %379, %cst_136 {dimension_numbers = #tpu.dot_dimension_numbers<[1], [0], [0], [1], [0, 0, 1, 1], [], []>} : vector<6x64xf32>, vector<64x64xf32>, vector<6x64xf32> -> vector<6x64xf32>
    %c0_137 = arith.constant 0 : index
    %c0_138 = arith.constant 0 : index
    %381 = vector.load %arg18[%c0_137, %c0_138] : memref<1x64xf32, #tpu.memory_space<vmem>>, vector<1x64xf32>
    %382 = vector.broadcast %381 : vector<1x64xf32> to vector<6x64xf32>
    %383 = arith.addf %380, %382 : vector<6x64xf32>
    %cst_139 = arith.constant 0.000000e+00 : f32
    %384 = vector.broadcast %cst_139 : f32 to vector<6x64xf32>
    %385 = arith.maximumf %383, %384 : vector<6x64xf32>
    %386 = math.absf %383 : vector<6x64xf32>
    %cst_140 = arith.constant 0.000000e+00 : f32
    %387 = vector.broadcast %cst_140 : f32 to vector<6x64xf32>
    %388 = arith.subf %387, %386 : vector<6x64xf32>
    %389 = math.exp %388 : vector<6x64xf32>
    %390 = math.log1p %389 : vector<6x64xf32>
    %391 = arith.addf %385, %390 : vector<6x64xf32>
    %392 = math.tanh %391 : vector<6x64xf32>
    %393 = arith.mulf %383, %392 : vector<6x64xf32>
    %c0_141 = arith.constant 0 : index
    %c0_142 = arith.constant 0 : index
    %394 = vector.load %arg19[%c0_141, %c0_142] : memref<64x64xf32, #tpu.memory_space<vmem>>, vector<64x64xf32>
    %cst_143 = arith.constant dense<0.000000e+00> : vector<6x64xf32>
    %395 = tpu.matmul %393, %394, %cst_143 {dimension_numbers = #tpu.dot_dimension_numbers<[1], [0], [0], [1], [0, 0, 1, 1], [], []>} : vector<6x64xf32>, vector<64x64xf32>, vector<6x64xf32> -> vector<6x64xf32>
    %c0_144 = arith.constant 0 : index
    %c0_145 = arith.constant 0 : index
    %396 = vector.load %arg20[%c0_144, %c0_145] : memref<1x64xf32, #tpu.memory_space<vmem>>, vector<1x64xf32>
    %397 = vector.broadcast %396 : vector<1x64xf32> to vector<6x64xf32>
    %398 = arith.addf %395, %397 : vector<6x64xf32>
    %cst_146 = arith.constant 0.000000e+00 : f32
    %399 = vector.broadcast %cst_146 : f32 to vector<6x64xf32>
    %400 = arith.maximumf %398, %399 : vector<6x64xf32>
    %401 = math.absf %398 : vector<6x64xf32>
    %cst_147 = arith.constant 0.000000e+00 : f32
    %402 = vector.broadcast %cst_147 : f32 to vector<6x64xf32>
    %403 = arith.subf %402, %401 : vector<6x64xf32>
    %404 = math.exp %403 : vector<6x64xf32>
    %405 = math.log1p %404 : vector<6x64xf32>
    %406 = arith.addf %400, %405 : vector<6x64xf32>
    %407 = math.tanh %406 : vector<6x64xf32>
    %408 = arith.mulf %398, %407 : vector<6x64xf32>
    %c0_148 = arith.constant 0 : index
    %c0_149 = arith.constant 0 : index
    %409 = vector.load %arg21[%c0_148, %c0_149] : memref<64x40xf32, #tpu.memory_space<vmem>>, vector<64x40xf32>
    %cst_150 = arith.constant dense<0.000000e+00> : vector<6x40xf32>
    %410 = tpu.matmul %408, %409, %cst_150 {dimension_numbers = #tpu.dot_dimension_numbers<[1], [0], [0], [1], [0, 0, 1, 1], [], []>} : vector<6x64xf32>, vector<64x40xf32>, vector<6x40xf32> -> vector<6x40xf32>
    %c0_151 = arith.constant 0 : index
    %c0_152 = arith.constant 0 : index
    %411 = vector.load %arg22[%c0_151, %c0_152] : memref<1x40xf32, #tpu.memory_space<vmem>>, vector<1x40xf32>
    %412 = vector.broadcast %411 : vector<1x40xf32> to vector<6x40xf32>
    %413 = arith.addf %410, %412 : vector<6x40xf32>
    %414 = vector.shape_cast %413 : vector<6x40xf32> to vector<1x6x40xf32>
    %c0_153 = arith.constant 0 : index
    %c0_154 = arith.constant 0 : index
    %c0_155 = arith.constant 0 : index
    %415 = vector.load %arg23[%c0_153, %c0_154, %c0_155] : memref<1x6x40xf32, #tpu.memory_space<vmem>>, vector<1x6x40xf32>
    tpu.vector_store %arg23[%c0_153, %c0_154, %c0_155], %414 {strides = array<i32>} : memref<1x6x40xf32, #tpu.memory_space<vmem>>, vector<1x6x40xf32>,
    return
  }
  func.func @transform_0(%arg0: i32, %arg1: memref<3xi32, #tpu.memory_space<smem>>) -> (i32, i32, i32) {
    %c0_i32 = arith.constant 0 : i32
    %c0_i32_0 = arith.constant 0 : i32
    %c0_i32_1 = arith.constant 0 : i32
    return %arg0, %c0_i32, %c0_i32_0 : i32, i32, i32
  }
  func.func @transform_1(%arg0: i32, %arg1: memref<3xi32, #tpu.memory_space<smem>>) -> (i32, i32) {
    %c0_i32 = arith.constant 0 : i32
    %c0_i32_0 = arith.constant 0 : i32
    %c0_i32_1 = arith.constant 0 : i32
    return %c0_i32, %c0_i32_0 : i32, i32
  }
  func.func @transform_2(%arg0: i32, %arg1: memref<3xi32, #tpu.memory_space<smem>>) -> (i32, i32) {
    %c0_i32 = arith.constant 0 : i32
    %c0_i32_0 = arith.constant 0 : i32
    %c0_i32_1 = arith.constant 0 : i32
    return %c0_i32, %c0_i32_0 : i32, i32
  }
  func.func @transform_3(%arg0: i32, %arg1: memref<3xi32, #tpu.memory_space<smem>>) -> (i32, i32) {
    %c0_i32 = arith.constant 0 : i32
    %c0_i32_0 = arith.constant 0 : i32
    %c0_i32_1 = arith.constant 0 : i32
    return %c0_i32, %c0_i32_0 : i32, i32
  }
  func.func @transform_4(%arg0: i32, %arg1: memref<3xi32, #tpu.memory_space<smem>>) -> (i32, i32) {
    %c0_i32 = arith.constant 0 : i32
    %c0_i32_0 = arith.constant 0 : i32
    %c0_i32_1 = arith.constant 0 : i32
    return %c0_i32, %c0_i32_0 : i32, i32
  }
  func.func @transform_5(%arg0: i32, %arg1: memref<3xi32, #tpu.memory_space<smem>>) -> (i32, i32, i32) {
    %c0_i32 = arith.constant 0 : i32
    %c0_i32_0 = arith.constant 0 : i32
    %c0_i32_1 = arith.constant 0 : i32
    %c0_i32_2 = arith.constant 0 : i32
    return %c0_i32, %c0_i32_0, %c0_i32_1 : i32, i32, i32
  }
  func.func @transform_6(%arg0: i32, %arg1: memref<3xi32, #tpu.memory_space<smem>>) -> (i32, i32) {
    %c0_i32 = arith.constant 0 : i32
    %c0_i32_0 = arith.constant 0 : i32
    %c0_i32_1 = arith.constant 0 : i32
    return %c0_i32, %c0_i32_0 : i32, i32
  }
  func.func @transform_7(%arg0: i32, %arg1: memref<3xi32, #tpu.memory_space<smem>>) -> (i32, i32) {
    %c0_i32 = arith.constant 0 : i32
    %c0_i32_0 = arith.constant 0 : i32
    %c0_i32_1 = arith.constant 0 : i32
    return %c0_i32, %c0_i32_0 : i32, i32
  }
  func.func @transform_8(%arg0: i32, %arg1: memref<3xi32, #tpu.memory_space<smem>>) -> (i32, i32) {
    %c0_i32 = arith.constant 0 : i32
    %c0_i32_0 = arith.constant 0 : i32
    %c0_i32_1 = arith.constant 0 : i32
    return %c0_i32, %c0_i32_0 : i32, i32
  }
  func.func @transform_9(%arg0: i32, %arg1: memref<3xi32, #tpu.memory_space<smem>>) -> (i32, i32, i32) {
    %c0_i32 = arith.constant 0 : i32
    %c0_i32_0 = arith.constant 0 : i32
    %c0_i32_1 = arith.constant 0 : i32
    %c0_i32_2 = arith.constant 0 : i32
    return %c0_i32, %c0_i32_0, %c0_i32_1 : i32, i32, i32
  }
  func.func @transform_10(%arg0: i32, %arg1: memref<3xi32, #tpu.memory_space<smem>>) -> (i32, i32) {
    %c0_i32 = arith.constant 0 : i32
    %c0_i32_0 = arith.constant 0 : i32
    %c0_i32_1 = arith.constant 0 : i32
    return %c0_i32, %c0_i32_0 : i32, i32
  }
  func.func @transform_11(%arg0: i32, %arg1: memref<3xi32, #tpu.memory_space<smem>>) -> (i32, i32) {
    %c0_i32 = arith.constant 0 : i32
    %c0_i32_0 = arith.constant 0 : i32
    %c0_i32_1 = arith.constant 0 : i32
    return %c0_i32, %c0_i32_0 : i32, i32
  }
  func.func @transform_12(%arg0: i32, %arg1: memref<3xi32, #tpu.memory_space<smem>>) -> (i32, i32) {
    %c0_i32 = arith.constant 0 : i32
    %c0_i32_0 = arith.constant 0 : i32
    %c0_i32_1 = arith.constant 0 : i32
    return %c0_i32, %c0_i32_0 : i32, i32
  }
  func.func @transform_13(%arg0: i32, %arg1: memref<3xi32, #tpu.memory_space<smem>>) -> (i32, i32) {
    %c0_i32 = arith.constant 0 : i32
    %c0_i32_0 = arith.constant 0 : i32
    %c0_i32_1 = arith.constant 0 : i32
    return %c0_i32, %c0_i32_0 : i32, i32
  }
  func.func @transform_14(%arg0: i32, %arg1: memref<3xi32, #tpu.memory_space<smem>>) -> (i32, i32) {
    %c0_i32 = arith.constant 0 : i32
    %c0_i32_0 = arith.constant 0 : i32
    %c0_i32_1 = arith.constant 0 : i32
    return %c0_i32, %c0_i32_0 : i32, i32
  }
  func.func @transform_15(%arg0: i32, %arg1: memref<3xi32, #tpu.memory_space<smem>>) -> (i32, i32) {
    %c0_i32 = arith.constant 0 : i32
    %c0_i32_0 = arith.constant 0 : i32
    %c0_i32_1 = arith.constant 0 : i32
    return %c0_i32, %c0_i32_0 : i32, i32
  }
  func.func @transform_16(%arg0: i32, %arg1: memref<3xi32, #tpu.memory_space<smem>>) -> (i32, i32) {
    %c0_i32 = arith.constant 0 : i32
    %c0_i32_0 = arith.constant 0 : i32
    %c0_i32_1 = arith.constant 0 : i32
    return %c0_i32, %c0_i32_0 : i32, i32
  }
  func.func @transform_17(%arg0: i32, %arg1: memref<3xi32, #tpu.memory_space<smem>>) -> (i32, i32) {
    %c0_i32 = arith.constant 0 : i32
    %c0_i32_0 = arith.constant 0 : i32
    %c0_i32_1 = arith.constant 0 : i32
    return %c0_i32, %c0_i32_0 : i32, i32
  }
  func.func @transform_18(%arg0: i32, %arg1: memref<3xi32, #tpu.memory_space<smem>>) -> (i32, i32) {
    %c0_i32 = arith.constant 0 : i32
    %c0_i32_0 = arith.constant 0 : i32
    %c0_i32_1 = arith.constant 0 : i32
    return %c0_i32, %c0_i32_0 : i32, i32
  }
  func.func @transform_19(%arg0: i32, %arg1: memref<3xi32, #tpu.memory_space<smem>>) -> (i32, i32) {
    %c0_i32 = arith.constant 0 : i32
    %c0_i32_0 = arith.constant 0 : i32
    %c0_i32_1 = arith.constant 0 : i32
    return %c0_i32, %c0_i32_0 : i32, i32
  }
  func.func @transform_20(%arg0: i32, %arg1: memref<3xi32, #tpu.memory_space<smem>>) -> (i32, i32) {
    %c0_i32 = arith.constant 0 : i32
    %c0_i32_0 = arith.constant 0 : i32
    %c0_i32_1 = arith.constant 0 : i32
    return %c0_i32, %c0_i32_0 : i32, i32
  }
  func.func @transform_21(%arg0: i32, %arg1: memref<3xi32, #tpu.memory_space<smem>>) -> (i32, i32, i32) {
    %c0_i32 = arith.constant 0 : i32
    %c0_i32_0 = arith.constant 0 : i32
    %c0_i32_1 = arith.constant 0 : i32
    return %arg0, %c0_i32, %c0_i32_0 : i32, i32, i32
  }
  func.func @transform_22(%arg0: i32, %arg1: memref<3xi32, #tpu.memory_space<smem>>) -> (i32, i32, i32) {
    %c0_i32 = arith.constant 0 : i32
    %c0_i32_0 = arith.constant 0 : i32
    %c0_i32_1 = arith.constant 0 : i32
    return %arg0, %c0_i32, %c0_i32_0 : i32, i32, i32
  }
}

</mosaic_0001>

<bundles_post_ra>
// kernel: _forward_core.3
= control target key start
LH: loop header
LB: loop body
LE: loop exit
PB: predicated region body
PF: predicated region fallthrough
CT: control target
= control target key end

     0   :  { %vm39_vm0 = vcmask 326656   ;;  %vm317_vm9 = vcmask 523264   ;;  %vm321_vm10 = vcmask 521216   ;;  %s560_s1 = inlined_call_operand.vmem [shape: f32[40,40], index: 1, kind: input, shape index: {}]   ;;  %s561_s2 = inlined_call_operand.vmem [shape: f32[1,40], index: 2, kind: input, shape index: {}]   ;;  %s562_s0 = inlined_call_operand.vmem [shape: f32[30,40], index: 0, kind: input, shape index: {}]   ;;  %s563_s4 = inlined_call_operand.vmem [shape: f32[1,40], index: 4, kind: input, shape index: {}]   ;;  %s564_s3 = inlined_call_operand.vmem [shape: f32[40,40], index: 3, kind: input, shape index: {}]   ;;  %s565_s6 = inlined_call_operand.vmem [shape: f32[1,64], index: 6, kind: input, shape index: {}]   ;;  %s566_s5 = inlined_call_operand.vmem [shape: f32[40,64], index: 5, kind: input, shape index: {}]   ;;  %s567_s7 = inlined_call_operand.vmem [shape: f32[30,64], index: 7, kind: output, shape index: {}]  }
   0x1   :  { %v34_v0 = vld [vmem:[%s560_s1 + $0x20] sm:$0xff]  ;;  %v33_v1 = vld [vmem:[%s560_s1 + $0x18] sm:$0xff]  ;;  %v32_v2 = vld [vmem:[%s560_s1 + $0x10] sm:$0xff] }
   0x2   :  { %63 = vmatpush.msra.mxu0 %v34_v0  ;;  %339 = vmatpush.msra.mxu3 %v34_v0  ;;  %v31_v3 = vld [vmem:[%s560_s1 + $0x8] sm:$0xff]  ;;  %v30_v4 = vld [vmem:[%s560_s1] sm:$0xff]  ;;  %v28_v7 = vld [vmem:[%s562_s0 + $0x10] sm:$0xff] }
   0x3   :  { %v26_v5 = vld [vmem:[%s562_s0] sm:$0xff]  ;;  %v27_v6 = vld [vmem:[%s562_s0 + $0x8] sm:$0xff]  ;;  %v29_v8 = vld [vmem:[%s562_s0 + $0x18] sm:$0x3f] }
   0x4   :  { %64 = vmatpush.msra.mxu0 %v33_v1  ;;  %340 = vmatpush.msra.mxu3 %v33_v1  ;;  %v349_v9 = vld [vmem:[%s561_s2] ss:$0 sm:$0xff]  ;;  %v152_v11 = vld [vmem:[%s564_s3 + $0x18] sm:$0xff]  ;;  %v151_v14 = vld [vmem:[%s564_s3 + $0x10] sm:$0xff] }
   0x5   :  { %v153_v10 = vld [vmem:[%s564_s3 + $0x20] sm:$0xff]  ;;  %v150_v16 = vld [vmem:[%s564_s3 + $0x8] sm:$0xff] }
   0x6   :  { %65 = vmatpush.msra.mxu0 %v32_v2  ;;  %341 = vmatpush.msra.mxu3 %v32_v2  ;;  %v149_v18 = vld [vmem:[%s564_s3] sm:$0xff] }
   0x7   :  { %344 = vmatpush.msra.mxu1 %v153_v10 }
   0x8   :  { %66 = vmatpush.msra.mxu0 %v31_v3  ;;  %342 = vmatpush.msra.mxu3 %v31_v3 }
   0x9   :  { %345 = vmatpush.msra.mxu1 %v152_v11 }
   0xa   :  { %67 = vmatpush.msra.mxu0 %v30_v4  ;;  %343 = vmatpush.msra.mxu3 %v30_v4 }
   0xb   :  { %327 = vmatmul.msk.f32.vlgmr.msra.gmra.mxu0 %vm39_vm0, %v26_v5  ;;  %328 = vmatmul.msk.f32.vlgmr.msra.gmra.mxu3 %vm39_vm0, %v27_v6 }
   0xc   :  { %181 = vmatpush.msrb.mxu0 %v153_v10  ;;  %346 = vmatpush.msra.mxu1 %v151_v14 }
   0xe   :  { %182 = vmatpush.msrb.mxu0 %v152_v11  ;;  %347 = vmatpush.msra.mxu1 %v150_v16 }
  0x10   :  { %183 = vmatpush.msrb.mxu0 %v151_v14  ;;  %348 = vmatpush.msra.mxu1 %v149_v18 }
  0x12   :  { %184 = vmatpush.msrb.mxu0 %v150_v16 }
  0x13   :  { %329 = vmatmul.msk.f32.gmra.mxu3 %vm39_vm0, %v28_v7 }
  0x14   :  { %185 = vmatpush.msrb.mxu0 %v149_v18 }
  0x1b   :  { %330 = vmatmul.msk.f32.gmra.mxu3 %vm39_vm0, %v29_v8 }
  0x88   :  { %v69_v12 = vpop.f32.mrf.mxu0 }
  0x89   :  { %v480_v13 = vadd.f32 %v349_v9, %v69_v12 }
  0x8b   :  { %v85_v15 = vand.u32 2147483647, %v480_v13  ;;  %v81_v44 = vmax.f32 %v480_v13, 0.0 }
  0x8d   :  { %v89_v17 = vsub.f32 0.0, %v85_v15 }
  0x8e   :  { %v72_v19 = vpop.f32.mrf.mxu3 }
  0x8f   :  { %v93_v20 = vmul.f32 1.442695, %v89_v17  ;;  %v492_v21 = vadd.f32 %v349_v9, %v72_v19 }
  0x91   :  { %352 = vpow2.f32 %v93_v20  ;;  %v86_v22 = vand.u32 2147483647, %v492_v21  ;;  %v82_v57 = vmax.f32 %v492_v21, 0.0 }
  0x93   :  { %v90_v23 = vsub.f32 0.0, %v86_v22 }
  0x95   :  { %v95_v24 = vmul.f32 1.442695, %v90_v23 }
  0x96   :  { %v75_v25 = vpop.f32.mrf.mxu3 }
  0x97   :  { %v353_v26 = vpop.eup %352  ;;  %354 = vpow2.f32 %v95_v24  ;;  %v495_v27 = vadd.f32 %v349_v9, %v75_v25  ;;  %v271_v24 = vld [vmem:[%s566_s5 + $0x20] sm:$0xff]  ;;  %v270_v25 = vld [vmem:[%s566_s5 + $0x18] sm:$0xff] }
  0x98   :  { %v101_v28 = vadd.f32 1.0, %v353_v26  ;;  %v104_v29 = vmul.f32 -0.5, %v353_v26  ;;  %v107_v35 = vand.u32 2147483647, %v353_v26  ;;  %299 = vmatpush.msra.mxu2 %v271_v24 }
  0x99   :  { %v87_v30 = vand.u32 2147483647, %v495_v27  ;;  %v83_v6 = vmax.f32 %v495_v27, 0.0 }
  0x9a   :  { %356 = vlog2.f32 %v101_v28  ;;  %v105_v33 = vadd.f32 1.0, %v104_v29  ;;  %vm108_vm1 = vcmp.lt.f32.partialorder %v107_v35, 0.0004427343  ;;  %300 = vmatpush.msra.mxu2 %v270_v25  ;;  %v269_v28 = vld [vmem:[%s566_s5 + $0x10] sm:$0xff] }
  0x9b   :  { %v91_v31 = vsub.f32 0.0, %v87_v30  ;;  %v268_v30 = vld [vmem:[%s566_s5 + $0x8] sm:$0xff] }
  0x9c   :  { %v106_v42 = vmul.f32 %v353_v26, %v105_v33  ;;  %301 = vmatpush.msra.mxu2 %v269_v28 }
  0x9d   :  { %v355_v32 = vpop.eup %354  ;;  %v97_v34 = vmul.f32 1.442695, %v91_v31 }
  0x9e   :  { %v110_v36 = vadd.f32 1.0, %v355_v32  ;;  %v78_v37 = vpop.f32.mrf.mxu3  ;;  %v113_v38 = vmul.f32 -0.5, %v355_v32  ;;  %v116_v49 = vand.u32 2147483647, %v355_v32  ;;  %302 = vmatpush.msra.mxu2 %v268_v30 }
  0x9f   :  { %358 = vpow2.f32 %v97_v34  ;;  %v79_v39 = vadd.f32 %v349_v9, %v78_v37 }
  0xa0   :  { %v357_v40 = vpop.eup %356  ;;  %360 = vlog2.f32 %v110_v36  ;;  %v114_v46 = vadd.f32 1.0, %v113_v38  ;;  %vm117_vm2 = vcmp.lt.f32.partialorder %v116_v49, 0.0004427343 }
  0xa1   :  { %v103_v41 = vmul.f32 0.6931472, %v357_v40  ;;  %v88_v43 = vand.u32 2147483647, %v79_v39  ;;  %v84_v16 = vmax.f32 %v79_v39, 0.0 }
  0xa2   :  { %v115_v55 = vmul.f32 %v355_v32, %v114_v46  ;;  %v267_v32 = vld [vmem:[%s566_s5] sm:$0xff] }
  0xa3   :  { %v109_v45 = vsel %vm108_vm1, %v106_v42, %v103_v41  ;;  %v92_v47 = vsub.f32 0.0, %v88_v43  ;;  %303 = vmatpush.msra.mxu2 %v267_v32 }
  0xa4   :  { %v137_v48 = vadd.f32 %v109_v45, %v81_v44 }
  0xa5   :  { %v359_v50 = vpop.eup %358  ;;  %v99_v51 = vmul.f32 1.442695, %v92_v47 }
  0xa6   :  { %v361_v52 = vpop.eup %360  ;;  %362 = vtanh.f32 %v137_v48  ;;  %v119_v53 = vadd.f32 1.0, %v359_v50  ;;  %v122_v56 = vmul.f32 -0.5, %v359_v50  ;;  %v125_v62 = vand.u32 2147483647, %v359_v50 }
  0xa7   :  { %v112_v54 = vmul.f32 0.6931472, %v361_v52  ;;  %364 = vpow2.f32 %v99_v51 }
  0xa8   :  { %366 = vlog2.f32 %v119_v53  ;;  %v123_v60 = vadd.f32 1.0, %v122_v56  ;;  %vm126_vm3 = vcmp.lt.f32.partialorder %v125_v62, 0.0004427343 }
  0xa9   :  { %v118_v58 = vsel %vm117_vm2, %v115_v55, %v112_v54 }
  0xaa   :  { %v138_v59 = vadd.f32 %v118_v58, %v82_v57  ;;  %v124_v4 = vmul.f32 %v359_v50, %v123_v60 }
  0xac   :  { %v363_v61 = vpop.eup %362  ;;  %368 = vtanh.f32 %v138_v59 }
  0xad   :  { %v365_v63 = vpop.eup %364  ;;  %v145_v0 = vmul.f32 %v363_v61, %v480_v13 }
  0xae   :  { %v367_v1 = vpop.eup %366  ;;  %v128_v2 = vadd.f32 1.0, %v365_v63  ;;  %v131_v5 = vmul.f32 -0.5, %v365_v63  ;;  %v134_v12 = vand.u32 2147483647, %v365_v63 }
  0xaf   :  { %v121_v3 = vmul.f32 0.6931472, %v367_v1  ;;  %331 = vmatmul.msk.f32.vlgmr.msrb.gmra.mxu0 %vm39_vm0, %v145_v0 }
  0xb0   :  { %370 = vlog2.f32 %v128_v2  ;;  %v132_v10 = vadd.f32 1.0, %v131_v5  ;;  %vm135_vm4 = vcmp.lt.f32.partialorder %v134_v12, 0.0004427343 }
  0xb1   :  { %v127_v7 = vsel %vm126_vm3, %v124_v4, %v121_v3 }
  0xb2   :  { %v369_v8 = vpop.eup %368  ;;  %v139_v9 = vadd.f32 %v127_v7, %v83_v6  ;;  %v133_v15 = vmul.f32 %v365_v63, %v132_v10 }
  0xb3   :  { %v146_v11 = vmul.f32 %v369_v8, %v492_v21  ;;  %v350_v21 = vld [vmem:[%s563_s4] ss:$0 sm:$0xff] }
  0xb4   :  { %372 = vtanh.f32 %v139_v9 }
  0xb5   :  { %332 = vmatmul.msk.f32.vlgmr.msra.gmra.mxu1 %vm39_vm0, %v146_v11 }
  0xb6   :  { %v371_v13 = vpop.eup %370 }
  0xb7   :  { %v130_v14 = vmul.f32 0.6931472, %v371_v13 }
  0xb9   :  { %v136_v17 = vsel %vm135_vm4, %v133_v15, %v130_v14 }
  0xba   :  { %v373_v18 = vpop.eup %372  ;;  %v140_v19 = vadd.f32 %v136_v17, %v84_v16 }
  0xbb   :  { %v147_v20 = vmul.f32 %v373_v18, %v495_v27 }
  0xbc   :  { %374 = vtanh.f32 %v140_v19 }
  0xbd   :  { %333 = vmatmul.msk.f32.gmra.mxu1 %vm39_vm0, %v147_v20 }
  0xc2   :  { %v375_v22 = vpop.eup %374 }
  0xc3   :  { %v148_v23 = vmul.f32 %v375_v22, %v79_v39 }
  0xc5   :  { %334 = vmatmul.msk.f32.gmra.mxu1 %vm39_vm0, %v148_v23 }
 0x12c   :  { %v187_v26 = vpop.f32.mrf.mxu0 }
 0x12d   :  { %v517_v27 = vadd.f32 %v350_v21, %v187_v26 }
 0x12f   :  { %v203_v29 = vand.u32 2147483647, %v517_v27  ;;  %v199_v58 = vmax.f32 %v517_v27, 0.0 }
 0x131   :  { %v207_v31 = vsub.f32 0.0, %v203_v29 }
 0x132   :  { %v190_v33 = vpop.f32.mrf.mxu1 }
 0x133   :  { %v211_v34 = vmul.f32 1.442695, %v207_v31  ;;  %v529_v35 = vadd.f32 %v350_v21, %v190_v33 }
 0x135   :  { %376 = vpow2.f32 %v211_v34  ;;  %v204_v36 = vand.u32 2147483647, %v529_v35  ;;  %v200_v7 = vmax.f32 %v529_v35, 0.0 }
 0x137   :  { %v208_v37 = vsub.f32 0.0, %v204_v36 }
 0x139   :  { %v213_v38 = vmul.f32 1.442695, %v208_v37 }
 0x13a   :  { %v193_v39 = vpop.f32.mrf.mxu1 }
 0x13b   :  { %v377_v40 = vpop.eup %376  ;;  %378 = vpow2.f32 %v213_v38  ;;  %v532_v41 = vadd.f32 %v350_v21, %v193_v39 }
 0x13c   :  { %v219_v42 = vadd.f32 1.0, %v377_v40  ;;  %v222_v43 = vmul.f32 -0.5, %v377_v40  ;;  %v225_v49 = vand.u32 2147483647, %v377_v40 }
 0x13d   :  { %v205_v44 = vand.u32 2147483647, %v532_v41  ;;  %v201_v20 = vmax.f32 %v532_v41, 0.0 }
 0x13e   :  { %380 = vlog2.f32 %v219_v42  ;;  %v223_v47 = vadd.f32 1.0, %v222_v43  ;;  %vm226_vm5 = vcmp.lt.f32.partialorder %v225_v49, 0.0004427343 }
 0x13f   :  { %v209_v45 = vsub.f32 0.0, %v205_v44 }
 0x140   :  { %v224_v56 = vmul.f32 %v377_v40, %v223_v47 }
 0x141   :  { %v379_v46 = vpop.eup %378  ;;  %v215_v48 = vmul.f32 1.442695, %v209_v45 }
 0x142   :  { %v228_v50 = vadd.f32 1.0, %v379_v46  ;;  %v196_v51 = vpop.f32.mrf.mxu1  ;;  %v231_v52 = vmul.f32 -0.5, %v379_v46  ;;  %v234_v63 = vand.u32 2147483647, %v379_v46 }
 0x143   :  { %382 = vpow2.f32 %v215_v48  ;;  %v197_v53 = vadd.f32 %v350_v21, %v196_v51 }
 0x144   :  { %v381_v54 = vpop.eup %380  ;;  %384 = vlog2.f32 %v228_v50  ;;  %v232_v60 = vadd.f32 1.0, %v231_v52  ;;  %vm235_vm6 = vcmp.lt.f32.partialorder %v234_v63, 0.0004427343 }
 0x145   :  { %v221_v55 = vmul.f32 0.6931472, %v381_v54  ;;  %v206_v57 = vand.u32 2147483647, %v197_v53  ;;  %v202_v30 = vmax.f32 %v197_v53, 0.0 }
 0x146   :  { %v233_v5 = vmul.f32 %v379_v46, %v232_v60 }
 0x147   :  { %v227_v59 = vsel %vm226_vm5, %v224_v56, %v221_v55  ;;  %v210_v61 = vsub.f32 0.0, %v206_v57 }
 0x148   :  { %v255_v62 = vadd.f32 %v227_v59, %v199_v58 }
 0x149   :  { %v383_v0 = vpop.eup %382  ;;  %v217_v1 = vmul.f32 1.442695, %v210_v61 }
 0x14a   :  { %v385_v2 = vpop.eup %384  ;;  %386 = vtanh.f32 %v255_v62  ;;  %v237_v3 = vadd.f32 1.0, %v383_v0  ;;  %v240_v6 = vmul.f32 -0.5, %v383_v0  ;;  %v243_v12 = vand.u32 2147483647, %v383_v0 }
 0x14b   :  { %v230_v4 = vmul.f32 0.6931472, %v385_v2  ;;  %388 = vpow2.f32 %v217_v1 }
 0x14c   :  { %390 = vlog2.f32 %v237_v3  ;;  %v241_v10 = vadd.f32 1.0, %v240_v6  ;;  %vm244_vm7 = vcmp.lt.f32.partialorder %v243_v12, 0.0004427343 }
 0x14d   :  { %v236_v8 = vsel %vm235_vm6, %v233_v5, %v230_v4 }
 0x14e   :  { %v256_v9 = vadd.f32 %v236_v8, %v200_v7  ;;  %v242_v18 = vmul.f32 %v383_v0, %v241_v10 }
 0x150   :  { %v387_v11 = vpop.eup %386  ;;  %392 = vtanh.f32 %v256_v9 }
 0x151   :  { %v389_v13 = vpop.eup %388  ;;  %v263_v14 = vmul.f32 %v387_v11, %v517_v27 }
 0x152   :  { %v391_v15 = vpop.eup %390  ;;  %v246_v16 = vadd.f32 1.0, %v389_v13  ;;  %v249_v19 = vmul.f32 -0.5, %v389_v13  ;;  %v252_v25 = vand.u32 2147483647, %v389_v13 }
 0x153   :  { %v239_v17 = vmul.f32 0.6931472, %v391_v15  ;;  %335 = vmatmul.msk.f32.vlgmr.msra.gmra.mxu2 %vm39_vm0, %v263_v14 }
 0x154   :  { %394 = vlog2.f32 %v246_v16  ;;  %v250_v24 = vadd.f32 1.0, %v249_v19  ;;  %vm253_vm8 = vcmp.lt.f32.partialorder %v252_v25, 0.0004427343 }
 0x155   :  { %v245_v22 = vsel %vm244_vm7, %v242_v18, %v239_v17 }
 0x156   :  { %v393_v23 = vpop.eup %392  ;;  %v257_v21 = vadd.f32 %v245_v22, %v201_v20  ;;  %v251_v29 = vmul.f32 %v389_v13, %v250_v24 }
 0x157   :  { %v264_v26 = vmul.f32 %v393_v23, %v529_v35  ;;  %v351_v35 = vld [vmem:[%s565_s6] ss:$0 sm:$0xff] }
 0x158   :  { %396 = vtanh.f32 %v257_v21 }
 0x15a   :  { %v395_v27 = vpop.eup %394 }
 0x15b   :  { %v248_v28 = vmul.f32 0.6931472, %v395_v27  ;;  %336 = vmatmul.msk.f32.gmra.mxu2 %vm39_vm0, %v264_v26 }
 0x15d   :  { %v254_v31 = vsel %vm253_vm8, %v251_v29, %v248_v28 }
 0x15e   :  { %v397_v32 = vpop.eup %396  ;;  %v258_v33 = vadd.f32 %v254_v31, %v202_v30 }
 0x15f   :  { %v265_v34 = vmul.f32 %v397_v32, %v532_v41 }
 0x160   :  { %398 = vtanh.f32 %v258_v33 }
 0x163   :  { %337 = vmatmul.msk.f32.gmra.mxu2 %vm39_vm0, %v265_v34 }
 0x166   :  { %v399_v36 = vpop.eup %398 }
 0x167   :  { %v266_v37 = vmul.f32 %v399_v36, %v197_v53 }
 0x16b   :  { %338 = vmatmul.msk.f32.gmra.mxu2 %vm39_vm0, %v266_v37 }
 0x1d6   :  { %v305_v38 = vpop.f32.mrf.mxu2 }
 0x1d7   :  { %v306_v39 = vadd.f32 %v351_v35, %v305_v38 }
 0x1d9   :  { %318 = vst.msk [vmem:[%s567_s7] sm:$0xff] %vm317_vm9, %v306_v39 }
 0x1de   :  { %v308_v40 = vpop.f32.mrf.mxu2 }
 0x1df   :  { %v309_v42 = vadd.f32 %v351_v35, %v308_v40 }
 0x1e1   :  { %319 = vst.msk [vmem:[%s567_s7 + $0x8] sm:$0xff] %vm317_vm9, %v309_v42 }
 0x1e6   :  { %v311_v41 = vpop.f32.mrf.mxu2 }
 0x1e7   :  { %v312_v43 = vadd.f32 %v351_v35, %v311_v41 }
 0x1e9   :  { %320 = vst.msk [vmem:[%s567_s7 + $0x10] sm:$0xff] %vm317_vm9, %v312_v43 }
 0x1ee   :  { %v314_v44 = vpop.f32.mrf.mxu2 }
 0x1ef   :  { %v315_v45 = vadd.f32 %v351_v35, %v314_v44 }
 0x1f1   :  { %322 = vst.msk [vmem:[%s567_s7 + $0x18] sm:$0x3f] %vm321_vm10, %v315_v45 }

// kernel: _forward_core.4
= control target key start
LH: loop header
LB: loop body
LE: loop exit
PB: predicated region body
PF: predicated region fallthrough
CT: control target
= control target key end

     0   :  { %19 = vsyncpa [#allocation3], 0  ;;  %v1319_v6 = vmov 0   ;;  %vm99_vm0 = vcmask 261120   ;;  %s2469_s0 = inlined_call_operand.vmem [shape: f32[288,128], index: 0, kind: input, shape index: {}]   ;;  %s2470_s1 = inlined_call_operand.vmem [shape: f32[16,288], index: 1, kind: input, shape index: {}]   ;;  %s2471_s2 = inlined_call_operand.vmem [shape: f32[16,1], index: 2, kind: input, shape index: {}]   ;;  %s2472_s3 = inlined_call_operand.vmem [shape: f32[16,128,32], index: 3, kind: input, shape index: {}]   ;;  %s2473_s4 = inlined_call_operand.vmem [shape: f32[1,32], index: 4, kind: input, shape index: {}]   ;;  %s2474_s5 = inlined_call_operand.vmem [shape: f32[3,128], index: 5, kind: input, shape index: {}]   ;;  %s2475_s6 = inlined_call_operand.vmem [shape: f32[128,128], index: 6, kind: input, shape index: {}]   ;;  %s2476_s7 = inlined_call_operand.vmem [shape: f32[1,128], index: 7, kind: input, shape index: {}]   ;;  %s2477_s8 = inlined_call_operand.vmem [shape: f32[128,128], index: 8, kind: input, shape index: {}]   ;;  %s2478_s9 = inlined_call_operand.vmem [shape: f32[1,128], index: 9, kind: input, shape index: {}]   ;;  %s2479_s10 = inlined_call_operand.vmem [shape: f32[128,32], index: 10, kind: input, shape index: {}]   ;;  %s2480_s11 = inlined_call_operand.vmem [shape: f32[1,32], index: 11, kind: input, shape index: {}]   ;;  %s2481_s12 = inlined_call_operand.hbm [shape: f32[1,32], index: 12, kind: output, shape index: {0}]   ;;  %s2482_s13 = inlined_call_operand.hbm [shape: f32[3,32], index: 13, kind: output, shape index: {1}]  }
   0x1   :  { %v66_v0 = vld [vmem:[%s2469_s0 + $0x78] sm:$0xff]  ;;  %v65_v1 = vld [vmem:[%s2469_s0 + $0x70] sm:$0xff]  ;;  %v64_v4 = vld [vmem:[%s2469_s0 + $0x68] sm:$0xff]  ;;  %1251 = vset.pattern.permute.xlu0 %v1319_v6 }
   0x2   :  { %v82_v2 = vld [vmem:[%s2469_s0 + $0xf8] sm:$0xff]  ;;  %106 = vmatpush.msra.mxu0 %v66_v0  ;;  %v81_v3 = vld [vmem:[%s2469_s0 + $0xf0] sm:$0xff]  ;;  %v80_v5 = vld [vmem:[%s2469_s0 + $0xe8] sm:$0xff] }
   0x3   :  { %129 = vmatpush.msra.mxu1 %v82_v2  ;;  %v63_v7 = vld [vmem:[%s2469_s0 + $0x60] sm:$0xff]  ;;  %v62_v9 = vld [vmem:[%s2469_s0 + $0x58] sm:$0xff]  ;;  %v61_v12 = vld [vmem:[%s2469_s0 + $0x50] sm:$0xff] }
   0x4   :  { %107 = vmatpush.msra.mxu0 %v65_v1  ;;  %v79_v8 = vld [vmem:[%s2469_s0 + $0xe0] sm:$0xff]  ;;  %v78_v10 = vld [vmem:[%s2469_s0 + $0xd8] sm:$0xff]  ;;  %v77_v13 = vld [vmem:[%s2469_s0 + $0xd0] sm:$0xff] }
   0x5   :  { %130 = vmatpush.msra.mxu1 %v81_v3  ;;  %v86_v11 = vld [vmem:[%s2469_s0 + $0x118] sm:$0xff]  ;;  %v85_v14 = vld [vmem:[%s2469_s0 + $0x110] sm:$0xff]  ;;  %v84_v15 = vld [vmem:[%s2469_s0 + $0x108] sm:$0xff] }
   0x6   :  { %108 = vmatpush.msra.mxu0 %v64_v4  ;;  %164 = vmatpush.msra.mxu2 %v86_v11  ;;  %v60_v16 = vld [vmem:[%s2469_s0 + $0x48] sm:$0xff]  ;;  %v83_v18 = vld [vmem:[%s2469_s0 + $0x100] sm:$0xff]  ;;  %v47_v21 = vld [vmem:[%s2470_s1 + $0x10] sm:$0xff] }
   0x7   :  { %131 = vmatpush.msra.mxu1 %v80_v5  ;;  %v76_v17 = vld [vmem:[%s2469_s0 + $0xc8] sm:$0xff]  ;;  %v59_v19 = vld [vmem:[%s2469_s0 + $0x40] sm:$0xff]  ;;  %v58_v23 = vld [vmem:[%s2469_s0 + $0x38] sm:$0xff] }
   0x8   :  { %109 = vmatpush.msra.mxu0 %v63_v7  ;;  %165 = vmatpush.msra.mxu2 %v85_v14  ;;  %v75_v20 = vld [vmem:[%s2469_s0 + $0xc0] sm:$0xff]  ;;  %v74_v24 = vld [vmem:[%s2469_s0 + $0xb8] sm:$0xff]  ;;  %v192_v26 = vld [vmem:[%s2472_s3 + $0x70] sm:$0xff] }
   0x9   :  { %132 = vmatpush.msra.mxu1 %v79_v8  ;;  %v87_v22 = vld [vmem:[%s2471_s2] sm:$0xff]  ;;  %v193_v25 = vld [vmem:[%s2472_s3 + $0x78] sm:$0xff]  ;;  %v57_v28 = vld [vmem:[%s2469_s0 + $0x30] sm:$0xff] }
   0xa   :  { %110 = vmatpush.msra.mxu0 %v62_v9  ;;  %166 = vmatpush.msra.mxu2 %v84_v15  ;;  %v1023_v27 = vld [vmem:[%s2472_s3 + $0xf8] sm:$0xff]  ;;  %v73_v29 = vld [vmem:[%s2469_s0 + $0xb0] sm:$0xff]  ;;  %v191_v30 = vld [vmem:[%s2472_s3 + $0x68] sm:$0xff] }
   0xb   :  { %133 = vmatpush.msra.mxu1 %v78_v10  ;;  %91 = vperm.xlu0 %1251, %v87_v22   ;;  %v1022_v31 = vld [vmem:[%s2472_s3 + $0xf0] sm:$0xff]  ;;  %v56_v32 = vld [vmem:[%s2469_s0 + $0x28] sm:$0xff]  ;;  %v190_v35 = vld [vmem:[%s2472_s3 + $0x60] sm:$0xff] }
   0xc   :  { %111 = vmatpush.msra.mxu0 %v61_v12  ;;  %167 = vmatpush.msra.mxu2 %v83_v18  ;;  %v72_v33 = vld [vmem:[%s2469_s0 + $0xa8] sm:$0xff]  ;;  %v55_v36 = vld [vmem:[%s2469_s0 + $0x20] sm:$0xff]  ;;  %v189_v39 = vld [vmem:[%s2472_s3 + $0x58] sm:$0xff] }
   0xd   :  { %134 = vmatpush.msra.mxu1 %v77_v13  ;;  %1006 = vmatmul.msk.f32.vlgmr.msra.gmra.mxu2 %vm99_vm0, %v47_v21  ;;  %v88_v34 = vld [vmem:[%s2471_s2 + $0x8] sm:$0xff]  ;;  %v71_v37 = vld [vmem:[%s2469_s0 + $0xa0] sm:$0xff]  ;;  %v54_v40 = vld [vmem:[%s2469_s0 + $0x18] sm:$0xff] }
   0xe   :  { %112 = vmatpush.msra.mxu0 %v60_v16  ;;  %194 = vmatpush.msra.mxu3 %v193_v25  ;;  %v50_v38 = vld [vmem:[%s2470_s1 + $0x28] sm:$0xff]  ;;  %v70_v41 = vld [vmem:[%s2469_s0 + $0x98] sm:$0xff]  ;;  %v188_v43 = vld [vmem:[%s2472_s3 + $0x50] sm:$0xff] }
   0xf   :  { %135 = vmatpush.msra.mxu1 %v76_v17  ;;  %235 = vmatpush.msrb.mxu2 %v1023_v27  ;;  %v1021_v42 = vld [vmem:[%s2472_s3 + $0xe8] sm:$0xff]  ;;  %v53_v44 = vld [vmem:[%s2469_s0 + $0x10] sm:$0xff]  ;;  %v1020_v46 = vld [vmem:[%s2472_s3 + $0xe0] sm:$0xff] }
  0x10   :  { %113 = vmatpush.msra.mxu0 %v59_v19  ;;  %195 = vmatpush.msra.mxu3 %v192_v26  ;;  %v69_v45 = vld [vmem:[%s2469_s0 + $0x90] sm:$0xff]  ;;  %v187_v47 = vld [vmem:[%s2472_s3 + $0x48] sm:$0xff]  ;;  %v1019_v50 = vld [vmem:[%s2472_s3 + $0xd8] sm:$0xff] }
  0x11   :  { %136 = vmatpush.msra.mxu1 %v75_v20  ;;  %236 = vmatpush.msrb.mxu2 %v1022_v31  ;;  %v52_v48 = vld [vmem:[%s2469_s0 + $0x8] sm:$0xff]  ;;  %v186_v51 = vld [vmem:[%s2472_s3 + $0x40] sm:$0xff]  ;;  %v1039_v56 = vld [vmem:[%s2472_s3 + $0x178] sm:$0xff] }
  0x12   :  { %114 = vmatpush.msra.mxu0 %v58_v23  ;;  %196 = vmatpush.msra.mxu3 %v191_v30  ;;  %v68_v49 = vld [vmem:[%s2469_s0 + $0x88] sm:$0xff]  ;;  %v51_v52 = vld [vmem:[%s2469_s0] sm:$0xff]  ;;  %v1055_v57 = vld [vmem:[%s2472_s3 + $0x1f8] sm:$0xff] }
  0x13   :  { %137 = vmatpush.msra.mxu1 %v74_v24  ;;  %96 = vperm.xlu0 %1251, %v88_v34   ;;  %v67_v53 = vld [vmem:[%s2469_s0 + $0x80] sm:$0xff]  ;;  %v46_v55 = vld [vmem:[%s2470_s1 + $0x8] sm:$0xff]  ;;  %v1018_v58 = vld [vmem:[%s2472_s3 + $0xd0] sm:$0xff] }
  0x14   :  { %115 = vmatpush.msra.mxu0 %v57_v28  ;;  %197 = vmatpush.msra.mxu3 %v190_v35  ;;  %v45_v54 = vld [vmem:[%s2470_s1] sm:$0xff]  ;;  %v185_v59 = vld [vmem:[%s2472_s3 + $0x38] sm:$0xff]  ;;  %v1038_v60 = vld [vmem:[%s2472_s3 + $0x170] sm:$0xff] }
  0x15   :  { %138 = vmatpush.msra.mxu1 %v73_v29  ;;  %1007 = vmatmul.msk.f32.gmra.mxu2 %vm99_vm0, %v50_v38  ;;  %v1054_v61 = vld [vmem:[%s2472_s3 + $0x1f0] sm:$0xff]  ;;  %v1017_v62 = vld [vmem:[%s2472_s3 + $0xc8] sm:$0xff]  ;;  %v1016_v2 = vld [vmem:[%s2472_s3 + $0xc0] sm:$0xff] }
  0x16   :  { %116 = vmatpush.msra.mxu0 %v56_v32  ;;  %198 = vmatpush.msra.mxu3 %v189_v39  ;;  %v184_v63 = vld [vmem:[%s2472_s3 + $0x30] sm:$0xff]  ;;  %v1037_v0 = vld [vmem:[%s2472_s3 + $0x168] sm:$0xff]  ;;  %v1036_v4 = vld [vmem:[%s2472_s3 + $0x160] sm:$0xff] }
  0x17   :  { %139 = vmatpush.msra.mxu1 %v72_v33  ;;  %237 = vmatpush.msrb.mxu2 %v1021_v42  ;;  %v1053_v1 = vld [vmem:[%s2472_s3 + $0x1e8] sm:$0xff]  ;;  %v1052_v5 = vld [vmem:[%s2472_s3 + $0x1e0] sm:$0xff]  ;;  %v48_v6 = vld [vmem:[%s2470_s1 + $0x18] sm:$0xff] }
  0x18   :  { %117 = vmatpush.msra.mxu0 %v55_v36  ;;  %199 = vmatpush.msra.mxu3 %v188_v43  ;;  %v183_v3 = vld [vmem:[%s2472_s3 + $0x28] sm:$0xff]  ;;  %v49_v7 = vld [vmem:[%s2470_s1 + $0x20] sm:$0xff]  ;;  %v1035_v8 = vld [vmem:[%s2472_s3 + $0x158] sm:$0xff] }
  0x19   :  { %140 = vmatpush.msra.mxu1 %v71_v37  ;;  %238 = vmatpush.msrb.mxu2 %v1020_v46  ;;  %v1051_v9 = vld [vmem:[%s2472_s3 + $0x1d8] sm:$0xff]  ;;  %v182_v11 = vld [vmem:[%s2472_s3 + $0x20] sm:$0xff]  ;;  %v1034_v12 = vld [vmem:[%s2472_s3 + $0x150] sm:$0xff] }
  0x1a   :  { %118 = vmatpush.msra.mxu0 %v54_v40  ;;  %200 = vmatpush.msra.mxu3 %v187_v47  ;;  %v1015_v10 = vld [vmem:[%s2472_s3 + $0xb8] sm:$0xff]  ;;  %v1050_v13 = vld [vmem:[%s2472_s3 + $0x1d0] sm:$0xff]  ;;  %v1033_v16 = vld [vmem:[%s2472_s3 + $0x148] sm:$0xff] }
  0x1b   :  { %141 = vmatpush.msra.mxu1 %v70_v41  ;;  %239 = vmatpush.msrb.mxu2 %v1019_v50  ;;  %v1014_v14 = vld [vmem:[%s2472_s3 + $0xb0] sm:$0xff]  ;;  %v181_v15 = vld [vmem:[%s2472_s3 + $0x18] sm:$0xff]  ;;  %v1049_v17 = vld [vmem:[%s2472_s3 + $0x1c8] sm:$0xff] }
  0x1c   :  { %119 = vmatpush.msra.mxu0 %v53_v44  ;;  %201 = vmatpush.msra.mxu3 %v186_v51  ;;  %v1032_v18 = vld [vmem:[%s2472_s3 + $0x140] sm:$0xff]  ;;  %v1013_v20 = vld [vmem:[%s2472_s3 + $0xa8] sm:$0xff]  ;;  %v180_v21 = vld [vmem:[%s2472_s3 + $0x10] sm:$0xff] }
  0x1d   :  { %142 = vmatpush.msra.mxu1 %v69_v45  ;;  %240 = vmatpush.msrb.mxu2 %v1018_v58  ;;  %v1048_v19 = vld [vmem:[%s2472_s3 + $0x1c0] sm:$0xff]  ;;  %v179_v23 = vld [vmem:[%s2472_s3 + $0x8] sm:$0xff] }
  0x1e   :  { %120 = vmatpush.msra.mxu0 %v52_v48  ;;  %202 = vmatpush.msra.mxu3 %v185_v59  ;;  %v1012_v22 = vld [vmem:[%s2472_s3 + $0xa0] sm:$0xff] }
  0x1f   :  { %143 = vmatpush.msra.mxu1 %v68_v49  ;;  %241 = vmatpush.msrb.mxu2 %v1017_v62 }
  0x20   :  { %121 = vmatpush.msra.mxu0 %v51_v52  ;;  %203 = vmatpush.msra.mxu3 %v184_v63 }
  0x21   :  { %144 = vmatpush.msra.mxu1 %v67_v53  ;;  %122 = vmatmul.f32.vlgmr.msra.gmra.mxu0 %v45_v54 }
  0x22   :  { %145 = vmatmul.f32.vlgmr.msra.gmra.mxu1 %v46_v55  ;;  %275 = vmatpush.msrb.mxu0 %v1039_v56 }
  0x23   :  { %315 = vmatpush.msrb.mxu1 %v1055_v57  ;;  %242 = vmatpush.msrb.mxu2 %v1016_v2 }
  0x24   :  { %276 = vmatpush.msrb.mxu0 %v1038_v60  ;;  %204 = vmatpush.msra.mxu3 %v183_v3 }
  0x25   :  { %316 = vmatpush.msrb.mxu1 %v1054_v61  ;;  %243 = vmatpush.msrb.mxu2 %v1015_v10 }
  0x26   :  { %277 = vmatpush.msrb.mxu0 %v1037_v0  ;;  %205 = vmatpush.msra.mxu3 %v182_v11 }
  0x27   :  { %317 = vmatpush.msrb.mxu1 %v1053_v1  ;;  %244 = vmatpush.msrb.mxu2 %v1014_v14 }
  0x28   :  { %278 = vmatpush.msrb.mxu0 %v1036_v4  ;;  %206 = vmatpush.msra.mxu3 %v181_v15 }
  0x29   :  { %318 = vmatpush.msrb.mxu1 %v1052_v5  ;;  %125 = vmatmul.f32.gmra.mxu0 %v48_v6 }
  0x2a   :  { %148 = vmatmul.f32.gmra.mxu1 %v49_v7  ;;  %279 = vmatpush.msrb.mxu0 %v1035_v8 }
  0x2b   :  { %319 = vmatpush.msrb.mxu1 %v1051_v9 }
  0x2c   :  { %280 = vmatpush.msrb.mxu0 %v1034_v12 }
  0x2d   :  { %320 = vmatpush.msrb.mxu1 %v1050_v13 }
  0x2e   :  { %281 = vmatpush.msrb.mxu0 %v1033_v16 }
  0x2f   :  { %321 = vmatpush.msrb.mxu1 %v1049_v17 }
  0x30   :  { %20 = vsyncpa [#allocation5], 0  ;;  %v1031_v24 = vld [vmem:[%s2472_s3 + $0x138] sm:$0xff]  ;;  %245 = vmatpush.msrb.mxu2 %v1013_v20  ;;  %207 = vmatpush.msra.mxu3 %v180_v21  ;;  %v178_v27 = vld [vmem:[%s2472_s3] sm:$0xff]  ;;  %vm815_vm1 = vcmask 253952   ;;  %s981_s14 = sshll.u32 %s2481_s12, 4  ;;  %s982_s14 = int_to_ptr.hbm [resolvable:$true] %s981_s14 }
  0x31   :  { %v1047_v25 = vld [vmem:[%s2472_s3 + $0x1b8] sm:$0xff]  ;;  %282 = vmatpush.msrb.mxu0 %v1032_v18  ;;  %322 = vmatpush.msrb.mxu1 %v1048_v19  ;;  %v1030_v28 = vld [vmem:[%s2472_s3 + $0x130] sm:$0xff]  ;;  %v1029_v32 = vld [vmem:[%s2472_s3 + $0x128] sm:$0xff]  ;;  %s1321_s2 = smov [#allocation4]   ;;  %vm972_vm4 = vcmask 256000  }
  0x32   :  { %v1011_v26 = vld [vmem:[%s2472_s3 + $0x98] sm:$0xff]  ;;  %v1046_v29 = vld [vmem:[%s2472_s3 + $0x1b0] sm:$0xff]  ;;  %246 = vmatpush.msrb.mxu2 %v1012_v22  ;;  %208 = vmatpush.msra.mxu3 %v179_v23  ;;  %v1045_v33 = vld [vmem:[%s2472_s3 + $0x1a8] sm:$0xff]  ;;  %s990_s16 = sshll.u32 %s1321_s2, 4  ;;  %s991_s16 = int_to_ptr.vmem [resolvable:$true] %s990_s16 }
  0x33   :  { %283 = vmatpush.msrb.mxu0 %v1031_v24  ;;  %323 = vmatpush.msrb.mxu1 %v1047_v25  ;;  %v1010_v30 = vld [vmem:[%s2472_s3 + $0x90] sm:$0xff]  ;;  %v1071_v31 = vld [vmem:[%s2472_s3 + $0x278] sm:$0xff]  ;;  %v1009_v34 = vld [vmem:[%s2472_s3 + $0x88] sm:$0xff] }
  0x34   :  { %247 = vmatpush.msrb.mxu2 %v1011_v26  ;;  %209 = vmatpush.msra.mxu3 %v178_v27  ;;  %v1070_v35 = vld [vmem:[%s2472_s3 + $0x270] sm:$0xff]  ;;  %v1028_v36 = vld [vmem:[%s2472_s3 + $0x120] sm:$0xff]  ;;  %v1069_v39 = vld [vmem:[%s2472_s3 + $0x268] sm:$0xff] }
  0x35   :  { %284 = vmatpush.msrb.mxu0 %v1030_v28  ;;  %324 = vmatpush.msrb.mxu1 %v1046_v29  ;;  %v1044_v37 = vld [vmem:[%s2472_s3 + $0x1a0] sm:$0xff]  ;;  %v1027_v40 = vld [vmem:[%s2472_s3 + $0x118] sm:$0xff]  ;;  %v1026_v44 = vld [vmem:[%s2472_s3 + $0x110] sm:$0xff] }
  0x36   :  { %248 = vmatpush.msrb.mxu2 %v1010_v30  ;;  %355 = vmatpush.msrb.mxu3 %v1071_v31  ;;  %v1008_v38 = vld [vmem:[%s2472_s3 + $0x80] sm:$0xff]  ;;  %v1043_v41 = vld [vmem:[%s2472_s3 + $0x198] sm:$0xff]  ;;  %v1042_v45 = vld [vmem:[%s2472_s3 + $0x190] sm:$0xff] }
  0x37   :  { %285 = vmatpush.msrb.mxu0 %v1029_v32  ;;  %325 = vmatpush.msrb.mxu1 %v1045_v33  ;;  %v1087_v42 = vld [vmem:[%s2472_s3 + $0x2f8] sm:$0xff]  ;;  %v1068_v43 = vld [vmem:[%s2472_s3 + $0x260] sm:$0xff]  ;;  %v1086_v46 = vld [vmem:[%s2472_s3 + $0x2f0] sm:$0xff] }
  0x38   :  { %249 = vmatpush.msrb.mxu2 %v1009_v34  ;;  %356 = vmatpush.msrb.mxu3 %v1070_v35  ;;  %v1067_v47 = vld [vmem:[%s2472_s3 + $0x258] sm:$0xff]  ;;  %v1025_v48 = vld [vmem:[%s2472_s3 + $0x108] sm:$0xff]  ;;  %v1066_v51 = vld [vmem:[%s2472_s3 + $0x250] sm:$0xff] }
  0x39   :  { %286 = vmatpush.msrb.mxu0 %v1028_v36  ;;  %326 = vmatpush.msrb.mxu1 %v1044_v37  ;;  %v1041_v49 = vld [vmem:[%s2472_s3 + $0x188] sm:$0xff]  ;;  %v1024_v52 = vld [vmem:[%s2472_s3 + $0x100] sm:$0xff]  ;;  %v1103_v54 = vld [vmem:[%s2472_s3 + $0x378] sm:$0xff] }
  0x3a   :  { %250 = vmatpush.msrb.mxu2 %v1008_v38  ;;  %357 = vmatpush.msrb.mxu3 %v1069_v39  ;;  %v1085_v50 = vld [vmem:[%s2472_s3 + $0x2e8] sm:$0xff]  ;;  %v1040_v53 = vld [vmem:[%s2472_s3 + $0x180] sm:$0xff]  ;;  %v1119_v55 = vld [vmem:[%s2472_s3 + $0x3f8] sm:$0xff] }
  0x3b   :  { %287 = vmatpush.msrb.mxu0 %v1027_v40  ;;  %327 = vmatpush.msrb.mxu1 %v1043_v41  ;;  %v1084_v56 = vld [vmem:[%s2472_s3 + $0x2e0] sm:$0xff]  ;;  %v1065_v57 = vld [vmem:[%s2472_s3 + $0x248] sm:$0xff]  ;;  %v1102_v58 = vld [vmem:[%s2472_s3 + $0x370] sm:$0xff] }
  0x3c   :  { %395 = vmatpush.msra.mxu2 %v1087_v42  ;;  %358 = vmatpush.msrb.mxu3 %v1068_v43  ;;  %v1118_v59 = vld [vmem:[%s2472_s3 + $0x3f0] sm:$0xff]  ;;  %v1083_v60 = vld [vmem:[%s2472_s3 + $0x2d8] sm:$0xff]  ;;  %v1064_v61 = vld [vmem:[%s2472_s3 + $0x240] sm:$0xff] }
  0x3d   :  { %288 = vmatpush.msrb.mxu0 %v1026_v44  ;;  %328 = vmatpush.msrb.mxu1 %v1042_v45  ;;  %v1101_v62 = vld [vmem:[%s2472_s3 + $0x368] sm:$0xff]  ;;  %v1082_v0 = vld [vmem:[%s2472_s3 + $0x2d0] sm:$0xff]  ;;  %v1100_v1 = vld [vmem:[%s2472_s3 + $0x360] sm:$0xff] }
  0x3e   :  { %396 = vmatpush.msra.mxu2 %v1086_v46  ;;  %359 = vmatpush.msrb.mxu3 %v1067_v47  ;;  %v1117_v63 = vld [vmem:[%s2472_s3 + $0x3e8] sm:$0xff]  ;;  %v1116_v2 = vld [vmem:[%s2472_s3 + $0x3e0] sm:$0xff]  ;;  %v1099_v3 = vld [vmem:[%s2472_s3 + $0x358] sm:$0xff] }
  0x3f   :  { %289 = vmatpush.msrb.mxu0 %v1025_v48  ;;  %329 = vmatpush.msrb.mxu1 %v1041_v49  ;;  %v1115_v4 = vld [vmem:[%s2472_s3 + $0x3d8] sm:$0xff]  ;;  %v1098_v5 = vld [vmem:[%s2472_s3 + $0x350] sm:$0xff]  ;;  %v1081_v7 = vld [vmem:[%s2472_s3 + $0x2c8] sm:$0xff] }
  0x40   :  { %397 = vmatpush.msra.mxu2 %v1085_v50  ;;  %360 = vmatpush.msrb.mxu3 %v1066_v51  ;;  %v1114_v6 = vld [vmem:[%s2472_s3 + $0x3d0] sm:$0xff]  ;;  %v1097_v8 = vld [vmem:[%s2472_s3 + $0x348] sm:$0xff]  ;;  %v1063_v10 = vld [vmem:[%s2472_s3 + $0x238] sm:$0xff] }
  0x41   :  { %290 = vmatpush.msrb.mxu0 %v1024_v52  ;;  %330 = vmatpush.msrb.mxu1 %v1040_v53  ;;  %v1113_v9 = vld [vmem:[%s2472_s3 + $0x3c8] sm:$0xff]  ;;  %v1080_v11 = vld [vmem:[%s2472_s3 + $0x2c0] sm:$0xff]  ;;  %v1062_v14 = vld [vmem:[%s2472_s3 + $0x230] sm:$0xff] }
  0x42   :  { %398 = vmatpush.msra.mxu2 %v1084_v56  ;;  %361 = vmatpush.msrb.mxu3 %v1065_v57  ;;  %v1096_v12 = vld [vmem:[%s2472_s3 + $0x340] sm:$0xff]  ;;  %v1079_v15 = vld [vmem:[%s2472_s3 + $0x2b8] sm:$0xff]  ;;  %v1061_v18 = vld [vmem:[%s2472_s3 + $0x228] sm:$0xff] }
  0x43   :  { %435 = vmatpush.msra.mxu0 %v1103_v54  ;;  %475 = vmatpush.msra.mxu1 %v1119_v55  ;;  %v1112_v13 = vld [vmem:[%s2472_s3 + $0x3c0] sm:$0xff]  ;;  %v1095_v16 = vld [vmem:[%s2472_s3 + $0x338] sm:$0xff]  ;;  %v1078_v19 = vld [vmem:[%s2472_s3 + $0x2b0] sm:$0xff] }
  0x44   :  { %399 = vmatpush.msra.mxu2 %v1083_v60  ;;  %362 = vmatpush.msrb.mxu3 %v1064_v61  ;;  %v1111_v17 = vld [vmem:[%s2472_s3 + $0x3b8] sm:$0xff]  ;;  %v1094_v20 = vld [vmem:[%s2472_s3 + $0x330] sm:$0xff]  ;;  %v1060_v22 = vld [vmem:[%s2472_s3 + $0x220] sm:$0xff] }
  0x45   :  { %436 = vmatpush.msra.mxu0 %v1102_v58  ;;  %476 = vmatpush.msra.mxu1 %v1118_v59  ;;  %v1110_v21 = vld [vmem:[%s2472_s3 + $0x3b0] sm:$0xff]  ;;  %v1077_v23 = vld [vmem:[%s2472_s3 + $0x2a8] sm:$0xff]  ;;  %v1059_v26 = vld [vmem:[%s2472_s3 + $0x218] sm:$0xff] }
  0x46   :  { %400 = vmatpush.msra.mxu2 %v1082_v0  ;;  %363 = vmatpush.msrb.mxu3 %v1063_v10  ;;  %v1093_v24 = vld [vmem:[%s2472_s3 + $0x328] sm:$0xff]  ;;  %v1076_v27 = vld [vmem:[%s2472_s3 + $0x2a0] sm:$0xff]  ;;  %v1058_v30 = vld [vmem:[%s2472_s3 + $0x210] sm:$0xff] }
  0x47   :  { %437 = vmatpush.msra.mxu0 %v1101_v62  ;;  %477 = vmatpush.msra.mxu1 %v1117_v63  ;;  %v1109_v25 = vld [vmem:[%s2472_s3 + $0x3a8] sm:$0xff]  ;;  %v1092_v28 = vld [vmem:[%s2472_s3 + $0x320] sm:$0xff]  ;;  %v1075_v31 = vld [vmem:[%s2472_s3 + $0x298] sm:$0xff] }
  0x48   :  { %401 = vmatpush.msra.mxu2 %v1081_v7  ;;  %364 = vmatpush.msrb.mxu3 %v1062_v14  ;;  %v1108_v29 = vld [vmem:[%s2472_s3 + $0x3a0] sm:$0xff]  ;;  %v1091_v32 = vld [vmem:[%s2472_s3 + $0x318] sm:$0xff]  ;;  %v1057_v34 = vld [vmem:[%s2472_s3 + $0x208] sm:$0xff] }
  0x49   :  { %438 = vmatpush.msra.mxu0 %v1100_v1  ;;  %478 = vmatpush.msra.mxu1 %v1116_v2  ;;  %v1107_v33 = vld [vmem:[%s2472_s3 + $0x398] sm:$0xff]  ;;  %v1074_v35 = vld [vmem:[%s2472_s3 + $0x290] sm:$0xff]  ;;  %v1056_v38 = vld [vmem:[%s2472_s3 + $0x200] sm:$0xff] }
  0x4a   :  { %402 = vmatpush.msra.mxu2 %v1080_v11  ;;  %365 = vmatpush.msrb.mxu3 %v1061_v18  ;;  %v1090_v36 = vld [vmem:[%s2472_s3 + $0x310] sm:$0xff]  ;;  %v1073_v39 = vld [vmem:[%s2472_s3 + $0x288] sm:$0xff]  ;;  %v1072_v42 = vld [vmem:[%s2472_s3 + $0x280] sm:$0xff] }
  0x4b   :  { %439 = vmatpush.msra.mxu0 %v1099_v3  ;;  %479 = vmatpush.msra.mxu1 %v1115_v4  ;;  %v1106_v37 = vld [vmem:[%s2472_s3 + $0x390] sm:$0xff]  ;;  %v1089_v40 = vld [vmem:[%s2472_s3 + $0x308] sm:$0xff]  ;;  %v1088_v43 = vld [vmem:[%s2472_s3 + $0x300] sm:$0xff] }
  0x4c   :  { %403 = vmatpush.msra.mxu2 %v1079_v15  ;;  %366 = vmatpush.msrb.mxu3 %v1060_v22  ;;  %v1105_v41 = vld [vmem:[%s2472_s3 + $0x388] sm:$0xff]  ;;  %v1104_v44 = vld [vmem:[%s2472_s3 + $0x380] sm:$0xff]  ;;  %v1135_v53 = vld [vmem:[%s2472_s3 + $0x478] sm:$0xff] }
  0x4d   :  { %440 = vmatpush.msra.mxu0 %v1098_v5  ;;  %480 = vmatpush.msra.mxu1 %v1114_v6  ;;  %v1134_v57 = vld [vmem:[%s2472_s3 + $0x470] sm:$0xff]  ;;  %v1151_v58 = vld [vmem:[%s2472_s3 + $0x4f8] sm:$0xff]  ;;  %v1133_v61 = vld [vmem:[%s2472_s3 + $0x468] sm:$0xff] }
  0x4e   :  { %404 = vmatpush.msra.mxu2 %v1078_v19  ;;  %367 = vmatpush.msrb.mxu3 %v1059_v26  ;;  %v1167_v59 = vld [vmem:[%s2472_s3 + $0x578] sm:$0xff]  ;;  %v1150_v62 = vld [vmem:[%s2472_s3 + $0x4f0] sm:$0xff]  ;;  %v1132_v1 = vld [vmem:[%s2472_s3 + $0x460] sm:$0xff] }
  0x4f   :  { %441 = vmatpush.msra.mxu0 %v1097_v8  ;;  %481 = vmatpush.msra.mxu1 %v1113_v9  ;;  %v1183_v60 = vld [vmem:[%s2472_s3 + $0x5f8] sm:$0xff]  ;;  %v1166_v63 = vld [vmem:[%s2472_s3 + $0x570] sm:$0xff]  ;;  %v1149_v2 = vld [vmem:[%s2472_s3 + $0x4e8] sm:$0xff] }
  0x50   :  { %405 = vmatpush.msra.mxu2 %v1077_v23  ;;  %368 = vmatpush.msrb.mxu3 %v1058_v30  ;;  %v1182_v0 = vld [vmem:[%s2472_s3 + $0x5f0] sm:$0xff]  ;;  %v1165_v3 = vld [vmem:[%s2472_s3 + $0x568] sm:$0xff]  ;;  %v1131_v6 = vld [vmem:[%s2472_s3 + $0x458] sm:$0xff] }
  0x51   :  { %442 = vmatpush.msra.mxu0 %v1096_v12  ;;  %482 = vmatpush.msra.mxu1 %v1112_v13  ;;  %v1181_v4 = vld [vmem:[%s2472_s3 + $0x5e8] sm:$0xff]  ;;  %v1148_v7 = vld [vmem:[%s2472_s3 + $0x4e0] sm:$0xff]  ;;  %v1130_v12 = vld [vmem:[%s2472_s3 + $0x450] sm:$0xff] }
  0x52   :  { %406 = vmatpush.msra.mxu2 %v1076_v27  ;;  %369 = vmatpush.msrb.mxu3 %v1057_v34  ;;  %v1164_v8 = vld [vmem:[%s2472_s3 + $0x560] sm:$0xff]  ;;  %v1147_v14 = vld [vmem:[%s2472_s3 + $0x4d8] sm:$0xff]  ;;  %v1146_v18 = vld [vmem:[%s2472_s3 + $0x4d0] sm:$0xff] }
  0x53   :  { %443 = vmatpush.msra.mxu0 %v1095_v16  ;;  %483 = vmatpush.msra.mxu1 %v1111_v17  ;;  %v1180_v9 = vld [vmem:[%s2472_s3 + $0x5e0] sm:$0xff]  ;;  %v1163_v15 = vld [vmem:[%s2472_s3 + $0x558] sm:$0xff]  ;;  %v1129_v17 = vld [vmem:[%s2472_s3 + $0x448] sm:$0xff] }
  0x54   :  { %407 = vmatpush.msra.mxu2 %v1075_v31  ;;  %370 = vmatpush.msrb.mxu3 %v1056_v38  ;;  %v1179_v16 = vld [vmem:[%s2472_s3 + $0x5d8] sm:$0xff]  ;;  %v1162_v19 = vld [vmem:[%s2472_s3 + $0x550] sm:$0xff]  ;;  %v1145_v22 = vld [vmem:[%s2472_s3 + $0x4c8] sm:$0xff] }
  0x55   :  { %444 = vmatpush.msra.mxu0 %v1094_v20  ;;  %484 = vmatpush.msra.mxu1 %v1110_v21  ;;  %v1178_v20 = vld [vmem:[%s2472_s3 + $0x5d0] sm:$0xff]  ;;  %v1128_v21 = vld [vmem:[%s2472_s3 + $0x440] sm:$0xff]  ;;  %v1161_v23 = vld [vmem:[%s2472_s3 + $0x548] sm:$0xff] }
  0x56   :  { %408 = vmatpush.msra.mxu2 %v1074_v35  ;;  %v1144_v27 = vld [vmem:[%s2472_s3 + $0x4c0] sm:$0xff]  ;;  %v1126_v30 = vld [vmem:[%s2472_s3 + $0x430] sm:$0xff]  ;;  %v1175_v35 = vld [vmem:[%s2472_s3 + $0x5b8] sm:$0xff] }
  0x57   :  { %445 = vmatpush.msra.mxu0 %v1093_v24  ;;  %485 = vmatpush.msra.mxu1 %v1109_v25  ;;  %v1177_v24 = vld [vmem:[%s2472_s3 + $0x5c8] sm:$0xff]  ;;  %v1127_v25 = vld [vmem:[%s2472_s3 + $0x438] sm:$0xff]  ;;  %v1142_v38 = vld [vmem:[%s2472_s3 + $0x4b0] sm:$0xff] }
  0x58   :  { %409 = vmatpush.msra.mxu2 %v1073_v39  ;;  %v1158_v39 = vld [vmem:[%s2472_s3 + $0x530] sm:$0xff] }
  0x59   :  { %446 = vmatpush.msra.mxu0 %v1092_v28  ;;  %486 = vmatpush.msra.mxu1 %v1108_v29  ;;  %v1160_v28 = vld [vmem:[%s2472_s3 + $0x540] sm:$0xff] }
  0x5a   :  { %410 = vmatpush.msra.mxu2 %v1072_v42  ;;  %v1176_v29 = vld [vmem:[%s2472_s3 + $0x5c0] sm:$0xff]  ;;  %v1141_v42 = vld [vmem:[%s2472_s3 + $0x4a8] sm:$0xff] }
  0x5b   :  { %447 = vmatpush.msra.mxu0 %v1091_v32  ;;  %487 = vmatpush.msra.mxu1 %v1107_v33  ;;  %v1143_v32 = vld [vmem:[%s2472_s3 + $0x4b8] sm:$0xff] }
  0x5c   :  { %v1159_v33 = vld [vmem:[%s2472_s3 + $0x538] sm:$0xff] }
  0x5d   :  { %448 = vmatpush.msra.mxu0 %v1090_v36  ;;  %488 = vmatpush.msra.mxu1 %v1106_v37  ;;  %v1125_v36 = vld [vmem:[%s2472_s3 + $0x428] sm:$0xff] }
  0x5f   :  { %449 = vmatpush.msra.mxu0 %v1089_v40  ;;  %489 = vmatpush.msra.mxu1 %v1105_v41  ;;  %v1174_v40 = vld [vmem:[%s2472_s3 + $0x5b0] sm:$0xff]  ;;  %v1124_v41 = vld [vmem:[%s2472_s3 + $0x420] sm:$0xff] }
  0x61   :  { %450 = vmatpush.msra.mxu0 %v1088_v43  ;;  %490 = vmatpush.msra.mxu1 %v1104_v44  ;;  %v1157_v43 = vld [vmem:[%s2472_s3 + $0x528] sm:$0xff] }
  0x7d   :  { %v92_v45 = vpop.permute.xlu0 %91 }
  0x85   :  { %v97_v31 = vpop.permute.xlu0 %96 }
  0x90   :  { %v169_v49 = vpop.f32.mrf.mxu2 }
  0x9e   :  { %v123_v46 = vpop.f32.mrf.mxu0 }
  0x9f   :  { %v146_v47 = vpop.f32.mrf.mxu1  ;;  %v124_v48 = vadd.f32 %v123_v46, %v92_v45  ;;  %v1173_v45 = vld [vmem:[%s2472_s3 + $0x5a8] sm:$0xff]  ;;  %v1123_v46 = vld [vmem:[%s2472_s3 + $0x418] sm:$0xff] }
  0xa1   :  { %v147_v50 = vadd.f32 %v146_v47, %v124_v48  ;;  %v172_v47 = vpop.f32.mrf.mxu2  ;;  %v1140_v48 = vld [vmem:[%s2472_s3 + $0x4a0] sm:$0xff] }
  0xa3   :  { %v170_v51 = vadd.f32 %v169_v49, %v147_v50  ;;  %v1156_v49 = vld [vmem:[%s2472_s3 + $0x520] sm:$0xff] }
  0xa4   :  { %v1172_v50 = vld [vmem:[%s2472_s3 + $0x5a0] sm:$0xff] }
  0xa5   :  { %v175_v52 = vmax.f32 %v170_v51, 0.0  ;;  %v1122_v51 = vld [vmem:[%s2472_s3 + $0x410] sm:$0xff] }
  0xa6   :  { %v126_v26 = vpop.f32.mrf.mxu0 }
  0xa7   :  { %210 = vmatmul.f32.vlgmr.msra.gmra.mxu3 %v175_v52  ;;  %v233_v54 = vrot.slane %v175_v52, 1  ;;  %v273_v55 = vrot.slane %v175_v52, 2  ;;  %v313_v56 = vrot.slane %v175_v52, 3  ;;  %v353_v5 = vrot.slane %v175_v52, 4  ;;  %v149_v37 = vpop.f32.mrf.mxu1 }
  0xa8   :  { %513 = vmatpush.msra.mxu3 %v1135_v53  ;;  %v393_v10 = vrot.slane %v175_v52, 5  ;;  %v433_v11 = vrot.slane %v175_v52, 6  ;;  %v473_v13 = vrot.slane %v175_v52, 7  ;;  %v127_v34 = vadd.f32 %v126_v26, %v97_v31  ;;  %v1139_v52 = vld [vmem:[%s2472_s3 + $0x498] sm:$0xff]  ;;  %v1242_v31 = vld [vmem:[%s2472_s3 + $0x7d0] sm:$0xff] }
  0xa9   :  { %251 = vmatmul.f32.vlgmr.msrb.gmra.mxu2 %v233_v54  ;;  %291 = vmatmul.f32.vlgmr.msrb.gmra.mxu0 %v273_v55  ;;  %v1155_v53 = vld [vmem:[%s2472_s3 + $0x518] sm:$0xff] }
  0xaa   :  { %331 = vmatmul.f32.vlgmr.msrb.gmra.mxu1 %v313_v56  ;;  %514 = vmatpush.msra.mxu3 %v1134_v57  ;;  %v150_v44 = vadd.f32 %v149_v37, %v127_v34  ;;  %v1171_v55 = vld [vmem:[%s2472_s3 + $0x598] sm:$0xff]  ;;  %v1121_v56 = vld [vmem:[%s2472_s3 + $0x408] sm:$0xff]  ;;  %v1138_v57 = vld [vmem:[%s2472_s3 + $0x490] sm:$0xff] }
  0xab   :  { %554 = vmatpush.msrb.mxu2 %v1151_v58  ;;  %594 = vmatpush.msrb.mxu0 %v1167_v59  ;;  %v1154_v58 = vld [vmem:[%s2472_s3 + $0x510] sm:$0xff]  ;;  %v1227_v26 = vld [vmem:[%s2472_s3 + $0x758] sm:$0xff]  ;;  %v1225_v34 = vld [vmem:[%s2472_s3 + $0x748] sm:$0xff] }
  0xac   :  { %634 = vmatpush.msrb.mxu1 %v1183_v60  ;;  %515 = vmatpush.msra.mxu3 %v1133_v61  ;;  %v173_v54 = vadd.f32 %v172_v47, %v150_v44  ;;  %v1170_v59 = vld [vmem:[%s2472_s3 + $0x590] sm:$0xff]  ;;  %v1120_v60 = vld [vmem:[%s2472_s3 + $0x400] sm:$0xff]  ;;  %v1137_v61 = vld [vmem:[%s2472_s3 + $0x488] sm:$0xff] }
  0xad   :  { %555 = vmatpush.msrb.mxu2 %v1150_v62  ;;  %595 = vmatpush.msrb.mxu0 %v1166_v63  ;;  %v1153_v62 = vld [vmem:[%s2472_s3 + $0x508] sm:$0xff]  ;;  %v1208_v37 = vld [vmem:[%s2472_s3 + $0x6c0] sm:$0xff]  ;;  %v1238_v47 = vld [vmem:[%s2472_s3 + $0x7b0] sm:$0xff] }
  0xae   :  { %635 = vmatpush.msrb.mxu1 %v1182_v0  ;;  %516 = vmatpush.msra.mxu3 %v1132_v1  ;;  %v2090_v63 = vmax.f32 %v173_v54, 0.0  ;;  %v1169_v0 = vld [vmem:[%s2472_s3 + $0x588] sm:$0xff]  ;;  %v1199_v1 = vld [vmem:[%s2472_s3 + $0x678] sm:$0xff]  ;;  %v1220_v54 = vld [vmem:[%s2472_s3 + $0x720] sm:$0xff] }
  0xaf   :  { %556 = vmatpush.msrb.mxu2 %v1149_v2  ;;  %596 = vmatpush.msrb.mxu0 %v1165_v3  ;;  %v1136_v2 = vld [vmem:[%s2472_s3 + $0x480] sm:$0xff]  ;;  %v1189_v44 = vld [vmem:[%s2472_s3 + $0x628] sm:$0xff] }
  0xb0   :  { %636 = vmatpush.msrb.mxu1 %v1181_v4  ;;  %371 = vmatmul.f32.vlgmr.msrb.gmra.mxu3 %v353_v5  ;;  %v1152_v3 = vld [vmem:[%s2472_s3 + $0x500] sm:$0xff]  ;;  %v552_v5 = vrot.slane %v2090_v63, 1 }
  0xb1   :  { %517 = vmatpush.msra.mxu3 %v1131_v6  ;;  %557 = vmatpush.msrb.mxu2 %v1148_v7  ;;  %v1168_v4 = vld [vmem:[%s2472_s3 + $0x580] sm:$0xff]  ;;  %v592_v6 = vrot.slane %v2090_v63, 2  ;;  %v1198_v7 = vld [vmem:[%s2472_s3 + $0x670] sm:$0xff] }
  0xb2   :  { %597 = vmatpush.msrb.mxu0 %v1164_v8  ;;  %637 = vmatpush.msrb.mxu1 %v1180_v9  ;;  %v632_v8 = vrot.slane %v2090_v63, 3  ;;  %v1215_v9 = vld [vmem:[%s2472_s3 + $0x6f8] sm:$0xff] }
  0xb3   :  { %411 = vmatmul.f32.vlgmr.msra.gmra.mxu2 %v393_v10  ;;  %451 = vmatmul.f32.vlgmr.msra.gmra.mxu0 %v433_v11  ;;  %v1231_v10 = vld [vmem:[%s2472_s3 + $0x778] sm:$0xff] }
  0xb4   :  { %491 = vmatmul.f32.vlgmr.msra.gmra.mxu1 %v473_v13  ;;  %518 = vmatpush.msra.mxu3 %v1130_v12  ;;  %v1247_v11 = vld [vmem:[%s2472_s3 + $0x7f8] sm:$0xff]  ;;  %v1197_v12 = vld [vmem:[%s2472_s3 + $0x668] sm:$0xff]  ;;  %v1214_v13 = vld [vmem:[%s2472_s3 + $0x6f0] sm:$0xff] }
  0xb5   :  { %558 = vmatpush.msrb.mxu2 %v1147_v14  ;;  %598 = vmatpush.msrb.mxu0 %v1163_v15  ;;  %v1230_v14 = vld [vmem:[%s2472_s3 + $0x770] sm:$0xff] }
  0xb6   :  { %638 = vmatpush.msrb.mxu1 %v1179_v16  ;;  %519 = vmatpush.msra.mxu3 %v1129_v17  ;;  %v1246_v15 = vld [vmem:[%s2472_s3 + $0x7f0] sm:$0xff]  ;;  %v1196_v16 = vld [vmem:[%s2472_s3 + $0x660] sm:$0xff]  ;;  %v1213_v17 = vld [vmem:[%s2472_s3 + $0x6e8] sm:$0xff] }
  0xb7   :  { %559 = vmatpush.msrb.mxu2 %v1146_v18  ;;  %599 = vmatpush.msrb.mxu0 %v1162_v19  ;;  %v1229_v18 = vld [vmem:[%s2472_s3 + $0x768] sm:$0xff] }
  0xb8   :  { %639 = vmatpush.msrb.mxu1 %v1178_v20  ;;  %520 = vmatpush.msra.mxu3 %v1128_v21  ;;  %v1245_v19 = vld [vmem:[%s2472_s3 + $0x7e8] sm:$0xff]  ;;  %v1195_v20 = vld [vmem:[%s2472_s3 + $0x658] sm:$0xff]  ;;  %v1212_v21 = vld [vmem:[%s2472_s3 + $0x6e0] sm:$0xff] }
  0xb9   :  { %560 = vmatpush.msrb.mxu2 %v1145_v22  ;;  %600 = vmatpush.msrb.mxu0 %v1161_v23  ;;  %v1228_v22 = vld [vmem:[%s2472_s3 + $0x760] sm:$0xff] }
  0xba   :  { %640 = vmatpush.msrb.mxu1 %v1177_v24  ;;  %521 = vmatpush.msra.mxu3 %v1127_v25  ;;  %v1244_v23 = vld [vmem:[%s2472_s3 + $0x7e0] sm:$0xff]  ;;  %v1194_v24 = vld [vmem:[%s2472_s3 + $0x650] sm:$0xff]  ;;  %v1211_v25 = vld [vmem:[%s2472_s3 + $0x6d8] sm:$0xff] }
  0xbb   :  { %561 = vmatpush.msrb.mxu2 %v1144_v27  ;;  %601 = vmatpush.msrb.mxu0 %v1160_v28  ;;  %v1243_v27 = vld [vmem:[%s2472_s3 + $0x7d8] sm:$0xff]  ;;  %v1193_v28 = vld [vmem:[%s2472_s3 + $0x648] sm:$0xff] }
  0xbc   :  { %641 = vmatpush.msrb.mxu1 %v1176_v29  ;;  %522 = vmatpush.msra.mxu3 %v1126_v30  ;;  %v1210_v29 = vld [vmem:[%s2472_s3 + $0x6d0] sm:$0xff] }
  0xbd   :  { %562 = vmatpush.msrb.mxu2 %v1143_v32  ;;  %602 = vmatpush.msrb.mxu0 %v1159_v33  ;;  %v1226_v30 = vld [vmem:[%s2472_s3 + $0x750] sm:$0xff]  ;;  %v1192_v32 = vld [vmem:[%s2472_s3 + $0x640] sm:$0xff]  ;;  %v1209_v33 = vld [vmem:[%s2472_s3 + $0x6c8] sm:$0xff] }
  0xbe   :  { %642 = vmatpush.msrb.mxu1 %v1175_v35  ;;  %523 = vmatpush.msra.mxu3 %v1125_v36  ;;  %v1241_v35 = vld [vmem:[%s2472_s3 + $0x7c8] sm:$0xff]  ;;  %v1191_v36 = vld [vmem:[%s2472_s3 + $0x638] sm:$0xff] }
  0xbf   :  { %563 = vmatpush.msrb.mxu2 %v1142_v38  ;;  %603 = vmatpush.msrb.mxu0 %v1158_v39  ;;  %v1224_v38 = vld [vmem:[%s2472_s3 + $0x740] sm:$0xff] }
  0xc0   :  { %643 = vmatpush.msrb.mxu1 %v1174_v40  ;;  %524 = vmatpush.msra.mxu3 %v1124_v41  ;;  %v1240_v39 = vld [vmem:[%s2472_s3 + $0x7c0] sm:$0xff]  ;;  %v1190_v40 = vld [vmem:[%s2472_s3 + $0x630] sm:$0xff]  ;;  %v1207_v41 = vld [vmem:[%s2472_s3 + $0x6b8] sm:$0xff] }
  0xc1   :  { %564 = vmatpush.msrb.mxu2 %v1141_v42  ;;  %604 = vmatpush.msrb.mxu0 %v1157_v43  ;;  %v1223_v42 = vld [vmem:[%s2472_s3 + $0x738] sm:$0xff] }
  0xc2   :  { %644 = vmatpush.msrb.mxu1 %v1173_v45  ;;  %525 = vmatpush.msra.mxu3 %v1123_v46  ;;  %v1239_v43 = vld [vmem:[%s2472_s3 + $0x7b8] sm:$0xff]  ;;  %v1206_v45 = vld [vmem:[%s2472_s3 + $0x6b0] sm:$0xff] }
  0xc3   :  { %565 = vmatpush.msrb.mxu2 %v1140_v48  ;;  %605 = vmatpush.msrb.mxu0 %v1156_v49  ;;  %v1222_v46 = vld [vmem:[%s2472_s3 + $0x730] sm:$0xff]  ;;  %v1188_v48 = vld [vmem:[%s2472_s3 + $0x620] sm:$0xff]  ;;  %v1205_v49 = vld [vmem:[%s2472_s3 + $0x6a8] sm:$0xff] }
  0xc4   :  { %645 = vmatpush.msrb.mxu1 %v1172_v50  ;;  %526 = vmatpush.msra.mxu3 %v1122_v51  ;;  %v1221_v50 = vld [vmem:[%s2472_s3 + $0x728] sm:$0xff] }
  0xc5   :  { %566 = vmatpush.msrb.mxu2 %v1139_v52  ;;  %606 = vmatpush.msrb.mxu0 %v1155_v53  ;;  %v1237_v51 = vld [vmem:[%s2472_s3 + $0x7a8] sm:$0xff]  ;;  %v1187_v52 = vld [vmem:[%s2472_s3 + $0x618] sm:$0xff]  ;;  %v1204_v53 = vld [vmem:[%s2472_s3 + $0x6a0] sm:$0xff] }
  0xc6   :  { %646 = vmatpush.msrb.mxu1 %v1171_v55  ;;  %527 = vmatpush.msra.mxu3 %v1121_v56  ;;  %v1236_v55 = vld [vmem:[%s2472_s3 + $0x7a0] sm:$0xff]  ;;  %v1186_v56 = vld [vmem:[%s2472_s3 + $0x610] sm:$0xff] }
  0xc7   :  { %567 = vmatpush.msrb.mxu2 %v1138_v57  ;;  %607 = vmatpush.msrb.mxu0 %v1154_v58  ;;  %v1203_v57 = vld [vmem:[%s2472_s3 + $0x698] sm:$0xff] }
  0xc8   :  { %647 = vmatpush.msrb.mxu1 %v1170_v59  ;;  %528 = vmatpush.msra.mxu3 %v1120_v60  ;;  %v1219_v58 = vld [vmem:[%s2472_s3 + $0x718] sm:$0xff]  ;;  %v1185_v60 = vld [vmem:[%s2472_s3 + $0x608] sm:$0xff] }
  0xc9   :  { %568 = vmatpush.msrb.mxu2 %v1137_v61  ;;  %608 = vmatpush.msrb.mxu0 %v1153_v62  ;;  %v1235_v59 = vld [vmem:[%s2472_s3 + $0x798] sm:$0xff]  ;;  %v1202_v61 = vld [vmem:[%s2472_s3 + $0x690] sm:$0xff] }
  0xca   :  { %648 = vmatpush.msrb.mxu1 %v1169_v0  ;;  %529 = vmatmul.f32.vlgmr.msra.gmra.mxu3 %v2090_v63  ;;  %v1218_v62 = vld [vmem:[%s2472_s3 + $0x710] sm:$0xff] }
  0xcb   :  { %674 = vmatpush.msrb.mxu3 %v1199_v1  ;;  %569 = vmatpush.msrb.mxu2 %v1136_v2  ;;  %v1234_v0 = vld [vmem:[%s2472_s3 + $0x790] sm:$0xff]  ;;  %v1184_v1 = vld [vmem:[%s2472_s3 + $0x600] sm:$0xff]  ;;  %v1201_v2 = vld [vmem:[%s2472_s3 + $0x688] sm:$0xff] }
  0xcc   :  { %609 = vmatpush.msrb.mxu0 %v1152_v3  ;;  %649 = vmatpush.msrb.mxu1 %v1168_v4  ;;  %v1217_v3 = vld [vmem:[%s2472_s3 + $0x708] sm:$0xff] }
  0xcd   :  { %570 = vmatmul.f32.vlgmr.msrb.gmra.mxu2 %v552_v5  ;;  %610 = vmatmul.f32.vlgmr.msrb.gmra.mxu0 %v592_v6  ;;  %v1233_v4 = vld [vmem:[%s2472_s3 + $0x788] sm:$0xff]  ;;  %v672_v5 = vrot.slane %v2090_v63, 4  ;;  %v833_v6 = vld [vmem:[%s2475_s6 + $0x78] sm:$0xff] }
  0xce   :  { %650 = vmatmul.f32.vlgmr.msrb.gmra.mxu1 %v632_v8  ;;  %675 = vmatpush.msrb.mxu3 %v1198_v7  ;;  %v1200_v7 = vld [vmem:[%s2472_s3 + $0x680] sm:$0xff] }
  0xcf   :  { %714 = vmatpush.msra.mxu2 %v1215_v9  ;;  %754 = vmatpush.msra.mxu0 %v1231_v10  ;;  %v1216_v8 = vld [vmem:[%s2472_s3 + $0x700] sm:$0xff]  ;;  %v712_v10 = vrot.slane %v2090_v63, 5 }
  0xd0   :  { %794 = vmatpush.msra.mxu1 %v1247_v11  ;;  %676 = vmatpush.msrb.mxu3 %v1197_v12  ;;  %v1232_v9 = vld [vmem:[%s2472_s3 + $0x780] sm:$0xff]  ;;  %v752_v11 = vrot.slane %v2090_v63, 6  ;;  %v832_v12 = vld [vmem:[%s2475_s6 + $0x70] sm:$0xff] }
  0xd1   :  { %715 = vmatpush.msra.mxu2 %v1214_v13  ;;  %755 = vmatpush.msra.mxu0 %v1230_v14  ;;  %v792_v13 = vrot.slane %v2090_v63, 7  ;;  %v831_v14 = vld [vmem:[%s2475_s6 + $0x68] sm:$0xff]  ;;  %v828_v63 = vld [vmem:[%s2475_s6 + $0x50] sm:$0xff] }
  0xd2   :  { %795 = vmatpush.msra.mxu1 %v1246_v15  ;;  %677 = vmatpush.msrb.mxu3 %v1196_v16  ;;  %v830_v15 = vld [vmem:[%s2475_s6 + $0x60] sm:$0xff]  ;;  %v829_v16 = vld [vmem:[%s2475_s6 + $0x58] sm:$0xff] }
  0xd3   :  { %716 = vmatpush.msra.mxu2 %v1213_v17  ;;  %756 = vmatpush.msra.mxu0 %v1229_v18  ;;  %v827_v17 = vld [vmem:[%s2475_s6 + $0x48] sm:$0xff]  ;;  %v826_v18 = vld [vmem:[%s2475_s6 + $0x40] sm:$0xff] }
  0xd4   :  { %796 = vmatpush.msra.mxu1 %v1245_v19  ;;  %678 = vmatpush.msrb.mxu3 %v1195_v20  ;;  %v825_v19 = vld [vmem:[%s2475_s6 + $0x38] sm:$0xff]  ;;  %v824_v20 = vld [vmem:[%s2475_s6 + $0x30] sm:$0xff] }
  0xd5   :  { %717 = vmatpush.msra.mxu2 %v1212_v21  ;;  %757 = vmatpush.msra.mxu0 %v1228_v22  ;;  %v823_v21 = vld [vmem:[%s2475_s6 + $0x28] sm:$0xff]  ;;  %v822_v22 = vld [vmem:[%s2475_s6 + $0x20] sm:$0xff] }
  0xd6   :  { %797 = vmatpush.msra.mxu1 %v1244_v23  ;;  %679 = vmatpush.msrb.mxu3 %v1194_v24  ;;  %v821_v23 = vld [vmem:[%s2475_s6 + $0x18] sm:$0xff]  ;;  %v820_v24 = vld [vmem:[%s2475_s6 + $0x10] sm:$0xff] }
  0xd7   :  { %718 = vmatpush.msra.mxu2 %v1211_v25  ;;  %758 = vmatpush.msra.mxu0 %v1227_v26  ;;  %v819_v25 = vld [vmem:[%s2475_s6 + $0x8] sm:$0xff]  ;;  %v818_v26 = vld [vmem:[%s2475_s6] sm:$0xff] }
  0xd8   :  { %798 = vmatpush.msra.mxu1 %v1243_v27  ;;  %680 = vmatpush.msrb.mxu3 %v1193_v28  ;;  %v817_v27 = vld [vmem:[%s2474_s5] sm:$0x7]  ;;  %s992_s5 = sshll.u32 %s2482_s13, 4  ;;  %s993_s5 = int_to_ptr.hbm [resolvable:$true] %s992_s5 }
  0xd9   :  { %719 = vmatpush.msra.mxu2 %v1210_v29  ;;  %759 = vmatpush.msra.mxu0 %v1226_v30  ;;  %v177_v28 = vld [vmem:[%s2473_s4] sm:$0x1] }
  0xda   :  { %799 = vmatpush.msra.mxu1 %v1242_v31  ;;  %681 = vmatpush.msrb.mxu3 %v1192_v32 }
  0xdb   :  { %720 = vmatpush.msra.mxu2 %v1209_v33  ;;  %760 = vmatpush.msra.mxu0 %v1225_v34 }
  0xdc   :  { %800 = vmatpush.msra.mxu1 %v1241_v35  ;;  %682 = vmatpush.msrb.mxu3 %v1191_v36 }
  0xdd   :  { %721 = vmatpush.msra.mxu2 %v1208_v37  ;;  %761 = vmatpush.msra.mxu0 %v1224_v38 }
  0xde   :  { %801 = vmatpush.msra.mxu1 %v1240_v39  ;;  %683 = vmatpush.msrb.mxu3 %v1190_v40 }
  0xdf   :  { %722 = vmatpush.msra.mxu2 %v1207_v41  ;;  %762 = vmatpush.msra.mxu0 %v1223_v42 }
  0xe0   :  { %802 = vmatpush.msra.mxu1 %v1239_v43  ;;  %684 = vmatpush.msrb.mxu3 %v1189_v44 }
  0xe1   :  { %723 = vmatpush.msra.mxu2 %v1206_v45  ;;  %763 = vmatpush.msra.mxu0 %v1222_v46 }
  0xe2   :  { %803 = vmatpush.msra.mxu1 %v1238_v47  ;;  %685 = vmatpush.msrb.mxu3 %v1188_v48 }
  0xe3   :  { %724 = vmatpush.msra.mxu2 %v1205_v49  ;;  %764 = vmatpush.msra.mxu0 %v1221_v50 }
  0xe4   :  { %804 = vmatpush.msra.mxu1 %v1237_v51  ;;  %686 = vmatpush.msrb.mxu3 %v1187_v52 }
  0xe5   :  { %725 = vmatpush.msra.mxu2 %v1204_v53  ;;  %765 = vmatpush.msra.mxu0 %v1220_v54 }
  0xe6   :  { %805 = vmatpush.msra.mxu1 %v1236_v55  ;;  %687 = vmatpush.msrb.mxu3 %v1186_v56 }
  0xe7   :  { %726 = vmatpush.msra.mxu2 %v1203_v57  ;;  %766 = vmatpush.msra.mxu0 %v1219_v58 }
  0xe8   :  { %806 = vmatpush.msra.mxu1 %v1235_v59  ;;  %688 = vmatpush.msrb.mxu3 %v1185_v60  ;;  %v890_v60 = vld [vmem:[%s2477_s8 + $0x78] sm:$0xff] }
  0xe9   :  { %727 = vmatpush.msra.mxu2 %v1202_v61  ;;  %767 = vmatpush.msra.mxu0 %v1218_v62  ;;  %v889_v62 = vld [vmem:[%s2477_s8 + $0x70] sm:$0xff] }
  0xea   :  { %807 = vmatpush.msra.mxu1 %v1234_v0  ;;  %689 = vmatpush.msrb.mxu3 %v1184_v1  ;;  %v888_v0 = vld [vmem:[%s2477_s8 + $0x68] sm:$0xff]  ;;  %v887_v1 = vld [vmem:[%s2477_s8 + $0x60] sm:$0xff] }
  0xeb   :  { %728 = vmatpush.msra.mxu2 %v1201_v2  ;;  %768 = vmatpush.msra.mxu0 %v1217_v3  ;;  %v886_v2 = vld [vmem:[%s2477_s8 + $0x58] sm:$0xff]  ;;  %v885_v3 = vld [vmem:[%s2477_s8 + $0x50] sm:$0xff] }
  0xec   :  { %808 = vmatpush.msra.mxu1 %v1233_v4  ;;  %690 = vmatmul.f32.vlgmr.msrb.gmra.mxu3 %v672_v5  ;;  %v884_v4 = vld [vmem:[%s2477_s8 + $0x48] sm:$0xff]  ;;  %v883_v5 = vld [vmem:[%s2477_s8 + $0x40] sm:$0xff] }
  0xed   :  { %838 = vmatpush.msra.mxu3 %v833_v6  ;;  %729 = vmatpush.msra.mxu2 %v1200_v7  ;;  %v882_v6 = vld [vmem:[%s2477_s8 + $0x38] sm:$0xff]  ;;  %v881_v7 = vld [vmem:[%s2477_s8 + $0x30] sm:$0xff] }
  0xee   :  { %769 = vmatpush.msra.mxu0 %v1216_v8  ;;  %809 = vmatpush.msra.mxu1 %v1232_v9  ;;  %v880_v8 = vld [vmem:[%s2477_s8 + $0x28] sm:$0xff]  ;;  %v1252_v9 = vld [vmem:[%s2476_s7] ss:$0 sm:$0xff] }
  0xef   :  { %730 = vmatmul.f32.vlgmr.msra.gmra.mxu2 %v712_v10  ;;  %770 = vmatmul.f32.vlgmr.msra.gmra.mxu0 %v752_v11  ;;  %v879_v10 = vld [vmem:[%s2477_s8 + $0x20] sm:$0xff]  ;;  %v878_v11 = vld [vmem:[%s2477_s8 + $0x18] sm:$0xff] }
  0xf0   :  { %810 = vmatmul.f32.vlgmr.msra.gmra.mxu1 %v792_v13  ;;  %839 = vmatpush.msra.mxu3 %v832_v12 }
  0xf1   :  { %895 = vmatpush.msrb.mxu2 %v890_v60 }
  0xf2   :  { %840 = vmatpush.msra.mxu3 %v831_v14  ;;  %v877_v14 = vld [vmem:[%s2477_s8 + $0x10] sm:$0xff] }
  0xf3   :  { %896 = vmatpush.msrb.mxu2 %v889_v62 }
  0xf4   :  { %841 = vmatpush.msra.mxu3 %v830_v15 }
  0xf5   :  { %897 = vmatpush.msrb.mxu2 %v888_v0 }
  0xf6   :  { %842 = vmatpush.msra.mxu3 %v829_v16  ;;  %v876_v16 = vld [vmem:[%s2477_s8 + $0x8] sm:$0xff] }
  0xf7   :  { %898 = vmatpush.msrb.mxu2 %v887_v1 }
  0xf8   :  { %843 = vmatpush.msra.mxu3 %v828_v63 }
  0xf9   :  { %899 = vmatpush.msrb.mxu2 %v886_v2 }
  0xfa   :  { %844 = vmatpush.msra.mxu3 %v827_v17  ;;  %v875_v17 = vld [vmem:[%s2477_s8] sm:$0xff] }
  0xfb   :  { %900 = vmatpush.msrb.mxu2 %v885_v3 }
  0xfc   :  { %845 = vmatpush.msra.mxu3 %v826_v18 }
  0xfd   :  { %901 = vmatpush.msrb.mxu2 %v884_v4  ;;  %v1254_v4 = vld [vmem:[%s2480_s11] ss:$0 sm:$0xff] }
  0xfe   :  { %846 = vmatpush.msra.mxu3 %v825_v19 }
  0xff   :  { %902 = vmatpush.msrb.mxu2 %v883_v5 }
 0x100   :  { %847 = vmatpush.msra.mxu3 %v824_v20 }
 0x101   :  { %903 = vmatpush.msrb.mxu2 %v882_v6 }
 0x102   :  { %848 = vmatpush.msra.mxu3 %v823_v21 }
 0x103   :  { %904 = vmatpush.msrb.mxu2 %v881_v7 }
 0x104   :  { %849 = vmatpush.msra.mxu3 %v822_v22 }
 0x105   :  { %905 = vmatpush.msrb.mxu2 %v880_v8 }
 0x106   :  { %850 = vmatpush.msra.mxu3 %v821_v23 }
 0x107   :  { %906 = vmatpush.msrb.mxu2 %v879_v10 }
 0x108   :  { %851 = vmatpush.msra.mxu3 %v820_v24 }
 0x109   :  { %907 = vmatpush.msrb.mxu2 %v878_v11 }
 0x10a   :  { %852 = vmatpush.msra.mxu3 %v819_v25 }
 0x10b   :  { %908 = vmatpush.msrb.mxu2 %v877_v14 }
 0x10c   :  { %853 = vmatpush.msra.mxu3 %v818_v26 }
 0x10d   :  { %854 = vmatmul.f32.vlgmr.msra.gmra.mxu3 %v817_v27  ;;  %909 = vmatpush.msrb.mxu2 %v876_v16 }
 0x10f   :  { %910 = vmatpush.msrb.mxu2 %v875_v17 }
 0x126   :  { %v292_v33 = vpop.f32.mrf.mxu0 }
 0x127   :  { %v332_v35 = vpop.f32.mrf.mxu1 }
 0x12a   :  { %v211_v29 = vpop.f32.mrf.mxu3 }
 0x12b   :  { %v214_v30 = vadd.f32 %v211_v29, %v177_v28 }
 0x12c   :  { %v252_v31 = vpop.f32.mrf.mxu2 }
 0x12d   :  { %v255_v32 = vadd.f32 %v252_v31, %v214_v30 }
 0x12f   :  { %v295_v34 = vadd.f32 %v292_v33, %v255_v32  ;;  %v947_v32 = vld [vmem:[%s2479_s10 + $0x78] sm:$0xff]  ;;  %v946_v33 = vld [vmem:[%s2479_s10 + $0x70] sm:$0xff] }
 0x130   :  { %v452_v41 = vpop.f32.mrf.mxu0  ;;  %952 = vmatpush.msrb.mxu0 %v947_v32 }
 0x131   :  { %v335_v36 = vadd.f32 %v332_v35, %v295_v34  ;;  %v492_v43 = vpop.f32.mrf.mxu1  ;;  %v945_v34 = vld [vmem:[%s2479_s10 + $0x68] sm:$0xff]  ;;  %v944_v35 = vld [vmem:[%s2479_s10 + $0x60] sm:$0xff] }
 0x132   :  { %953 = vmatpush.msrb.mxu0 %v946_v33 }
 0x133   :  { %v372_v37 = vpop.f32.mrf.mxu3 }
 0x134   :  { %v375_v38 = vadd.f32 %v372_v37, %v335_v36  ;;  %954 = vmatpush.msrb.mxu0 %v945_v34  ;;  %v943_v36 = vld [vmem:[%s2479_s10 + $0x58] sm:$0xff]  ;;  %v942_v37 = vld [vmem:[%s2479_s10 + $0x50] sm:$0xff] }
 0x136   :  { %v412_v39 = vpop.f32.mrf.mxu2  ;;  %955 = vmatpush.msrb.mxu0 %v944_v35 }
 0x137   :  { %v415_v40 = vadd.f32 %v412_v39, %v375_v38  ;;  %v941_v38 = vld [vmem:[%s2479_s10 + $0x48] sm:$0xff]  ;;  %v940_v39 = vld [vmem:[%s2479_s10 + $0x40] sm:$0xff] }
 0x138   :  { %956 = vmatpush.msrb.mxu0 %v943_v36 }
 0x139   :  { %v455_v42 = vadd.f32 %v452_v41, %v415_v40  ;;  %v939_v40 = vld [vmem:[%s2479_s10 + $0x38] sm:$0xff]  ;;  %v938_v41 = vld [vmem:[%s2479_s10 + $0x30] sm:$0xff] }
 0x13a   :  { %957 = vmatpush.msrb.mxu0 %v942_v37 }
 0x13b   :  { %v495_v45 = vadd.f32 %v492_v43, %v455_v42  ;;  %v937_v42 = vld [vmem:[%s2479_s10 + $0x28] sm:$0xff]  ;;  %v1253_v43 = vld [vmem:[%s2478_s9] ss:$0 sm:$0xff] }
 0x13c   :  { %958 = vmatpush.msrb.mxu0 %v941_v38 }
 0x13e   :  { %959 = vmatpush.msrb.mxu0 %v940_v39 }
 0x140   :  { %960 = vmatpush.msrb.mxu0 %v939_v40 }
 0x142   :  { %961 = vmatpush.msrb.mxu0 %v938_v41 }
 0x144   :  { %962 = vmatpush.msrb.mxu0 %v937_v42 }
 0x14a   :  { %v611_v49 = vpop.f32.mrf.mxu0 }
 0x14b   :  { %v651_v51 = vpop.f32.mrf.mxu1 }
 0x14d   :  { %v530_v44 = vpop.f32.mrf.mxu3 }
 0x14e   :  { %v533_v46 = vadd.f32 %v530_v44, %v495_v45  ;;  %v936_v44 = vld [vmem:[%s2479_s10 + $0x20] sm:$0xff]  ;;  %v935_v45 = vld [vmem:[%s2479_s10 + $0x18] sm:$0xff] }
 0x14f   :  { %963 = vmatpush.msrb.mxu0 %v936_v44 }
 0x150   :  { %v571_v47 = vpop.f32.mrf.mxu2 }
 0x151   :  { %v574_v48 = vadd.f32 %v571_v47, %v533_v46  ;;  %964 = vmatpush.msrb.mxu0 %v935_v45 }
 0x153   :  { %v614_v50 = vadd.f32 %v611_v49, %v574_v48  ;;  %v934_v48 = vld [vmem:[%s2479_s10 + $0x10] sm:$0xff] }
 0x154   :  { %965 = vmatpush.msrb.mxu0 %v934_v48 }
 0x155   :  { %v654_v52 = vadd.f32 %v651_v51, %v614_v50  ;;  %v933_v50 = vld [vmem:[%s2479_s10 + $0x8] sm:$0xff] }
 0x156   :  { %966 = vmatpush.msrb.mxu0 %v933_v50 }
 0x16c   :  { %v771_v57 = vpop.f32.mrf.mxu0 }
 0x16d   :  { %v811_v59 = vpop.f32.mrf.mxu1 }
 0x16f   :  { %v691_v53 = vpop.f32.mrf.mxu3 }
 0x170   :  { %v694_v54 = vadd.f32 %v691_v53, %v654_v52  ;;  %v932_v52 = vld [vmem:[%s2479_s10] sm:$0xff]  ;;  %s1320_s10 = smov [#allocation2]  }
 0x171   :  { %967 = vmatpush.msrb.mxu0 %v932_v52  ;;  %s979_s28 = sshll.u32 %s1320_s10, 4  ;;  %s980_s28 = int_to_ptr.vmem [resolvable:$true] %s979_s28 }
 0x172   :  { %v731_v55 = vpop.f32.mrf.mxu2 }
 0x173   :  { %v734_v56 = vadd.f32 %v731_v55, %v694_v54 }
 0x175   :  { %v774_v58 = vadd.f32 %v771_v57, %v734_v56 }
 0x177   :  { %v814_v61 = vadd.f32 %v811_v59, %v774_v58 }
 0x179   :  { %816 = vst.msk [vmem:[#allocation2] sm:$0x1] %vm815_vm1, %v814_v61 }
 0x17a   :  { %984 = dma.vmem_to_hbm [thread:$0]  %s980_s28, 16, %s982_s14, [#allocation3]  }
 0x190   :  { %v855_v12 = vpop.f32.mrf.mxu3 }
 0x191   :  { %v856_v13 = vadd.f32 %v1252_v9, %v855_v12 }
 0x193   :  { %v859_v15 = vand.u32 2147483647, %v856_v13  ;;  %v858_v27 = vmax.f32 %v856_v13, 0.0 }
 0x195   :  { %v860_v63 = vsub.f32 0.0, %v859_v15 }
 0x197   :  { %v861_v18 = vmul.f32 1.442695, %v860_v63 }
 0x199   :  { %1255 = vpow2.f32 %v861_v18 }
 0x19f   :  { %v1256_v19 = vpop.eup %1255 }
 0x1a0   :  { %v863_v20 = vadd.f32 1.0, %v1256_v19  ;;  %v866_v21 = vmul.f32 -0.5, %v1256_v19  ;;  %v869_v23 = vand.u32 2147483647, %v1256_v19 }
 0x1a2   :  { %1257 = vlog2.f32 %v863_v20  ;;  %v867_v22 = vadd.f32 1.0, %v866_v21  ;;  %vm870_vm2 = vcmp.lt.f32.partialorder %v869_v23, 0.0004427343 }
 0x1a4   :  { %v868_v26 = vmul.f32 %v1256_v19, %v867_v22 }
 0x1a8   :  { %v1258_v24 = vpop.eup %1257 }
 0x1a9   :  { %v865_v25 = vmul.f32 0.6931472, %v1258_v24 }
 0x1ab   :  { %v871_v28 = vsel %vm870_vm2, %v868_v26, %v865_v25 }
 0x1ac   :  { %v872_v29 = vadd.f32 %v871_v28, %v858_v27 }
 0x1ae   :  { %1259 = vtanh.f32 %v872_v29 }
 0x1b4   :  { %v1260_v30 = vpop.eup %1259 }
 0x1b5   :  { %v874_v31 = vmul.f32 %v1260_v30, %v856_v13 }
 0x1b7   :  { %911 = vmatmul.f32.vlgmr.msrb.gmra.mxu2 %v874_v31 }
 0x23a   :  { %v912_v46 = vpop.f32.mrf.mxu2 }
 0x23b   :  { %v913_v47 = vadd.f32 %v1253_v43, %v912_v46 }
 0x23d   :  { %v916_v49 = vand.u32 2147483647, %v913_v47  ;;  %v915_v62 = vmax.f32 %v913_v47, 0.0 }
 0x23f   :  { %v917_v51 = vsub.f32 0.0, %v916_v49 }
 0x241   :  { %v918_v53 = vmul.f32 1.442695, %v917_v51 }
 0x243   :  { %1261 = vpow2.f32 %v918_v53 }
 0x249   :  { %v1262_v54 = vpop.eup %1261 }
 0x24a   :  { %v920_v55 = vadd.f32 1.0, %v1262_v54  ;;  %v923_v56 = vmul.f32 -0.5, %v1262_v54  ;;  %v926_v58 = vand.u32 2147483647, %v1262_v54 }
 0x24c   :  { %1263 = vlog2.f32 %v920_v55  ;;  %v924_v57 = vadd.f32 1.0, %v923_v56  ;;  %vm927_vm3 = vcmp.lt.f32.partialorder %v926_v58, 0.0004427343 }
 0x24e   :  { %v925_v61 = vmul.f32 %v1262_v54, %v924_v57 }
 0x252   :  { %v1264_v59 = vpop.eup %1263 }
 0x253   :  { %v922_v60 = vmul.f32 0.6931472, %v1264_v59 }
 0x255   :  { %v928_v0 = vsel %vm927_vm3, %v925_v61, %v922_v60 }
 0x256   :  { %v929_v1 = vadd.f32 %v928_v0, %v915_v62 }
 0x258   :  { %1265 = vtanh.f32 %v929_v1 }
 0x25e   :  { %v1266_v2 = vpop.eup %1265 }
 0x25f   :  { %v931_v3 = vmul.f32 %v1266_v2, %v913_v47 }
 0x261   :  { %968 = vmatmul.f32.vlgmr.msrb.gmra.mxu0 %v931_v3 }
 0x2de   :  { %v969_v5 = vpop.f32.mrf.mxu0 }
 0x2df   :  { %v970_v6 = vadd.f32 %v1254_v4, %v969_v5 }
 0x2e1   :  { %973 = vst.msk [vmem:[#allocation4] sm:$0x7] %vm972_vm4, %v970_v6 }
 0x2e2   :  { %995 = dma.vmem_to_hbm [thread:$0]  %s991_s16, 64, %s993_s5, [#allocation5]  }
 0x2e3   :  { %1315 = dma.done.wait [#allocation3], 16  }
 0x2e4   :  { %1316 = vsyncadd [#allocation3], 4294967280 }
 0x2e5   :  { %1317 = dma.done.wait [#allocation5], 64  }
 0x2e6   :  { %1318 = vsyncadd [#allocation5], 4294967232 }
 0x2e7   :  { %1004 = vsyncpa [#allocation3], 1 }
 0x2e8   :  { %1005 = vsyncpa [#allocation5], 1 }

// kernel: _forward_core.5
= control target key start
LH: loop header
LB: loop body
LE: loop exit
PB: predicated region body
PF: predicated region fallthrough
CT: control target
= control target key end

     0   :  { %s3994_s25 = smov [#allocation3]   ;;  %s6402_s0 = inlined_call_operand.vmem [shape: s32[3], index: 0, kind: input, shape index: {}]   ;;  %s6403_s1 = inlined_call_operand.vmem [shape: f32[3,12,64], index: 1, kind: input, shape index: {}]   ;;  %s6404_s2 = inlined_call_operand.vmem [shape: f32[1,64], index: 2, kind: input, shape index: {}]   ;;  %s6405_s3 = inlined_call_operand.vmem [shape: f32[1,64], index: 3, kind: input, shape index: {}]   ;;  %s6406_s4 = inlined_call_operand.vmem [shape: f32[64,768], index: 4, kind: input, shape index: {}]   ;;  %s6407_s5 = inlined_call_operand.vmem [shape: f32[1,768], index: 5, kind: input, shape index: {}]   ;;  %s6408_s6 = inlined_call_operand.vmem [shape: f32[6,128,128], index: 6, kind: input, shape index: {}]   ;;  %s6409_s7 = inlined_call_operand.vmem [shape: f32[6,128], index: 7, kind: input, shape index: {}]   ;;  %s6410_s8 = inlined_call_operand.vmem [shape: f32[6,128], index: 8, kind: input, shape index: {}]   ;;  %s6411_s9 = inlined_call_operand.vmem [shape: f32[1,6], index: 9, kind: input, shape index: {}]   ;;  %s6412_s10 = inlined_call_operand.vmem [shape: f32[6,64,384], index: 10, kind: input, shape index: {}]   ;;  %s6413_s11 = inlined_call_operand.vmem [shape: f32[1,384], index: 11, kind: input, shape index: {}]   ;;  %s6414_s12 = inlined_call_operand.vmem [shape: f32[384,384], index: 12, kind: input, shape index: {}]   ;;  %s6415_s13 = inlined_call_operand.vmem [shape: f32[1,384], index: 13, kind: input, shape index: {}]   ;;  %s6416_s14 = inlined_call_operand.vmem [shape: f32[384,6], index: 14, kind: input, shape index: {}]   ;;  %s6417_s15 = inlined_call_operand.vmem [shape: f32[1,6], index: 15, kind: input, shape index: {}]   ;;  %s6418_s16 = inlined_call_operand.vmem [shape: f32[64,64], index: 16, kind: input, shape index: {}]   ;;  %s6419_s17 = inlined_call_operand.vmem [shape: f32[1,64], index: 17, kind: input, shape index: {}]   ;;  %s6420_s18 = inlined_call_operand.vmem [shape: f32[64,64], index: 18, kind: input, shape index: {}]   ;;  %s6421_s19 = inlined_call_operand.vmem [shape: f32[1,64], index: 19, kind: input, shape index: {}]   ;;  %s6422_s20 = inlined_call_operand.vmem [shape: f32[64,40], index: 20, kind: input, shape index: {}]   ;;  %s6423_s21 = inlined_call_operand.vmem [shape: f32[1,40], index: 21, kind: input, shape index: {}]   ;;  %s6424_s22 = inlined_call_operand.hbm [shape: f32[3,6,40], index: 22, kind: output, shape index: {0}]   ;;  %s6425_s23 = inlined_call_operand.vmem [shape: f32[3,1,6], index: 23, kind: output, shape index: {1}]  }
   0x1   :  { %6439 = sst [smem:[#allocation15_spill]] %s6402_s0 }
   0x2   :  { %6440 = sst [smem:[#allocation16_spill]] %s6403_s1 }
   0x3   :  { %6441 = sst [smem:[#allocation17_spill]] %s6404_s2 }
   0x4   :  { %6442 = sst [smem:[#allocation18_spill]] %s6405_s3 }
   0x5   :  { %6443 = sst [smem:[#allocation19_spill]] %s6406_s4 }
   0x6   :  { %6444 = sst [smem:[#allocation20_spill]] %s6407_s5 }
   0x7   :  { %6445 = sst [smem:[#allocation21_spill]] %s6408_s6 }
   0x8   :  { %6446 = sst [smem:[#allocation22_spill]] %s6409_s7 }
   0x9   :  { %6447 = sst [smem:[#allocation23_spill]] %s6417_s15 }
   0xa   :  { %s6448_s24 = sld [smem:[#allocation15_spill]] }
  0x10   :  { %s30_s15 = sshll.u32 %s6448_s24, 4  ;;  %s31_s15 = int_to_ptr.vmem [resolvable:$true] %s30_s15 }
  0x11   :  { %33 = dma.vmem_to_smem %s31_s15, 16, %s3994_s25, [#allocation2] }
  0x12   :  { %3972 = dma.done.wait [#allocation2], 16 }
  0x13   :  { %3973 = vsyncadd [#allocation2], 4294967280 }
  0x14   :  { %36 = sfence }
  0x15   :  { %37 = vsyncpa [#allocation5], 0 }
  0x16   :  { %39 = vsyncpa [#allocation5 + $0x1], 0  ;;  %s4124_s5 = smov 0   ;;  %s4126_s1 = smov 0  }
  0x17   :  { %s4128_s26 = smov 0   ;;  %s4130_s2 = smov 0  }
  0x18 LB: > { %6449 = sst [smem:[#allocation8_spill]] %s3980_s5  ;;  %s4145_s15 = sadd.s32 4294967295, %s3992_s2   ;;  %s3992_s2 = sphi %s4130_s2, %s6491_s2   ;;  %s3988_s26 = sphi %s4128_s26, %s6493_s26   ;;  %s3984_s1 = sphi %s4126_s1, %s6495_s1   ;;  %s3980_s5 = sphi %s4124_s5, %s6494_s5  }
  0x19   : > { %6450 = sst [smem:[#allocation9_spill]] %s3988_s26  ;;  %s3383_s6 = sadd.s32 4294967294, %s3992_s2  }
  0x1a   : > { %6451 = sst [smem:[#allocation10_spill]] %s3992_s2  ;;  %s4149_s27 = sadd.s32 1, %s3992_s2  }
  0x1b   : > { %6452 = sst [smem:[#allocation11_spill]] %s4149_s27  ;;  %s498_s7 = sadd.s32 1, %s3988_s26 }
  0x1c   : > { %s495_s28 = ssub.s32 %s3992_s2, %s4149_s27  ;;  %p508_p0 = scmp.ne.s32.totalorder %s3988_s26, %s3984_s1 }
  0x1d   : > { %p496_p1 = scmp.eq.s32.totalorder %s495_s28, 0  ;;  %p509_p2 = scmp.eq.s32.totalorder %s4145_s15, 2 }
  0x1e   : > { %p514_p3 = scmp.ne.s32.totalorder %s3984_s1, %s3980_s5  ;;  %p515_p4 = scmp.eq.s32.totalorder %s3383_s6, 2 }
  0x1f   : > { %s4160_s29 = scalar_select %p496_p1, %s3988_s26, %s498_s7  }
  0x20   : > { %p4162_p5 = por %p509_p2, %p508_p0  ;;  %p4166_p6 = por %p515_p4, %p514_p3 }
  0x21   : > { %6453 = sst [smem:[#allocation12_spill]] %s4160_s29  ;;  %p3386_p7 = scmp.ge.s32.totalorder %s3992_s2, 1 }
  0x22   : > { %s6454_s3 = scalar_select %p4162_p5, 1, 0 }
  0x23   : > { %s6456_s0 = scalar_select %p4166_p6, 1, 0 }
  0x24   : > { %6455 = sst [smem:[#allocation13_spill]] %s6454_s3  ;;  %p627_p8 = scmp.lt.s32.totalorder %s3992_s2, 4 }
  0x25   : > { %6457 = sst [smem:[#allocation14_spill]] %s6456_s0 }
  0x26   : > { %p628_p9 = pnand %p3386_p7, %p627_p8 }
  0x27   : > { %s702_s4 = sld [smem:[#allocation3 + %s4145_s15]] (!%p628_p9)  ;;  %p692_p10 = scmp.lt.s32.totalorder (!%p628_p9), %s4145_s15, 2 }
  0x28   : > { %631 = sbr.rel (%p628_p9) target bundleno = 1603 (0x643), region = 104  ;;  %s6458_s28 = sld [smem:[#allocation16_spill]] (!%p628_p9) }
  0x29   : > { %s6463_s7 = sld [smem:[#allocation19_spill]] (!%p628_p9)  ;;  %s3624_s2 = sshll.u32 (!%p628_p9), %s4145_s15, 3 }
  0x2a   : > { %s6464_s0 = sld [smem:[#allocation17_spill]] (!%p628_p9)  ;;  %s3297_s29 = scalar_lea.hbm (!%p628_p9), %s6424_s22, %s3624_s2 }
  0x2b   : > { %s6465_s6 = sld [smem:[#allocation21_spill]] (!%p628_p9)  ;;  %s3301_s27 = sshll.u32 (!%p628_p9), %s3297_s29, 4  ;;  %s3302_s27 = int_to_ptr.hbm [resolvable:$true] %s3301_s27 }
  0x2d   : > { %s709_s30 = scvt.s32.f32 %s702_s4  ;;  %v703_v11 = vlaneseq  ;;  %v706_v14 = vstv %s702_s4  ;;  %vm732_vm6 = vcmask 523264   ;;  %vm734_vm7 = vcmask 519168  }
  0x2e   : > { %s4175_s24 = scalar_select %p692_p10, %s4145_s15, 2 }
  0x2f   : > { %v710_v0 = vstv %s709_s30  ;;  %v704_v12 = vshrl.u32 %v703_v11, 7  ;;  %v828_v34 = vld [vmem:[%s6463_s7 + $0x150] sm:$0xff]  ;;  %v829_v35 = vld [vmem:[%s6463_s7 + $0x158] sm:$0xff]  ;;  %v830_v36 = vld [vmem:[%s6463_s7 + $0x160] sm:$0xff]  ;;  %s3942_s15 = sshra.s32 %s3302_s27, 4  ;;  %s3943_s15 = int_to_ptr.hbm [resolvable:$true] %s3942_s15 }
  0x30   : > { %3694 = vrcp.f32 %v710_v0  ;;  %v722_v3 = vand.u32 2147483648, %v710_v0  ;;  %vm716_vm0 = vweird.f32 %v710_v0  ;;  %v720_v5 = vand.u32 2147483647, %v710_v0  ;;  %s3627_s25 = sshll.u32 %s4175_s24, 4  ;;  %862 = vmatpush.msra.mxu0 %v828_v34  ;;  %885 = vmatpush.msra.mxu1 %v829_v35  ;;  %v831_v37 = vld [vmem:[%s6463_s7 + $0x168] sm:$0xff]  ;;  %v822_v40 = vld [vmem:[%s6463_s7 + $0x120] sm:$0xff]  ;;  %p3949_p0 = scmp.lt.s32.totalorder %s3943_s15, %s6424_s22 }
  0x31   : > { %v705_v13 = vadd.s32 8, %v704_v12  ;;  %s4181_s30 = scalar_lea.vmem %s6458_s28, %s3627_s25  ;;  %vm4183_vm4 = vcmp.lt.s32.totalorder %v704_v12, %v706_v14  ;;  %908 = vmatpush.msra.mxu2 %v830_v36  ;;  %931 = vmatpush.msra.mxu3 %v831_v37  ;;  %v823_v41 = vld [vmem:[%s6463_s7 + $0x128] sm:$0xff]  ;;  %v824_v42 = vld [vmem:[%s6463_s7 + $0x130] sm:$0xff]  ;;  %v825_v45 = vld [vmem:[%s6463_s7 + $0x138] sm:$0xff]  ;;  %s6478_s28 = sld [smem:[#allocation22_spill]] }
  0x32   : > { %v723_v7 = vor.u32 1.1754944e-38, %v722_v3  ;;  %vm721_vm3 = vcmp.eq.f32.partialorder %v720_v5, 8.507059e+37  ;;  %v700_v17 = vld [vmem:[%s4181_s30] sm:$0xff]  ;;  %v701_v18 = vld [vmem:[%s4181_s30 + $0x8] sm:$0xf]  ;;  %863 = vmatpush.msra.mxu0 %v822_v40  ;;  %886 = vmatpush.msra.mxu1 %v823_v41  ;;  %v816_v46 = vld [vmem:[%s6463_s7 + $0xf0] sm:$0xff] }
  0x33   : > { %vm4187_vm5 = vcmp.lt.s32.totalorder %v705_v13, %v706_v14  ;;  %v730_v19 = vsel %vm4183_vm4, %v700_v17, 0.0  ;;  %909 = vmatpush.msra.mxu2 %v824_v42  ;;  %932 = vmatpush.msra.mxu3 %v825_v45  ;;  %v817_v47 = vld [vmem:[%s6463_s7 + $0xf8] sm:$0xff]  ;;  %v818_v48 = vld [vmem:[%s6463_s7 + $0x100] sm:$0xff]  ;;  %v819_v51 = vld [vmem:[%s6463_s7 + $0x108] sm:$0xff] }
  0x34   : > { %v731_v20 = vsel %vm4187_vm5, %v701_v18, 0.0  ;;  %v733_v21 = vsel %vm732_vm6, %v730_v19, 0.0  ;;  %864 = vmatpush.msra.mxu0 %v816_v46  ;;  %887 = vmatpush.msra.mxu1 %v817_v47  ;;  %v810_v53 = vld [vmem:[%s6463_s7 + $0xc0] sm:$0xff]  ;;  %v811_v54 = vld [vmem:[%s6463_s7 + $0xc8] sm:$0xff]  ;;  %v812_v55 = vld [vmem:[%s6463_s7 + $0xd0] sm:$0xff] }
  0x35   : > { %v735_v22 = vsel %vm734_vm7, %v731_v20, 0.0  ;;  %910 = vmatpush.msra.mxu2 %v818_v48  ;;  %933 = vmatpush.msra.mxu3 %v819_v51  ;;  %v813_v56 = vld [vmem:[%s6463_s7 + $0xd8] sm:$0xff]  ;;  %v804_v58 = vld [vmem:[%s6463_s7 + $0x90] sm:$0xff]  ;;  %v806_v60 = vld [vmem:[%s6463_s7 + $0xa0] sm:$0xff] }
  0x36   : > { %v3695_v1 = vpop.eup %3694  ;;  %v736_v23 = vadd.f32 %v735_v22, %v733_v21  ;;  %865 = vmatpush.msra.mxu0 %v810_v53  ;;  %888 = vmatpush.msra.mxu1 %v811_v54  ;;  %v805_v59 = vld [vmem:[%s6463_s7 + $0x98] sm:$0xff]  ;;  %v807_v61 = vld [vmem:[%s6463_s7 + $0xa8] sm:$0xff]  ;;  %v798_v63 = vld [vmem:[%s6463_s7 + $0x60] sm:$0xff] }
  0x37   : > { %v712_v2 = vmul.f32 %v3695_v1, %v710_v0  ;;  %vm717_vm1 = vweird.f32 %v3695_v1  ;;  %911 = vmatpush.msra.mxu2 %v812_v55  ;;  %934 = vmatpush.msra.mxu3 %v813_v56  ;;  %v799_v0 = vld [vmem:[%s6463_s7 + $0x68] sm:$0xff]  ;;  %v793_v5 = vld [vmem:[%s6463_s7 + $0x38] sm:$0xff]  ;;  %v788_v11 = vld [vmem:[%s6463_s7 + $0x10] sm:$0xff] }
  0x38   : > { %vm718_vm2 = vmor %vm716_vm0, %vm717_vm1  ;;  %v737_v24 = vrot.slane %v736_v23, 4  ;;  %866 = vmatpush.msra.mxu0 %v804_v58  ;;  %889 = vmatpush.msra.mxu1 %v805_v59  ;;  %v789_v12 = vld [vmem:[%s6463_s7 + $0x18] sm:$0xff]  ;;  %v832_v14 = vld [vmem:[%s6463_s7 + $0x170] sm:$0xff] }
  0x39   : > { %v713_v4 = vsub.f32 1.0, %v712_v2  ;;  %912 = vmatpush.msra.mxu2 %v806_v60  ;;  %935 = vmatpush.msra.mxu3 %v807_v61  ;;  %v801_v2 = vld [vmem:[%s6463_s7 + $0x78] sm:$0xff]  ;;  %v827_v20 = vld [vmem:[%s6463_s7 + $0x148] sm:$0xff]  ;;  %v820_v21 = vld [vmem:[%s6463_s7 + $0x110] sm:$0xff] }
  0x3a   : > { %v738_v25 = vadd.f32 %v737_v24, %v736_v23  ;;  %867 = vmatpush.msra.mxu0 %v798_v63  ;;  %890 = vmatpush.msra.mxu1 %v799_v0  ;;  %v821_v22 = vld [vmem:[%s6463_s7 + $0x118] sm:$0xff]  ;;  %v814_v24 = vld [vmem:[%s6463_s7 + $0xe0] sm:$0xff]  ;;  %v791_v36 = vld [vmem:[%s6463_s7 + $0x28] sm:$0xff] }
  0x3b   : > { %v714_v6 = vmul.f32 %v3695_v1, %v713_v4  ;;  %936 = vmatpush.msra.mxu3 %v801_v2  ;;  %v792_v4 = vld [vmem:[%s6463_s7 + $0x30] sm:$0xff]  ;;  %v797_v34 = vld [vmem:[%s6463_s7 + $0x58] sm:$0xff]  ;;  %v790_v35 = vld [vmem:[%s6463_s7 + $0x20] sm:$0xff] }
  0x3c   : > { %v739_v26 = vrot.slane %v738_v25, 2  ;;  %868 = vmatpush.msra.mxu0 %v792_v4  ;;  %891 = vmatpush.msra.mxu1 %v793_v5  ;;  %v3417_v45 = vld [vmem:[%s6465_s6 + $0xf8] sm:$0xff]  ;;  %v1213_v46 = vld [vmem:[%s6465_s6 + $0x70] sm:$0xff]  ;;  %v1212_v51 = vld [vmem:[%s6465_s6 + $0x68] sm:$0xff] }
  0x3d   : > { %v715_v8 = vadd.f32 %v3695_v1, %v714_v6  ;;  %v794_v6 = vld [vmem:[%s6463_s7 + $0x40] sm:$0xff]  ;;  %v3416_v48 = vld [vmem:[%s6465_s6 + $0xf0] sm:$0xff]  ;;  %v3413_v59 = vld [vmem:[%s6465_s6 + $0xd8] sm:$0xff] }
  0x3e   : > { %v740_v27 = vadd.f32 %v739_v26, %v738_v25  ;;  %v815_v25 = vld [vmem:[%s6463_s7 + $0xe8] sm:$0xff]  ;;  %v1211_v54 = vld [vmem:[%s6465_s6 + $0x60] sm:$0xff]  ;;  %v1209_v60 = vld [vmem:[%s6465_s6 + $0x50] sm:$0xff] }
  0x3f   : > { %v719_v9 = vsel %vm718_vm2, %v3695_v1, %v715_v8  ;;  %v800_v1 = vld [vmem:[%s6463_s7 + $0x70] sm:$0xff]  ;;  %v3411_v63 = vld [vmem:[%s6465_s6 + $0xc8] sm:$0xff]  ;;  %v1207_v0 = vld [vmem:[%s6465_s6 + $0x40] sm:$0xff] }
  0x40   : > { %v724_v10 = vsel %vm721_vm3, %v723_v7, %v719_v9  ;;  %v741_v28 = vrot.slane %v740_v27, 1  ;;  %913 = vmatpush.msra.mxu2 %v800_v1  ;;  %v795_v7 = vld [vmem:[%s6463_s7 + $0x48] sm:$0xff]  ;;  %v786_v9 = vld [vmem:[%s6463_s7] sm:$0xff]  ;;  %v3412_v61 = vld [vmem:[%s6465_s6 + $0xd0] sm:$0xff] }
  0x41   : > { %3628 = vpush %v724_v10  ;;  %937 = vmatpush.msra.mxu3 %v795_v7  ;;  %v787_v10 = vld [vmem:[%s6463_s7 + $0x8] sm:$0xff]  ;;  %869 = vmatpush.msra.mxu0 %v786_v9  ;;  %v3410_v1 = vld [vmem:[%s6465_s6 + $0xc0] sm:$0xff]  ;;  %v1206_v2 = vld [vmem:[%s6465_s6 + $0x38] sm:$0xff] }
  0x42   : > { %v742_v29 = vadd.f32 %v741_v28, %v740_v27  ;;  %914 = vmatpush.msra.mxu2 %v794_v6  ;;  %892 = vmatpush.msra.mxu1 %v787_v10  ;;  %v808_v27 = vld [vmem:[%s6463_s7 + $0xb0] sm:$0xff]  ;;  %v809_v28 = vld [vmem:[%s6463_s7 + $0xb8] sm:$0xff]  ;;  %v1204_v6 = vld [vmem:[%s6465_s6 + $0x28] sm:$0xff] }
  0x43   : > { %938 = vmatpush.msra.mxu3 %v789_v12  ;;  %954 = vmatpush.msrb.mxu0 %v832_v14  ;;  %v1205_v4 = vld [vmem:[%s6465_s6 + $0x30] sm:$0xff]  ;;  %v3407_v7 = vld [vmem:[%s6465_s6 + $0xa8] sm:$0xff]  ;;  %v3433_v9 = vld [vmem:[%s6465_s6 + $0x178] sm:$0xff] }
  0x44   : > { %915 = vmatpush.msra.mxu2 %v788_v11  ;;  %v3408_v5 = vld [vmem:[%s6465_s6 + $0xb0] sm:$0xff]  ;;  %v3449_v10 = vld [vmem:[%s6465_s6 + $0x1f8] sm:$0xff]  ;;  %v1203_v11 = vld [vmem:[%s6465_s6 + $0x20] sm:$0xff] }
  0x45   : > { %1359 = vmatpush.msrb.mxu3 %v3417_v45  ;;  %v3406_v12 = vld [vmem:[%s6465_s6 + $0xa0] sm:$0xff] }
  0x47   : > { %1360 = vmatpush.msrb.mxu3 %v3416_v48  ;;  %v3446_v48 = vld [vmem:[%s6465_s6 + $0x1e0] sm:$0xff] }
  0x72   : > { %s4199_s4 = spop %3628 }
  0x73   : > { %v743_v30 = vstv %s4199_s4  ;;  %s699_s4 = scalar_lea.vmem %s6425_s23, %s4175_s24 }
  0x74   : > { %v744_v31 = vmul.f32 %v743_v30, %v742_v29  ;;  %v802_v29 = vld [vmem:[%s6463_s7 + $0x80] sm:$0xff] }
  0x76   : > { %v4204_v32 = vsub.f32 %v700_v17, %v744_v31  ;;  %v4206_v33 = vsub.f32 %v701_v18, %v744_v31  ;;  %v833_v17 = vld [vmem:[%s6463_s7 + $0x178] sm:$0xff]  ;;  %v826_v18 = vld [vmem:[%s6463_s7 + $0x140] sm:$0xff]  ;;  %v796_v31 = vld [vmem:[%s6463_s7 + $0x50] sm:$0xff] }
  0x77   : > { %977 = vmatpush.msrb.mxu1 %v833_v17  ;;  %955 = vmatpush.msrb.mxu0 %v826_v18 }
  0x78   : > { %v747_v38 = vsel %vm4183_vm4, %v4204_v32, 0.0  ;;  %v748_v39 = vsel %vm4187_vm5, %v4206_v33, 0.0 }
  0x79   : > { %v749_v43 = vmul.f32 %v747_v38, %v747_v38  ;;  %v750_v44 = vmul.f32 %v748_v39, %v748_v39  ;;  %978 = vmatpush.msrb.mxu1 %v827_v20  ;;  %956 = vmatpush.msrb.mxu0 %v820_v21 }
  0x7b   : > { %v751_v49 = vsel %vm732_vm6, %v749_v43, 0.0  ;;  %v752_v50 = vsel %vm734_vm7, %v750_v44, 0.0  ;;  %979 = vmatpush.msrb.mxu1 %v821_v22  ;;  %957 = vmatpush.msrb.mxu0 %v814_v24  ;;  %v3688_v43 = vld [vmem:[%s6464_s0] ss:$0 sm:$0xff]  ;;  %v1214_v44 = vld [vmem:[%s6465_s6 + $0x78] sm:$0xff]  ;;  %s6466_s0 = sld [smem:[#allocation18_spill]] }
  0x7c   : > { %v753_v52 = vadd.f32 %v752_v50, %v751_v49  ;;  %1216 = vmatpush.msrb.mxu2 %v1214_v44  ;;  %v3404_v44 = vld [vmem:[%s6465_s6 + $0x90] sm:$0xff] }
  0x7d   : > { %980 = vmatpush.msrb.mxu1 %v815_v25  ;;  %958 = vmatpush.msrb.mxu0 %v808_v27  ;;  %v3432_v27 = vld [vmem:[%s6465_s6 + $0x170] sm:$0xff] }
  0x7e   : > { %v754_v57 = vrot.slane %v753_v52, 4  ;;  %1217 = vmatpush.msrb.mxu2 %v1213_v46 }
  0x7f   : > { %981 = vmatpush.msrb.mxu1 %v809_v28  ;;  %959 = vmatpush.msrb.mxu0 %v802_v29  ;;  %v3448_v28 = vld [vmem:[%s6465_s6 + $0x1f0] sm:$0xff]  ;;  %v1202_v29 = vld [vmem:[%s6465_s6 + $0x18] sm:$0xff] }
  0x80   : > { %v755_v62 = vadd.f32 %v754_v57, %v753_v52  ;;  %v3415_v52 = vld [vmem:[%s6465_s6 + $0xe8] sm:$0xff]  ;;  %1218 = vmatpush.msrb.mxu2 %v1212_v51 }
  0x81   : > { %960 = vmatpush.msrb.mxu0 %v796_v31  ;;  %v3689_v50 = vld [vmem:[%s6466_s0] ss:$0 sm:$0xff]  ;;  %1361 = vmatpush.msrb.mxu3 %v3415_v52  ;;  %v3403_v51 = vld [vmem:[%s6465_s6 + $0x88] sm:$0xff]  ;;  %s684_s0 = sand.u32 1, %s3984_s1  }
  0x82   : > { %v756_v3 = vrot.slane %v755_v62, 2  ;;  %1219 = vmatpush.msrb.mxu2 %v1211_v54  ;;  %s3387_s24 = sshll.u32 %s684_s0, 3  ;;  %s3284_s5 = scalar_lea.sflag [#allocation5], %s684_s0 }
  0x83   : > { %961 = vmatpush.msrb.mxu0 %v790_v35  ;;  %s686_s25 = scalar_lea.vmem [#allocation4], %s3387_s24  ;;  %s3948_s24 = scalar_lea.hbm %s6424_s22, 24 }
  0x84   : > { %v757_v8 = vadd.f32 %v756_v3, %v755_v62  ;;  %v1208_v62 = vld [vmem:[%s6465_s6 + $0x48] sm:$0xff]  ;;  %v3409_v3 = vld [vmem:[%s6465_s6 + $0xb8] sm:$0xff]  ;;  %s3299_s26 = sshll.u32 %s686_s25, 4  ;;  %s3300_s26 = int_to_ptr.vmem [resolvable:$true] %s3299_s26 }
  0x86   : > { %v758_v13 = vrot.slane %v757_v8, 1 }
  0x88   : > { %v759_v19 = vadd.f32 %v758_v13, %v757_v8 }
  0x8a   : > { %v760_v23 = vmul.f32 %v759_v19, %v743_v30  ;;  %v803_v30 = vld [vmem:[%s6463_s7 + $0x88] sm:$0xff]  ;;  %s6467_s7 = sld [smem:[#allocation20_spill]] }
  0x8b   : > { %982 = vmatpush.msrb.mxu1 %v803_v30  ;;  %v3405_v30 = vld [vmem:[%s6465_s6 + $0x98] sm:$0xff] }
  0x8c   : > { %v761_v26 = vadd.f32 1e-05, %v760_v23 }
  0x8d   : > { %983 = vmatpush.msrb.mxu1 %v797_v34 }
  0x8e   : > { %3696 = vrsqrt.f32 %v761_v26  ;;  %vm768_vm9 = vweird.f32 %v761_v26 }
  0x8f   : > { %984 = vmatpush.msrb.mxu1 %v791_v36 }
  0x90   : > { %v4451_v8 = vld [vmem:[%s6467_s7] sm:$0x3f] }
  0x91   : > { %v836_v13 = vperm.slane %v4451_v8, 0  ;;  %v837_v14 = vperm.slane %v4451_v8, 1  ;;  %v838_v23 = vperm.slane %v4451_v8, 2  ;;  %v839_v24 = vperm.slane %v4451_v8, 3 }
  0x94   : > { %v3697_v37 = vpop.eup %3696 }
  0x95   : > { %v763_v38 = vmul.f32 %v3697_v37, %v761_v26  ;;  %vm769_vm8 = vweird.f32 %v3697_v37 }
  0x96   : > { %vm770_vm10 = vmor %vm768_vm9, %vm769_vm8 }
  0x97   : > { %v764_v39 = vmul.f32 %v3697_v37, %v763_v38  ;;  %v3447_v38 = vld [vmem:[%s6465_s6 + $0x1e8] sm:$0xff] }
  0x99   : > { %v765_v40 = vmul.f32 0.5, %v764_v39 }
  0x9b   : > { %v766_v41 = vsub.f32 1.5, %v765_v40 }
  0x9d   : > { %v767_v42 = vmul.f32 %v3697_v37, %v766_v41 }
  0x9f   : > { %v771_v47 = vsel %vm770_vm10, %v3697_v37, %v767_v42  ;;  %v3431_v37 = vld [vmem:[%s6465_s6 + $0x168] sm:$0xff] }
  0xa0   : > { %v772_v49 = vmul.f32 %v771_v47, %v4204_v32  ;;  %v3414_v32 = vld [vmem:[%s6465_s6 + $0xe0] sm:$0xff]  ;;  %v773_v55 = vmul.f32 %v771_v47, %v4206_v33  ;;  %v1210_v33 = vld [vmem:[%s6465_s6 + $0x58] sm:$0xff] }
  0xa1   : > { %1362 = vmatpush.msrb.mxu3 %v3414_v32  ;;  %1220 = vmatpush.msrb.mxu2 %v1210_v33  ;;  %v3430_v47 = vld [vmem:[%s6465_s6 + $0x160] sm:$0xff] }
  0xa2   : > { %v778_v53 = vmul.f32 %v3688_v43, %v772_v49  ;;  %v779_v57 = vmul.f32 %v3688_v43, %v773_v55  ;;  %v1201_v43 = vld [vmem:[%s6465_s6 + $0x10] sm:$0xff]  ;;  %v3429_v55 = vld [vmem:[%s6465_s6 + $0x158] sm:$0xff] }
  0xa3   : > { %1363 = vmatpush.msrb.mxu3 %v3413_v59  ;;  %1221 = vmatpush.msrb.mxu2 %v1209_v60  ;;  %v3402_v59 = vld [vmem:[%s6465_s6 + $0x80] sm:$0xff] }
  0xa4   : > { %v784_v56 = vadd.f32 %v3689_v50, %v778_v53  ;;  %v785_v58 = vadd.f32 %v3689_v50, %v779_v57  ;;  %v1200_v50 = vld [vmem:[%s6465_s6 + $0x8] sm:$0xff]  ;;  %v1199_v57 = vld [vmem:[%s6465_s6] sm:$0xff] }
  0xa5   : > { %1364 = vmatpush.msrb.mxu3 %v3412_v61  ;;  %1222 = vmatpush.msrb.mxu2 %v1208_v62 }
  0xa6   : > { %3390 = vmatmul.msk.f32.vlgmr.msra.gmra.mxu0 %vm732_vm6, %v784_v56  ;;  %3392 = vmatmul.msk.f32.vlgmr.msra.gmra.mxu1 %vm732_vm6, %v784_v56 }
  0xa7   : > { %3394 = vmatmul.msk.f32.vlgmr.msra.gmra.mxu2 %vm732_vm6, %v784_v56  ;;  %3396 = vmatmul.msk.f32.vlgmr.msra.gmra.mxu3 %vm732_vm6, %v784_v56 }
  0xa8   : > { %1365 = vmatpush.msrb.mxu3 %v3411_v63  ;;  %1223 = vmatpush.msrb.mxu2 %v1207_v0  ;;  %v840_v0 = vperm.slane %v4451_v8, 4 }
  0xa9   : > { %1498 = vmatpush.msra.mxu0 %v3433_v9  ;;  %1637 = vmatpush.msra.mxu1 %v3449_v10 }
  0xaa   : > { %1366 = vmatpush.msrb.mxu3 %v3410_v1  ;;  %1224 = vmatpush.msrb.mxu2 %v1206_v2  ;;  %v841_v1 = vperm.slane %v4451_v8, 5 }
  0xab   : > { %1499 = vmatpush.msra.mxu0 %v3432_v27  ;;  %1638 = vmatpush.msra.mxu1 %v3448_v28  ;;  %v3481_v28 = vld [vmem:[%s6465_s6 + $0x2f8] sm:$0xff] }
  0xac   : > { %1367 = vmatpush.msrb.mxu3 %v3409_v3  ;;  %1225 = vmatpush.msrb.mxu2 %v1205_v4 }
  0xad   : > { %1500 = vmatpush.msra.mxu0 %v3431_v37  ;;  %1639 = vmatpush.msra.mxu1 %v3447_v38  ;;  %v3426_v38 = vld [vmem:[%s6465_s6 + $0x140] sm:$0xff] }
  0xae   : > { %3391 = vmatmul.msk.f32.gmra.mxu0 %vm732_vm6, %v785_v58  ;;  %3393 = vmatmul.msk.f32.gmra.mxu1 %vm732_vm6, %v785_v58 }
  0xaf   : > { %3395 = vmatmul.msk.f32.gmra.mxu2 %vm732_vm6, %v785_v58  ;;  %3397 = vmatmul.msk.f32.gmra.mxu3 %vm732_vm6, %v785_v58 }
  0xb0   : > { %1368 = vmatpush.msrb.mxu3 %v3408_v5  ;;  %1226 = vmatpush.msrb.mxu2 %v1204_v6 }
  0xb1   : > { %1501 = vmatpush.msra.mxu0 %v3430_v47  ;;  %1640 = vmatpush.msra.mxu1 %v3446_v48 }
  0xb2   : > { %1369 = vmatpush.msrb.mxu3 %v3407_v7  ;;  %1227 = vmatpush.msrb.mxu2 %v1203_v11 }
  0xb3   : > { %1502 = vmatpush.msra.mxu0 %v3429_v55 }
  0xb4   : > { %1370 = vmatpush.msrb.mxu3 %v3406_v12  ;;  %1228 = vmatpush.msrb.mxu2 %v1202_v29  ;;  %v3427_v29 = vld [vmem:[%s6465_s6 + $0x148] sm:$0xff] }
  0xb6   : > { %3398 = vmatmul.msk.f32.vlgmr.msrb.gmra.mxu0 %vm732_vm6, %v784_v56  ;;  %3400 = vmatmul.msk.f32.vlgmr.msrb.gmra.mxu1 %vm732_vm6, %v784_v56  ;;  %v3445_v56 = vld [vmem:[%s6465_s6 + $0x1d8] sm:$0xff] }
  0xb7   : > { %1371 = vmatpush.msrb.mxu3 %v3405_v30  ;;  %1229 = vmatpush.msrb.mxu2 %v1201_v43  ;;  %v3443_v30 = vld [vmem:[%s6465_s6 + $0x1c8] sm:$0xff] }
  0xb8   : > { %1641 = vmatpush.msra.mxu1 %v3445_v56 }
  0xb9   : > { %1372 = vmatpush.msrb.mxu3 %v3404_v44  ;;  %1230 = vmatpush.msrb.mxu2 %v1200_v50 }
  0xbb   : > { %1373 = vmatpush.msrb.mxu3 %v3403_v51  ;;  %1231 = vmatpush.msrb.mxu2 %v1199_v57 }
  0xbd   : > { %1374 = vmatpush.msrb.mxu3 %v3402_v59  ;;  %v3425_v59 = vld [vmem:[%s6465_s6 + $0x138] sm:$0xff] }
  0xbe   : > { %3399 = vmatmul.msk.f32.gmra.mxu0 %vm732_vm6, %v785_v58  ;;  %3401 = vmatmul.msk.f32.gmra.mxu1 %vm732_vm6, %v785_v58 }
  0xbf   : > { %1915 = vmatpush.msra.mxu3 %v3481_v28 }
 0x123   : > { %v871_v17 = vpop.f32.mrf.mxu0  ;;  %v894_v18 = vpop.f32.mrf.mxu1 }
 0x124   : > { %v4467_v19 = vadd.f32 %v871_v17, %v836_v13  ;;  %v4469_v20 = vadd.f32 %v894_v18, %v837_v14 }
 0x126   : > { %v1004_v21 = vand.u32 2147483647, %v4467_v19  ;;  %v1005_v22 = vand.u32 2147483647, %v4469_v20 }
 0x128   : > { %v1016_v25 = vsub.f32 0.0, %v1004_v21  ;;  %v1017_v26 = vsub.f32 0.0, %v1005_v22  ;;  %v3465_v22 = vld [vmem:[%s6465_s6 + $0x278] sm:$0xff] }
 0x129   : > { %1776 = vmatpush.msra.mxu2 %v3465_v22 }
 0x12a   : > { %v1028_v31 = vmul.f32 1.442695, %v1016_v25  ;;  %v1030_v34 = vmul.f32 1.442695, %v1017_v26  ;;  %v917_v35 = vpop.f32.mrf.mxu2  ;;  %v940_v36 = vpop.f32.mrf.mxu3  ;;  %v992_v25 = vmax.f32 %v4467_v19, 0.0 }
 0x12b   : > { %v4495_v39 = vadd.f32 %v917_v35, %v838_v23  ;;  %v4499_v40 = vadd.f32 %v940_v36, %v839_v24  ;;  %v874_v41 = vpop.f32.mrf.mxu0  ;;  %v897_v42 = vpop.f32.mrf.mxu1  ;;  %v3464_v35 = vld [vmem:[%s6465_s6 + $0x270] sm:$0xff] }
 0x12c   : > { %3698 = vpow2.f32 %v1028_v31  ;;  %v4507_v45 = vadd.f32 %v874_v41, %v836_v13  ;;  %v4509_v46 = vadd.f32 %v897_v42, %v837_v14  ;;  %v3428_v13 = vld [vmem:[%s6465_s6 + $0x150] sm:$0xff]  ;;  %v993_v31 = vmax.f32 %v4469_v20, 0.0  ;;  %1777 = vmatpush.msra.mxu2 %v3464_v35  ;;  %v3442_v41 = vld [vmem:[%s6465_s6 + $0x1c0] sm:$0xff]  ;;  %v3463_v42 = vld [vmem:[%s6465_s6 + $0x268] sm:$0xff] }
 0x12d   : > { %3700 = vpow2.f32 %v1030_v34  ;;  %v1006_v49 = vand.u32 2147483647, %v4495_v39  ;;  %v1007_v52 = vand.u32 2147483647, %v4499_v40  ;;  %v3444_v14 = vld [vmem:[%s6465_s6 + $0x1d0] sm:$0xff]  ;;  %1503 = vmatpush.msra.mxu0 %v3428_v13  ;;  %v994_v37 = vmax.f32 %v4495_v39, 0.0 }
 0x12e   : > { %v1010_v53 = vand.u32 2147483647, %v4507_v45  ;;  %v1011_v32 = vand.u32 2147483647, %v4509_v46  ;;  %1642 = vmatpush.msra.mxu1 %v3444_v14  ;;  %v3480_v36 = vld [vmem:[%s6465_s6 + $0x2f0] sm:$0xff]  ;;  %1778 = vmatpush.msra.mxu2 %v3463_v42  ;;  %v3478_v14 = vld [vmem:[%s6465_s6 + $0x2e0] sm:$0xff] }
 0x12f   : > { %v1018_v54 = vsub.f32 0.0, %v1006_v49  ;;  %v1019_v58 = vsub.f32 0.0, %v1007_v52  ;;  %1504 = vmatpush.msra.mxu0 %v3427_v29  ;;  %1916 = vmatpush.msra.mxu3 %v3480_v36  ;;  %v3461_v29 = vld [vmem:[%s6465_s6 + $0x258] sm:$0xff] }
 0x130   : > { %v1022_v33 = vsub.f32 0.0, %v1010_v53  ;;  %v1023_v61 = vsub.f32 0.0, %v1011_v32  ;;  %1643 = vmatpush.msra.mxu1 %v3443_v30  ;;  %v3479_v32 = vld [vmem:[%s6465_s6 + $0x2e8] sm:$0xff]  ;;  %v3477_v30 = vld [vmem:[%s6465_s6 + $0x2d8] sm:$0xff] }
 0x131   : > { %v1032_v60 = vmul.f32 1.442695, %v1018_v54  ;;  %v1034_v63 = vmul.f32 1.442695, %v1019_v58  ;;  %1505 = vmatpush.msra.mxu0 %v3426_v38  ;;  %1917 = vmatpush.msra.mxu3 %v3479_v32  ;;  %v3439_v38 = vld [vmem:[%s6465_s6 + $0x1a8] sm:$0xff] }
 0x132   : > { %v3699_v62 = vpop.eup %3698  ;;  %v1040_v5 = vmul.f32 1.442695, %v1022_v33  ;;  %v920_v6 = vpop.f32.mrf.mxu2  ;;  %v1042_v21 = vmul.f32 1.442695, %v1023_v61  ;;  %1644 = vmatpush.msra.mxu1 %v3442_v41  ;;  %v3460_v41 = vld [vmem:[%s6465_s6 + $0x250] sm:$0xff] }
 0x133   : > { %v3701_v2 = vpop.eup %3700  ;;  %v1052_v3 = vadd.f32 1.0, %v3699_v62  ;;  %v1055_v4 = vmul.f32 -0.5, %v3699_v62  ;;  %3702 = vpow2.f32 %v1032_v60  ;;  %v1058_v7 = vand.u32 2147483647, %v3699_v62  ;;  %v943_v11 = vpop.f32.mrf.mxu3  ;;  %1506 = vmatpush.msra.mxu0 %v3425_v59  ;;  %1918 = vmatpush.msra.mxu3 %v3478_v14 }
 0x134   : > { %v1061_v9 = vadd.f32 1.0, %v3701_v2  ;;  %v1064_v10 = vmul.f32 -0.5, %v3701_v2  ;;  %3704 = vpow2.f32 %v1034_v63  ;;  %v963_v12 = vpop.f32.mrf.mxu0  ;;  %v1067_v18 = vand.u32 2147483647, %v3701_v2  ;;  %v986_v48 = vpop.f32.mrf.mxu1 }
 0x135   : > { %3706 = vlog2.f32 %v1052_v3  ;;  %v1056_v17 = vadd.f32 1.0, %v1055_v4  ;;  %v4553_v27 = vadd.f32 %v920_v6, %v838_v23  ;;  %v4567_v23 = vadd.f32 %v943_v11, %v839_v24  ;;  %1919 = vmatpush.msra.mxu3 %v3477_v30  ;;  %v3436_v6 = vld [vmem:[%s6465_s6 + $0x190] sm:$0xff] }
 0x136   : > { %3708 = vlog2.f32 %v1061_v9  ;;  %v1065_v26 = vadd.f32 1.0, %v1064_v10  ;;  %v4571_v34 = vadd.f32 %v963_v12, %v840_v0  ;;  %vm4592_vm11 = vcmp.lt.f32.partialorder %v1058_v7, 0.0004427343  ;;  %v3462_v7 = vld [vmem:[%s6465_s6 + $0x260] sm:$0xff] }
 0x137   : > { %3710 = vpow2.f32 %v1040_v5  ;;  %v1012_v24 = vand.u32 2147483647, %v4553_v27  ;;  %v1057_v44 = vmul.f32 %v3699_v62, %v1056_v17  ;;  %vm4596_vm12 = vcmp.lt.f32.partialorder %v1067_v18, 0.0004427343  ;;  %1779 = vmatpush.msra.mxu2 %v3462_v7  ;;  %v3424_v17 = vld [vmem:[%s6465_s6 + $0x130] sm:$0xff] }
 0x138   : > { %3712 = vpow2.f32 %v1042_v21  ;;  %v1013_v49 = vand.u32 2147483647, %v4567_v23  ;;  %v1066_v51 = vmul.f32 %v3701_v2, %v1065_v26  ;;  %v1008_v33 = vand.u32 2147483647, %v4571_v34  ;;  %v3441_v2 = vld [vmem:[%s6465_s6 + $0x1b8] sm:$0xff]  ;;  %v3440_v18 = vld [vmem:[%s6465_s6 + $0x1b0] sm:$0xff]  ;;  %1507 = vmatpush.msra.mxu0 %v3424_v17 }
 0x139   : > { %v4590_v43 = vpop.eup %3702  ;;  %v1024_v58 = vsub.f32 0.0, %v1012_v24  ;;  %1645 = vmatpush.msra.mxu1 %v3441_v2  ;;  %v995_v26 = vmax.f32 %v4499_v40, 0.0  ;;  %1780 = vmatpush.msra.mxu2 %v3461_v29  ;;  %v3437_v2 = vld [vmem:[%s6465_s6 + $0x198] sm:$0xff]  ;;  %v998_v14 = vmax.f32 %v4507_v45, 0.0 }
 0x13a   : > { %v4601_v50 = vpop.eup %3704  ;;  %v1070_v52 = vadd.f32 1.0, %v4590_v43  ;;  %v1073_v53 = vmul.f32 -0.5, %v4590_v43  ;;  %v1076_v54 = vand.u32 2147483647, %v4590_v43  ;;  %v1025_v63 = vsub.f32 0.0, %v1013_v49  ;;  %v3422_v49 = vld [vmem:[%s6465_s6 + $0x120] sm:$0xff] }
 0x13b   : > { %v3707_v55 = vpop.eup %3706  ;;  %v1079_v56 = vadd.f32 1.0, %v4601_v50  ;;  %v1082_v57 = vmul.f32 -0.5, %v4601_v50  ;;  %v1085_v62 = vand.u32 2147483647, %v4601_v50  ;;  %1646 = vmatpush.msra.mxu1 %v3440_v18  ;;  %1781 = vmatpush.msra.mxu2 %v3460_v41  ;;  %v3457_v18 = vld [vmem:[%s6465_s6 + $0x238] sm:$0xff] }
 0x13c   : > { %v3709_v60 = vpop.eup %3708  ;;  %v1054_v61 = vmul.f32 0.6931472, %v3707_v55  ;;  %3714 = vlog2.f32 %v1070_v52  ;;  %v1074_v5 = vadd.f32 1.0, %v1073_v53  ;;  %vm4621_vm13 = vcmp.lt.f32.partialorder %v1076_v54, 0.0004427343  ;;  %v966_v32 = vpop.f32.mrf.mxu0  ;;  %v3459_v55 = vld [vmem:[%s6465_s6 + $0x248] sm:$0xff] }
 0x13d   : > { %v4619_v3 = vpop.eup %3710  ;;  %v1063_v4 = vmul.f32 0.6931472, %v3709_v60  ;;  %3716 = vlog2.f32 %v1079_v56  ;;  %v1083_v11 = vadd.f32 1.0, %v1082_v57  ;;  %vm4660_vm14 = vcmp.lt.f32.partialorder %v1085_v62, 0.0004427343  ;;  %1647 = vmatpush.msra.mxu1 %v3439_v38  ;;  %1782 = vmatpush.msra.mxu2 %v3459_v55  ;;  %v989_v55 = vpop.f32.mrf.mxu1 }
 0x13e   : > { %v4628_v9 = vpop.eup %3712  ;;  %v1060_v10 = vsel %vm4592_vm11, %v1057_v44, %v1054_v61  ;;  %v1106_v12 = vadd.f32 1.0, %v4619_v3  ;;  %v1109_v13 = vmul.f32 -0.5, %v4619_v3  ;;  %v1112_v28 = vand.u32 2147483647, %v4619_v3 }
 0x13f   : > { %v1160_v21 = vadd.f32 %v1060_v10, %v992_v25  ;;  %v1069_v22 = vsel %vm4596_vm12, %v1066_v51, %v1063_v4  ;;  %v3423_v25 = vld [vmem:[%s6465_s6 + $0x128] sm:$0xff]  ;;  %v1115_v24 = vadd.f32 1.0, %v4628_v9  ;;  %v1075_v42 = vmul.f32 %v4590_v43, %v1074_v5  ;;  %v3438_v43 = vld [vmem:[%s6465_s6 + $0x1a0] sm:$0xff] }
 0x140   : > { %v1161_v35 = vadd.f32 %v1069_v22, %v993_v31  ;;  %3718 = vlog2.f32 %v1106_v12  ;;  %v3476_v31 = vld [vmem:[%s6465_s6 + $0x2d0] sm:$0xff]  ;;  %v1110_v44 = vadd.f32 1.0, %v1109_v13  ;;  %v1118_v47 = vmul.f32 -0.5, %v4628_v9  ;;  %1508 = vmatpush.msra.mxu0 %v3423_v25  ;;  %1648 = vmatpush.msra.mxu1 %v3438_v43  ;;  %v3458_v4 = vld [vmem:[%s6465_s6 + $0x240] sm:$0xff] }
 0x141   : > { %3720 = vtanh.f32 %v1160_v21  ;;  %v1084_v52 = vmul.f32 %v4601_v50, %v1083_v11  ;;  %v1044_v53 = vmul.f32 1.442695, %v1024_v58  ;;  %v1046_v54 = vmul.f32 1.442695, %v1025_v63  ;;  %1920 = vmatpush.msra.mxu3 %v3476_v31  ;;  %v3475_v58 = vld [vmem:[%s6465_s6 + $0x2c8] sm:$0xff]  ;;  %v3421_v63 = vld [vmem:[%s6465_s6 + $0x118] sm:$0xff]  ;;  %1783 = vmatpush.msra.mxu2 %v3458_v4 }
 0x142   : > { %v3715_v51 = vpop.eup %3714  ;;  %3722 = vtanh.f32 %v1161_v35  ;;  %vm4686_vm15 = vcmp.lt.f32.partialorder %v1112_v28, 0.0004427343  ;;  %v1119_v50 = vadd.f32 1.0, %v1118_v47  ;;  %1509 = vmatpush.msra.mxu0 %v3422_v49  ;;  %v1020_v61 = vsub.f32 0.0, %v1008_v33  ;;  %v3474_v10 = vld [vmem:[%s6465_s6 + $0x2c0] sm:$0xff]  ;;  %v3420_v11 = vld [vmem:[%s6465_s6 + $0x110] sm:$0xff]  ;;  %1649 = vmatpush.msra.mxu1 %v3437_v2 }
 0x143   : > { %v3717_v56 = vpop.eup %3716  ;;  %v1072_v57 = vmul.f32 0.6931472, %v3715_v51  ;;  %3724 = vlog2.f32 %v1115_v24  ;;  %v4697_v62 = vadd.f32 %v986_v48, %v841_v1  ;;  %v1121_v5 = vand.u32 2147483647, %v4628_v9  ;;  %1921 = vmatpush.msra.mxu3 %v3475_v58  ;;  %v3473_v21 = vld [vmem:[%s6465_s6 + $0x2b8] sm:$0xff]  ;;  %v3435_v35 = vld [vmem:[%s6465_s6 + $0x188] sm:$0xff]  ;;  %1784 = vmatpush.msra.mxu2 %v3457_v18 }
 0x144   : > { %v1081_v60 = vmul.f32 0.6931472, %v3717_v56  ;;  %3726 = vpow2.f32 %v1044_v53  ;;  %v4713_v7 = vadd.f32 %v966_v32, %v840_v0  ;;  %1510 = vmatpush.msra.mxu0 %v3421_v63  ;;  %v1036_v17 = vmul.f32 1.442695, %v1020_v61  ;;  %1650 = vmatpush.msra.mxu1 %v3436_v6  ;;  %v3471_v56 = vld [vmem:[%s6465_s6 + $0x2a8] sm:$0xff]  ;;  %v3454_v58 = vld [vmem:[%s6465_s6 + $0x220] sm:$0xff] }
 0x145   : > { %v1078_v33 = vsel %vm4621_vm13, %v1075_v42, %v1072_v57  ;;  %3728 = vpow2.f32 %v1046_v54  ;;  %v1111_v30 = vmul.f32 %v4619_v3, %v1110_v44  ;;  %v1009_v25 = vand.u32 2147483647, %v4697_v62  ;;  %1922 = vmatpush.msra.mxu3 %v3474_v10  ;;  %v3456_v3 = vld [vmem:[%s6465_s6 + $0x230] sm:$0xff]  ;;  %v3470_v63 = vld [vmem:[%s6465_s6 + $0x2a0] sm:$0xff]  ;;  %v3469_v6 = vld [vmem:[%s6465_s6 + $0x298] sm:$0xff] }
 0x146   : > { %v3719_v12 = vpop.eup %3718  ;;  %v1162_v13 = vadd.f32 %v1078_v33, %v994_v37  ;;  %v1087_v0 = vsel %vm4660_vm14, %v1084_v52, %v1081_v60  ;;  %v3419_v37 = vld [vmem:[%s6465_s6 + $0x108] sm:$0xff]  ;;  %1511 = vmatpush.msra.mxu0 %v3420_v11  ;;  %v1120_v24 = vmul.f32 %v4628_v9, %v1119_v50  ;;  %v1014_v38 = vand.u32 2147483647, %v4713_v7  ;;  %v3418_v9 = vld [vmem:[%s6465_s6 + $0x100] sm:$0xff]  ;;  %1651 = vmatpush.msra.mxu1 %v3435_v35 }
 0x147   : > { %v3721_v22 = vpop.eup %3720  ;;  %v1163_v28 = vadd.f32 %v1087_v0, %v995_v26  ;;  %v1108_v29 = vmul.f32 0.6931472, %v3719_v12  ;;  %v1021_v42 = vsub.f32 0.0, %v1009_v25  ;;  %1923 = vmatpush.msra.mxu3 %v3473_v21  ;;  %v3455_v52 = vld [vmem:[%s6465_s6 + $0x228] sm:$0xff]  ;;  %v999_v54 = vmax.f32 %v4509_v46, 0.0  ;;  %1785 = vmatpush.msra.mxu2 %v3456_v3 }
 0x148   : > { %v3723_v36 = vpop.eup %3722  ;;  %3730 = vtanh.f32 %v1162_v13  ;;  %v1184_v41 = vmul.f32 %v3721_v22, %v4467_v19  ;;  %1512 = vmatpush.msra.mxu0 %v3419_v37  ;;  %v3472_v19 = vld [vmem:[%s6465_s6 + $0x2b0] sm:$0xff]  ;;  %v1026_v51 = vsub.f32 0.0, %v1014_v38  ;;  %vm1122_vm0 = vcmp.lt.f32.partialorder %v1121_v5, 0.0004427343  ;;  %v3453_v5 = vld [vmem:[%s6465_s6 + $0x218] sm:$0xff] }
 0x149   : > { %v3725_v26 = vpop.eup %3724  ;;  %3732 = vtanh.f32 %v1163_v28  ;;  %v1114_v31 = vsel %vm4686_vm15, %v1111_v30, %v1108_v29  ;;  %v1185_v44 = vmul.f32 %v3723_v36, %v4469_v20  ;;  %v3434_v20 = vld [vmem:[%s6465_s6 + $0x180] sm:$0xff]  ;;  %v1038_v50 = vmul.f32 1.442695, %v1021_v42  ;;  %1924 = vmatpush.msra.mxu3 %v3472_v19  ;;  %1786 = vmatpush.msra.mxu2 %v3455_v52  ;;  %v3452_v13 = vld [vmem:[%s6465_s6 + $0x210] sm:$0xff]  ;;  %v3451_v29 = vld [vmem:[%s6465_s6 + $0x208] sm:$0xff] }
 0x14a   : > { %v4760_v47 = vpop.eup %3726  ;;  %v1166_v48 = vadd.f32 %v1114_v31, %v998_v14  ;;  %v1117_v49 = vmul.f32 0.6931472, %v3725_v26  ;;  %3734 = vpow2.f32 %v1036_v17  ;;  %1232 = vmatmul.f32.vlgmr.msrb.gmra.mxu2 %v1184_v41  ;;  %1513 = vmatpush.msra.mxu0 %v3418_v9  ;;  %v1048_v4 = vmul.f32 1.442695, %v1026_v51  ;;  %v3468_v17 = vld [vmem:[%s6465_s6 + $0x290] sm:$0xff]  ;;  %v3467_v30 = vld [vmem:[%s6465_s6 + $0x288] sm:$0xff] }
 0x14b   : > { %v4768_v53 = vpop.eup %3728  ;;  %v1124_v32 = vadd.f32 1.0, %v4760_v47  ;;  %v1127_v43 = vmul.f32 -0.5, %v4760_v47  ;;  %1375 = vmatmul.f32.vlgmr.msrb.gmra.mxu3 %v1185_v44  ;;  %1652 = vmatpush.msra.mxu1 %v3434_v20  ;;  %v4786_v33 = vadd.f32 %v989_v55, %v841_v1  ;;  %v1130_v0 = vand.u32 2147483647, %v4760_v47  ;;  %v3450_v31 = vld [vmem:[%s6465_s6 + $0x200] sm:$0xff] }
 0x14c   : > { %3736 = vtanh.f32 %v1166_v48  ;;  %v1123_v57 = vsel %vm1122_vm0, %v1120_v24, %v1117_v49  ;;  %v1133_v59 = vadd.f32 1.0, %v4768_v53  ;;  %v1136_v61 = vmul.f32 -0.5, %v4768_v53  ;;  %1925 = vmatpush.msra.mxu3 %v3471_v56  ;;  %1787 = vmatpush.msra.mxu2 %v3454_v58 }
 0x14d   : > { %v1167_v60 = vadd.f32 %v1123_v57, %v999_v54  ;;  %3738 = vlog2.f32 %v1124_v32  ;;  %v1128_v1 = vadd.f32 1.0, %v1127_v43  ;;  %v1139_v18 = vand.u32 2147483647, %v4768_v53 }
 0x14e   : > { %v3731_v2 = vpop.eup %3730  ;;  %3740 = vlog2.f32 %v1133_v59  ;;  %1926 = vmatpush.msra.mxu3 %v3470_v63  ;;  %1788 = vmatpush.msra.mxu2 %v3453_v5  ;;  %v1015_v37 = vand.u32 2147483647, %v4786_v33  ;;  %v1000_v35 = vmax.f32 %v4553_v27, 0.0  ;;  %v1001_v38 = vmax.f32 %v4567_v23, 0.0 }
 0x14f   : > { %v3733_v10 = vpop.eup %3732  ;;  %v1186_v11 = vmul.f32 %v3731_v2, %v4495_v39  ;;  %3742 = vtanh.f32 %v1167_v60  ;;  %v1137_v39 = vadd.f32 1.0, %v1136_v61  ;;  %v1129_v24 = vmul.f32 %v4760_v47, %v1128_v1  ;;  %v3466_v47 = vld [vmem:[%s6465_s6 + $0x280] sm:$0xff]  ;;  %s3944_s6 = scalar_lea.hbm %s3943_s15, 8 }
 0x150   : > { %v4795_v12 = vpop.eup %3734  ;;  %v1187_v8 = vmul.f32 %v3733_v10, %v4499_v40  ;;  %3744 = vpow2.f32 %v1038_v50  ;;  %1927 = vmatpush.msra.mxu3 %v3469_v6  ;;  %1789 = vmatpush.msra.mxu2 %v3452_v13  ;;  %vm1131_vm1 = vcmp.lt.f32.partialorder %v1130_v0, 0.0004427343  ;;  %v1027_v26 = vsub.f32 0.0, %v1015_v37  ;;  %p3945_p11 = scmp.ne.s32.totalorder %s3943_s15, %s3944_s6  ;;  %p3950_p1 = scmp.lt.s32.totalorder %s3948_s24, %s3944_s6 }
 0x151   : > { %v1088_v14 = vadd.f32 1.0, %v4795_v12  ;;  %3746 = vpow2.f32 %v1048_v4  ;;  %1514 = vmatmul.f32.vlgmr.msra.gmra.mxu0 %v1186_v11  ;;  %v1091_v21 = vmul.f32 -0.5, %v4795_v12  ;;  %v1138_v3 = vmul.f32 %v4768_v53, %v1137_v39 }
 0x152   : > { %v3737_v40 = vpop.eup %3736  ;;  %1653 = vmatmul.f32.vlgmr.msra.gmra.mxu1 %v1187_v8  ;;  %1928 = vmatpush.msra.mxu3 %v3468_v17  ;;  %vm1140_vm2 = vcmp.lt.f32.partialorder %v1139_v18, 0.0004427343  ;;  %v1094_v20 = vand.u32 2147483647, %v4795_v12  ;;  %v1050_v43 = vmul.f32 1.442695, %v1027_v26  ;;  %p3946_p12 = pnand %p3945_p11, %p4162_p5  ;;  %p3951_p2 = por %p3950_p1, %p3949_p0 }
 0x153   : > { %v3739_v22 = vpop.eup %3738  ;;  %3748 = vlog2.f32 %v1088_v14  ;;  %v1190_v28 = vmul.f32 %v3737_v40, %v4507_v45  ;;  %v1092_v19 = vadd.f32 1.0, %v1091_v21  ;;  %1790 = vmatpush.msra.mxu2 %v3451_v29  ;;  %v996_v57 = vmax.f32 %v4571_v34, 0.0 }
 0x154   : > { %v3741_v25 = vpop.eup %3740  ;;  %v1126_v36 = vmul.f32 0.6931472, %v3739_v22  ;;  %1929 = vmatpush.msra.mxu3 %v3467_v30  ;;  %vm1095_vm3 = vcmp.lt.f32.partialorder %v1094_v20, 0.0004427343  ;;  %v997_v0 = vmax.f32 %v4697_v62, 0.0  ;;  %v1002_v40 = vmax.f32 %v4713_v7, 0.0  ;;  %p3947_p13 = pneg %p3946_p12 }
 0x155   : > { %v3743_v41 = vpop.eup %3742  ;;  %v1135_v45 = vmul.f32 0.6931472, %v3741_v25  ;;  %1235 = vmatmul.f32.gmra.mxu2 %v1190_v28  ;;  %v1093_v55 = vmul.f32 %v4795_v12, %v1092_v19 }
 0x156   : > { %v3745_v42 = vpop.eup %3744  ;;  %v1132_v44 = vsel %vm1131_vm1, %v1129_v24, %v1126_v36  ;;  %v1191_v9 = vmul.f32 %v3743_v41, %v4509_v46  ;;  %1791 = vmatpush.msra.mxu2 %v3450_v31  ;;  %1930 = vmatpush.msra.mxu3 %v3466_v47  ;;  %p3952_p3 = pnand %p3951_p2, %p3947_p13 }
 0x157   : > { %v3747_v48 = vpop.eup %3746  ;;  %v1168_v49 = vadd.f32 %v1132_v44, %v1000_v35  ;;  %v1141_v51 = vsel %vm1140_vm2, %v1138_v3, %v1135_v45  ;;  %v1097_v52 = vadd.f32 1.0, %v3745_v42  ;;  %v1100_v56 = vmul.f32 -0.5, %v3745_v42  ;;  %v4842_v44 = vld [vmem:[%s6478_s28] sm:$0x3f]  ;;  %s6486_s28 = sld [smem:[#allocation23_spill]] }
 0x158   : > { %v1169_v53 = vadd.f32 %v1141_v51, %v1001_v38  ;;  %v1142_v54 = vadd.f32 1.0, %v3747_v48  ;;  %1378 = vmatmul.f32.gmra.mxu3 %v1191_v9  ;;  %v1145_v59 = vmul.f32 -0.5, %v3747_v48  ;;  %v1103_v63 = vand.u32 2147483647, %v3745_v42 }
 0x159   : > { %v3749_v32 = vpop.eup %3748  ;;  %3750 = vtanh.f32 %v1168_v49  ;;  %v1101_v60 = vadd.f32 1.0, %v1100_v56  ;;  %v1148_v5 = vand.u32 2147483647, %v3747_v48  ;;  %v1003_v45 = vmax.f32 %v4786_v33, 0.0 }
 0x15a   : > { %3752 = vtanh.f32 %v1169_v53  ;;  %v1090_v46 = vmul.f32 0.6931472, %v3749_v32  ;;  %v1146_v2 = vadd.f32 1.0, %v1145_v59  ;;  %vm1104_vm8 = vcmp.lt.f32.partialorder %v1103_v63, 0.0004427343 }
 0x15b   : > { %3754 = vlog2.f32 %v1097_v52  ;;  %v1102_v1 = vmul.f32 %v3745_v42, %v1101_v60  ;;  %vm1149_vm9 = vcmp.lt.f32.partialorder %v1148_v5, 0.0004427343  ;;  %v1358_v19 = vperm.slane %v4842_v44, 1 }
 0x15c   : > { %v1096_v50 = vsel %vm1095_vm3, %v1093_v55, %v1090_v46  ;;  %3756 = vlog2.f32 %v1142_v54  ;;  %v1147_v14 = vmul.f32 %v3747_v48, %v1146_v2  ;;  %v1497_v9 = vperm.slane %v4842_v44, 2 }
 0x15d   : > { %v1164_v58 = vadd.f32 %v1096_v50, %v996_v57  ;;  %3758 = vpow2.f32 %v1050_v43  ;;  %vm6437_vm3 = vcmask 1043456  }
 0x15f   : > { %v3751_v61 = vpop.eup %3750  ;;  %3760 = vtanh.f32 %v1164_v58 }
 0x160   : > { %v3753_v4 = vpop.eup %3752  ;;  %v1192_v10 = vmul.f32 %v3751_v61, %v4553_v27 }
 0x161   : > { %v3755_v11 = vpop.eup %3754  ;;  %v1193_v6 = vmul.f32 %v3753_v4, %v4567_v23 }
 0x162   : > { %v3757_v12 = vpop.eup %3756  ;;  %v1099_v8 = vmul.f32 0.6931472, %v3755_v11  ;;  %1517 = vmatmul.f32.gmra.mxu0 %v1192_v10 }
 0x163   : > { %v3759_v13 = vpop.eup %3758  ;;  %v1144_v39 = vmul.f32 0.6931472, %v3757_v12  ;;  %1656 = vmatmul.f32.gmra.mxu1 %v1193_v6 }
 0x164   : > { %v1105_v17 = vsel %vm1104_vm8, %v1102_v1, %v1099_v8  ;;  %v1151_v18 = vadd.f32 1.0, %v3759_v13  ;;  %v1154_v23 = vmul.f32 -0.5, %v3759_v13  ;;  %v1157_v30 = vand.u32 2147483647, %v3759_v13 }
 0x165   : > { %v3761_v27 = vpop.eup %3760  ;;  %v1165_v21 = vadd.f32 %v1105_v17, %v997_v0  ;;  %v1150_v37 = vsel %vm1149_vm9, %v1147_v14, %v1144_v39 }
 0x166   : > { %v1188_v22 = vmul.f32 %v3761_v27, %v4571_v34  ;;  %v1170_v28 = vadd.f32 %v1150_v37, %v1002_v40  ;;  %3762 = vlog2.f32 %v1151_v18  ;;  %v1155_v29 = vadd.f32 1.0, %v1154_v23 }
 0x167   : > { %3764 = vtanh.f32 %v1165_v21  ;;  %vm1158_vm10 = vcmp.lt.f32.partialorder %v1157_v30, 0.0004427343 }
 0x168   : > { %3766 = vtanh.f32 %v1170_v28  ;;  %1792 = vmatmul.f32.vlgmr.msra.gmra.mxu2 %v1188_v22  ;;  %v1156_v24 = vmul.f32 %v3759_v13, %v1155_v29 }
 0x16c   : > { %v3763_v25 = vpop.eup %3762 }
 0x16d   : > { %v3765_v35 = vpop.eup %3764  ;;  %v1153_v36 = vmul.f32 0.6931472, %v3763_v25 }
 0x16e   : > { %v3767_v38 = vpop.eup %3766  ;;  %v1189_v41 = vmul.f32 %v3765_v35, %v4697_v62  ;;  %v1215_v62 = vperm.slane %v4842_v44, 0 }
 0x16f   : > { %v1159_v3 = vsel %vm1158_vm10, %v1156_v24, %v1153_v36  ;;  %v1194_v34 = vmul.f32 %v3767_v38, %v4713_v7  ;;  %v1636_v7 = vperm.slane %v4842_v44, 3  ;;  %v1775_v24 = vperm.slane %v4842_v44, 4 }
 0x170   : > { %v1171_v26 = vadd.f32 %v1159_v3, %v1003_v45  ;;  %1931 = vmatmul.f32.vlgmr.msra.gmra.mxu3 %v1189_v41 }
 0x171   : > { %1795 = vmatmul.f32.gmra.mxu2 %v1194_v34 }
 0x172   : > { %3768 = vtanh.f32 %v1171_v26 }
 0x178   : > { %v3769_v31 = vpop.eup %3768 }
 0x179   : > { %v1195_v42 = vmul.f32 %v3769_v31, %v4786_v33 }
 0x17b   : > { %1934 = vmatmul.f32.gmra.mxu3 %v1195_v42 }
 0x1cd   : > { %v1233_v47 = vpop.f32.mrf.mxu2 }
 0x1ce   : > { %v4848_v48 = vadd.f32 %v1233_v47, %v1215_v62  ;;  %v1376_v49 = vpop.f32.mrf.mxu3  ;;  %v1515_v51 = vpop.f32.mrf.mxu0 }
 0x1cf   : > { %v4850_v33 = vadd.f32 %v1376_v49, %v1358_v19  ;;  %v4854_v20 = vadd.f32 %v1515_v51, %v1497_v9  ;;  %v1654_v52 = vpop.f32.mrf.mxu1 }
 0x1d0   : > { %v1241_v53 = vand.u32 2147483647, %v4848_v48  ;;  %v4859_v54 = vadd.f32 %v1654_v52, %v1636_v7  ;;  %v1239_v6 = vmax.f32 %v4848_v48, 0.0 }
 0x1d1   : > { %v1384_v32 = vand.u32 2147483647, %v4850_v33  ;;  %v1523_v43 = vand.u32 2147483647, %v4854_v20  ;;  %v1382_v13 = vmax.f32 %v4850_v33, 0.0  ;;  %v1521_v23 = vmax.f32 %v4854_v20, 0.0 }
 0x1d2   : > { %v1243_v46 = vsub.f32 0.0, %v1241_v53  ;;  %v1662_v55 = vand.u32 2147483647, %v4859_v54  ;;  %v1660_v22 = vmax.f32 %v4859_v54, 0.0 }
 0x1d3   : > { %v1386_v56 = vsub.f32 0.0, %v1384_v32  ;;  %v1525_v57 = vsub.f32 0.0, %v1523_v43 }
 0x1d4   : > { %v1245_v59 = vmul.f32 1.442695, %v1243_v46  ;;  %v1664_v50 = vsub.f32 0.0, %v1662_v55 }
 0x1d5   : > { %v1388_v58 = vmul.f32 1.442695, %v1386_v56  ;;  %v1527_v60 = vmul.f32 1.442695, %v1525_v57 }
 0x1d6   : > { %3770 = vpow2.f32 %v1245_v59  ;;  %v1666_v61 = vmul.f32 1.442695, %v1664_v50 }
 0x1d7   : > { %3772 = vpow2.f32 %v1388_v58 }
 0x1d8   : > { %3774 = vpow2.f32 %v1527_v60  ;;  %v1236_v63 = vpop.f32.mrf.mxu2 }
 0x1d9   : > { %3776 = vpow2.f32 %v1666_v61  ;;  %v4864_v2 = vadd.f32 %v1236_v63, %v1215_v62 }
 0x1db   : > { %v1242_v4 = vand.u32 2147483647, %v4864_v2  ;;  %v1379_v10 = vpop.f32.mrf.mxu3 }
 0x1dc   : > { %v3771_v5 = vpop.eup %3770  ;;  %v4869_v18 = vadd.f32 %v1379_v10, %v1358_v19 }
 0x1dd   : > { %v3773_v11 = vpop.eup %3772  ;;  %v1249_v12 = vadd.f32 1.0, %v3771_v5  ;;  %v1252_v1 = vmul.f32 -0.5, %v3771_v5  ;;  %v1244_v40 = vsub.f32 0.0, %v1242_v4  ;;  %v1255_v27 = vand.u32 2147483647, %v3771_v5 }
 0x1de   : > { %v3775_v8 = vpop.eup %3774  ;;  %v1392_v0 = vadd.f32 1.0, %v3773_v11  ;;  %v1395_v39 = vmul.f32 -0.5, %v3773_v11  ;;  %v1398_v21 = vand.u32 2147483647, %v3773_v11  ;;  %v1385_v45 = vand.u32 2147483647, %v4869_v18 }
 0x1df   : > { %v3777_v14 = vpop.eup %3776  ;;  %3778 = vlog2.f32 %v1249_v12  ;;  %v1531_v17 = vadd.f32 1.0, %v3775_v8  ;;  %v1534_v37 = vmul.f32 -0.5, %v3775_v8  ;;  %v1518_v29 = vpop.f32.mrf.mxu0  ;;  %v1253_v30 = vadd.f32 1.0, %v1252_v1 }
 0x1e0   : > { %3780 = vlog2.f32 %v1392_v0  ;;  %v1670_v28 = vadd.f32 1.0, %v3777_v14  ;;  %v1396_v25 = vadd.f32 1.0, %v1395_v39  ;;  %v1673_v35 = vmul.f32 -0.5, %v3777_v14  ;;  %v1657_v36 = vpop.f32.mrf.mxu1 }
 0x1e1   : > { %3782 = vlog2.f32 %v1531_v17  ;;  %v1537_v38 = vand.u32 2147483647, %v3775_v8  ;;  %v1247_v41 = vmul.f32 1.442695, %v1244_v40  ;;  %vm4875_vm11 = vcmp.lt.f32.partialorder %v1255_v27, 0.0004427343 }
 0x1e2   : > { %3784 = vlog2.f32 %v1670_v28  ;;  %vm4879_vm12 = vcmp.lt.f32.partialorder %v1398_v21, 0.0004427343  ;;  %v1535_v26 = vadd.f32 1.0, %v1534_v37  ;;  %v4885_v31 = vadd.f32 %v1518_v29, %v1497_v9 }
 0x1e3   : > { %v1676_v62 = vand.u32 2147483647, %v3777_v14  ;;  %3786 = vpow2.f32 %v1247_v41  ;;  %v1387_v19 = vsub.f32 0.0, %v1385_v45  ;;  %v4889_v47 = vadd.f32 %v1657_v36, %v1636_v7 }
 0x1e4   : > { %v1254_v52 = vmul.f32 %v3771_v5, %v1253_v30  ;;  %v1674_v53 = vadd.f32 1.0, %v1673_v35  ;;  %v1524_v32 = vand.u32 2147483647, %v4885_v31  ;;  %v1397_v55 = vmul.f32 %v3773_v11, %v1396_v25 }
 0x1e5   : > { %v3779_v42 = vpop.eup %3778  ;;  %vm4892_vm13 = vcmp.lt.f32.partialorder %v1537_v38, 0.0004427343  ;;  %v1390_v56 = vmul.f32 1.442695, %v1387_v19  ;;  %v1536_v7 = vmul.f32 %v3775_v8, %v1535_v26  ;;  %v1663_v50 = vand.u32 2147483647, %v4889_v47 }
 0x1e6   : > { %v3781_v49 = vpop.eup %3780  ;;  %v1251_v51 = vmul.f32 0.6931472, %v3779_v42  ;;  %v1526_v63 = vsub.f32 0.0, %v1524_v32  ;;  %v1675_v11 = vmul.f32 %v3777_v14, %v1674_v53  ;;  %vm1677_vm14 = vcmp.lt.f32.partialorder %v1676_v62, 0.0004427343 }
 0x1e7   : > { %v3783_v43 = vpop.eup %3782  ;;  %v1394_v46 = vmul.f32 0.6931472, %v3781_v49  ;;  %3788 = vpow2.f32 %v1390_v56  ;;  %v1665_v8 = vsub.f32 0.0, %v1663_v50  ;;  %v4910_v14 = vld [vmem:[%s6410_s8] sm:$0x3f]  ;;  %v1240_v28 = vmax.f32 %v4864_v2, 0.0 }
 0x1e8   : > { %v1257_v57 = vsel %vm4875_vm11, %v1254_v52, %v1251_v51  ;;  %v1533_v59 = vmul.f32 0.6931472, %v3783_v43  ;;  %v3785_v58 = vpop.eup %3784  ;;  %v1529_v27 = vmul.f32 1.442695, %v1526_v63  ;;  %v1416_v36 = vperm.slane %v4910_v14, 1 }
 0x1e9   : > { %v1267_v60 = vadd.f32 %v1257_v57, %v1239_v6  ;;  %v1400_v61 = vsel %vm4879_vm12, %v1397_v55, %v1394_v46  ;;  %v1672_v10 = vmul.f32 0.6931472, %v3785_v58  ;;  %v3787_v12 = vpop.eup %3786  ;;  %v1273_v38 = vperm.slane %v4910_v14, 0 }
 0x1ea   : > { %v1410_v4 = vadd.f32 %v1400_v61, %v1382_v13  ;;  %v1539_v5 = vsel %vm4892_vm13, %v1536_v7, %v1533_v59  ;;  %v1258_v6 = vadd.f32 1.0, %v3787_v12  ;;  %v1261_v17 = vmul.f32 -0.5, %v3787_v12 }
 0x1eb   : > { %3790 = vtanh.f32 %v1267_v60  ;;  %v1549_v1 = vadd.f32 %v1539_v5, %v1521_v23  ;;  %v1793_v0 = vpop.f32.mrf.mxu2  ;;  %v1678_v39 = vsel %vm1677_vm14, %v1675_v11, %v1672_v10  ;;  %v1668_v23 = vmul.f32 1.442695, %v1665_v8 }
 0x1ec   : > { %3792 = vtanh.f32 %v1410_v4  ;;  %v1688_v40 = vadd.f32 %v1678_v39, %v1660_v22  ;;  %v4905_v13 = vadd.f32 %v1793_v0, %v1775_v24  ;;  %v1262_v37 = vadd.f32 1.0, %v1261_v17 }
 0x1ed   : > { %3794 = vtanh.f32 %v1549_v1  ;;  %v3789_v21 = vpop.eup %3788  ;;  %v1914_v22 = vperm.slane %v4842_v44, 5  ;;  %v1264_v45 = vand.u32 2147483647, %v3787_v12  ;;  %v1555_v3 = vperm.slane %v4910_v14, 2 }
 0x1ee   : > { %3796 = vlog2.f32 %v1258_v6  ;;  %v1401_v29 = vadd.f32 1.0, %v3789_v21  ;;  %v1404_v30 = vmul.f32 -0.5, %v3789_v21  ;;  %v1801_v35 = vand.u32 2147483647, %v4905_v13 }
 0x1ef   : > { %3798 = vtanh.f32 %v1688_v40  ;;  %v1263_v42 = vmul.f32 %v3787_v12, %v1262_v37  ;;  %vm1265_vm15 = vcmp.lt.f32.partialorder %v1264_v45, 0.0004427343  ;;  %v1407_v57 = vand.u32 2147483647, %v3789_v21 }
 0x1f0   : > { %3800 = vpow2.f32 %v1529_v27  ;;  %v1803_v62 = vsub.f32 0.0, %v1801_v35  ;;  %v1405_v52 = vadd.f32 1.0, %v1404_v30  ;;  %v1383_v58 = vmax.f32 %v4869_v18, 0.0 }
 0x1f1   : > { %v3791_v25 = vpop.eup %3790  ;;  %3802 = vlog2.f32 %v1401_v29  ;;  %v1694_v5 = vperm.slane %v4910_v14, 3  ;;  %vm1408_vm0 = vcmp.lt.f32.partialorder %v1407_v57, 0.0004427343  ;;  %vm1289_vm12 = vcmask 7168  }
 0x1f2   : > { %v3793_v41 = vpop.eup %3792  ;;  %v1271_v34 = vmul.f32 %v3791_v25, %v4848_v48  ;;  %3804 = vpow2.f32 %v1668_v23  ;;  %v1805_v9 = vmul.f32 1.442695, %v1803_v62  ;;  %v1406_v12 = vmul.f32 %v3789_v21, %v1405_v52 }
 0x1f3   : > { %v3795_v26 = vpop.eup %3794  ;;  %v1932_v19 = vpop.f32.mrf.mxu3  ;;  %v1414_v49 = vmul.f32 %v3793_v41, %v4850_v33  ;;  %v1661_v62 = vmax.f32 %v4889_v47, 0.0  ;;  %vm1291_vm13 = vcmask 3072   ;;  %vm1428_vm14 = vcmask 15368  }
 0x1f4   : > { %v3797_v51 = vpop.eup %3796  ;;  %v4922_v53 = vadd.f32 %v1932_v19, %v1914_v22  ;;  %v1796_v32 = vpop.f32.mrf.mxu2  ;;  %v1553_v43 = vmul.f32 %v3795_v26, %v4854_v20  ;;  %v1274_v46 = vmul.f32 %v1273_v38, %v1271_v34  ;;  %3806 = vpow2.f32 %v1805_v9 }
 0x1f5   : > { %v3799_v48 = vpop.eup %3798  ;;  %v1260_v55 = vmul.f32 0.6931472, %v3797_v51  ;;  %v4929_v56 = vadd.f32 %v1796_v32, %v1775_v24  ;;  %v1417_v33 = vmul.f32 %v1416_v36, %v1414_v49  ;;  %v1522_v34 = vmax.f32 %v4885_v31, 0.0 }
 0x1f6   : > { %v1940_v59 = vand.u32 2147483647, %v4922_v53  ;;  %v1556_v20 = vmul.f32 %v1555_v3, %v1553_v43  ;;  %1276 = vadd.xlane.f32.xlu0 %v1274_v46  ;;  %v3801_v7 = vpop.eup %3800  ;;  %v1692_v4 = vmul.f32 %v3799_v48, %v4859_v54 }
 0x1f7   : > { %v1266_v50 = vsel %vm1265_vm15, %v1263_v42, %v1260_v55  ;;  %v1802_v60 = vand.u32 2147483647, %v4929_v56  ;;  %1419 = vadd.xlane.f32.xlu1 %v1417_v33  ;;  %v3803_v24 = vpop.eup %3802  ;;  %v1540_v63 = vadd.f32 1.0, %v3801_v7  ;;  %v1543_v0 = vmul.f32 -0.5, %v3801_v7 }
 0x1f8   : > { %v1268_v61 = vadd.f32 %v1266_v50, %v1240_v28  ;;  %1558 = vadd.xlane.f32.xlu2 %v1556_v20  ;;  %v3805_v10 = vpop.eup %3804  ;;  %v1403_v11 = vmul.f32 0.6931472, %v3803_v24  ;;  %v1942_v1 = vsub.f32 0.0, %v1940_v59  ;;  %v1695_v54 = vmul.f32 %v1694_v5, %v1692_v4 }
 0x1f9   : > { %v1804_v8 = vsub.f32 0.0, %v1802_v60  ;;  %v1679_v39 = vadd.f32 1.0, %v3805_v10  ;;  %v1682_v17 = vmul.f32 -0.5, %v3805_v10  ;;  %v1546_v23 = vand.u32 2147483647, %v3801_v7 }
 0x1fa   : > { %3808 = vtanh.f32 %v1268_v61  ;;  %v1409_v6 = vsel %vm1408_vm0, %v1406_v12, %v1403_v11  ;;  %v1944_v27 = vmul.f32 1.442695, %v1942_v1  ;;  %v3807_v37 = vpop.eup %3806  ;;  %v1544_v21 = vadd.f32 1.0, %v1543_v0 }
 0x1fb   : > { %3810 = vlog2.f32 %v1540_v63  ;;  %v1411_v40 = vadd.f32 %v1409_v6, %v1383_v58  ;;  %v1807_v28 = vmul.f32 1.442695, %v1804_v8  ;;  %v1809_v29 = vadd.f32 1.0, %v3807_v37 }
 0x1fc   : > { %3812 = vlog2.f32 %v1679_v39  ;;  %v1812_v30 = vmul.f32 -0.5, %v3807_v37  ;;  %v1683_v35 = vadd.f32 1.0, %v1682_v17  ;;  %v1685_v26 = vand.u32 2147483647, %v3805_v10 }
 0x1fd   : > { %3814 = vtanh.f32 %v1411_v40  ;;  %v1545_v32 = vmul.f32 %v3801_v7, %v1544_v21  ;;  %vm1547_vm1 = vcmp.lt.f32.partialorder %v1546_v23, 0.0004427343  ;;  %v1815_v33 = vand.u32 2147483647, %v3807_v37 }
 0x1fe   : > { %v1935_v25 = vpop.f32.mrf.mxu3  ;;  %1697 = vadd.xlane.f32.xlu0 %v1695_v54  ;;  %3816 = vpow2.f32 %v1944_v27  ;;  %v1813_v44 = vadd.f32 1.0, %v1812_v30  ;;  %v1684_v43 = vmul.f32 %v3805_v10, %v1683_v35  ;;  %vm1686_vm2 = vcmp.lt.f32.partialorder %v1685_v26, 0.0004427343 }
 0x1ff   : > { %v4944_v41 = vadd.f32 %v1935_v25, %v1914_v22  ;;  %3818 = vlog2.f32 %v1809_v29  ;;  %vm1816_vm8 = vcmp.lt.f32.partialorder %v1815_v33, 0.0004427343  ;;  %v1938_v23 = vmax.f32 %v4922_v53, 0.0 }
 0x200   : > { %v3809_v45 = vpop.eup %3808  ;;  %3820 = vpow2.f32 %v1807_v28  ;;  %v1814_v60 = vmul.f32 %v3807_v37, %v1813_v44  ;;  %v1800_v25 = vmax.f32 %v4929_v56, 0.0  ;;  %vm1430_vm15 = vcmask 11272  }
 0x201   : > { %v3811_v42 = vpop.eup %3810  ;;  %v1941_v19 = vand.u32 2147483647, %v4944_v41  ;;  %v1272_v49 = vmul.f32 %v3809_v45, %v4864_v2  ;;  %v1799_v2 = vmax.f32 %v4905_v13, 0.0  ;;  %vm1567_vm0 = vcmask 23568  }
 0x202   : > { %v3813_v51 = vpop.eup %3812  ;;  %v1542_v52 = vmul.f32 0.6931472, %v3811_v42 }
 0x203   : > { %v1681_v22 = vmul.f32 0.6931472, %v3813_v51  ;;  %v1943_v46 = vsub.f32 0.0, %v1941_v19  ;;  %v1275_v48 = vmul.f32 %v1273_v38, %v1272_v49  ;;  %v3815_v55 = vpop.eup %3814 }
 0x204   : > { %v1548_v9 = vsel %vm1547_vm1, %v1545_v32, %v1542_v52  ;;  %v3817_v57 = vpop.eup %3816  ;;  %v1415_v7 = vmul.f32 %v3815_v55, %v4869_v18  ;;  %v1972_v55 = vperm.slane %v4910_v14, 5  ;;  %vm1706_vm1 = vcmask 31768  }
 0x205   : > { %v1550_v59 = vadd.f32 %v1548_v9, %v1522_v34  ;;  %v1687_v20 = vsel %vm1686_vm2, %v1684_v43, %v1681_v22  ;;  %v3819_v50 = vpop.eup %3818  ;;  %v1948_v24 = vadd.f32 1.0, %v3817_v57  ;;  %v1946_v61 = vmul.f32 1.442695, %v1943_v46 }
 0x206   : > { %v1689_v58 = vadd.f32 %v1687_v20, %v1661_v62  ;;  %v3821_v63 = vpop.eup %3820  ;;  %v1811_v38 = vmul.f32 0.6931472, %v3819_v50  ;;  %v1418_v4 = vmul.f32 %v1416_v36, %v1415_v7  ;;  %v1279_v10 = vsel %vm6437_vm3, %v1275_v48, 0.0 }
 0x207   : > { %3822 = vtanh.f32 %v1550_v59  ;;  %v1951_v11 = vmul.f32 -0.5, %v3817_v57  ;;  %v1818_v12 = vadd.f32 1.0, %v3821_v63  ;;  %1280 = vadd.xlane.f32.xlu0 %v1279_v10  ;;  %v1821_v18 = vmul.f32 -0.5, %v3821_v63 }
 0x208   : > { %3824 = vtanh.f32 %v1689_v58  ;;  %v1817_v1 = vsel %vm1816_vm8, %v1814_v60, %v1811_v38  ;;  %v1421_v0 = vsel %vm6437_vm3, %v1418_v4, 0.0  ;;  %v1954_v36 = vand.u32 2147483647, %v3817_v57 }
 0x209   : > { %3826 = vlog2.f32 %v1948_v24  ;;  %v1827_v8 = vadd.f32 %v1817_v1, %v1799_v2  ;;  %1422 = vadd.xlane.f32.xlu1 %v1421_v0  ;;  %v1952_v39 = vadd.f32 1.0, %v1951_v11  ;;  %v1822_v17 = vadd.f32 1.0, %v1821_v18 }
 0x20a   : > { %3828 = vlog2.f32 %v1818_v12  ;;  %v1824_v27 = vand.u32 2147483647, %v3821_v63  ;;  %vm1955_vm9 = vcmp.lt.f32.partialorder %v1954_v36, 0.0004427343  ;;  %v1939_v20 = vmax.f32 %v4944_v41, 0.0 }
 0x20b   : > { %3830 = vpow2.f32 %v1946_v61  ;;  %v1953_v30 = vmul.f32 %v3817_v57, %v1952_v39  ;;  %v1823_v26 = vmul.f32 %v3821_v63, %v1822_v17  ;;  %vm1569_vm2 = vcmask 19472  }
 0x20c   : > { %3832 = vtanh.f32 %v1827_v8  ;;  %vm1825_vm10 = vcmp.lt.f32.partialorder %v1824_v27, 0.0004427343  ;;  %vm1708_vm8 = vcmask 27672  }
 0x20d   : > { %v3823_v6 = vpop.eup %3822 }
 0x20e   : > { %v3825_v40 = vpop.eup %3824  ;;  %v1554_v54 = vmul.f32 %v3823_v6, %v4885_v31 }
 0x20f   : > { %v3827_v37 = vpop.eup %3826  ;;  %v1693_v28 = vmul.f32 %v3825_v40, %v4889_v47 }
 0x210   : > { %v3829_v21 = vpop.eup %3828  ;;  %v1950_v29 = vmul.f32 0.6931472, %v3827_v37  ;;  %v1557_v35 = vmul.f32 %v1555_v3, %v1554_v54  ;;  %v1833_v3 = vperm.slane %v4910_v14, 4 }
 0x211   : > { %v3831_v45 = vpop.eup %3830  ;;  %v1820_v34 = vmul.f32 0.6931472, %v3829_v21  ;;  %v1696_v31 = vmul.f32 %v1694_v5, %v1693_v28 }
 0x212   : > { %v3833_v42 = vpop.eup %3832  ;;  %v1956_v62 = vsel %vm1955_vm9, %v1953_v30, %v1950_v29  ;;  %v1957_v19 = vadd.f32 1.0, %v3831_v45  ;;  %v1960_v47 = vmul.f32 -0.5, %v3831_v45  ;;  %v1560_v52 = vsel %vm6437_vm3, %v1557_v35, 0.0 }
 0x213   : > { %v1966_v49 = vadd.f32 %v1956_v62, %v1938_v23  ;;  %v1826_v51 = vsel %vm1825_vm10, %v1823_v26, %v1820_v34  ;;  %v1699_v32 = vsel %vm6437_vm3, %v1696_v31, 0.0  ;;  %1561 = vadd.xlane.f32.xlu2 %v1560_v52  ;;  %v1831_v5 = vmul.f32 %v3833_v42, %v4905_v13 }
 0x214   : > { %v1828_v44 = vadd.f32 %v1826_v51, %v1800_v25  ;;  %3834 = vlog2.f32 %v1957_v19  ;;  %1700 = vadd.xlane.f32.xlu1 %v1699_v32  ;;  %v1961_v22 = vadd.f32 1.0, %v1960_v47  ;;  %v1963_v43 = vand.u32 2147483647, %v3831_v45 }
 0x215   : > { %3836 = vtanh.f32 %v1966_v49  ;;  %v1834_v46 = vmul.f32 %v1833_v3, %v1831_v5  ;;  %vm1845_vm9 = vcmask 39968   ;;  %vm1984_vm10 = vcmask 48168  }
 0x216   : > { %3838 = vtanh.f32 %v1828_v44  ;;  %v1962_v57 = vmul.f32 %v3831_v45, %v1961_v22  ;;  %vm1964_vm11 = vcmp.lt.f32.partialorder %v1963_v43, 0.0004427343 }
 0x21a   : > { %v3835_v48 = vpop.eup %3834 }
 0x21b   : > { %v3837_v9 = vpop.eup %3836  ;;  %v1959_v33 = vmul.f32 0.6931472, %v3835_v48  ;;  %1836 = vadd.xlane.f32.xlu2 %v1834_v46 }
 0x21c   : > { %v3839_v59 = vpop.eup %3838  ;;  %v1970_v2 = vmul.f32 %v3837_v9, %v4922_v53 }
 0x21d   : > { %v1965_v7 = vsel %vm1964_vm11, %v1962_v57, %v1959_v33  ;;  %v1832_v13 = vmul.f32 %v3839_v59, %v4929_v56  ;;  %v4980_v56 = vld [vmem:[%s6411_s9] ss:$0 sm:$0xff]  ;;  %vm1847_vm11 = vcmask 35872  }
 0x21e   : > { %v1967_v50 = vadd.f32 %v1965_v7, %v1939_v20  ;;  %v1973_v58 = vmul.f32 %v1972_v55, %v1970_v2 }
 0x21f   : > { %v1835_v60 = vmul.f32 %v1833_v3, %v1832_v13 }
 0x220   : > { %3840 = vtanh.f32 %v1967_v50  ;;  %1975 = vadd.xlane.f32.xlu1 %v1973_v58 }
 0x221   : > { %v1838_v14 = vsel %vm6437_vm3, %v1835_v60, 0.0 }
 0x222   : > { %1839 = vadd.xlane.f32.xlu0 %v1838_v14 }
 0x226   : > { %v3841_v24 = vpop.eup %3840 }
 0x227   : > { %v1971_v61 = vmul.f32 %v3841_v24, %v4944_v41 }
 0x229   : > { %v1974_v63 = vmul.f32 %v1972_v55, %v1971_v61 }
 0x22b   : > { %v1977_v38 = vsel %vm6437_vm3, %v1974_v63, 0.0  ;;  %vm1986_vm3 = vcmask 44072  }
 0x22c   : > { %1978 = vadd.xlane.f32.xlu2 %v1977_v38 }
 0x269   : > { %v1277_v4 = vpop.xlane.xlu0 %1276 }
 0x26a   : > { %v1420_v10 = vpop.xlane.xlu1 %1419  ;;  %v1285_v11 = vadd.f32 %v4980_v56, %v1277_v4 }
 0x26b   : > { %v1424_v12 = vadd.f32 %v4980_v56, %v1420_v10  ;;  %v1559_v8 = vpop.xlane.xlu2 %1558 }
 0x26c   : > { %v1287_v41 = vsel %vm4183_vm4, %v1285_v11, -1e+30  ;;  %v1563_v21 = vadd.f32 %v4980_v56, %v1559_v8 }
 0x26d   : > { %v1426_v6 = vsel %vm4183_vm4, %v1424_v12, -1e+30  ;;  %v1290_v36 = vsel %vm1289_vm12, %v1287_v41, -inf }
 0x26e   : > { %v1429_v37 = vsel %vm1428_vm14, %v1426_v6, -inf  ;;  %v5002_v34 = vsel %vm4183_vm4, %v1563_v21, -1e+30 }
 0x26f   : > { %v1568_v52 = vsel %vm1567_vm0, %v5002_v34, -inf }
 0x271   : > { %v1698_v53 = vpop.xlane.xlu0 %1697 }
 0x272   : > { %v1702_v29 = vadd.f32 %v4980_v56, %v1698_v53 }
 0x274   : > { %v5006_v26 = vsel %vm4183_vm4, %v1702_v29, -1e+30 }
 0x275   : > { %v1707_v5 = vsel %vm1706_vm1, %v5006_v26, -inf }
 0x27a   : > { %v1281_v1 = vpop.xlane.xlu0 %1280 }
 0x27b   : > { %v1286_v18 = vadd.f32 %v4980_v56, %v1281_v1 }
 0x27c   : > { %v1423_v0 = vpop.xlane.xlu1 %1422 }
 0x27d   : > { %v1288_v39 = vsel %vm4187_vm5, %v1286_v18, -1e+30  ;;  %v1425_v17 = vadd.f32 %v4980_v56, %v1423_v0 }
 0x27e   : > { %v1292_v40 = vsel %vm1291_vm13, %v1288_v39, -inf }
 0x27f   : > { %v1293_v27 = vmax.f32 %v1290_v36, %v1292_v40  ;;  %v1427_v54 = vsel %vm4187_vm5, %v1425_v17, -1e+30 }
 0x280   : > { %v1431_v23 = vsel %vm1430_vm15, %v1427_v54, -inf }
 0x281   : > { %v1294_v28 = vrot.slane %v1293_v27, 4  ;;  %v1432_v30 = vmax.f32 %v1429_v37, %v1431_v23 }
 0x283   : > { %v1295_v25 = vmax.f32 %v1293_v27, %v1294_v28  ;;  %v1433_v35 = vrot.slane %v1432_v30, 4 }
 0x285   : > { %v1296_v45 = vrot.slane %v1295_v25, 2  ;;  %v1434_v31 = vmax.f32 %v1432_v30, %v1433_v35 }
 0x286   : > { %v1562_v42 = vpop.xlane.xlu2 %1561 }
 0x287   : > { %v1701_v62 = vpop.xlane.xlu1 %1700  ;;  %v1564_v19 = vadd.f32 %v4980_v56, %v1562_v42  ;;  %v1297_v47 = vmax.f32 %v1295_v25, %v1296_v45  ;;  %v1435_v51 = vrot.slane %v1434_v31, 2 }
 0x288   : > { %v1703_v49 = vadd.f32 %v4980_v56, %v1701_v62 }
 0x289   : > { %v5014_v32 = vsel %vm4187_vm5, %v1564_v19, -1e+30  ;;  %v1298_v44 = vrot.slane %v1297_v47, 1  ;;  %v1436_v22 = vmax.f32 %v1434_v31, %v1435_v51 }
 0x28a   : > { %v5018_v3 = vsel %vm4187_vm5, %v1703_v49, -1e+30  ;;  %v1570_v43 = vsel %vm1569_vm2, %v5014_v32, -inf }
 0x28b   : > { %v1709_v46 = vsel %vm1708_vm8, %v5018_v3, -inf  ;;  %v1571_v48 = vmax.f32 %v1568_v52, %v1570_v43  ;;  %v1299_v55 = vmax.f32 %v1297_v47, %v1298_v44  ;;  %v1437_v33 = vrot.slane %v1436_v22, 1 }
 0x28c   : > { %v1710_v9 = vmax.f32 %v1707_v5, %v1709_v46 }
 0x28d   : > { %v1572_v57 = vrot.slane %v1571_v48, 4  ;;  %v1300_v59 = vsub.f32 %v1287_v41, %v1299_v55  ;;  %v1301_v20 = vsub.f32 %v1288_v39, %v1299_v55  ;;  %v1438_v7 = vmax.f32 %v1436_v22, %v1437_v33 }
 0x28e   : > { %v1711_v2 = vrot.slane %v1710_v9, 4  ;;  %v1837_v13 = vpop.xlane.xlu2 %1836  ;;  %v3995_v55 = vmov 1  }
 0x28f   : > { %v1573_v50 = vmax.f32 %v1571_v48, %v1572_v57  ;;  %v1302_v58 = vmul.f32 1.442695, %v1300_v59  ;;  %v1304_v60 = vmul.f32 1.442695, %v1301_v20  ;;  %v1439_v24 = vsub.f32 %v1426_v6, %v1438_v7  ;;  %3678 = vset.pattern.permute.xlu2 %v3995_v55 }
 0x290   : > { %v1712_v14 = vmax.f32 %v1710_v9, %v1711_v2  ;;  %v1440_v61 = vsub.f32 %v1427_v54, %v1438_v7  ;;  %v1841_v4 = vadd.f32 %v4980_v56, %v1837_v13  ;;  %v3996_v9 = vmov 0  }
 0x291   : > { %v1574_v63 = vrot.slane %v1573_v50, 2  ;;  %3842 = vpow2.f32 %v1302_v58  ;;  %v1441_v53 = vmul.f32 1.442695, %v1439_v24  ;;  %3677 = vset.pattern.permute.xlu1 %v3996_v9  ;;  %3676 = vset.pattern.permute.xlu0 %v3996_v9 }
 0x292   : > { %v1713_v38 = vrot.slane %v1712_v14, 2  ;;  %v1443_v10 = vmul.f32 1.442695, %v1440_v61  ;;  %3844 = vpow2.f32 %v1304_v60  ;;  %v5029_v0 = vsel %vm4183_vm4, %v1841_v4, -1e+30 }
 0x293   : > { %v1575_v11 = vmax.f32 %v1573_v50, %v1574_v63  ;;  %v1976_v1 = vpop.xlane.xlu1 %1975  ;;  %3846 = vpow2.f32 %v1441_v53  ;;  %v1846_v54 = vsel %vm1845_vm9, %v5029_v0, -inf }
 0x294   : > { %v1714_v12 = vmax.f32 %v1712_v14, %v1713_v38  ;;  %3848 = vpow2.f32 %v1443_v10  ;;  %v1980_v39 = vadd.f32 %v4980_v56, %v1976_v1 }
 0x295   : > { %v1840_v41 = vpop.xlane.xlu0 %1839  ;;  %v1576_v18 = vrot.slane %v1575_v11, 1 }
 0x296   : > { %v1715_v8 = vrot.slane %v1714_v12, 1  ;;  %v1842_v6 = vadd.f32 %v4980_v56, %v1840_v41  ;;  %v5049_v35 = vsel %vm4183_vm4, %v1980_v39, -1e+30 }
 0x297   : > { %v3843_v36 = vpop.eup %3842  ;;  %v1577_v17 = vmax.f32 %v1575_v11, %v1576_v18  ;;  %v1985_v57 = vsel %vm1984_vm10, %v5049_v35, -inf }
 0x298   : > { %v1716_v40 = vmax.f32 %v1714_v12, %v1715_v8  ;;  %v3845_v27 = vpop.eup %3844  ;;  %v5037_v37 = vsel %vm4187_vm5, %v1842_v6, -1e+30  ;;  %v5041_v23 = vsel %vm4183_vm4, %v3843_v36, 0.0 }
 0x299   : > { %v1578_v28 = vsub.f32 %v5002_v34, %v1577_v17  ;;  %v1579_v21 = vsub.f32 %v5014_v32, %v1577_v17  ;;  %v3847_v25 = vpop.eup %3846  ;;  %v1848_v45 = vsel %vm1847_vm11, %v5037_v37, -inf  ;;  %v5055_v31 = vsel %vm4187_vm5, %v3845_v27, 0.0 }
 0x29a   : > { %v1717_v29 = vsub.f32 %v5006_v26, %v1716_v40  ;;  %v1718_v30 = vsub.f32 %v5018_v3, %v1716_v40  ;;  %v1308_v34 = vsel %vm1289_vm12, %v5041_v23, 0.0  ;;  %v3849_v42 = vpop.eup %3848  ;;  %v1849_v47 = vmax.f32 %v1846_v54, %v1848_v45 }
 0x29b   : > { %v1580_v62 = vmul.f32 1.442695, %v1578_v28  ;;  %v1582_v26 = vmul.f32 1.442695, %v1579_v21  ;;  %v5061_v49 = vsel %vm4187_vm5, %v3849_v42, 0.0  ;;  %v5065_v52 = vsel %vm4183_vm4, %v3847_v25, 0.0 }
 0x29c   : > { %v1719_v19 = vmul.f32 1.442695, %v1717_v29  ;;  %v1721_v51 = vmul.f32 1.442695, %v1718_v30  ;;  %v1309_v32 = vsel %vm1291_vm13, %v5055_v31, 0.0  ;;  %v1448_v44 = vsel %vm1430_vm15, %v5061_v49, 0.0 }
 0x29d   : > { %3850 = vpow2.f32 %v1580_v62  ;;  %v1850_v3 = vrot.slane %v1849_v47, 4  ;;  %v1447_v5 = vsel %vm1428_vm14, %v5065_v52, 0.0  ;;  %v1310_v33 = vadd.f32 %v1309_v32, %v1308_v34 }
 0x29e   : > { %3852 = vpow2.f32 %v1582_v26  ;;  %v1449_v43 = vadd.f32 %v1448_v44, %v1447_v5  ;;  %vm6485_vm12 = vcmask 1043456  }
 0x29f   : > { %v1979_v22 = vpop.xlane.xlu2 %1978  ;;  %3854 = vpow2.f32 %v1719_v19  ;;  %v1851_v48 = vmax.f32 %v1849_v47, %v1850_v3  ;;  %v1311_v7 = vrot.slane %v1310_v33, 4 }
 0x2a0   : > { %v1981_v46 = vadd.f32 %v4980_v56, %v1979_v22  ;;  %3856 = vpow2.f32 %v1721_v51  ;;  %v1450_v59 = vrot.slane %v1449_v43, 4 }
 0x2a1   : > { %v1852_v2 = vrot.slane %v1851_v48, 2  ;;  %v1312_v14 = vadd.f32 %v1311_v7, %v1310_v33 }
 0x2a2   : > { %v1983_v20 = vsel %vm4187_vm5, %v1981_v46, -1e+30  ;;  %v1451_v56 = vadd.f32 %v1450_v59, %v1449_v43 }
 0x2a3   : > { %v1987_v13 = vsel %vm1986_vm3, %v1983_v20, -inf  ;;  %v3851_v50 = vpop.eup %3850  ;;  %v1853_v60 = vmax.f32 %v1851_v48, %v1852_v2  ;;  %v1313_v11 = vrot.slane %v1312_v14, 2 }
 0x2a4   : > { %v1988_v58 = vmax.f32 %v1985_v57, %v1987_v13  ;;  %v3853_v24 = vpop.eup %3852  ;;  %v1452_v61 = vrot.slane %v1451_v56, 2  ;;  %v5081_v63 = vsel %vm4183_vm4, %v3851_v50, 0.0 }
 0x2a5   : > { %v3855_v38 = vpop.eup %3854  ;;  %v5085_v4 = vsel %vm4187_vm5, %v3853_v24, 0.0  ;;  %v1854_v10 = vrot.slane %v1853_v60, 1  ;;  %v1586_v18 = vsel %vm1567_vm0, %v5081_v63, 0.0  ;;  %v1314_v36 = vadd.f32 %v1313_v11, %v1312_v14 }
 0x2a6   : > { %v1989_v53 = vrot.slane %v1988_v58, 4  ;;  %v3857_v12 = vpop.eup %3856  ;;  %v1587_v1 = vsel %vm1569_vm2, %v5085_v4, 0.0  ;;  %v1453_v41 = vadd.f32 %v1452_v61, %v1451_v56  ;;  %v5093_v8 = vsel %vm4183_vm4, %v3855_v38, 0.0 }
 0x2a7   : > { %v1855_v6 = vmax.f32 %v1853_v60, %v1854_v10  ;;  %v1588_v17 = vadd.f32 %v1587_v1, %v1586_v18  ;;  %v5097_v27 = vsel %vm4187_vm5, %v3857_v12, 0.0  ;;  %v1725_v54 = vsel %vm1706_vm1, %v5093_v8, 0.0 }
 0x2a8   : > { %v1990_v39 = vmax.f32 %v1988_v58, %v1989_v53  ;;  %v1454_v40 = vrot.slane %v1453_v41, 1  ;;  %v1315_v30 = vrot.slane %v1314_v36, 1  ;;  %v1726_v34 = vsel %vm1708_vm8, %v5097_v27, 0.0 }
 0x2a9   : > { %v1856_v21 = vsub.f32 %v5029_v0, %v1855_v6  ;;  %v1857_v29 = vsub.f32 %v5037_v37, %v1855_v6  ;;  %v1589_v45 = vrot.slane %v1588_v17, 4  ;;  %v1727_v51 = vadd.f32 %v1726_v34, %v1725_v54 }
 0x2aa   : > { %v1991_v28 = vrot.slane %v1990_v39, 2  ;;  %v1455_v25 = vadd.f32 %v1454_v40, %v1453_v41  ;;  %v1316_v19 = vadd.f32 %v1315_v30, %v1314_v36  ;;  %v3998_v40 = vmov 3  }
 0x2ab   : > { %v1858_v62 = vmul.f32 1.442695, %v1856_v21  ;;  %v1860_v26 = vmul.f32 1.442695, %v1857_v29  ;;  %v1590_v47 = vadd.f32 %v1589_v45, %v1588_v17  ;;  %v1728_v0 = vrot.slane %v1727_v51, 4 }
 0x2ac   : > { %v1992_v42 = vmax.f32 %v1990_v39, %v1991_v28  ;;  %3858 = vrcp.f32 %v1455_v25  ;;  %v3997_v17 = vmov 2   ;;  %vm3143_vm2 = vcmask 40960  }
 0x2ad   : > { %3860 = vpow2.f32 %v1858_v62  ;;  %v1591_v44 = vrot.slane %v1590_v47, 2  ;;  %v1729_v5 = vadd.f32 %v1728_v0, %v1727_v51 }
 0x2ae   : > { %v1993_v32 = vrot.slane %v1992_v42, 1  ;;  %3862 = vpow2.f32 %v1860_v26  ;;  %v3999_v26 = vmov 5  }
 0x2af   : > { %3864 = vrcp.f32 %v1316_v19  ;;  %v1592_v37 = vadd.f32 %v1591_v44, %v1590_v47  ;;  %v1730_v55 = vrot.slane %v1729_v5, 2  ;;  %v4000_v19 = vmov 4  }
 0x2b0   : > { %v1994_v3 = vmax.f32 %v1992_v42, %v1993_v32 }
 0x2b1   : > { %v1593_v48 = vrot.slane %v1592_v37, 1  ;;  %v1731_v13 = vadd.f32 %v1730_v55, %v1729_v5  ;;  %v2064_v5 = vld [vmem:[%s6412_s10 + $0x90] sm:$0xff] }
 0x2b2   : > { %v1995_v22 = vsub.f32 %v5049_v35, %v1994_v3  ;;  %v1996_v43 = vsub.f32 %v1983_v20, %v1994_v3  ;;  %v3859_v46 = vpop.eup %3858  ;;  %v2067_v3 = vld [vmem:[%s6412_s10 + $0xa8] sm:$0xff] }
 0x2b3   : > { %v3861_v9 = vpop.eup %3860  ;;  %v1457_v59 = vmul.f32 %v3859_v46, %v5065_v52  ;;  %v1594_v7 = vadd.f32 %v1593_v48, %v1592_v37  ;;  %v1732_v14 = vrot.slane %v1731_v13, 1  ;;  %v1458_v10 = vmul.f32 %v3859_v46, %v5061_v49  ;;  %v2068_v37 = vld [vmem:[%s6412_s10 + $0xb0] sm:$0xff]  ;;  %2081 = vmatpush.msrb.mxu0 %v2067_v3  ;;  %v3508_v46 = vld [vmem:[%s6412_s10 + $0x178] sm:$0xff]  ;;  %v2066_v3 = vld [vmem:[%s6412_s10 + $0xa0] sm:$0xff] }
 0x2b4   : > { %v1997_v33 = vmul.f32 1.442695, %v1995_v22  ;;  %v1999_v57 = vmul.f32 1.442695, %v1996_v43  ;;  %v3863_v2 = vpop.eup %3862  ;;  %v1862_v56 = vsel %vm4183_vm4, %v3861_v9, 0.0  ;;  %2101 = vmatpush.msrb.mxu1 %v2068_v37  ;;  %v2065_v22 = vld [vmem:[%s6412_s10 + $0x98] sm:$0xff]  ;;  %2218 = vmatpush.msrb.mxu3 %v3508_v46 }
 0x2b5   : > { %v3865_v50 = vpop.eup %3864  ;;  %v1863_v35 = vsel %vm4187_vm5, %v3863_v2, 0.0  ;;  %1461 = vperm.xlu2 %3678, %v1457_v59   ;;  %v1864_v20 = vsel %vm1845_vm9, %v1862_v56, 0.0  ;;  %v1733_v61 = vadd.f32 %v1732_v14, %v1731_v13  ;;  %v3507_v43 = vld [vmem:[%s6412_s10 + $0x170] sm:$0xff]  ;;  %2082 = vmatpush.msrb.mxu0 %v2064_v5  ;;  %v3504_v59 = vld [vmem:[%s6412_s10 + $0x158] sm:$0xff]  ;;  %v3505_v2 = vld [vmem:[%s6412_s10 + $0x160] sm:$0xff]  ;;  %vm3281_vm9 = vcmask 324608  }
 0x2b6   : > { %3866 = vpow2.f32 %v1997_v33  ;;  %v1865_v58 = vsel %vm1847_vm11, %v1863_v35, 0.0  ;;  %v1319_v60 = vmul.f32 %v3865_v50, %v5055_v31  ;;  %v1318_v52 = vmul.f32 %v3865_v50, %v5041_v23  ;;  %2198 = vmatpush.msrb.mxu2 %v3507_v43  ;;  %2102 = vmatpush.msrb.mxu1 %v2065_v22  ;;  %v2061_v33 = vld [vmem:[%s6412_s10 + $0x78] sm:$0xff]  ;;  %v2059_v13 = vld [vmem:[%s6412_s10 + $0x68] sm:$0xff]  ;;  %v3503_v37 = vld [vmem:[%s6412_s10 + $0x150] sm:$0xff] }
 0x2b7   : > { %3868 = vpow2.f32 %v1999_v57  ;;  %v1866_v24 = vadd.f32 %v1865_v58, %v1864_v20  ;;  %v2062_v57 = vld [vmem:[%s6412_s10 + $0x80] sm:$0xff]  ;;  %2083 = vmatpush.msrb.mxu0 %v2061_v33  ;;  %2219 = vmatpush.msrb.mxu3 %v3505_v2  ;;  %v3535_v43 = vld [vmem:[%s6412_s10 + $0x238] sm:$0xff]  ;;  %v3560_v46 = vld [vmem:[%s6412_s10 + $0x2e8] sm:$0xff] }
 0x2b8   : > { %3870 = vrcp.f32 %v1594_v7  ;;  %1327 = vperm.xlu1 %3677, %v1319_v60   ;;  %1322 = vperm.xlu0 %3676, %v1318_v52   ;;  %v2058_v7 = vld [vmem:[%s6412_s10 + $0x60] sm:$0xff]  ;;  %v3502_v60 = vld [vmem:[%s6412_s10 + $0x148] sm:$0xff]  ;;  %v3557_v2 = vld [vmem:[%s6412_s10 + $0x2d0] sm:$0xff] }
 0x2b9   : > { %v1867_v38 = vrot.slane %v1866_v24, 4  ;;  %3872 = vrcp.f32 %v1733_v61  ;;  %2103 = vmatpush.msrb.mxu1 %v2062_v57  ;;  %2199 = vmatpush.msrb.mxu2 %v3504_v59  ;;  %v3501_v58 = vld [vmem:[%s6412_s10 + $0x140] sm:$0xff]  ;;  %v2055_v52 = vld [vmem:[%s6412_s10 + $0x48] sm:$0xff]  ;;  %v2056_v61 = vld [vmem:[%s6412_s10 + $0x50] sm:$0xff] }
 0x2ba   : > { %2084 = vmatpush.msrb.mxu0 %v2058_v7  ;;  %2220 = vmatpush.msrb.mxu3 %v3502_v60  ;;  %v2063_v33 = vld [vmem:[%s6412_s10 + $0x88] sm:$0xff]  ;;  %v3500_v57 = vld [vmem:[%s6412_s10 + $0x138] sm:$0xff]  ;;  %v3532_v59 = vld [vmem:[%s6412_s10 + $0x220] sm:$0xff] }
 0x2bb   : > { %v1868_v11 = vadd.f32 %v1867_v38, %v1866_v24  ;;  %2104 = vmatpush.msrb.mxu1 %v2059_v13  ;;  %v3498_v38 = vld [vmem:[%s6412_s10 + $0x128] sm:$0xff]  ;;  %2200 = vmatpush.msrb.mxu2 %v3501_v58  ;;  %v3497_v58 = vld [vmem:[%s6412_s10 + $0x120] sm:$0xff] }
 0x2bc   : > { %v3867_v53 = vpop.eup %3866  ;;  %2085 = vmatpush.msrb.mxu0 %v2055_v52 }
 0x2bd   : > { %v3869_v12 = vpop.eup %3868  ;;  %v2001_v1 = vsel %vm4183_vm4, %v3867_v53, 0.0  ;;  %1466 = vperm.xlu2 %3678, %v1458_v10   ;;  %v1869_v31 = vrot.slane %v1868_v11, 2  ;;  %v3499_v53 = vld [vmem:[%s6412_s10 + $0x130] sm:$0xff]  ;;  %2105 = vmatpush.msrb.mxu1 %v2056_v61  ;;  %vm2036_vm4 = vcmask 1040384  }
 0x2be   : > { %v3871_v41 = vpop.eup %3870  ;;  %v2002_v23 = vsel %vm4187_vm5, %v3869_v12, 0.0  ;;  %v2003_v18 = vsel %vm1984_vm10, %v2001_v1, 0.0  ;;  %v2053_v12 = vld [vmem:[%s6412_s10 + $0x38] sm:$0xff]  ;;  %2201 = vmatpush.msrb.mxu2 %v3498_v38  ;;  %2221 = vmatpush.msrb.mxu3 %v3499_v53  ;;  %vm2038_vm5 = vcmask 1041408  }
 0x2bf   : > { %v2004_v39 = vsel %vm1986_vm3, %v2002_v23, 0.0  ;;  %v1596_v6 = vmul.f32 %v3871_v41, %v5081_v63  ;;  %v1870_v36 = vadd.f32 %v1869_v31, %v1868_v11  ;;  %v3873_v15 = vpop.eup %3872  ;;  %v1597_v30 = vmul.f32 %v3871_v41, %v5085_v4  ;;  %v2052_v11 = vld [vmem:[%s6412_s10 + $0x30] sm:$0xff]  ;;  %2106 = vmatpush.msrb.mxu1 %v2053_v12 }
 0x2c0   : > { %v2005_v49 = vadd.f32 %v2004_v39, %v2003_v18  ;;  %3679 = vset.pattern.permute.xlu1 %v3997_v17  ;;  %3682 = vset.pattern.permute.xlu0 %v3998_v40  ;;  %v1736_v16 = vmul.f32 %v3873_v15, %v5097_v27  ;;  %v1735_v45 = vmul.f32 %v3873_v15, %v5093_v8  ;;  %v3495_v31 = vld [vmem:[%s6412_s10 + $0x110] sm:$0xff]  ;;  %v3496_v18 = vld [vmem:[%s6412_s10 + $0x118] sm:$0xff]  ;;  %vm2043_vm3 = vcmask 1044480  }
 0x2c1   : > { %1600 = vperm.xlu1 %3679, %v1596_v6   ;;  %v1871_v54 = vrot.slane %v1870_v36, 1  ;;  %2086 = vmatpush.msrb.mxu0 %v2052_v11  ;;  %v3494_v11 = vld [vmem:[%s6412_s10 + $0x108] sm:$0xff] }
 0x2c2   : > { %v2006_v28 = vrot.slane %v2005_v49, 4  ;;  %1744 = vperm.xlu0 %3682, %v1736_v16   ;;  %2202 = vmatpush.msrb.mxu2 %v3495_v31  ;;  %v2054_v31 = vld [vmem:[%s6412_s10 + $0x40] sm:$0xff] }
 0x2c3   : > { %v1872_v21 = vadd.f32 %v1871_v54, %v1870_v36  ;;  %2222 = vmatpush.msrb.mxu3 %v3496_v18  ;;  %v3491_v18 = vld [vmem:[%s6412_s10 + $0xf0] sm:$0xff] }
 0x2c4   : > { %v2007_v29 = vadd.f32 %v2006_v28, %v2005_v49 }
 0x2c5   : > { %3680 = vset.pattern.permute.xlu2 %v3997_v17  ;;  %3874 = vrcp.f32 %v1872_v21  ;;  %v2049_v21 = vld [vmem:[%s6412_s10 + $0x18] sm:$0xff] }
 0x2c6   : > { %v2008_v63 = vrot.slane %v2007_v29, 2  ;;  %1605 = vperm.xlu2 %3680, %v1597_v30   ;;  %v3492_v30 = vld [vmem:[%s6412_s10 + $0xf8] sm:$0xff]  ;;  %2087 = vmatpush.msrb.mxu0 %v2049_v21 }
 0x2c7   : > { %2203 = vmatpush.msrb.mxu2 %v3492_v30  ;;  %v3545_v30 = vld [vmem:[%s6412_s10 + $0x270] sm:$0xff] }
 0x2c8   : > { %v2009_v25 = vadd.f32 %v2008_v63, %v2007_v29  ;;  %v2050_v29 = vld [vmem:[%s6412_s10 + $0x20] sm:$0xff] }
 0x2c9   : > { %3681 = vset.pattern.permute.xlu1 %v3998_v40  ;;  %2107 = vmatpush.msrb.mxu1 %v2050_v29  ;;  %v3520_v29 = vld [vmem:[%s6412_s10 + $0x1c0] sm:$0xff] }
 0x2ca   : > { %v2010_v34 = vrot.slane %v2009_v25, 1  ;;  %1739 = vperm.xlu1 %3681, %v1735_v45   ;;  %3687 = vset.pattern.permute.xlu0 %v3999_v26 }
 0x2cb   : > { %v3875_v42 = vpop.eup %3874 }
 0x2cc   : > { %v2011_v62 = vadd.f32 %v2010_v34, %v2009_v25  ;;  %v1874_v27 = vmul.f32 %v3875_v42, %v1862_v56  ;;  %v1875_v4 = vmul.f32 %v3875_v42, %v1863_v35  ;;  %v5163_v56 = vld [vmem:[%s4181_s30 + $0x8] sm:$0xf]  ;;  %v5167_v35 = vld [vmem:[%s4181_s30] sm:$0xff] }
 0x2cd   : > { %v3493_v34 = vld [vmem:[%s6412_s10 + $0x100] sm:$0xff] }
 0x2ce   : > { %3876 = vrcp.f32 %v2011_v62  ;;  %3683 = vset.pattern.permute.xlu2 %v4000_v19  ;;  %v2046_v42 = vld [vmem:[%s6412_s10] sm:$0xff]  ;;  %v2047_v62 = vld [vmem:[%s6412_s10 + $0x8] sm:$0xff]  ;;  %2223 = vmatpush.msrb.mxu3 %v3493_v34 }
 0x2cf   : > { %1878 = vperm.xlu2 %3683, %v1874_v27   ;;  %2088 = vmatpush.msrb.mxu0 %v2046_v42 }
 0x2d0   : > { %2108 = vmatpush.msrb.mxu1 %v2047_v62  ;;  %v3517_v62 = vld [vmem:[%s6412_s10 + $0x1a8] sm:$0xff] }
 0x2d2   : > { %3684 = vset.pattern.permute.xlu1 %v4000_v19  ;;  %v3489_v19 = vld [vmem:[%s6412_s10 + $0xe0] sm:$0xff] }
 0x2d3   : > { %1883 = vperm.xlu1 %3684, %v1875_v4   ;;  %v3490_v4 = vld [vmem:[%s6412_s10 + $0xe8] sm:$0xff]  ;;  %2204 = vmatpush.msrb.mxu2 %v3489_v19 }
 0x2d4   : > { %v3877_v47 = vpop.eup %3876  ;;  %2224 = vmatpush.msrb.mxu3 %v3490_v4 }
 0x2d5   : > { %v2013_v51 = vmul.f32 %v3877_v47, %v2001_v1  ;;  %v2014_v8 = vmul.f32 %v3877_v47, %v2002_v23  ;;  %v2069_v47 = vld [vmem:[%s6412_s10 + $0xb8] sm:$0xff] }
 0x2d6   : > { %2121 = vmatpush.msra.mxu0 %v2069_v47 }
 0x2d7   : > { %3685 = vset.pattern.permute.xlu2 %v3999_v26 }
 0x2d8   : > { %2017 = vperm.xlu2 %3685, %v2013_v51   ;;  %v3506_v51 = vld [vmem:[%s6412_s10 + $0x168] sm:$0xff]  ;;  %2122 = vmatpush.msra.mxu0 %v2066_v3 }
 0x2d9   : > { %2178 = vmatpush.msra.mxu1 %v3506_v51  ;;  %v3514_v51 = vld [vmem:[%s6412_s10 + $0x190] sm:$0xff] }
 0x2da   : > { %2123 = vmatpush.msra.mxu0 %v2063_v33 }
 0x2db   : > { %3686 = vset.pattern.permute.xlu1 %v3999_v26  ;;  %2179 = vmatpush.msra.mxu1 %v3503_v37 }
 0x2dc   : > { %2022 = vperm.xlu1 %3686, %v2014_v8   ;;  %v3486_v8 = vld [vmem:[%s6412_s10 + $0xc8] sm:$0xff] }
 0x2dd   : > { %2205 = vmatpush.msrb.mxu2 %v3486_v8  ;;  %2180 = vmatpush.msra.mxu1 %v3500_v57  ;;  %v3539_v8 = vld [vmem:[%s6412_s10 + $0x240] sm:$0xff] }
 0x2df   : > { %2315 = vmatpush.msra.mxu2 %v3535_v43  ;;  %2181 = vmatpush.msra.mxu1 %v3497_v58  ;;  %v3533_v58 = vld [vmem:[%s6412_s10 + $0x228] sm:$0xff] }
 0x2e1   : > { %2316 = vmatpush.msra.mxu2 %v3532_v59  ;;  %2182 = vmatpush.msra.mxu1 %v3494_v11  ;;  %v3528_v11 = vld [vmem:[%s6412_s10 + $0x200] sm:$0xff] }
 0x2e3   : > { %2183 = vmatpush.msra.mxu1 %v3491_v18  ;;  %v3582_v18 = vld [vmem:[%s6412_s10 + $0x380] sm:$0xff] }
 0x30f   : > { %v1462_v32 = vpop.permute.xlu2 %1461 }
 0x310   : > { %v1469_v1 = vmul.f32 %v5167_v35, %v1462_v32  ;;  %v3487_v32 = vld [vmem:[%s6412_s10 + $0xd0] sm:$0xff] }
 0x311   : > { %2225 = vmatpush.msrb.mxu3 %v3487_v32 }
 0x312   : > { %v1471_v63 = vsel %vm732_vm6, %v1469_v1, 0.0  ;;  %v3526_v1 = vld [vmem:[%s6412_s10 + $0x1f0] sm:$0xff] }
 0x313   : > { %2372 = vmatpush.msra.mxu3 %v3560_v46 }
 0x315   : > { %2373 = vmatpush.msra.mxu3 %v3557_v2 }
 0x317   : > { %v1467_v0 = vpop.permute.xlu2 %1466 }
 0x318   : > { %v1470_v10 = vmul.f32 %v5163_v56, %v1467_v0 }
 0x31a   : > { %v1472_v40 = vsel %vm734_vm7, %v1470_v10, 0.0  ;;  %v2057_v10 = vld [vmem:[%s6412_s10 + $0x58] sm:$0xff] }
 0x31b   : > { %v1473_v26 = vadd.f32 %v1472_v40, %v1471_v63 }
 0x320   : > { %v1606_v9 = vpop.permute.xlu2 %1605 }
 0x321   : > { %v1609_v41 = vmul.f32 %v5163_v56, %v1606_v9 }
 0x323   : > { %v1611_v54 = vsel %vm734_vm7, %v1609_v41, 0.0  ;;  %v3551_v41 = vld [vmem:[%s6412_s10 + $0x2a0] sm:$0xff] }
 0x329   : > { %v1879_v28 = vpop.permute.xlu2 %1878 }
 0x32a   : > { %v1328_v44 = vpop.permute.xlu1 %1327  ;;  %v1323_v48 = vpop.permute.xlu0 %1322 }
 0x32b   : > { %v1331_v50 = vmul.f32 %v5163_v56, %v1328_v44  ;;  %v1330_v20 = vmul.f32 %v5167_v35, %v1323_v48  ;;  %v1886_v44 = vmul.f32 %v5167_v35, %v1879_v28  ;;  %v1474_v48 = vrot.slane %v1473_v26, 4  ;;  %v3488_v28 = vld [vmem:[%s6412_s10 + $0xd8] sm:$0xff] }
 0x32c   : > { %2184 = vmatpush.msra.mxu1 %v3488_v28  ;;  %v3576_v28 = vld [vmem:[%s6412_s10 + $0x350] sm:$0xff] }
 0x32d   : > { %v1333_v39 = vsel %vm734_vm7, %v1331_v50, 0.0  ;;  %v1332_v6 = vsel %vm732_vm6, %v1330_v20, 0.0  ;;  %v1888_v7 = vsel %vm732_vm6, %v1886_v44, 0.0  ;;  %v2060_v20 = vld [vmem:[%s6412_s10 + $0x70] sm:$0xff]  ;;  %v1475_v61 = vadd.f32 %v1474_v48, %v1473_v26  ;;  %v3542_v26 = vld [vmem:[%s6412_s10 + $0x258] sm:$0xff] }
 0x32e   : > { %v1334_v16 = vadd.f32 %v1333_v39, %v1332_v6  ;;  %2124 = vmatpush.msra.mxu0 %v2060_v20 }
 0x32f   : > { %v1476_v40 = vrot.slane %v1475_v61, 2 }
 0x330   : > { %v1335_v0 = vrot.slane %v1334_v16, 4  ;;  %2125 = vmatpush.msra.mxu0 %v2057_v10  ;;  %v3527_v10 = vld [vmem:[%s6412_s10 + $0x1f8] sm:$0xff] }
 0x332   : > { %v1336_v13 = vadd.f32 %v1335_v0, %v1334_v16  ;;  %v2018_v38 = vpop.permute.xlu2 %2017  ;;  %2126 = vmatpush.msra.mxu0 %v2054_v31  ;;  %v3581_v31 = vld [vmem:[%s6412_s10 + $0x378] sm:$0xff] }
 0x333   : > { %v1601_v55 = vpop.permute.xlu1 %1600  ;;  %v2025_v39 = vmul.f32 %v5167_v35, %v2018_v38  ;;  %v3587_v38 = vld [vmem:[%s6412_s10 + $0x3a8] sm:$0xff] }
 0x334   : > { %v1608_v14 = vmul.f32 %v5167_v35, %v1601_v55  ;;  %v1745_v24 = vpop.permute.xlu0 %1744 }
 0x335   : > { %v1748_v36 = vmul.f32 %v5163_v56, %v1745_v24  ;;  %v3554_v24 = vld [vmem:[%s6412_s10 + $0x2b8] sm:$0xff] }
 0x336   : > { %v1610_v17 = vsel %vm732_vm6, %v1608_v14, 0.0  ;;  %v3529_v14 = vld [vmem:[%s6412_s10 + $0x208] sm:$0xff]  ;;  %2374 = vmatpush.msra.mxu3 %v3554_v24  ;;  %v3530_v24 = vld [vmem:[%s6412_s10 + $0x210] sm:$0xff] }
 0x337   : > { %v1612_v25 = vadd.f32 %v1611_v54, %v1610_v17  ;;  %v1750_v45 = vsel %vm734_vm7, %v1748_v36, 0.0  ;;  %2317 = vmatpush.msra.mxu2 %v3529_v14  ;;  %v3548_v17 = vld [vmem:[%s6412_s10 + $0x288] sm:$0xff] }
 0x338   : > { %2375 = vmatpush.msra.mxu3 %v3551_v41  ;;  %v3524_v41 = vld [vmem:[%s6412_s10 + $0x1e0] sm:$0xff] }
 0x339   : > { %v1613_v5 = vrot.slane %v1612_v25, 4  ;;  %2318 = vmatpush.msra.mxu2 %v3526_v1  ;;  %v3585_v1 = vld [vmem:[%s6412_s10 + $0x398] sm:$0xff] }
 0x33a   : > { %2376 = vmatpush.msra.mxu3 %v3548_v17  ;;  %v3518_v17 = vld [vmem:[%s6412_s10 + $0x1b0] sm:$0xff] }
 0x33b   : > { %v1614_v60 = vadd.f32 %v1613_v5, %v1612_v25  ;;  %v2048_v25 = vld [vmem:[%s6412_s10 + $0x10] sm:$0xff] }
 0x33c   : > { %v1740_v23 = vpop.permute.xlu1 %1739  ;;  %2377 = vmatpush.msra.mxu3 %v3545_v30  ;;  %v3573_v30 = vld [vmem:[%s6412_s10 + $0x338] sm:$0xff] }
 0x33d   : > { %v1747_v49 = vmul.f32 %v5167_v35, %v1740_v23  ;;  %v1337_v23 = vrot.slane %v1336_v13, 2  ;;  %v1615_v6 = vrot.slane %v1614_v60, 2  ;;  %v2051_v35 = vld [vmem:[%s6412_s10 + $0x28] sm:$0xff] }
 0x33e   : > { %2127 = vmatpush.msra.mxu0 %v2051_v35  ;;  %2378 = vmatpush.msra.mxu3 %v3542_v26  ;;  %v3575_v35 = vld [vmem:[%s6412_s10 + $0x348] sm:$0xff] }
 0x33f   : > { %v1749_v15 = vsel %vm732_vm6, %v1747_v49, 0.0  ;;  %v3523_v49 = vld [vmem:[%s6412_s10 + $0x1d8] sm:$0xff]  ;;  %v1338_v63 = vadd.f32 %v1337_v23, %v1336_v13  ;;  %v1616_v34 = vadd.f32 %v1615_v6, %v1614_v60  ;;  %v3534_v60 = vld [vmem:[%s6412_s10 + $0x230] sm:$0xff]  ;;  %v3525_v23 = vld [vmem:[%s6412_s10 + $0x1e8] sm:$0xff] }
 0x340   : > { %v1751_v27 = vadd.f32 %v1750_v45, %v1749_v15  ;;  %2319 = vmatpush.msra.mxu2 %v3523_v49  ;;  %v2027_v45 = vsel %vm732_vm6, %v2025_v39, 0.0  ;;  %2128 = vmatpush.msra.mxu0 %v2048_v25  ;;  %v3521_v39 = vld [vmem:[%s6412_s10 + $0x1c8] sm:$0xff]  ;;  %v3522_v6 = vld [vmem:[%s6412_s10 + $0x1d0] sm:$0xff] }
 0x341   : > { %v1339_v32 = vrot.slane %v1338_v63, 1  ;;  %v1617_v0 = vrot.slane %v1616_v34, 1  ;;  %2379 = vmatpush.msra.mxu3 %v3539_v8  ;;  %v3579_v49 = vld [vmem:[%s6412_s10 + $0x368] sm:$0xff]  ;;  %v3555_v8 = vld [vmem:[%s6412_s10 + $0x2c0] sm:$0xff] }
 0x342   : > { %v1752_v55 = vrot.slane %v1751_v27, 4  ;;  %2320 = vmatpush.msra.mxu2 %v3520_v29  ;;  %v3572_v29 = vld [vmem:[%s6412_s10 + $0x330] sm:$0xff]  ;;  %v3513_v25 = vld [vmem:[%s6412_s10 + $0x188] sm:$0xff] }
 0x343   : > { %v1340_v43 = vadd.f32 %v1339_v32, %v1338_v63  ;;  %v1618_v48 = vadd.f32 %v1617_v0, %v1616_v34  ;;  %v3512_v63 = vld [vmem:[%s6412_s10 + $0x180] sm:$0xff]  ;;  %v3561_v34 = vld [vmem:[%s6412_s10 + $0x2f0] sm:$0xff]  ;;  %v3567_v26 = vld [vmem:[%s6412_s10 + $0x308] sm:$0xff] }
 0x344   : > { %v1753_v53 = vadd.f32 %v1752_v55, %v1751_v27  ;;  %v1477_v27 = vadd.f32 %v1476_v40, %v1475_v61  ;;  %2321 = vmatpush.msra.mxu2 %v3517_v62  ;;  %v3531_v61 = vld [vmem:[%s6412_s10 + $0x218] sm:$0xff]  ;;  %v3566_v62 = vld [vmem:[%s6412_s10 + $0x300] sm:$0xff]  ;;  %v3556_v32 = vld [vmem:[%s6412_s10 + $0x2c8] sm:$0xff] }
 0x345   : > { %v1884_v22 = vpop.permute.xlu1 %1883  ;;  %v3519_v40 = vld [vmem:[%s6412_s10 + $0x1b8] sm:$0xff]  ;;  %v3613_v0 = vld [vmem:[%s6412_s10 + $0x460] sm:$0xff] }
 0x346   : > { %v1887_v9 = vmul.f32 %v5163_v56, %v1884_v22  ;;  %v1754_v15 = vrot.slane %v1753_v53, 2  ;;  %v1478_v3 = vrot.slane %v1477_v27, 1  ;;  %2322 = vmatpush.msra.mxu2 %v3514_v51 }
 0x348   : > { %v1889_v50 = vsel %vm734_vm7, %v1887_v9, 0.0  ;;  %v1755_v19 = vadd.f32 %v1754_v15, %v1753_v53  ;;  %v1479_v55 = vadd.f32 %v1478_v3, %v1477_v27  ;;  %v3588_v53 = vld [vmem:[%s6412_s10 + $0x3b0] sm:$0xff]  ;;  %v3558_v27 = vld [vmem:[%s6412_s10 + $0x2d8] sm:$0xff]  ;;  %v3552_v3 = vld [vmem:[%s6412_s10 + $0x2a8] sm:$0xff] }
 0x349   : > { %v1890_v52 = vadd.f32 %v1889_v50, %v1888_v7 }
 0x34a   : > { %v1756_v37 = vrot.slane %v1755_v19, 1  ;;  %v2037_v59 = vsel %vm2036_vm4, %v1340_v43, %v1479_v55  ;;  %v3549_v43 = vld [vmem:[%s6412_s10 + $0x290] sm:$0xff] }
 0x34b   : > { %v1891_v12 = vrot.slane %v1890_v52, 4  ;;  %v2039_v7 = vsel %vm2038_vm5, %v2037_v59, %v1618_v48  ;;  %v3606_v48 = vld [vmem:[%s6412_s10 + $0x428] sm:$0xff]  ;;  %v3607_v55 = vld [vmem:[%s6412_s10 + $0x430] sm:$0xff]  ;;  %v3604_v59 = vld [vmem:[%s6412_s10 + $0x418] sm:$0xff] }
 0x34c   : > { %v1757_v9 = vadd.f32 %v1756_v37, %v1755_v19  ;;  %v3559_v19 = vld [vmem:[%s6412_s10 + $0x2e0] sm:$0xff]  ;;  %v3553_v37 = vld [vmem:[%s6412_s10 + $0x2b0] sm:$0xff] }
 0x34d   : > { %v1892_v36 = vadd.f32 %v1891_v12, %v1890_v52  ;;  %v3584_v12 = vld [vmem:[%s6412_s10 + $0x390] sm:$0xff] }
 0x34e   : > { %v2023_v54 = vpop.permute.xlu1 %2022 }
 0x34f   : > { %v1893_v16 = vrot.slane %v1892_v36, 2  ;;  %v2026_v21 = vmul.f32 %v5163_v56, %v2023_v54  ;;  %v3485_v56 = vld [vmem:[%s6412_s10 + $0xc0] sm:$0xff] }
 0x350   : > { %2185 = vmatpush.msra.mxu1 %v3485_v56  ;;  %v3569_v56 = vld [vmem:[%s6412_s10 + $0x318] sm:$0xff] }
 0x351   : > { %v2028_v42 = vsel %vm734_vm7, %v2026_v21, 0.0  ;;  %v1894_v47 = vadd.f32 %v1893_v16, %v1892_v36  ;;  %vm2040_vm7 = vcmask 1042432   ;;  %v3578_v36 = vld [vmem:[%s6412_s10 + $0x360] sm:$0xff]  ;;  %v3515_v16 = vld [vmem:[%s6412_s10 + $0x198] sm:$0xff] }
 0x352   : > { %v2029_v4 = vadd.f32 %v2028_v42, %v2027_v45  ;;  %v2041_v13 = vsel %vm2040_vm7, %v2039_v7, %v1757_v9  ;;  %v3516_v21 = vld [vmem:[%s6412_s10 + $0x1a0] sm:$0xff]  ;;  %v3562_v42 = vld [vmem:[%s6412_s10 + $0x2f8] sm:$0xff]  ;;  %v3544_v7 = vld [vmem:[%s6412_s10 + $0x268] sm:$0xff] }
 0x353   : > { %v1895_v22 = vrot.slane %v1894_v47, 1  ;;  %v3570_v45 = vld [vmem:[%s6412_s10 + $0x320] sm:$0xff]  ;;  %v3546_v9 = vld [vmem:[%s6412_s10 + $0x278] sm:$0xff] }
 0x354   : > { %v2030_v44 = vrot.slane %v2029_v4, 4 }
 0x355   : > { %v1896_v57 = vadd.f32 %v1895_v22, %v1894_v47  ;;  %v3616_v47 = vld [vmem:[%s6412_s10 + $0x478] sm:$0xff]  ;;  %v3610_v22 = vld [vmem:[%s6412_s10 + $0x448] sm:$0xff] }
 0x356   : > { %v2031_v5 = vadd.f32 %v2030_v44, %v2029_v4  ;;  %v3615_v4 = vld [vmem:[%s6412_s10 + $0x470] sm:$0xff]  ;;  %v3612_v44 = vld [vmem:[%s6412_s10 + $0x458] sm:$0xff] }
 0x357   : > { %v2042_v20 = vsel %vm6485_vm12, %v2041_v13, %v1896_v57  ;;  %v3603_v57 = vld [vmem:[%s6412_s10 + $0x410] sm:$0xff]  ;;  %v3600_v13 = vld [vmem:[%s6412_s10 + $0x3f8] sm:$0xff] }
 0x358   : > { %v2032_v46 = vrot.slane %v2031_v5, 2 }
 0x35a   : > { %v2033_v33 = vadd.f32 %v2032_v46, %v2031_v5  ;;  %v3609_v5 = vld [vmem:[%s6412_s10 + $0x440] sm:$0xff]  ;;  %v3550_v46 = vld [vmem:[%s6412_s10 + $0x298] sm:$0xff] }
 0x35c   : > { %v2034_v2 = vrot.slane %v2033_v33, 1 }
 0x35e   : > { %v2035_v50 = vadd.f32 %v2034_v2, %v2033_v33  ;;  %v3547_v33 = vld [vmem:[%s6412_s10 + $0x280] sm:$0xff] }
 0x35f   : > { %v3543_v2 = vld [vmem:[%s6412_s10 + $0x260] sm:$0xff] }
 0x360   : > { %v5357_v52 = vsel %vm2043_vm3, %v2042_v20, %v2035_v50  ;;  %v3601_v50 = vld [vmem:[%s6412_s10 + $0x400] sm:$0xff]  ;;  %v3540_v20 = vld [vmem:[%s6412_s10 + $0x248] sm:$0xff] }
 0x361   : > { %3482 = vmatmul.msk.f32.vlgmr.msrb.gmra.mxu0 %vm732_vm6, %v5357_v52  ;;  %3483 = vmatmul.msk.f32.vlgmr.msrb.gmra.mxu1 %vm732_vm6, %v5357_v52  ;;  %v2167_v14 = vrot.slane %v5357_v52, 1  ;;  %v2264_v15 = vrot.slane %v5357_v52, 2  ;;  %v5425_v54 = vrot.slane %v5357_v52, 3  ;;  %v5487_v51 = vrot.slane %v5357_v52, 4 }
 0x362   : > { %2275 = vmatpush.msrb.mxu0 %v3533_v58  ;;  %2295 = vmatpush.msrb.mxu1 %v3534_v60  ;;  %v3541_v58 = vld [vmem:[%s6412_s10 + $0x250] sm:$0xff]  ;;  %v3597_v60 = vld [vmem:[%s6412_s10 + $0x3e0] sm:$0xff] }
 0x363   : > { %3510 = vmatmul.msk.f32.vlgmr.msrb.gmra.mxu2 %vm732_vm6, %v2167_v14  ;;  %3511 = vmatmul.msk.f32.vlgmr.msrb.gmra.mxu3 %vm732_vm6, %v2167_v14 }
 0x364   : > { %2276 = vmatpush.msrb.mxu0 %v3530_v24  ;;  %2296 = vmatpush.msrb.mxu1 %v3531_v61  ;;  %v3589_v24 = vld [vmem:[%s6412_s10 + $0x3b8] sm:$0xff]  ;;  %v3614_v61 = vld [vmem:[%s6412_s10 + $0x468] sm:$0xff] }
 0x365   : > { %2469 = vmatpush.msrb.mxu2 %v3587_v38  ;;  %2489 = vmatpush.msrb.mxu3 %v3588_v53  ;;  %v3594_v38 = vld [vmem:[%s6412_s10 + $0x3c8] sm:$0xff]  ;;  %v3595_v53 = vld [vmem:[%s6412_s10 + $0x3d0] sm:$0xff] }
 0x366   : > { %2277 = vmatpush.msrb.mxu0 %v3527_v10  ;;  %2297 = vmatpush.msrb.mxu1 %v3528_v11  ;;  %v3586_v10 = vld [vmem:[%s6412_s10 + $0x3a0] sm:$0xff]  ;;  %v3611_v11 = vld [vmem:[%s6412_s10 + $0x450] sm:$0xff] }
 0x367   : > { %2470 = vmatpush.msrb.mxu2 %v3584_v12  ;;  %2490 = vmatpush.msrb.mxu3 %v3585_v1  ;;  %v2555_v12 = vrot.slane %v5357_v52, 5  ;;  %v3583_v1 = vld [vmem:[%s6412_s10 + $0x388] sm:$0xff] }
 0x368   : > { %2278 = vmatpush.msrb.mxu0 %v3524_v41  ;;  %2298 = vmatpush.msrb.mxu1 %v3525_v23  ;;  %v3608_v41 = vld [vmem:[%s6412_s10 + $0x438] sm:$0xff]  ;;  %v3580_v23 = vld [vmem:[%s6412_s10 + $0x370] sm:$0xff] }
 0x369   : > { %2471 = vmatpush.msrb.mxu2 %v3581_v31  ;;  %2491 = vmatpush.msrb.mxu3 %v3582_v18  ;;  %v3605_v31 = vld [vmem:[%s6412_s10 + $0x420] sm:$0xff]  ;;  %v3577_v18 = vld [vmem:[%s6412_s10 + $0x358] sm:$0xff] }
 0x36a   : > { %3484 = vmatmul.msk.f32.vlgmr.msra.gmra.mxu0 %vm732_vm6, %v5357_v52  ;;  %3509 = vmatmul.msk.f32.vlgmr.msra.gmra.mxu1 %vm732_vm6, %v2167_v14  ;;  %v3598_v14 = vld [vmem:[%s6412_s10 + $0x3e8] sm:$0xff] }
 0x36b   : > { %2279 = vmatpush.msrb.mxu0 %v3521_v39  ;;  %2299 = vmatpush.msrb.mxu1 %v3522_v6  ;;  %v3602_v39 = vld [vmem:[%s6412_s10 + $0x408] sm:$0xff]  ;;  %v3574_v6 = vld [vmem:[%s6412_s10 + $0x340] sm:$0xff] }
 0x36c   : > { %2472 = vmatpush.msrb.mxu2 %v3578_v36  ;;  %2492 = vmatpush.msrb.mxu3 %v3579_v49  ;;  %v3599_v36 = vld [vmem:[%s6412_s10 + $0x3f0] sm:$0xff]  ;;  %v3571_v49 = vld [vmem:[%s6412_s10 + $0x328] sm:$0xff] }
 0x36d   : > { %2280 = vmatpush.msrb.mxu0 %v3518_v17  ;;  %2300 = vmatpush.msrb.mxu1 %v3519_v40  ;;  %v3596_v17 = vld [vmem:[%s6412_s10 + $0x3d8] sm:$0xff]  ;;  %v3568_v40 = vld [vmem:[%s6412_s10 + $0x310] sm:$0xff] }
 0x36e   : > { %3538 = vmatmul.msk.f32.vlgmr.msra.gmra.mxu2 %vm732_vm6, %v2264_v15  ;;  %3563 = vmatmul.msk.f32.vlgmr.msra.gmra.mxu3 %vm732_vm6, %v5425_v54 }
 0x36f   : > { %2473 = vmatpush.msrb.mxu2 %v3575_v35  ;;  %2493 = vmatpush.msrb.mxu3 %v3576_v28  ;;  %v2686_v35 = vld [vmem:[%s6414_s12 + $0x150] sm:$0xff]  ;;  %v2683_v28 = vld [vmem:[%s6414_s12 + $0x138] sm:$0xff] }
 0x370   : > { %2281 = vmatpush.msrb.mxu0 %v3515_v16  ;;  %2301 = vmatpush.msrb.mxu1 %v3516_v21  ;;  %v2737_v16 = vld [vmem:[%s6414_s12 + $0x2e8] sm:$0xff] }
 0x371   : > { %2474 = vmatpush.msrb.mxu2 %v3572_v29  ;;  %2494 = vmatpush.msrb.mxu3 %v3573_v30  ;;  %v2785_v21 = vld [vmem:[%s6414_s12 + $0x468] sm:$0xff]  ;;  %v2680_v29 = vld [vmem:[%s6414_s12 + $0x120] sm:$0xff]  ;;  %v2690_v30 = vld [vmem:[%s6414_s12 + $0x170] sm:$0xff] }
 0x372   : > { %2282 = vmatpush.msrb.mxu0 %v3512_v63  ;;  %2302 = vmatpush.msrb.mxu1 %v3513_v25  ;;  %v2677_v25 = vld [vmem:[%s6414_s12 + $0x108] sm:$0xff] }
 0x373   : > { %2475 = vmatpush.msrb.mxu2 %v3569_v56  ;;  %2495 = vmatpush.msrb.mxu3 %v3570_v45  ;;  %v2674_v56 = vld [vmem:[%s6414_s12 + $0xf0] sm:$0xff] }
 0x374   : > { %2392 = vmatpush.msra.mxu0 %v3561_v34  ;;  %2412 = vmatpush.msra.mxu1 %v3562_v42  ;;  %v2734_v45 = vld [vmem:[%s6414_s12 + $0x2d0] sm:$0xff] }
 0x375   : > { %3536 = vmatmul.msk.f32.vlgmr.msrb.gmra.mxu0 %vm732_vm6, %v2264_v15  ;;  %3537 = vmatmul.msk.f32.vlgmr.msrb.gmra.mxu1 %vm732_vm6, %v2264_v15  ;;  %v3593_v15 = vld [vmem:[%s6412_s10 + $0x3c0] sm:$0xff]  ;;  %v2782_v34 = vld [vmem:[%s6414_s12 + $0x450] sm:$0xff] }
 0x376   : > { %2476 = vmatpush.msrb.mxu2 %v3566_v62  ;;  %2496 = vmatpush.msrb.mxu3 %v3567_v26  ;;  %v2687_v62 = vld [vmem:[%s6414_s12 + $0x158] sm:$0xff] }
 0x377   : > { %2393 = vmatpush.msra.mxu0 %v3558_v27  ;;  %2413 = vmatpush.msra.mxu1 %v3559_v19  ;;  %v2731_v26 = vld [vmem:[%s6414_s12 + $0x2b8] sm:$0xff] }
 0x378   : > { %2586 = vmatpush.msra.mxu2 %v3615_v4  ;;  %2606 = vmatpush.msra.mxu3 %v3616_v47  ;;  %v2671_v27 = vld [vmem:[%s6414_s12 + $0xd8] sm:$0xff]  ;;  %v2684_v4 = vld [vmem:[%s6414_s12 + $0x140] sm:$0xff] }
 0x379   : > { %3590 = vmatmul.msk.f32.vlgmr.msrb.gmra.mxu2 %vm732_vm6, %v5487_v51  ;;  %3591 = vmatmul.msk.f32.vlgmr.msrb.gmra.mxu3 %vm732_vm6, %v5487_v51  ;;  %v2779_v19 = vld [vmem:[%s6414_s12 + $0x438] sm:$0xff]  ;;  %v2728_v47 = vld [vmem:[%s6414_s12 + $0x2a0] sm:$0xff] }
 0x37a   : > { %2394 = vmatpush.msra.mxu0 %v3555_v8  ;;  %2414 = vmatpush.msra.mxu1 %v3556_v32  ;;  %v2681_v8 = vld [vmem:[%s6414_s12 + $0x128] sm:$0xff]  ;;  %v2668_v32 = vld [vmem:[%s6414_s12 + $0xc0] sm:$0xff] }
 0x37b   : > { %2587 = vmatpush.msra.mxu2 %v3612_v44  ;;  %2607 = vmatpush.msra.mxu3 %v3613_v0 }
 0x37c   : > { %2395 = vmatpush.msra.mxu0 %v3552_v3  ;;  %2415 = vmatpush.msra.mxu1 %v3553_v37 }
 0x37d   : > { %2588 = vmatpush.msra.mxu2 %v3609_v5  ;;  %2608 = vmatpush.msra.mxu3 %v3610_v22  ;;  %v2665_v22 = vld [vmem:[%s6414_s12 + $0xa8] sm:$0xff] }
 0x37e   : > { %2396 = vmatpush.msra.mxu0 %v3549_v43  ;;  %2416 = vmatpush.msra.mxu1 %v3550_v46  ;;  %v2725_v43 = vld [vmem:[%s6414_s12 + $0x288] sm:$0xff] }
 0x37f   : > { %2589 = vmatpush.msra.mxu2 %v3606_v48  ;;  %2609 = vmatpush.msra.mxu3 %v3607_v55  ;;  %v2773_v46 = vld [vmem:[%s6414_s12 + $0x408] sm:$0xff] }
 0x380   : > { %2397 = vmatpush.msra.mxu0 %v3546_v9  ;;  %2417 = vmatpush.msra.mxu1 %v3547_v33  ;;  %v2678_v9 = vld [vmem:[%s6414_s12 + $0x110] sm:$0xff] }
 0x381   : > { %2590 = vmatpush.msra.mxu2 %v3603_v57  ;;  %2610 = vmatpush.msra.mxu3 %v3604_v59  ;;  %v2662_v33 = vld [vmem:[%s6414_s12 + $0x90] sm:$0xff] }
 0x382   : > { %2398 = vmatpush.msra.mxu0 %v3543_v2  ;;  %2418 = vmatpush.msra.mxu1 %v3544_v7  ;;  %v2722_v57 = vld [vmem:[%s6414_s12 + $0x270] sm:$0xff]  ;;  %v2675_v2 = vld [vmem:[%s6414_s12 + $0xf8] sm:$0xff] }
 0x383   : > { %2591 = vmatpush.msra.mxu2 %v3600_v13  ;;  %2611 = vmatpush.msra.mxu3 %v3601_v50  ;;  %v2770_v59 = vld [vmem:[%s6414_s12 + $0x3f0] sm:$0xff]  ;;  %v2659_v13 = vld [vmem:[%s6414_s12 + $0x78] sm:$0xff] }
 0x384   : > { %2399 = vmatpush.msra.mxu0 %v3540_v20  ;;  %2419 = vmatpush.msra.mxu1 %v3541_v58  ;;  %v2719_v50 = vld [vmem:[%s6414_s12 + $0x258] sm:$0xff]  ;;  %v2672_v58 = vld [vmem:[%s6414_s12 + $0xe0] sm:$0xff] }
 0x385   : > { %2592 = vmatpush.msra.mxu2 %v3597_v60  ;;  %2612 = vmatpush.msra.mxu3 %v3598_v14  ;;  %v2767_v20 = vld [vmem:[%s6414_s12 + $0x3d8] sm:$0xff]  ;;  %v2656_v14 = vld [vmem:[%s6414_s12 + $0x60] sm:$0xff] }
 0x386   : > { %3564 = vmatmul.msk.f32.vlgmr.msra.gmra.mxu0 %vm732_vm6, %v5425_v54  ;;  %3565 = vmatmul.msk.f32.vlgmr.msra.gmra.mxu1 %vm732_vm6, %v5425_v54  ;;  %v2689_v54 = vld [vmem:[%s6414_s12 + $0x168] sm:$0xff] }
 0x387   : > { %2509 = vmatpush.msrb.mxu0 %v3589_v24  ;;  %2566 = vmatpush.msrb.mxu1 %v3614_v61  ;;  %v2716_v24 = vld [vmem:[%s6414_s12 + $0x240] sm:$0xff] }
 0x388   : > { %2593 = vmatpush.msra.mxu2 %v3594_v38  ;;  %2613 = vmatpush.msra.mxu3 %v3595_v53  ;;  %v2764_v61 = vld [vmem:[%s6414_s12 + $0x3c0] sm:$0xff]  ;;  %v2669_v53 = vld [vmem:[%s6414_s12 + $0xc8] sm:$0xff] }
 0x389   : > { %2510 = vmatpush.msrb.mxu0 %v3586_v10  ;;  %2567 = vmatpush.msrb.mxu1 %v3611_v11  ;;  %v2653_v11 = vld [vmem:[%s6414_s12 + $0x48] sm:$0xff] }
 0x38a   : > { %3618 = vmatmul.msk.f32.vlgmr.msra.gmra.mxu2 %vm732_vm6, %v2555_v12  ;;  %3619 = vmatmul.msk.f32.vlgmr.msra.gmra.mxu3 %vm732_vm6, %v2555_v12 }
 0x38b   : > { %2511 = vmatpush.msrb.mxu0 %v3583_v1  ;;  %2568 = vmatpush.msrb.mxu1 %v3608_v41  ;;  %v2761_v1 = vld [vmem:[%s6414_s12 + $0x3a8] sm:$0xff] }
 0x38c   : > { %2843 = vmatpush.msrb.mxu2 %v2785_v21  ;;  %2863 = vmatpush.msrb.mxu3 %v2690_v30  ;;  %v2707_v30 = vld [vmem:[%s6414_s12 + $0x1f8] sm:$0xff] }
 0x38d   : > { %2512 = vmatpush.msrb.mxu0 %v3580_v23  ;;  %2569 = vmatpush.msrb.mxu1 %v3605_v31  ;;  %v2666_v31 = vld [vmem:[%s6414_s12 + $0xb0] sm:$0xff] }
 0x38e   : > { %2844 = vmatpush.msrb.mxu2 %v2782_v34  ;;  %2864 = vmatpush.msrb.mxu3 %v2687_v62  ;;  %v2704_v62 = vld [vmem:[%s6414_s12 + $0x1e0] sm:$0xff] }
 0x38f   : > { %2513 = vmatpush.msrb.mxu0 %v3577_v18  ;;  %2570 = vmatpush.msrb.mxu1 %v3602_v39 }
 0x390   : > { %2845 = vmatpush.msrb.mxu2 %v2779_v19  ;;  %2865 = vmatpush.msrb.mxu3 %v2684_v4  ;;  %v2657_v4 = vld [vmem:[%s6414_s12 + $0x68] sm:$0xff] }
 0x391   : > { %2514 = vmatpush.msrb.mxu0 %v3574_v6  ;;  %2571 = vmatpush.msrb.mxu1 %v3599_v36  ;;  %v2650_v6 = vld [vmem:[%s6414_s12 + $0x30] sm:$0xff] }
 0x392   : > { %2866 = vmatpush.msrb.mxu3 %v2681_v8  ;;  %v2710_v36 = vld [vmem:[%s6414_s12 + $0x210] sm:$0xff]  ;;  %v2701_v8 = vld [vmem:[%s6414_s12 + $0x1c8] sm:$0xff] }
 0x393   : > { %2515 = vmatpush.msrb.mxu0 %v3571_v49  ;;  %2572 = vmatpush.msrb.mxu1 %v3596_v17  ;;  %v2758_v49 = vld [vmem:[%s6414_s12 + $0x390] sm:$0xff]  ;;  %v2045_v17 = vld [vmem:[%s6413_s11] sm:$0x7] }
 0x394   : > { %2867 = vmatpush.msrb.mxu3 %v2678_v9 }
 0x395   : > { %2516 = vmatpush.msrb.mxu0 %v3568_v40  ;;  %2573 = vmatpush.msrb.mxu1 %v3593_v15 }
 0x396   : > { %3592 = vmatmul.msk.f32.vlgmr.msrb.gmra.mxu0 %vm732_vm6, %v5487_v51  ;;  %3617 = vmatmul.msk.f32.vlgmr.msrb.gmra.mxu1 %vm732_vm6, %v2555_v12  ;;  %v2776_v51 = vld [vmem:[%s6414_s12 + $0x420] sm:$0xff]  ;;  %v2713_v12 = vld [vmem:[%s6414_s12 + $0x228] sm:$0xff] }
 0x397   : > { %2803 = vmatpush.msra.mxu0 %v2689_v54  ;;  %2823 = vmatpush.msra.mxu1 %v2737_v16 }
 0x398   : > { %2846 = vmatpush.msrb.mxu2 %v2776_v51  ;;  %2868 = vmatpush.msrb.mxu3 %v2675_v2 }
 0x399   : > { %2804 = vmatpush.msra.mxu0 %v2686_v35  ;;  %2824 = vmatpush.msra.mxu1 %v2734_v45  ;;  %v2663_v35 = vld [vmem:[%s6414_s12 + $0x98] sm:$0xff] }
 0x39a   : > { %2847 = vmatpush.msrb.mxu2 %v2773_v46  ;;  %2869 = vmatpush.msrb.mxu3 %v2672_v58  ;;  %v2746_v46 = vld [vmem:[%s6414_s12 + $0x330] sm:$0xff] }
 0x39b   : > { %2805 = vmatpush.msra.mxu0 %v2683_v28  ;;  %2825 = vmatpush.msra.mxu1 %v2731_v26  ;;  %v2752_v26 = vld [vmem:[%s6414_s12 + $0x360] sm:$0xff] }
 0x39c   : > { %2848 = vmatpush.msrb.mxu2 %v2770_v59  ;;  %2870 = vmatpush.msrb.mxu3 %v2669_v53  ;;  %v2740_v53 = vld [vmem:[%s6414_s12 + $0x300] sm:$0xff] }
 0x39d   : > { %2806 = vmatpush.msra.mxu0 %v2680_v29  ;;  %2826 = vmatpush.msra.mxu1 %v2728_v47  ;;  %v2647_v29 = vld [vmem:[%s6414_s12 + $0x18] sm:$0xff]  ;;  %v2738_v47 = vld [vmem:[%s6414_s12 + $0x2f0] sm:$0xff] }
 0x39e   : > { %2849 = vmatpush.msrb.mxu2 %v2767_v20  ;;  %2871 = vmatpush.msrb.mxu3 %v2666_v31  ;;  %v2648_v20 = vld [vmem:[%s6414_s12 + $0x20] sm:$0xff] }
 0x39f   : > { %2807 = vmatpush.msra.mxu0 %v2677_v25  ;;  %2827 = vmatpush.msra.mxu1 %v2725_v43  ;;  %v2698_v43 = vld [vmem:[%s6414_s12 + $0x1b0] sm:$0xff] }
 0x3a0   : > { %2850 = vmatpush.msrb.mxu2 %v2764_v61  ;;  %2872 = vmatpush.msrb.mxu3 %v2663_v35  ;;  %v2685_v35 = vld [vmem:[%s6414_s12 + $0x148] sm:$0xff] }
 0x3a1   : > { %2808 = vmatpush.msra.mxu0 %v2674_v56  ;;  %2828 = vmatpush.msra.mxu1 %v2722_v57  ;;  %v2660_v56 = vld [vmem:[%s6414_s12 + $0x80] sm:$0xff] }
 0x3a2   : > { %2851 = vmatpush.msrb.mxu2 %v2761_v1  ;;  %2873 = vmatpush.msrb.mxu3 %v2660_v56  ;;  %v2726_v1 = vld [vmem:[%s6414_s12 + $0x290] sm:$0xff] }
 0x3a3   : > { %2809 = vmatpush.msra.mxu0 %v2671_v27  ;;  %2829 = vmatpush.msra.mxu1 %v2719_v50  ;;  %v2743_v50 = vld [vmem:[%s6414_s12 + $0x318] sm:$0xff]  ;;  %v2714_v56 = vld [vmem:[%s6414_s12 + $0x230] sm:$0xff] }
 0x3a4   : > { %2852 = vmatpush.msrb.mxu2 %v2758_v49  ;;  %2874 = vmatpush.msrb.mxu3 %v2657_v4  ;;  %v2688_v49 = vld [vmem:[%s6414_s12 + $0x160] sm:$0xff] }
 0x3a5   : > { %2810 = vmatpush.msra.mxu0 %v2668_v32  ;;  %2830 = vmatpush.msra.mxu1 %v2716_v24  ;;  %v2749_v32 = vld [vmem:[%s6414_s12 + $0x348] sm:$0xff]  ;;  %v2724_v4 = vld [vmem:[%s6414_s12 + $0x280] sm:$0xff] }
 0x3a7   : > { %2811 = vmatpush.msra.mxu0 %v2665_v22  ;;  %2831 = vmatpush.msra.mxu1 %v2713_v12 }
 0x3a9   : > { %2812 = vmatpush.msra.mxu0 %v2662_v33  ;;  %2832 = vmatpush.msra.mxu1 %v2710_v36  ;;  %v2732_v33 = vld [vmem:[%s6414_s12 + $0x2c0] sm:$0xff]  ;;  %v2783_v36 = vld [vmem:[%s6414_s12 + $0x458] sm:$0xff] }
 0x3ab   : > { %2813 = vmatpush.msra.mxu0 %v2659_v13  ;;  %2833 = vmatpush.msra.mxu1 %v2707_v30  ;;  %v2695_v13 = vld [vmem:[%s6414_s12 + $0x198] sm:$0xff]  ;;  %v2682_v30 = vld [vmem:[%s6414_s12 + $0x130] sm:$0xff] }
 0x3ad   : > { %2814 = vmatpush.msra.mxu0 %v2656_v14  ;;  %2834 = vmatpush.msra.mxu1 %v2704_v62 }
 0x3af   : > { %2815 = vmatpush.msra.mxu0 %v2653_v11  ;;  %2835 = vmatpush.msra.mxu1 %v2701_v8  ;;  %v2673_v8 = vld [vmem:[%s6414_s12 + $0xe8] sm:$0xff] }
 0x3b1   : > { %2816 = vmatpush.msra.mxu0 %v2650_v6  ;;  %2836 = vmatpush.msra.mxu1 %v2698_v43  ;;  %v2723_v6 = vld [vmem:[%s6414_s12 + $0x278] sm:$0xff] }
 0x3b2   : > { %v2667_v43 = vld [vmem:[%s6414_s12 + $0xb8] sm:$0xff] }
 0x3b3   : > { %2817 = vmatpush.msra.mxu0 %v2647_v29  ;;  %2837 = vmatpush.msra.mxu1 %v2695_v13  ;;  %v2777_v29 = vld [vmem:[%s6414_s12 + $0x428] sm:$0xff]  ;;  %v2756_v13 = vld [vmem:[%s6414_s12 + $0x380] sm:$0xff] }
 0x3de   : > { %v5650_v63 = vpop.f32.mrf.mxu0  ;;  %v5664_v42 = vpop.f32.mrf.mxu1 }
 0x3df   : > { %v2136_v60 = vrot.slane %v5664_v42, 7  ;;  %v2644_v42 = vld [vmem:[%s6414_s12] sm:$0xff] }
 0x3e0   : > { %2818 = vmatpush.msra.mxu0 %v2644_v42  ;;  %v2727_v42 = vld [vmem:[%s6414_s12 + $0x298] sm:$0xff] }
 0x3e1   : > { %v2138_v18 = vsel %vm2036_vm4, %v5650_v63, %v2136_v60  ;;  %v2755_v63 = vld [vmem:[%s6414_s12 + $0x378] sm:$0xff]  ;;  %v2729_v60 = vld [vmem:[%s6414_s12 + $0x2a8] sm:$0xff] }
 0x3e2   : > { %2853 = vmatpush.msrb.mxu2 %v2755_v63  ;;  %2883 = vmatpush.msrb.mxu0 %v2738_v47  ;;  %v2708_v47 = vld [vmem:[%s6414_s12 + $0x200] sm:$0xff] }
 0x3e4   : > { %2854 = vmatpush.msrb.mxu2 %v2752_v26  ;;  %v2711_v26 = vld [vmem:[%s6414_s12 + $0x218] sm:$0xff] }
 0x3e6   : > { %v5693_v44 = vpop.f32.mrf.mxu2  ;;  %v5695_v3 = vpop.f32.mrf.mxu3  ;;  %2855 = vmatpush.msrb.mxu2 %v2749_v32  ;;  %v2721_v32 = vld [vmem:[%s6414_s12 + $0x268] sm:$0xff] }
 0x3e7   : > { %v2130_v0 = vpop.f32.mrf.mxu0  ;;  %v5697_v37 = vpop.f32.mrf.mxu1  ;;  %v2233_v10 = vrot.slane %v5693_v44, 7  ;;  %v2234_v15 = vrot.slane %v5695_v3, 6  ;;  %v2654_v44 = vld [vmem:[%s6414_s12 + $0x50] sm:$0xff] }
 0x3e8   : > { %v2137_v38 = vrot.slane %v2130_v0, 6  ;;  %2875 = vmatpush.msrb.mxu3 %v2654_v44  ;;  %2856 = vmatpush.msrb.mxu2 %v2746_v46  ;;  %v2705_v44 = vld [vmem:[%s6414_s12 + $0x1e8] sm:$0xff]  ;;  %v2715_v46 = vld [vmem:[%s6414_s12 + $0x238] sm:$0xff] }
 0x3e9   : > { %v2235_v28 = vsel %vm2036_vm4, %v5697_v37, %v2233_v10  ;;  %v2735_v37 = vld [vmem:[%s6414_s12 + $0x2d8] sm:$0xff]  ;;  %v2645_v10 = vld [vmem:[%s6414_s12 + $0x8] sm:$0xff] }
 0x3ea   : > { %v2139_v40 = vsel %vm2038_vm5, %v2138_v18, %v2137_v38  ;;  %v2236_v27 = vsel %vm2038_vm5, %v2235_v28, %v2234_v15  ;;  %2884 = vmatpush.msrb.mxu0 %v2735_v37  ;;  %2857 = vmatpush.msrb.mxu2 %v2743_v50  ;;  %v2692_v38 = vld [vmem:[%s6414_s12 + $0x180] sm:$0xff]  ;;  %v2739_v18 = vld [vmem:[%s6414_s12 + $0x2f8] sm:$0xff]  ;;  %v2718_v37 = vld [vmem:[%s6414_s12 + $0x250] sm:$0xff] }
 0x3eb   : > { %v2141_v45 = vadd.f32 %v2139_v40, %v2045_v17  ;;  %2838 = vmatpush.msra.mxu1 %v2692_v38  ;;  %v2736_v40 = vld [vmem:[%s6414_s12 + $0x2e0] sm:$0xff]  ;;  %v2661_v50 = vld [vmem:[%s6414_s12 + $0x88] sm:$0xff]  ;;  %v2750_v38 = vld [vmem:[%s6414_s12 + $0x350] sm:$0xff] }
 0x3ec   : > { %2885 = vmatpush.msrb.mxu0 %v2732_v33  ;;  %2858 = vmatpush.msrb.mxu2 %v2740_v53  ;;  %v2720_v15 = vld [vmem:[%s6414_s12 + $0x260] sm:$0xff] }
 0x3ee   : > { %2886 = vmatpush.msrb.mxu0 %v2729_v60  ;;  %v2753_v60 = vld [vmem:[%s6414_s12 + $0x368] sm:$0xff] }
 0x3f0   : > { %2887 = vmatpush.msrb.mxu0 %v2726_v1 }
 0x3f1   : > { %v5699_v5 = vpop.f32.mrf.mxu2  ;;  %v5712_v55 = vpop.f32.mrf.mxu3 }
 0x3f2   : > { %v5710_v48 = vpop.f32.mrf.mxu0  ;;  %v2304_v7 = vpop.f32.mrf.mxu1  ;;  %v2331_v25 = vrot.slane %v5699_v5, 6  ;;  %v2238_v5 = vadd.f32 %v2236_v27, %v2141_v45  ;;  %2888 = vmatpush.msrb.mxu0 %v2723_v6  ;;  %v2774_v45 = vld [vmem:[%s6414_s12 + $0x410] sm:$0xff]  ;;  %v2771_v27 = vld [vmem:[%s6414_s12 + $0x3f8] sm:$0xff] }
 0x3f3   : > { %v2330_v39 = vrot.slane %v2304_v7, 7 }
 0x3f4   : > { %2889 = vmatpush.msrb.mxu0 %v2720_v15  ;;  %v2741_v15 = vld [vmem:[%s6414_s12 + $0x308] sm:$0xff] }
 0x3f5   : > { %v2332_v34 = vsel %vm2036_vm4, %v5710_v48, %v2330_v39  ;;  %v2651_v48 = vld [vmem:[%s6414_s12 + $0x38] sm:$0xff] }
 0x3f6   : > { %v2333_v0 = vsel %vm2038_vm5, %v2332_v34, %v2331_v25  ;;  %2876 = vmatpush.msrb.mxu3 %v2651_v48  ;;  %v2730_v25 = vld [vmem:[%s6414_s12 + $0x2b0] sm:$0xff]  ;;  %v2679_v34 = vld [vmem:[%s6414_s12 + $0x118] sm:$0xff] }
 0x3f7   : > { %v2335_v57 = vadd.f32 %v2333_v0, %v2238_v5  ;;  %v2765_v0 = vld [vmem:[%s6414_s12 + $0x3c8] sm:$0xff]  ;;  %v2702_v5 = vld [vmem:[%s6414_s12 + $0x1d0] sm:$0xff] }
 0x3f8   : > { %2877 = vmatpush.msrb.mxu3 %v2648_v20  ;;  %v2709_v20 = vld [vmem:[%s6414_s12 + $0x208] sm:$0xff] }
 0x3fa   : > { %2878 = vmatpush.msrb.mxu3 %v2645_v10  ;;  %v2655_v10 = vld [vmem:[%s6414_s12 + $0x58] sm:$0xff] }
 0x3fc   : > { %v5764_v41 = vpop.f32.mrf.mxu2  ;;  %v5785_v54 = vpop.f32.mrf.mxu3  ;;  %2943 = vmatpush.msra.mxu3 %v2739_v18 }
 0x3fd   : > { %v2524_v22 = vrot.slane %v5785_v54, 7  ;;  %v2780_v54 = vld [vmem:[%s6414_s12 + $0x440] sm:$0xff] }
 0x3fe   : > { %2944 = vmatpush.msra.mxu3 %v2736_v40 }
 0x3ff   : > { %v2526_v14 = vsel %vm2036_vm4, %v5764_v41, %v2524_v22  ;;  %v2786_v41 = vld [vmem:[%s6414_s12 + $0x470] sm:$0xff] }
 0x400   : > { %2903 = vmatpush.msrb.mxu1 %v2786_v41  ;;  %v2762_v22 = vld [vmem:[%s6414_s12 + $0x3b0] sm:$0xff]  ;;  %v2652_v41 = vld [vmem:[%s6414_s12 + $0x40] sm:$0xff] }
 0x402   : > { %2904 = vmatpush.msrb.mxu1 %v2783_v36  ;;  %v2649_v36 = vld [vmem:[%s6414_s12 + $0x28] sm:$0xff] }
 0x403   : > { %v2401_v23 = vpop.f32.mrf.mxu0  ;;  %v2421_v21 = vpop.f32.mrf.mxu1 }
 0x404   : > { %v2427_v16 = vrot.slane %v2401_v23, 7  ;;  %v2428_v19 = vrot.slane %v2421_v21, 6  ;;  %v2691_v23 = vld [vmem:[%s6414_s12 + $0x178] sm:$0xff]  ;;  %2905 = vmatpush.msrb.mxu1 %v2780_v54  ;;  %v2717_v21 = vld [vmem:[%s6414_s12 + $0x248] sm:$0xff] }
 0x405   : > { %2923 = vmatpush.msra.mxu2 %v2691_v23  ;;  %2890 = vmatpush.msrb.mxu0 %v2717_v21  ;;  %v2700_v23 = vld [vmem:[%s6414_s12 + $0x1c0] sm:$0xff] }
 0x406   : > { %v2429_v51 = vsel %vm2036_vm4, %v5712_v55, %v2427_v16  ;;  %v2733_v16 = vld [vmem:[%s6414_s12 + $0x2c8] sm:$0xff]  ;;  %2906 = vmatpush.msrb.mxu1 %v2777_v29 }
 0x407   : > { %v2430_v55 = vsel %vm2038_vm5, %v2429_v51, %v2428_v19  ;;  %2924 = vmatpush.msra.mxu2 %v2688_v49  ;;  %2945 = vmatpush.msra.mxu3 %v2733_v16  ;;  %v2676_v19 = vld [vmem:[%s6414_s12 + $0x100] sm:$0xff]  ;;  %v2697_v49 = vld [vmem:[%s6414_s12 + $0x1a8] sm:$0xff] }
 0x408   : > { %v2432_v24 = vadd.f32 %v2430_v55, %v2335_v57  ;;  %2891 = vmatpush.msrb.mxu0 %v2714_v56  ;;  %2907 = vmatpush.msrb.mxu1 %v2774_v45  ;;  %v2768_v51 = vld [vmem:[%s6414_s12 + $0x3e0] sm:$0xff]  ;;  %v2699_v55 = vld [vmem:[%s6414_s12 + $0x1b8] sm:$0xff]  ;;  %v2778_v45 = vld [vmem:[%s6414_s12 + $0x430] sm:$0xff] }
 0x409   : > { %2925 = vmatpush.msra.mxu2 %v2685_v35  ;;  %2946 = vmatpush.msra.mxu3 %v2730_v25  ;;  %v2664_v57 = vld [vmem:[%s6414_s12 + $0xa0] sm:$0xff]  ;;  %v2646_v35 = vld [vmem:[%s6414_s12 + $0x10] sm:$0xff]  ;;  %v2787_v25 = vld [vmem:[%s6414_s12 + $0x478] sm:$0xff] }
 0x40a   : > { %2892 = vmatpush.msrb.mxu0 %v2711_v26  ;;  %2908 = vmatpush.msrb.mxu1 %v2771_v27  ;;  %v2784_v56 = vld [vmem:[%s6414_s12 + $0x460] sm:$0xff]  ;;  %v2766_v26 = vld [vmem:[%s6414_s12 + $0x3d0] sm:$0xff]  ;;  %v2763_v27 = vld [vmem:[%s6414_s12 + $0x3b8] sm:$0xff] }
 0x40b   : > { %2926 = vmatpush.msra.mxu2 %v2682_v30  ;;  %2947 = vmatpush.msra.mxu3 %v2727_v42  ;;  %v2772_v42 = vld [vmem:[%s6414_s12 + $0x400] sm:$0xff] }
 0x40c   : > { %2893 = vmatpush.msrb.mxu0 %v2708_v47  ;;  %2909 = vmatpush.msrb.mxu1 %v2768_v51  ;;  %v2754_v47 = vld [vmem:[%s6414_s12 + $0x370] sm:$0xff]  ;;  %v2751_v51 = vld [vmem:[%s6414_s12 + $0x358] sm:$0xff] }
 0x40d   : > { %v2595_v3 = vpop.f32.mrf.mxu2  ;;  %v2615_v9 = vpop.f32.mrf.mxu3  ;;  %2927 = vmatpush.msra.mxu2 %v2679_v34  ;;  %2948 = vmatpush.msra.mxu3 %v2724_v4  ;;  %v2775_v34 = vld [vmem:[%s6414_s12 + $0x418] sm:$0xff]  ;;  %v2757_v4 = vld [vmem:[%s6414_s12 + $0x388] sm:$0xff] }
 0x40e   : > { %v2621_v59 = vrot.slane %v2595_v3, 7  ;;  %v2622_v11 = vrot.slane %v2615_v9, 6  ;;  %v2670_v3 = vld [vmem:[%s6414_s12 + $0xd0] sm:$0xff]  ;;  %2894 = vmatpush.msrb.mxu0 %v2705_v44  ;;  %2910 = vmatpush.msrb.mxu1 %v2765_v0  ;;  %v2759_v9 = vld [vmem:[%s6414_s12 + $0x398] sm:$0xff] }
 0x40f   : > { %2928 = vmatpush.msra.mxu2 %v2676_v19  ;;  %2949 = vmatpush.msra.mxu3 %v2721_v32  ;;  %v2760_v19 = vld [vmem:[%s6414_s12 + $0x3a0] sm:$0xff]  ;;  %v2745_v32 = vld [vmem:[%s6414_s12 + $0x328] sm:$0xff]  ;;  %v2742_v44 = vld [vmem:[%s6414_s12 + $0x310] sm:$0xff] }
 0x410   : > { %2895 = vmatpush.msrb.mxu0 %v2702_v5  ;;  %2911 = vmatpush.msrb.mxu1 %v2762_v22  ;;  %v3152_v0 = vld [vmem:[%s6418_s16 + $0x38] sm:$0xff]  ;;  %v3149_v5 = vld [vmem:[%s6418_s16 + $0x20] sm:$0xff] }
 0x411   : > { %2929 = vmatpush.msra.mxu2 %v2673_v8  ;;  %2950 = vmatpush.msra.mxu3 %v2718_v37  ;;  %v2748_v8 = vld [vmem:[%s6414_s12 + $0x340] sm:$0xff]  ;;  %v3150_v37 = vld [vmem:[%s6418_s16 + $0x28] sm:$0xff]  ;;  %v3148_v22 = vld [vmem:[%s6418_s16 + $0x18] sm:$0xff] }
 0x412   : > { %2896 = vmatpush.msrb.mxu0 %v2699_v55  ;;  %2912 = vmatpush.msrb.mxu1 %v2759_v9  ;;  %v3049_v55 = vld [vmem:[%s6416_s14 + $0x78] sm:$0xff]  ;;  %v6143_v9 = vld [vmem:[%s6415_s13] sm:$0x7] }
 0x413   : > { %v2518_v2 = vpop.f32.mrf.mxu0  ;;  %v2575_v7 = vpop.f32.mrf.mxu1  ;;  %2930 = vmatpush.msra.mxu2 %v2670_v3  ;;  %2951 = vmatpush.msra.mxu3 %v2715_v46  ;;  %v3151_v3 = vld [vmem:[%s6418_s16 + $0x30] sm:$0xff]  ;;  %v3146_v46 = vld [vmem:[%s6418_s16 + $0x8] sm:$0xff] }
 0x414   : > { %v2525_v58 = vrot.slane %v2518_v2, 6  ;;  %v2623_v61 = vsel %vm2036_vm4, %v2575_v7, %v2621_v59  ;;  %v2712_v59 = vld [vmem:[%s6414_s12 + $0x220] sm:$0xff]  ;;  %2913 = vmatpush.msrb.mxu1 %v2756_v13  ;;  %v3064_v13 = vld [vmem:[%s6416_s14 + $0xf0] sm:$0xff] }
 0x415   : > { %v2624_v39 = vsel %vm2038_vm5, %v2623_v61, %v2622_v11  ;;  %2931 = vmatpush.msra.mxu2 %v2667_v43  ;;  %v2696_v7 = vld [vmem:[%s6414_s12 + $0x1a0] sm:$0xff]  ;;  %2952 = vmatpush.msra.mxu3 %v2712_v59  ;;  %v2703_v11 = vld [vmem:[%s6414_s12 + $0x1d8] sm:$0xff]  ;;  %v3147_v43 = vld [vmem:[%s6418_s16 + $0x10] sm:$0xff] }
 0x416   : > { %v2527_v12 = vsel %vm2038_vm5, %v2526_v14, %v2525_v58  ;;  %v2693_v58 = vld [vmem:[%s6414_s12 + $0x188] sm:$0xff]  ;;  %2897 = vmatpush.msrb.mxu0 %v2696_v7  ;;  %v2658_v14 = vld [vmem:[%s6414_s12 + $0x70] sm:$0xff]  ;;  %2914 = vmatpush.msrb.mxu1 %v2753_v60  ;;  %v3065_v59 = vld [vmem:[%s6416_s14 + $0xf8] sm:$0xff] }
 0x417   : > { %v2529_v31 = vadd.f32 %v2527_v12, %v2432_v24  ;;  %2932 = vmatpush.msra.mxu2 %v2664_v57  ;;  %v2706_v24 = vld [vmem:[%s6414_s12 + $0x1f0] sm:$0xff]  ;;  %2953 = vmatpush.msra.mxu3 %v2709_v20  ;;  %v2747_v12 = vld [vmem:[%s6414_s12 + $0x338] sm:$0xff]  ;;  %v2797_v57 = vperm.slane %v6143_v9, 0  ;;  %v3046_v7 = vld [vmem:[%s6416_s14 + $0x60] sm:$0xff] }
 0x418   : > { %2898 = vmatpush.msrb.mxu0 %v2693_v58  ;;  %2915 = vmatpush.msrb.mxu1 %v2750_v38  ;;  %v3045_v58 = vld [vmem:[%s6416_s14 + $0x58] sm:$0xff]  ;;  %v3063_v60 = vld [vmem:[%s6416_s14 + $0xe8] sm:$0xff] }
 0x419   : > { %v5899_v17 = vadd.f32 %v2624_v39, %v2529_v31  ;;  %2933 = vmatpush.msra.mxu2 %v2661_v50  ;;  %2954 = vmatpush.msra.mxu3 %v2706_v24  ;;  %v2744_v39 = vld [vmem:[%s6414_s12 + $0x320] sm:$0xff]  ;;  %v3044_v24 = vld [vmem:[%s6416_s14 + $0x50] sm:$0xff] }
 0x41a   : > { %2916 = vmatpush.msrb.mxu1 %v2747_v12 }
 0x41b   : > { %v2628_v28 = vand.u32 2147483647, %v5899_v17  ;;  %2934 = vmatpush.msra.mxu2 %v2658_v14  ;;  %2955 = vmatpush.msra.mxu3 %v2703_v11  ;;  %v2627_v6 = vmax.f32 %v5899_v17, 0.0  ;;  %v2798_v14 = vperm.slane %v6143_v9, 1 }
 0x41c   : > { %2917 = vmatpush.msrb.mxu1 %v2744_v39 }
 0x41d   : > { %v2629_v63 = vsub.f32 0.0, %v2628_v28  ;;  %2935 = vmatpush.msra.mxu2 %v2655_v10  ;;  %2956 = vmatpush.msra.mxu3 %v2700_v23  ;;  %v2694_v28 = vld [vmem:[%s6414_s12 + $0x190] sm:$0xff]  ;;  %v3061_v10 = vld [vmem:[%s6416_s14 + $0xd8] sm:$0xff]  ;;  %v3042_v23 = vld [vmem:[%s6416_s14 + $0x40] sm:$0xff] }
 0x41e   : > { %2918 = vmatpush.msrb.mxu1 %v2741_v15 }
 0x41f   : > { %v2630_v62 = vmul.f32 1.442695, %v2629_v63  ;;  %2936 = vmatpush.msra.mxu2 %v2652_v41  ;;  %2957 = vmatpush.msra.mxu3 %v2697_v49  ;;  %v3059_v49 = vld [vmem:[%s6416_s14 + $0xc8] sm:$0xff] }
 0x421   : > { %3878 = vpow2.f32 %v2630_v62  ;;  %2937 = vmatpush.msra.mxu2 %v2649_v36  ;;  %2958 = vmatpush.msra.mxu3 %v2694_v28  ;;  %v2769_v62 = vld [vmem:[%s6414_s12 + $0x3e8] sm:$0xff]  ;;  %v3041_v36 = vld [vmem:[%s6416_s14 + $0x38] sm:$0xff]  ;;  %v3058_v28 = vld [vmem:[%s6416_s14 + $0xc0] sm:$0xff] }
 0x423   : > { %2938 = vmatpush.msra.mxu2 %v2646_v35  ;;  %v3040_v35 = vld [vmem:[%s6416_s14 + $0x30] sm:$0xff] }
 0x427   : > { %v3879_v48 = vpop.eup %3878 }
 0x428   : > { %v2632_v33 = vadd.f32 1.0, %v3879_v48  ;;  %v2635_v2 = vmul.f32 -0.5, %v3879_v48  ;;  %v2638_v53 = vand.u32 2147483647, %v3879_v48 }
 0x42a   : > { %3880 = vlog2.f32 %v2632_v33  ;;  %v2636_v61 = vadd.f32 1.0, %v2635_v2  ;;  %vm2639_vm13 = vcmp.lt.f32.partialorder %v2638_v53, 0.0004427343  ;;  %v3048_v33 = vld [vmem:[%s6416_s14 + $0x70] sm:$0xff]  ;;  %v3043_v53 = vld [vmem:[%s6416_s14 + $0x48] sm:$0xff] }
 0x42c   : > { %v2637_v18 = vmul.f32 %v3879_v48, %v2636_v61  ;;  %v3145_v48 = vld [vmem:[%s6418_s16] sm:$0xff] }
 0x42d   : > { %v3062_v61 = vld [vmem:[%s6416_s14 + $0xe0] sm:$0xff] }
 0x430   : > { %v3881_v1 = vpop.eup %3880 }
 0x431   : > { %v2634_v31 = vmul.f32 0.6931472, %v3881_v1 }
 0x433   : > { %v2640_v40 = vsel %vm2639_vm13, %v2637_v18, %v2634_v31  ;;  %v3060_v31 = vld [vmem:[%s6416_s14 + $0xd0] sm:$0xff] }
 0x434   : > { %v2641_v54 = vadd.f32 %v2640_v40, %v2627_v6 }
 0x436   : > { %3882 = vtanh.f32 %v2641_v54 }
 0x43c   : > { %v3883_v16 = vpop.eup %3882 }
 0x43d   : > { %v2643_v21 = vmul.f32 %v3883_v16, %v5899_v17  ;;  %v2781_v17 = vld [vmem:[%s6414_s12 + $0x448] sm:$0xff] }
 0x43f   : > { %v2790_v29 = vperm.slane %v2643_v21, 0  ;;  %v2791_v30 = vperm.slane %v2643_v21, 1  ;;  %v2792_v63 = vperm.slane %v2643_v21, 2 }
 0x441   : > { %2819 = vmatmul.f32.vlgmr.msra.gmra.mxu0 %v2790_v29  ;;  %2839 = vmatmul.f32.vlgmr.msra.gmra.mxu1 %v2791_v30 }
 0x442   : > { %2859 = vmatmul.f32.vlgmr.msrb.gmra.mxu2 %v2792_v63  ;;  %2879 = vmatmul.f32.vlgmr.msrb.gmra.mxu3 %v2790_v29 }
 0x443   : > { %2963 = vmatpush.msra.mxu0 %v2787_v25  ;;  %3083 = vmatpush.msra.mxu1 %v3049_v55  ;;  %v3038_v25 = vld [vmem:[%s6416_s14 + $0x20] sm:$0xff] }
 0x444   : > { %3103 = vmatpush.msrb.mxu2 %v3065_v59  ;;  %v3076_v59 = vld [vmem:[%s6416_s14 + $0x150] sm:$0xff] }
 0x445   : > { %2964 = vmatpush.msra.mxu0 %v2784_v56  ;;  %3084 = vmatpush.msra.mxu1 %v3048_v33  ;;  %v3056_v56 = vld [vmem:[%s6416_s14 + $0xb0] sm:$0xff] }
 0x446   : > { %3104 = vmatpush.msrb.mxu2 %v3064_v13  ;;  %v3075_v13 = vld [vmem:[%s6416_s14 + $0x148] sm:$0xff] }
 0x447   : > { %2965 = vmatpush.msra.mxu0 %v2781_v17 }
 0x448   : > { %3105 = vmatpush.msrb.mxu2 %v3063_v60 }
 0x449   : > { %2966 = vmatpush.msra.mxu0 %v2778_v45  ;;  %2919 = vmatmul.f32.vlgmr.msrb.gmra.mxu1 %v2792_v63  ;;  %v3037_v45 = vld [vmem:[%s6416_s14 + $0x18] sm:$0xff] }
 0x44a   : > { %2899 = vmatmul.f32.vlgmr.msrb.gmra.mxu0 %v2791_v30  ;;  %2939 = vmatmul.f32.vlgmr.msra.gmra.mxu2 %v2790_v29  ;;  %v3039_v29 = vld [vmem:[%s6416_s14 + $0x28] sm:$0xff] }
 0x44b   : > { %2959 = vmatmul.f32.vlgmr.msra.gmra.mxu3 %v2791_v30  ;;  %2967 = vmatpush.msra.mxu0 %v2775_v34  ;;  %v3057_v30 = vld [vmem:[%s6416_s14 + $0xb8] sm:$0xff]  ;;  %v3055_v34 = vld [vmem:[%s6416_s14 + $0xa8] sm:$0xff] }
 0x44c   : > { %3106 = vmatpush.msrb.mxu2 %v3062_v61 }
 0x44d   : > { %2968 = vmatpush.msra.mxu0 %v2772_v42  ;;  %v3081_v42 = vld [vmem:[%s6416_s14 + $0x178] sm:$0xff] }
 0x44e   : > { %3107 = vmatpush.msrb.mxu2 %v3061_v10  ;;  %3123 = vmatpush.msrb.mxu3 %v3081_v42  ;;  %v3066_v42 = vld [vmem:[%s6416_s14 + $0x100] sm:$0xff] }
 0x44f   : > { %2969 = vmatpush.msra.mxu0 %v2769_v62  ;;  %v3036_v62 = vld [vmem:[%s6416_s14 + $0x10] sm:$0xff] }
 0x450   : > { %3108 = vmatpush.msrb.mxu2 %v3060_v31 }
 0x451   : > { %2970 = vmatpush.msra.mxu0 %v2766_v26  ;;  %v3054_v26 = vld [vmem:[%s6416_s14 + $0xa0] sm:$0xff] }
 0x452   : > { %3109 = vmatpush.msrb.mxu2 %v3059_v49 }
 0x453   : > { %2971 = vmatpush.msra.mxu0 %v2763_v27  ;;  %v3080_v27 = vld [vmem:[%s6416_s14 + $0x170] sm:$0xff] }
 0x454   : > { %3110 = vmatpush.msrb.mxu2 %v3058_v28  ;;  %3124 = vmatpush.msrb.mxu3 %v3080_v27  ;;  %v3070_v28 = vld [vmem:[%s6416_s14 + $0x120] sm:$0xff]  ;;  %v3201_v27 = vld [vmem:[%s6420_s18 + $0x38] sm:$0xff] }
 0x455   : > { %2972 = vmatpush.msra.mxu0 %v2760_v19 }
 0x456   : > { %3111 = vmatpush.msrb.mxu2 %v3057_v30  ;;  %v3068_v30 = vld [vmem:[%s6416_s14 + $0x110] sm:$0xff] }
 0x457   : > { %2973 = vmatpush.msra.mxu0 %v2757_v4  ;;  %v3035_v4 = vld [vmem:[%s6416_s14 + $0x8] sm:$0xff] }
 0x458   : > { %3112 = vmatpush.msrb.mxu2 %v3056_v56  ;;  %v3067_v56 = vld [vmem:[%s6416_s14 + $0x108] sm:$0xff] }
 0x459   : > { %2974 = vmatpush.msra.mxu0 %v2754_v47  ;;  %v3053_v47 = vld [vmem:[%s6416_s14 + $0x98] sm:$0xff] }
 0x45a   : > { %3113 = vmatpush.msrb.mxu2 %v3055_v34 }
 0x45b   : > { %2975 = vmatpush.msra.mxu0 %v2751_v51 }
 0x45c   : > { %3114 = vmatpush.msrb.mxu2 %v3054_v26 }
 0x45d   : > { %2976 = vmatpush.msra.mxu0 %v2748_v8  ;;  %v3079_v8 = vld [vmem:[%s6416_s14 + $0x168] sm:$0xff] }
 0x45e   : > { %3115 = vmatpush.msrb.mxu2 %v3053_v47  ;;  %3125 = vmatpush.msrb.mxu3 %v3079_v8  ;;  %v3198_v8 = vld [vmem:[%s6420_s18 + $0x20] sm:$0xff] }
 0x45f   : > { %2977 = vmatpush.msra.mxu0 %v2745_v32 }
 0x461   : > { %2978 = vmatpush.msra.mxu0 %v2742_v44  ;;  %v2799_v44 = vperm.slane %v6143_v9, 2 }
 0x462   : > { %2979 = vmatmul.f32.vlgmr.msra.gmra.mxu0 %v2792_v63 }
 0x463   : > { %3165 = vmatpush.msrb.mxu0 %v3152_v0  ;;  %v3034_v0 = vld [vmem:[%s6416_s14] sm:$0xff] }
 0x465   : > { %3166 = vmatpush.msrb.mxu0 %v3151_v3  ;;  %v3052_v3 = vld [vmem:[%s6416_s14 + $0x90] sm:$0xff] }
 0x466   : > { %3116 = vmatpush.msrb.mxu2 %v3052_v3 }
 0x467   : > { %3167 = vmatpush.msrb.mxu0 %v3150_v37 }
 0x469   : > { %3168 = vmatpush.msrb.mxu0 %v3149_v5  ;;  %v3078_v5 = vld [vmem:[%s6416_s14 + $0x160] sm:$0xff] }
 0x46a   : > { %3126 = vmatpush.msrb.mxu3 %v3078_v5 }
 0x46b   : > { %3169 = vmatpush.msrb.mxu0 %v3148_v22 }
 0x46d   : > { %3170 = vmatpush.msrb.mxu0 %v3147_v43  ;;  %v3051_v43 = vld [vmem:[%s6416_s14 + $0x88] sm:$0xff] }
 0x46e   : > { %3117 = vmatpush.msrb.mxu2 %v3051_v43 }
 0x46f   : > { %3171 = vmatpush.msrb.mxu0 %v3146_v46 }
 0x471   : > { %3172 = vmatpush.msrb.mxu0 %v3145_v48  ;;  %v3077_v48 = vld [vmem:[%s6416_s14 + $0x158] sm:$0xff] }
 0x472   : > { %3620 = vmatmul.msk.f32.vlgmr.msrb.gmra.mxu0 %vm732_vm6, %v5357_v52  ;;  %v3047_v52 = vld [vmem:[%s6416_s14 + $0x68] sm:$0xff]  ;;  %3127 = vmatpush.msrb.mxu3 %v3077_v48 }
 0x473   : > { %3085 = vmatpush.msra.mxu1 %v3047_v52  ;;  %v3195_v48 = vld [vmem:[%s6420_s18 + $0x8] sm:$0xff] }
 0x474   : > { %3128 = vmatpush.msrb.mxu3 %v3076_v59 }
 0x475   : > { %3086 = vmatpush.msra.mxu1 %v3046_v7 }
 0x476   : > { %3129 = vmatpush.msrb.mxu3 %v3075_v13 }
 0x477   : > { %3087 = vmatpush.msra.mxu1 %v3045_v58 }
 0x479   : > { %3088 = vmatpush.msra.mxu1 %v3044_v24 }
 0x47b   : > { %3089 = vmatpush.msra.mxu1 %v3043_v53 }
 0x47d   : > { %3090 = vmatpush.msra.mxu1 %v3042_v23 }
 0x47f   : > { %3091 = vmatpush.msra.mxu1 %v3041_v36 }
 0x481   : > { %3092 = vmatpush.msra.mxu1 %v3040_v35 }
 0x483   : > { %3093 = vmatpush.msra.mxu1 %v3039_v29 }
 0x485   : > { %3094 = vmatpush.msra.mxu1 %v3038_v25 }
 0x487   : > { %3095 = vmatpush.msra.mxu1 %v3037_v45 }
 0x489   : > { %3096 = vmatpush.msra.mxu1 %v3036_v62 }
 0x48b   : > { %3097 = vmatpush.msra.mxu1 %v3035_v4 }
 0x48d   : > { %3098 = vmatpush.msra.mxu1 %v3034_v0  ;;  %v3197_v0 = vld [vmem:[%s6420_s18 + $0x18] sm:$0xff] }
 0x48f   : > { %3217 = vmatpush.msrb.mxu1 %v3201_v27 }
 0x4be   : > { %v2820_v2 = vpop.f32.mrf.mxu0  ;;  %v2840_v50 = vpop.f32.mrf.mxu1 }
 0x4bf   : > { %v2821_v20 = vadd.f32 %v2820_v2, %v2797_v57  ;;  %v3050_v57 = vld [vmem:[%s6416_s14 + $0x80] sm:$0xff] }
 0x4c0   : > { %3118 = vmatpush.msrb.mxu2 %v3050_v57 }
 0x4c1   : > { %v2841_v38 = vadd.f32 %v2840_v50, %v2821_v20 }
 0x4c5   : > { %v2860_v11 = vpop.f32.mrf.mxu2  ;;  %v2880_v12 = vpop.f32.mrf.mxu3 }
 0x4c6   : > { %v6180_v1 = vadd.f32 %v2860_v11, %v2841_v38  ;;  %v2881_v41 = vadd.f32 %v2880_v12, %v2798_v14  ;;  %v2920_v40 = vpop.f32.mrf.mxu1  ;;  %v3074_v38 = vld [vmem:[%s6416_s14 + $0x140] sm:$0xff] }
 0x4c7   : > { %v2900_v18 = vpop.f32.mrf.mxu0  ;;  %3130 = vmatpush.msrb.mxu3 %v3074_v38 }
 0x4c8   : > { %v2986_v39 = vand.u32 2147483647, %v6180_v1  ;;  %v2901_v6 = vadd.f32 %v2900_v18, %v2881_v41  ;;  %v2983_v14 = vmax.f32 %v6180_v1, 0.0  ;;  %v3073_v41 = vld [vmem:[%s6416_s14 + $0x138] sm:$0xff] }
 0x4c9   : > { %3131 = vmatpush.msrb.mxu3 %v3073_v41 }
 0x4ca   : > { %v2989_v15 = vsub.f32 0.0, %v2986_v39  ;;  %v6195_v54 = vadd.f32 %v2920_v40, %v2901_v6  ;;  %v3072_v6 = vld [vmem:[%s6416_s14 + $0x130] sm:$0xff] }
 0x4cb   : > { %3132 = vmatpush.msrb.mxu3 %v3072_v6 }
 0x4cc   : > { %v2992_v16 = vmul.f32 1.442695, %v2989_v15  ;;  %v2987_v21 = vand.u32 2147483647, %v6195_v54  ;;  %v2984_v39 = vmax.f32 %v6195_v54, 0.0  ;;  %v3071_v15 = vld [vmem:[%s6416_s14 + $0x128] sm:$0xff] }
 0x4cd   : > { %v2940_v37 = vpop.f32.mrf.mxu2  ;;  %3133 = vmatpush.msrb.mxu3 %v3071_v15 }
 0x4ce   : > { %3884 = vpow2.f32 %v2992_v16  ;;  %v2990_v63 = vsub.f32 0.0, %v2987_v21  ;;  %v2941_v33 = vadd.f32 %v2940_v37, %v2799_v44  ;;  %v2960_v7 = vpop.f32.mrf.mxu3  ;;  %v3069_v21 = vld [vmem:[%s6416_s14 + $0x118] sm:$0xff] }
 0x4cf   : > { %3134 = vmatpush.msrb.mxu3 %v3070_v28  ;;  %v3250_v28 = vld [vmem:[%s6422_s20 + $0x20] sm:$0xff] }
 0x4d0   : > { %v2994_v17 = vmul.f32 1.442695, %v2990_v63  ;;  %v2961_v60 = vadd.f32 %v2960_v7, %v2941_v33  ;;  %v3691_v63 = vld [vmem:[%s6419_s17] ss:$0 sm:$0xff] }
 0x4d1   : > { %3135 = vmatpush.msrb.mxu3 %v3069_v21  ;;  %v3249_v21 = vld [vmem:[%s6422_s20 + $0x18] sm:$0xff] }
 0x4d2   : > { %3886 = vpow2.f32 %v2994_v17 }
 0x4d3   : > { %3136 = vmatpush.msrb.mxu3 %v3068_v30  ;;  %v3247_v30 = vld [vmem:[%s6422_s20 + $0x8] sm:$0xff] }
 0x4d4   : > { %v3885_v19 = vpop.eup %3884 }
 0x4d5   : > { %v2998_v51 = vadd.f32 1.0, %v3885_v19  ;;  %v3001_v32 = vmul.f32 -0.5, %v3885_v19  ;;  %v3004_v52 = vand.u32 2147483647, %v3885_v19  ;;  %3137 = vmatpush.msrb.mxu3 %v3067_v56 }
 0x4d7   : > { %3888 = vlog2.f32 %v2998_v51  ;;  %v3002_v55 = vadd.f32 1.0, %v3001_v32  ;;  %vm3005_vm14 = vcmp.lt.f32.partialorder %v3004_v52, 0.0004427343  ;;  %3138 = vmatpush.msrb.mxu3 %v3066_v42  ;;  %v3199_v51 = vld [vmem:[%s6420_s18 + $0x28] sm:$0xff] }
 0x4d8   : > { %v3887_v22 = vpop.eup %3886 }
 0x4d9   : > { %v3007_v46 = vadd.f32 1.0, %v3887_v22  ;;  %v3010_v9 = vmul.f32 -0.5, %v3887_v22  ;;  %v3003_v20 = vmul.f32 %v3885_v19, %v3002_v55  ;;  %v3013_v24 = vand.u32 2147483647, %v3887_v22 }
 0x4db   : > { %3890 = vlog2.f32 %v3007_v46  ;;  %v3011_v58 = vadd.f32 1.0, %v3010_v9  ;;  %vm3014_vm15 = vcmp.lt.f32.partialorder %v3013_v24, 0.0004427343  ;;  %v3194_v9 = vld [vmem:[%s6420_s18] sm:$0xff] }
 0x4dd   : > { %v3889_v2 = vpop.eup %3888  ;;  %v3012_v31 = vmul.f32 %v3887_v22, %v3011_v58  ;;  %v3196_v22 = vld [vmem:[%s6420_s18 + $0x10] sm:$0xff] }
 0x4de   : > { %v3000_v50 = vmul.f32 0.6931472, %v3889_v2 }
 0x4df   : > { %v2980_v61 = vpop.f32.mrf.mxu0 }
 0x4e0   : > { %v3006_v53 = vsel %vm3005_vm14, %v3003_v20, %v3000_v50  ;;  %v6272_v10 = vadd.f32 %v2980_v61, %v2961_v60 }
 0x4e1   : > { %v3891_v11 = vpop.eup %3890  ;;  %v3025_v12 = vadd.f32 %v3006_v53, %v2983_v14  ;;  %v3082_v53 = vld [vmem:[%s6486_s28] sm:$0x1] }
 0x4e2   : > { %v3009_v23 = vmul.f32 0.6931472, %v3891_v11  ;;  %v2988_v18 = vand.u32 2147483647, %v6272_v10  ;;  %v2985_v43 = vmax.f32 %v6272_v10, 0.0 }
 0x4e3   : > { %3892 = vtanh.f32 %v3025_v12 }
 0x4e4   : > { %v3015_v36 = vsel %vm3014_vm15, %v3012_v31, %v3009_v23  ;;  %v2991_v49 = vsub.f32 0.0, %v2988_v18  ;;  %v3692_v18 = vld [vmem:[%s6421_s19] ss:$0 sm:$0xff] }
 0x4e5   : > { %v3026_v40 = vadd.f32 %v3015_v36, %v2984_v39  ;;  %v3253_v36 = vld [vmem:[%s6422_s20 + $0x38] sm:$0xff] }
 0x4e6   : > { %v2996_v35 = vmul.f32 1.442695, %v2991_v49  ;;  %3269 = vmatpush.msra.mxu2 %v3253_v36 }
 0x4e7   : > { %3894 = vtanh.f32 %v3026_v40  ;;  %v3252_v40 = vld [vmem:[%s6422_s20 + $0x30] sm:$0xff] }
 0x4e8   : > { %3896 = vpow2.f32 %v2996_v35  ;;  %3270 = vmatpush.msra.mxu2 %v3252_v40  ;;  %v3251_v35 = vld [vmem:[%s6422_s20 + $0x28] sm:$0xff] }
 0x4e9   : > { %v3893_v16 = vpop.eup %3892 }
 0x4ea   : > { %v3031_v29 = vmul.f32 %v3893_v16, %v6180_v1  ;;  %3271 = vmatpush.msra.mxu2 %v3251_v35 }
 0x4ec   : > { %3099 = vmatmul.f32.vlgmr.msra.gmra.mxu1 %v3031_v29  ;;  %3272 = vmatpush.msra.mxu2 %v3250_v28  ;;  %v3248_v29 = vld [vmem:[%s6422_s20 + $0x10] sm:$0xff] }
 0x4ed   : > { %v3895_v25 = vpop.eup %3894 }
 0x4ee   : > { %v3897_v17 = vpop.eup %3896  ;;  %v3032_v45 = vmul.f32 %v3895_v25, %v6195_v54  ;;  %v3200_v54 = vld [vmem:[%s6420_s18 + $0x30] sm:$0xff]  ;;  %3273 = vmatpush.msra.mxu2 %v3249_v21 }
 0x4ef   : > { %v3016_v1 = vadd.f32 1.0, %v3897_v17  ;;  %v3174_v34 = vpop.f32.mrf.mxu0  ;;  %v3019_v62 = vmul.f32 -0.5, %v3897_v17  ;;  %3218 = vmatpush.msrb.mxu1 %v3200_v54  ;;  %v3022_v32 = vand.u32 2147483647, %v3897_v17 }
 0x4f0   : > { %v3175_v26 = vadd.f32 %v3691_v63, %v3174_v34  ;;  %3119 = vmatmul.f32.vlgmr.msrb.gmra.mxu2 %v3032_v45  ;;  %v3246_v63 = vld [vmem:[%s6422_s20] sm:$0xff] }
 0x4f1   : > { %3898 = vlog2.f32 %v3016_v1  ;;  %v3020_v4 = vadd.f32 1.0, %v3019_v62  ;;  %3219 = vmatpush.msrb.mxu1 %v3199_v51  ;;  %vm3023_vm0 = vcmp.lt.f32.partialorder %v3022_v32, 0.0004427343  ;;  %3274 = vmatpush.msra.mxu2 %v3248_v29 }
 0x4f2   : > { %v3178_v19 = vand.u32 2147483647, %v3175_v26  ;;  %v3177_v60 = vmax.f32 %v3175_v26, 0.0 }
 0x4f3   : > { %3220 = vmatpush.msrb.mxu1 %v3198_v8  ;;  %v3021_v5 = vmul.f32 %v3897_v17, %v3020_v4  ;;  %3275 = vmatpush.msra.mxu2 %v3247_v30 }
 0x4f4   : > { %v3179_v47 = vsub.f32 0.0, %v3178_v19 }
 0x4f5   : > { %3221 = vmatpush.msrb.mxu1 %v3197_v0  ;;  %3276 = vmatpush.msra.mxu2 %v3246_v63 }
 0x4f6   : > { %v3180_v44 = vmul.f32 1.442695, %v3179_v47  ;;  %v3693_v47 = vld [vmem:[%s6423_s21] ss:$0 sm:$0xff] }
 0x4f7   : > { %v3899_v3 = vpop.eup %3898  ;;  %3222 = vmatpush.msrb.mxu1 %v3196_v22 }
 0x4f8   : > { %v3018_v37 = vmul.f32 0.6931472, %v3899_v3  ;;  %3900 = vpow2.f32 %v3180_v44 }
 0x4f9   : > { %3223 = vmatpush.msrb.mxu1 %v3195_v48 }
 0x4fa   : > { %v3024_v46 = vsel %vm3023_vm0, %v3021_v5, %v3018_v37 }
 0x4fb   : > { %v3027_v55 = vadd.f32 %v3024_v46, %v2985_v43  ;;  %3224 = vmatpush.msrb.mxu1 %v3194_v9 }
 0x4fd   : > { %3902 = vtanh.f32 %v3027_v55 }
 0x4fe   : > { %v3901_v33 = vpop.eup %3900 }
 0x4ff   : > { %v3182_v57 = vadd.f32 1.0, %v3901_v33  ;;  %v3185_v52 = vmul.f32 -0.5, %v3901_v33  ;;  %v3188_v13 = vand.u32 2147483647, %v3901_v33 }
 0x501   : > { %3904 = vlog2.f32 %v3182_v57  ;;  %v3186_v7 = vadd.f32 1.0, %v3185_v52  ;;  %vm3189_vm1 = vcmp.lt.f32.partialorder %v3188_v13, 0.0004427343 }
 0x503   : > { %v3903_v59 = vpop.eup %3902  ;;  %v3187_v58 = vmul.f32 %v3901_v33, %v3186_v7 }
 0x504   : > { %v3033_v2 = vmul.f32 %v3903_v59, %v6272_v10 }
 0x506   : > { %3139 = vmatmul.f32.vlgmr.msrb.gmra.mxu3 %v3033_v2 }
 0x507   : > { %v3905_v50 = vpop.eup %3904 }
 0x508   : > { %v3184_v20 = vmul.f32 0.6931472, %v3905_v50 }
 0x50a   : > { %v3190_v14 = vsel %vm3189_vm1, %v3187_v58, %v3184_v20 }
 0x50b   : > { %v3191_v24 = vadd.f32 %v3190_v14, %v3177_v60 }
 0x50d   : > { %3906 = vtanh.f32 %v3191_v24 }
 0x513   : > { %v3907_v61 = vpop.eup %3906 }
 0x514   : > { %v3193_v38 = vmul.f32 %v3907_v61, %v3175_v26 }
 0x516   : > { %3621 = vmatmul.msk.f32.vlgmr.msrb.gmra.mxu1 %vm732_vm6, %v3193_v38 }
 0x569   : > { %v3100_v10 = vpop.f32.mrf.mxu1 }
 0x56a   : > { %v3101_v12 = vadd.f32 %v3100_v10, %v3082_v53 }
 0x573   : > { %v3120_v11 = vpop.f32.mrf.mxu2 }
 0x574   : > { %v3121_v41 = vadd.f32 %v3120_v11, %v3101_v12 }
 0x589   : > { %v3140_v23 = vpop.f32.mrf.mxu3 }
 0x58a   : > { %v3141_v31 = vadd.f32 %v3140_v23, %v3121_v41 }
 0x58c   : > { %3144 = vst.msk [vmem:[%s699_s4] sm:$0x1] %vm3143_vm2, %v3141_v31 }
 0x593   : > { %v3226_v39 = vpop.f32.mrf.mxu1 }
 0x594   : > { %v3227_v6 = vadd.f32 %v3692_v18, %v3226_v39 }
 0x596   : > { %v3230_v49 = vand.u32 2147483647, %v3227_v6  ;;  %v3229_v26 = vmax.f32 %v3227_v6, 0.0 }
 0x598   : > { %v3231_v15 = vsub.f32 0.0, %v3230_v49 }
 0x59a   : > { %v3232_v16 = vmul.f32 1.442695, %v3231_v15 }
 0x59c   : > { %3908 = vpow2.f32 %v3232_v16 }
 0x5a2   : > { %v3909_v25 = vpop.eup %3908 }
 0x5a3   : > { %v3234_v56 = vadd.f32 1.0, %v3909_v25  ;;  %v3237_v17 = vmul.f32 -0.5, %v3909_v25  ;;  %v3240_v1 = vand.u32 2147483647, %v3909_v25 }
 0x5a5   : > { %3910 = vlog2.f32 %v3234_v56  ;;  %v3238_v45 = vadd.f32 1.0, %v3237_v17  ;;  %vm3241_vm8 = vcmp.lt.f32.partialorder %v3240_v1, 0.0004427343 }
 0x5a7   : > { %v3239_v62 = vmul.f32 %v3909_v25, %v3238_v45 }
 0x5ab   : > { %v3911_v34 = vpop.eup %3910 }
 0x5ac   : > { %v3236_v42 = vmul.f32 0.6931472, %v3911_v34 }
 0x5ae   : > { %v3242_v27 = vsel %vm3241_vm8, %v3239_v62, %v3236_v42 }
 0x5af   : > { %v3243_v19 = vadd.f32 %v3242_v27, %v3229_v26 }
 0x5b1   : > { %3912 = vtanh.f32 %v3243_v19 }
 0x5b7   : > { %v3913_v54 = vpop.eup %3912 }
 0x5b8   : > { %v3245_v4 = vmul.f32 %v3913_v54, %v3227_v6 }
 0x5ba   : > { %3622 = vmatmul.msk.f32.vlgmr.msra.gmra.mxu2 %vm732_vm6, %v3245_v4 }
 0x63d   : > { %v3278_v51 = vpop.f32.mrf.mxu2 }
 0x63e   : > { %v3279_v8 = vadd.f32 %v3693_v47, %v3278_v51 }
 0x640   : > { %3282 = vst.msk [vmem:[%s686_s25] sm:$0x3f] %vm3281_vm9, %v3279_v8 }
 0x641   : > { %3955 = shalt.err (!%p3952_p3)
}
 0x642   : > { %3630 = dma.vmem_to_hbm [thread:$0]  (%p4162_p5), %s3300_s26, 128, %s3302_s27, %s3284_s5  }
 0x643 PF: > { %s6488_s0 = sld [smem:[#allocation10_spill]] }
 0x644   : > { %s6489_s30 = sld [smem:[#allocation8_spill]] }
 0x649   : > { %p3636_p4 = scmp.ge.s32.totalorder %s6488_s0, 2 }
 0x64a   : > { %s3316_s25 = sand.u32 1, %s6489_s30  }
 0x64b   : > { %p3633_p7 = pnand %p3636_p4, %p4166_p6  ;;  %s3317_s2 = scalar_lea.sflag [#allocation5], %s3316_s25 }
 0x64d   : > { %p3634_p8 = pneg %p3633_p7 }
 0x64f   : > { %3975 = dma.done.wait (%p3634_p8), %s3317_s2, 128  }
 0x650   : > { %3977 = vsyncadd (%p3634_p8), %s3317_s2, 4294967168  ;;  %s6491_s2 = sld [smem:[#allocation11_spill]]  ;;  %s6494_s5 = smov %s3984_s1 }
 0x651   : > { %s6492_s6 = sld [smem:[#allocation9_spill]] }
 0x652   : > { %s6493_s26 = sld [smem:[#allocation12_spill]] }
 0x656   : > { %p42_p9 = scmp.ge.s32.totalorder %s6491_s2, 5  }
 0x657   : > { %s6495_s1 = smov %s6492_s6 }
 0x658   :  { %44 = sbr.rel (!%p42_p9) target bundleno = 24 (0x18), region = 161 }
 0x65d   :  { %3329 = vsyncpa [#allocation5], 1 }
 0x65e   :  { %3331 = vsyncpa [#allocation5 + $0x1], 1 }

</bundles_post_ra>
